<compile_context>
chip_gen: v6e
topology: v6e:2x2x1
jax: 0.10.0
libtpu: 0.0.40
codegen_flags: <defaults>
</compile_context>

<pallas_src>
import jax
import jax.numpy as jnp
from jax import lax
from jax.experimental import pallas as pl
from jax.experimental.pallas import tpu as pltpu

DROPOUT_VALUE = 0.05   # `dropout_value` from the PyTorch script; unused at eval time.
BN_EPS = 1e-5
WEIGHT_DTYPE = jnp.bfloat16   # MXU operand dtype for conv weights (f32 accumulate)


# --------------------------- fused forward kernel ---------------------------

def fused_net_kernel(x_ref, b1_ref, bn1_ref, b2_ref, bn2_ref, b3_ref,
                     s1_ref, g1_ref, b4_ref, bn4_ref, b5_ref,
                     s2_ref, g2_ref, b6_ref, bn6_ref, w8_ref, o_ref):
    f32 = jnp.float32
    tb = x_ref.shape[0]                               # images per grid step (static)

    def conv3x3(a, b_ref, ho):
        # a: (H, W*Cin); b_ref: (3, W*Cin, Wo*Cout) banded weights.
        # valid 3x3 conv == sum over the 3 row shifts of a banded matmul.
        acc = None
        for dh in range(3):
            lhs = a[dh:dh + ho, :].astype(WEIGHT_DTYPE)
            t = jnp.dot(lhs, b_ref[dh], preferred_element_type=f32)
            acc = t if acc is None else acc + t
        return acc

    def relu_bn(y, bn_ref):
        bn = bn_ref[...]                              # (2, Wo*Cout): [scale; shift]
        return jnp.maximum(y, 0.0) * bn[0:1, :] + bn[1:2, :]

    def conv1x1(a, b_ref):
        return jnp.dot(a.astype(WEIGHT_DTYPE), b_ref[...],
                       preferred_element_type=f32)

    def maxpool2x2(a, c, s_ref, g_ref):
        # a: (H, W*C).  Shifted maxima + 0/1 selection matmuls (exact).
        h, wc = a.shape
        wmax = jnp.maximum(a[:, :wc - c], a[:, c:])        # max over W pairs
        hmax = jnp.maximum(wmax[:h - 1, :], wmax[1:, :])   # max over H pairs
        t = jnp.dot(hmax, g_ref[...], preferred_element_type=f32)   # lane downselect
        return jnp.dot(s_ref[...], t, preferred_element_type=f32)   # row downselect

    # Static (unrolled) loop over the tile's images: independent chains that the
    # scheduler can interleave; weights stay resident in VMEM the whole time.
    for b in range(tb):
        x = x_ref[b].astype(f32)                          # (28, 28) == (H, W*Cin)
        y = relu_bn(conv3x3(x, b1_ref, 26), bn1_ref)      # (26, 26*16)
        y = relu_bn(conv3x3(y, b2_ref, 24), bn2_ref)      # (24, 24*16)
        y = conv1x1(y, b3_ref)                            # (24, 24*8)
        y = maxpool2x2(y, 8, s1_ref, g1_ref)              # (12, 12*8)
        y = relu_bn(conv3x3(y, b4_ref, 10), bn4_ref)      # (10, 10*16)
        y = conv1x1(y, b5_ref)                            # (10, 10*8)
        y = maxpool2x2(y, 8, s2_ref, g2_ref)              # (5, 5*8)
        y = relu_bn(conv3x3(y, b6_ref, 3), bn6_ref)       # (3, 3*48)

        # GAP(3x3): sum over the 3 rows then over the 3 W-blocks of the lane axis.
        rows = y[0:1, :] + y[1:2, :] + y[2:3, :]                              # (1, 144)
        g = (rows[:, 0:48] + rows[:, 48:96] + rows[:, 96:144]) * (1.0 / 9.0)  # (1, 48)
        logits = jnp.dot(g, w8_ref[...], preferred_element_type=f32)          # (1, 10)

        m = jnp.max(logits, axis=-1, keepdims=True)
        lse = jnp.log(jnp.sum(jnp.exp(logits - m), axis=-1, keepdims=True)) + m
        o_ref[b] = logits - lse


# ------------------------ weight preparation (host/XLA) ----------------------

def _band3x3(w_pt, w_in, cin, cout, dtype):
    """PyTorch (Cout,Cin,3,3) -> (3, W_in*Cin, Wo*Cout) banded matrices so that
    the conv over the fused (W*C) lane axis is  sum_dh  A[dh:dh+Ho] @ B[dh]."""
    wt = jnp.transpose(w_pt, (2, 3, 1, 0))          # (3, 3, Cin, Cout)
    wo = w_in - 2
    idx = jnp.arange(wo)
    mats = []
    for dh in range(3):
        b = jnp.zeros((w_in, cin, wo, cout), jnp.float32)
        for dw in range(3):
            b = b.at[idx + dw, :, idx, :].set(wt[dh, dw])
        mats.append(b.reshape(w_in * cin, wo * cout))
    return jnp.stack(mats).astype(dtype)


def _blockdiag1x1(w_pt, w_spatial, cin, cout, dtype):
    """PyTorch (Cout,Cin,1,1) -> block-diagonal (W*Cin, W*Cout) matrix."""
    m = jnp.transpose(w_pt[:, :, 0, 0], (1, 0))     # (Cin, Cout)
    idx = jnp.arange(w_spatial)
    b = jnp.zeros((w_spatial, cin, w_spatial, cout), jnp.float32)
    b = b.at[idx, :, idx, :].set(m)
    return b.reshape(w_spatial * cin, w_spatial * cout).astype(dtype)


def _pool_mats(h_in, w_in, c):
    """0/1 selection matrices finishing a 2x2 maxpool: pooled = S @ (hmax @ G)."""
    hp, wp = h_in // 2, w_in // 2
    s = jnp.zeros((hp, h_in - 1), jnp.float32)
    s = s.at[jnp.arange(hp), 2 * jnp.arange(hp)].set(1.0)
    rows = (2 * jnp.arange(wp)[:, None] * c + jnp.arange(c)[None, :]).reshape(-1)
    cols = (jnp.arange(wp)[:, None] * c + jnp.arange(c)[None, :]).reshape(-1)
    g = jnp.zeros((w_in * c - c, wp * c), jnp.float32)
    g = g.at[rows, cols].set(1.0)
    return s, g


def _bn_fold_tiled(gamma, beta, mean, var, wo):
    """Eval-mode BN folded to scale/shift, tiled over the Wo positions of the
    fused (W*C) lane axis.  ReLU precedes BN, so BN is NOT folded into conv."""
    scale = gamma / jnp.sqrt(var + BN_EPS)
    shift = beta - mean * scale
    return jnp.stack([jnp.tile(scale, wo), jnp.tile(shift, wo)]).astype(jnp.float32)


# ------------------------------- full forward --------------------------------

def net2_forward(x_nchw, params, tile_b=8):
    x = x_nchw[:, 0, :, :].astype(jnp.float32)      # (N, 28, 28)   (Cin = 1)
    n = x.shape[0]
    tb = max(1, min(tile_b, n))                     # images per grid step
    n_pad = ((n + tb - 1) // tb) * tb
    if n_pad != n:
        x = jnp.pad(x, ((0, n_pad - n), (0, 0), (0, 0)))

    b1 = _band3x3(params["w1"], 28, 1, 16, WEIGHT_DTYPE)     # (3, 28, 416)
    bn1 = _bn_fold_tiled(*params["bn1"], 26)                 # (2, 416)
    b2 = _band3x3(params["w2"], 26, 16, 16, WEIGHT_DTYPE)    # (3, 416, 384)
    bn2 = _bn_fold_tiled(*params["bn2"], 24)                 # (2, 384)
    b3 = _blockdiag1x1(params["w3"], 24, 16, 8, WEIGHT_DTYPE)   # (384, 192)
    s1, g1 = _pool_mats(24, 24, 8)                           # (12,23), (184,96)
    b4 = _band3x3(params["w4"], 12, 8, 16, WEIGHT_DTYPE)     # (3, 96, 160)
    bn4 = _bn_fold_tiled(*params["bn4"], 10)                 # (2, 160)
    b5 = _blockdiag1x1(params["w5"], 10, 16, 8, WEIGHT_DTYPE)   # (160, 80)
    s2, g2 = _pool_mats(10, 10, 8)                           # (5,9), (72,40)
    b6 = _band3x3(params["w6"], 5, 8, 48, WEIGHT_DTYPE)      # (3, 40, 144)
    bn6 = _bn_fold_tiled(*params["bn6"], 3)                  # (2, 144)
    w8 = jnp.transpose(params["w8"][:, :, 0, 0], (1, 0)).astype(jnp.float32)  # (48,10)

    consts = (b1, bn1, b2, bn2, b3, s1, g1, b4, bn4, b5, s2, g2, b6, bn6, w8)

    def resident(a):
        nd = a.ndim
        return pl.BlockSpec(a.shape, lambda i, _n=nd: (0,) * _n)  # stays in VMEM

    in_specs = [pl.BlockSpec((tb, 28, 28), lambda i: (i, 0, 0))]
    in_specs += [resident(a) for a in consts]

    out = pl.pallas_call(
        fused_net_kernel,
        out_shape=jax.ShapeDtypeStruct((n_pad, 1, 10), jnp.float32),
        grid_spec=pltpu.PrefetchScalarGridSpec(
            num_scalar_prefetch=0,
            grid=(n_pad // tb,),
            in_specs=in_specs,
            out_specs=pl.BlockSpec((tb, 1, 10), lambda i: (i, 0, 0)),
        ),
        compiler_params=pltpu.CompilerParams(
            dimension_semantics=("parallel",),          # batch tiles sharded over TCs
            vmem_limit_bytes=32 * 1024 * 1024,
        ),
    )(x, *consts)
    return out.reshape(n_pad, 10)[:n]
    # TODO(synk): training-mode Dropout (stochastic masking) is omitted; forward
    # matches PyTorch eval() semantics.


# --------------------------- pure-JAX reference ------------------------------

def net2_reference(x_nchw, params):
    x = jnp.transpose(x_nchw, (0, 2, 3, 1)).astype(jnp.float32)

    def conv(y, w):
        wt = jnp.transpose(w, (2, 3, 1, 0))
        return lax.conv_general_dilated(y, wt, (1, 1), "VALID",
                                        dimension_numbers=("NHWC", "HWIO", "NHWC"))

    def relu_bn(y, bn):
        gamma, beta, mean, var = bn
        s = gamma / jnp.sqrt(var + BN_EPS)
        b = beta - mean * s
        return jnp.maximum(y, 0.0) * s + b

    def pool(y):
        n, h, w, c = y.shape
        return y.reshape(n, h // 2, 2, w // 2, 2, c).max(axis=(2, 4))

    y = relu_bn(conv(x, params["w1"]), params["bn1"])
    y = relu_bn(conv(y, params["w2"]), params["bn2"])
    y = conv(y, params["w3"])
    y = pool(y)
    y = relu_bn(conv(y, params["w4"]), params["bn4"])
    y = conv(y, params["w5"])
    y = pool(y)
    y = relu_bn(conv(y, params["w6"]), params["bn6"])
    g = y.mean(axis=(1, 2))                                    # (N, 48)
    logits = g @ jnp.transpose(params["w8"][:, :, 0, 0], (1, 0))
    return jax.nn.log_softmax(logits, axis=-1)


# --------------------------------- params ------------------------------------

def make_params(key):
    ks = jax.random.split(key, 16)

    def conv_w(k, shape):
        return (0.1 * jax.random.normal(k, shape)).astype(jnp.float32)

    def bn_p(k, c):
        k1, k2, k3, k4 = jax.random.split(k, 4)
        gamma = 1.0 + 0.1 * jax.random.normal(k1, (c,))
        beta = 0.1 * jax.random.normal(k2, (c,))
        mean = 0.1 * jax.random.normal(k3, (c,))
        var = jax.random.uniform(k4, (c,), minval=0.5, maxval=1.5)
        return (gamma.astype(jnp.float32), beta.astype(jnp.float32),
                mean.astype(jnp.float32), var.astype(jnp.float32))

    return {
        "w1": conv_w(ks[0], (16, 1, 3, 3)),  "bn1": bn_p(ks[1], 16),
        "w2": conv_w(ks[2], (16, 16, 3, 3)), "bn2": bn_p(ks[3], 16),
        "w3": conv_w(ks[4], (8, 16, 1, 1)),
        "w4": conv_w(ks[5], (16, 8, 3, 3)),  "bn4": bn_p(ks[6], 16),
        "w5": conv_w(ks[7], (8, 16, 1, 1)),
        "w6": conv_w(ks[8], (48, 8, 3, 3)),  "bn6": bn_p(ks[9], 48),
        "w8": conv_w(ks[10], (10, 48, 1, 1)),
    }


if __name__ == "__main__":
    key = jax.random.PRNGKey(0)
    k_params, k_x = jax.random.split(key)
    params = make_params(k_params)

    # 28x28 single-channel input (architecture requires 28 so GAP(3) consumes
    # the final 3x3 map exactly, as in the original MNIST model).
    x = jax.random.normal(k_x, (2, 1, 28, 28), dtype=jnp.float32)

    out = jax.jit(net2_forward)(x, params)
    out = jax.block_until_ready(out)

    assert out.shape == (2, 10), out.shape
    # log_softmax rows should sum (in prob space) to ~1
    assert bool(jnp.allclose(jnp.exp(out).sum(axis=-1), 1.0, atol=1e-4))

    # numerics vs a pure-JAX reference (bf16 MXU operands -> loose tolerance)
    ref = jax.block_until_ready(jax.jit(net2_reference)(x, params))
    assert bool(jnp.allclose(out, ref, atol=5e-2)), float(jnp.abs(out - ref).max())

    print("KERNEL_OK")
</pallas_src>

<mosaic_0001>
module attributes {stable_mosaic.version = 11 : i64} {
  func.func @fused_net_kernel(%arg0: i32, %arg1: memref<2x28x28xf32, #tpu.memory_space<vmem>>, %arg2: memref<3x28x416xbf16, #tpu.memory_space<vmem>>, %arg3: memref<2x416xf32, #tpu.memory_space<vmem>>, %arg4: memref<3x416x384xbf16, #tpu.memory_space<vmem>>, %arg5: memref<2x384xf32, #tpu.memory_space<vmem>>, %arg6: memref<384x192xbf16, #tpu.memory_space<vmem>>, %arg7: memref<12x23xf32, #tpu.memory_space<vmem>>, %arg8: memref<184x96xf32, #tpu.memory_space<vmem>>, %arg9: memref<3x96x160xbf16, #tpu.memory_space<vmem>>, %arg10: memref<2x160xf32, #tpu.memory_space<vmem>>, %arg11: memref<160x80xbf16, #tpu.memory_space<vmem>>, %arg12: memref<5x9xf32, #tpu.memory_space<vmem>>, %arg13: memref<72x40xf32, #tpu.memory_space<vmem>>, %arg14: memref<3x40x144xbf16, #tpu.memory_space<vmem>>, %arg15: memref<2x144xf32, #tpu.memory_space<vmem>>, %arg16: memref<48x10xf32, #tpu.memory_space<vmem>>, %arg17: memref<2x1x10xf32, #tpu.memory_space<vmem>>) attributes {dimension_semantics = [#tpu.dimension_semantics<parallel>], iteration_bounds = array<i64: 1>, scalar_prefetch = 0 : i64, scratch_operands = 0 : i64, tpu.core_type = #tpu.core_type<tc>, window_params = [{transform_indices = @transform_0, window_bounds = array<i64: 2, 28, 28>}, {pipeline_mode = #tpu.pipeline_mode<synchronous>, transform_indices = @transform_1, window_bounds = array<i64: 3, 28, 416>}, {pipeline_mode = #tpu.pipeline_mode<synchronous>, transform_indices = @transform_2, window_bounds = array<i64: 2, 416>}, {pipeline_mode = #tpu.pipeline_mode<synchronous>, transform_indices = @transform_3, window_bounds = array<i64: 3, 416, 384>}, {pipeline_mode = #tpu.pipeline_mode<synchronous>, transform_indices = @transform_4, window_bounds = array<i64: 2, 384>}, {pipeline_mode = #tpu.pipeline_mode<synchronous>, transform_indices = @transform_5, window_bounds = array<i64: 384, 192>}, {pipeline_mode = #tpu.pipeline_mode<synchronous>, transform_indices = @transform_6, window_bounds = array<i64: 12, 23>}, {pipeline_mode = #tpu.pipeline_mode<synchronous>, transform_indices = @transform_7, window_bounds = array<i64: 184, 96>}, {pipeline_mode = #tpu.pipeline_mode<synchronous>, transform_indices = @transform_8, window_bounds = array<i64: 3, 96, 160>}, {pipeline_mode = #tpu.pipeline_mode<synchronous>, transform_indices = @transform_9, window_bounds = array<i64: 2, 160>}, {pipeline_mode = #tpu.pipeline_mode<synchronous>, transform_indices = @transform_10, window_bounds = array<i64: 160, 80>}, {pipeline_mode = #tpu.pipeline_mode<synchronous>, transform_indices = @transform_11, window_bounds = array<i64: 5, 9>}, {pipeline_mode = #tpu.pipeline_mode<synchronous>, transform_indices = @transform_12, window_bounds = array<i64: 72, 40>}, {pipeline_mode = #tpu.pipeline_mode<synchronous>, transform_indices = @transform_13, window_bounds = array<i64: 3, 40, 144>}, {pipeline_mode = #tpu.pipeline_mode<synchronous>, transform_indices = @transform_14, window_bounds = array<i64: 2, 144>}, {pipeline_mode = #tpu.pipeline_mode<synchronous>, transform_indices = @transform_15, window_bounds = array<i64: 48, 10>}, {transform_indices = @transform_16, window_bounds = array<i64: 2, 1, 10>}]} {
    %c0 = arith.constant 0 : index
    %c0_0 = arith.constant 0 : index
    %c0_1 = arith.constant 0 : index
    %0 = vector.load %arg1[%c0, %c0_0, %c0_1] : memref<2x28x28xf32, #tpu.memory_space<vmem>>, vector<1x28x28xf32>
    %1 = vector.shape_cast %0 : vector<1x28x28xf32> to vector<28x28xf32>
    %2 = vector.extract_strided_slice %1 {offsets = [0, 0], sizes = [26, 28], strides = [1, 1]} : vector<28x28xf32> to vector<26x28xf32>
    %3 = arith.truncf %2 : vector<26x28xf32> to vector<26x28xbf16>
    %c0_2 = arith.constant 0 : index
    %c0_3 = arith.constant 0 : index
    %c0_4 = arith.constant 0 : index
    %4 = vector.load %arg2[%c0_2, %c0_3, %c0_4] : memref<3x28x416xbf16, #tpu.memory_space<vmem>>, vector<1x28x416xbf16>
    %5 = vector.shape_cast %4 : vector<1x28x416xbf16> to vector<28x416xbf16>
    %cst = arith.constant dense<0.000000e+00> : vector<26x416xf32>
    %6 = tpu.matmul %3, %5, %cst {dimension_numbers = #tpu.dot_dimension_numbers<[1], [0], [0], [1], [0, 0, 1, 1], [], []>} : vector<26x28xbf16>, vector<28x416xbf16>, vector<26x416xf32> -> vector<26x416xf32>
    %7 = vector.extract_strided_slice %1 {offsets = [1, 0], sizes = [26, 28], strides = [1, 1]} : vector<28x28xf32> to vector<26x28xf32>
    %8 = arith.truncf %7 : vector<26x28xf32> to vector<26x28xbf16>
    %c1 = arith.constant 1 : index
    %c0_5 = arith.constant 0 : index
    %c0_6 = arith.constant 0 : index
    %9 = vector.load %arg2[%c1, %c0_5, %c0_6] : memref<3x28x416xbf16, #tpu.memory_space<vmem>>, vector<1x28x416xbf16>
    %10 = vector.shape_cast %9 : vector<1x28x416xbf16> to vector<28x416xbf16>
    %cst_7 = arith.constant dense<0.000000e+00> : vector<26x416xf32>
    %11 = tpu.matmul %8, %10, %cst_7 {dimension_numbers = #tpu.dot_dimension_numbers<[1], [0], [0], [1], [0, 0, 1, 1], [], []>} : vector<26x28xbf16>, vector<28x416xbf16>, vector<26x416xf32> -> vector<26x416xf32>
    %12 = arith.addf %6, %11 : vector<26x416xf32>
    %13 = vector.extract_strided_slice %1 {offsets = [2, 0], sizes = [26, 28], strides = [1, 1]} : vector<28x28xf32> to vector<26x28xf32>
    %14 = arith.truncf %13 : vector<26x28xf32> to vector<26x28xbf16>
    %c2 = arith.constant 2 : index
    %c0_8 = arith.constant 0 : index
    %c0_9 = arith.constant 0 : index
    %15 = vector.load %arg2[%c2, %c0_8, %c0_9] : memref<3x28x416xbf16, #tpu.memory_space<vmem>>, vector<1x28x416xbf16>
    %16 = vector.shape_cast %15 : vector<1x28x416xbf16> to vector<28x416xbf16>
    %cst_10 = arith.constant dense<0.000000e+00> : vector<26x416xf32>
    %17 = tpu.matmul %14, %16, %cst_10 {dimension_numbers = #tpu.dot_dimension_numbers<[1], [0], [0], [1], [0, 0, 1, 1], [], []>} : vector<26x28xbf16>, vector<28x416xbf16>, vector<26x416xf32> -> vector<26x416xf32>
    %18 = arith.addf %12, %17 : vector<26x416xf32>
    %c0_11 = arith.constant 0 : index
    %c0_12 = arith.constant 0 : index
    %19 = vector.load %arg3[%c0_11, %c0_12] : memref<2x416xf32, #tpu.memory_space<vmem>>, vector<2x416xf32>
    %cst_13 = arith.constant 0.000000e+00 : f32
    %20 = vector.broadcast %cst_13 : f32 to vector<26x416xf32>
    %21 = arith.maximumf %18, %20 : vector<26x416xf32>
    %22 = vector.extract_strided_slice %19 {offsets = [0, 0], sizes = [1, 416], strides = [1, 1]} : vector<2x416xf32> to vector<1x416xf32>
    %23 = vector.broadcast %22 : vector<1x416xf32> to vector<26x416xf32>
    %24 = arith.mulf %21, %23 : vector<26x416xf32>
    %25 = vector.extract_strided_slice %19 {offsets = [1, 0], sizes = [1, 416], strides = [1, 1]} : vector<2x416xf32> to vector<1x416xf32>
    %26 = vector.broadcast %25 : vector<1x416xf32> to vector<26x416xf32>
    %27 = arith.addf %24, %26 : vector<26x416xf32>
    %28 = vector.extract_strided_slice %27 {offsets = [0, 0], sizes = [24, 416], strides = [1, 1]} : vector<26x416xf32> to vector<24x416xf32>
    %29 = arith.truncf %28 : vector<24x416xf32> to vector<24x416xbf16>
    %c0_14 = arith.constant 0 : index
    %c0_15 = arith.constant 0 : index
    %c0_16 = arith.constant 0 : index
    %30 = vector.load %arg4[%c0_14, %c0_15, %c0_16] : memref<3x416x384xbf16, #tpu.memory_space<vmem>>, vector<1x416x384xbf16>
    %31 = vector.shape_cast %30 : vector<1x416x384xbf16> to vector<416x384xbf16>
    %cst_17 = arith.constant dense<0.000000e+00> : vector<24x384xf32>
    %32 = tpu.matmul %29, %31, %cst_17 {dimension_numbers = #tpu.dot_dimension_numbers<[1], [0], [0], [1], [0, 0, 1, 1], [], []>} : vector<24x416xbf16>, vector<416x384xbf16>, vector<24x384xf32> -> vector<24x384xf32>
    %33 = vector.extract_strided_slice %27 {offsets = [1, 0], sizes = [24, 416], strides = [1, 1]} : vector<26x416xf32> to vector<24x416xf32>
    %34 = arith.truncf %33 : vector<24x416xf32> to vector<24x416xbf16>
    %c1_18 = arith.constant 1 : index
    %c0_19 = arith.constant 0 : index
    %c0_20 = arith.constant 0 : index
    %35 = vector.load %arg4[%c1_18, %c0_19, %c0_20] : memref<3x416x384xbf16, #tpu.memory_space<vmem>>, vector<1x416x384xbf16>
    %36 = vector.shape_cast %35 : vector<1x416x384xbf16> to vector<416x384xbf16>
    %cst_21 = arith.constant dense<0.000000e+00> : vector<24x384xf32>
    %37 = tpu.matmul %34, %36, %cst_21 {dimension_numbers = #tpu.dot_dimension_numbers<[1], [0], [0], [1], [0, 0, 1, 1], [], []>} : vector<24x416xbf16>, vector<416x384xbf16>, vector<24x384xf32> -> vector<24x384xf32>
    %38 = arith.addf %32, %37 : vector<24x384xf32>
    %39 = vector.extract_strided_slice %27 {offsets = [2, 0], sizes = [24, 416], strides = [1, 1]} : vector<26x416xf32> to vector<24x416xf32>
    %40 = arith.truncf %39 : vector<24x416xf32> to vector<24x416xbf16>
    %c2_22 = arith.constant 2 : index
    %c0_23 = arith.constant 0 : index
    %c0_24 = arith.constant 0 : index
    %41 = vector.load %arg4[%c2_22, %c0_23, %c0_24] : memref<3x416x384xbf16, #tpu.memory_space<vmem>>, vector<1x416x384xbf16>
    %42 = vector.shape_cast %41 : vector<1x416x384xbf16> to vector<416x384xbf16>
    %cst_25 = arith.constant dense<0.000000e+00> : vector<24x384xf32>
    %43 = tpu.matmul %40, %42, %cst_25 {dimension_numbers = #tpu.dot_dimension_numbers<[1], [0], [0], [1], [0, 0, 1, 1], [], []>} : vector<24x416xbf16>, vector<416x384xbf16>, vector<24x384xf32> -> vector<24x384xf32>
    %44 = arith.addf %38, %43 : vector<24x384xf32>
    %c0_26 = arith.constant 0 : index
    %c0_27 = arith.constant 0 : index
    %45 = vector.load %arg5[%c0_26, %c0_27] : memref<2x384xf32, #tpu.memory_space<vmem>>, vector<2x384xf32>
    %cst_28 = arith.constant 0.000000e+00 : f32
    %46 = vector.broadcast %cst_28 : f32 to vector<24x384xf32>
    %47 = arith.maximumf %44, %46 : vector<24x384xf32>
    %48 = vector.extract_strided_slice %45 {offsets = [0, 0], sizes = [1, 384], strides = [1, 1]} : vector<2x384xf32> to vector<1x384xf32>
    %49 = vector.broadcast %48 : vector<1x384xf32> to vector<24x384xf32>
    %50 = arith.mulf %47, %49 : vector<24x384xf32>
    %51 = vector.extract_strided_slice %45 {offsets = [1, 0], sizes = [1, 384], strides = [1, 1]} : vector<2x384xf32> to vector<1x384xf32>
    %52 = vector.broadcast %51 : vector<1x384xf32> to vector<24x384xf32>
    %53 = arith.addf %50, %52 : vector<24x384xf32>
    %54 = arith.truncf %53 : vector<24x384xf32> to vector<24x384xbf16>
    %c0_29 = arith.constant 0 : index
    %c0_30 = arith.constant 0 : index
    %55 = vector.load %arg6[%c0_29, %c0_30] : memref<384x192xbf16, #tpu.memory_space<vmem>>, vector<384x192xbf16>
    %cst_31 = arith.constant dense<0.000000e+00> : vector<24x192xf32>
    %56 = tpu.matmul %54, %55, %cst_31 {dimension_numbers = #tpu.dot_dimension_numbers<[1], [0], [0], [1], [0, 0, 1, 1], [], []>} : vector<24x384xbf16>, vector<384x192xbf16>, vector<24x192xf32> -> vector<24x192xf32>
    %57 = vector.extract_strided_slice %56 {offsets = [0, 0], sizes = [24, 184], strides = [1, 1]} : vector<24x192xf32> to vector<24x184xf32>
    %58 = vector.extract_strided_slice %56 {offsets = [0, 8], sizes = [24, 184], strides = [1, 1]} : vector<24x192xf32> to vector<24x184xf32>
    %59 = arith.maximumf %57, %58 : vector<24x184xf32>
    %60 = vector.extract_strided_slice %59 {offsets = [0, 0], sizes = [23, 184], strides = [1, 1]} : vector<24x184xf32> to vector<23x184xf32>
    %61 = vector.extract_strided_slice %59 {offsets = [1, 0], sizes = [23, 184], strides = [1, 1]} : vector<24x184xf32> to vector<23x184xf32>
    %62 = arith.maximumf %60, %61 : vector<23x184xf32>
    %c0_32 = arith.constant 0 : index
    %c0_33 = arith.constant 0 : index
    %63 = vector.load %arg8[%c0_32, %c0_33] : memref<184x96xf32, #tpu.memory_space<vmem>>, vector<184x96xf32>
    %cst_34 = arith.constant dense<0.000000e+00> : vector<23x96xf32>
    %64 = tpu.matmul %62, %63, %cst_34 {dimension_numbers = #tpu.dot_dimension_numbers<[1], [0], [0], [1], [0, 0, 1, 1], [], []>} : vector<23x184xf32>, vector<184x96xf32>, vector<23x96xf32> -> vector<23x96xf32>
    %c0_35 = arith.constant 0 : index
    %c0_36 = arith.constant 0 : index
    %65 = vector.load %arg7[%c0_35, %c0_36] : memref<12x23xf32, #tpu.memory_space<vmem>>, vector<12x23xf32>
    %cst_37 = arith.constant dense<0.000000e+00> : vector<12x96xf32>
    %66 = tpu.matmul %65, %64, %cst_37 {dimension_numbers = #tpu.dot_dimension_numbers<[1], [0], [0], [1], [0, 0, 1, 1], [], []>} : vector<12x23xf32>, vector<23x96xf32>, vector<12x96xf32> -> vector<12x96xf32>
    %67 = vector.extract_strided_slice %66 {offsets = [0, 0], sizes = [10, 96], strides = [1, 1]} : vector<12x96xf32> to vector<10x96xf32>
    %68 = arith.truncf %67 : vector<10x96xf32> to vector<10x96xbf16>
    %c0_38 = arith.constant 0 : index
    %c0_39 = arith.constant 0 : index
    %c0_40 = arith.constant 0 : index
    %69 = vector.load %arg9[%c0_38, %c0_39, %c0_40] : memref<3x96x160xbf16, #tpu.memory_space<vmem>>, vector<1x96x160xbf16>
    %70 = vector.shape_cast %69 : vector<1x96x160xbf16> to vector<96x160xbf16>
    %cst_41 = arith.constant dense<0.000000e+00> : vector<10x160xf32>
    %71 = tpu.matmul %68, %70, %cst_41 {dimension_numbers = #tpu.dot_dimension_numbers<[1], [0], [0], [1], [0, 0, 1, 1], [], []>} : vector<10x96xbf16>, vector<96x160xbf16>, vector<10x160xf32> -> vector<10x160xf32>
    %72 = vector.extract_strided_slice %66 {offsets = [1, 0], sizes = [10, 96], strides = [1, 1]} : vector<12x96xf32> to vector<10x96xf32>
    %73 = arith.truncf %72 : vector<10x96xf32> to vector<10x96xbf16>
    %c1_42 = arith.constant 1 : index
    %c0_43 = arith.constant 0 : index
    %c0_44 = arith.constant 0 : index
    %74 = vector.load %arg9[%c1_42, %c0_43, %c0_44] : memref<3x96x160xbf16, #tpu.memory_space<vmem>>, vector<1x96x160xbf16>
    %75 = vector.shape_cast %74 : vector<1x96x160xbf16> to vector<96x160xbf16>
    %cst_45 = arith.constant dense<0.000000e+00> : vector<10x160xf32>
    %76 = tpu.matmul %73, %75, %cst_45 {dimension_numbers = #tpu.dot_dimension_numbers<[1], [0], [0], [1], [0, 0, 1, 1], [], []>} : vector<10x96xbf16>, vector<96x160xbf16>, vector<10x160xf32> -> vector<10x160xf32>
    %77 = arith.addf %71, %76 : vector<10x160xf32>
    %78 = vector.extract_strided_slice %66 {offsets = [2, 0], sizes = [10, 96], strides = [1, 1]} : vector<12x96xf32> to vector<10x96xf32>
    %79 = arith.truncf %78 : vector<10x96xf32> to vector<10x96xbf16>
    %c2_46 = arith.constant 2 : index
    %c0_47 = arith.constant 0 : index
    %c0_48 = arith.constant 0 : index
    %80 = vector.load %arg9[%c2_46, %c0_47, %c0_48] : memref<3x96x160xbf16, #tpu.memory_space<vmem>>, vector<1x96x160xbf16>
    %81 = vector.shape_cast %80 : vector<1x96x160xbf16> to vector<96x160xbf16>
    %cst_49 = arith.constant dense<0.000000e+00> : vector<10x160xf32>
    %82 = tpu.matmul %79, %81, %cst_49 {dimension_numbers = #tpu.dot_dimension_numbers<[1], [0], [0], [1], [0, 0, 1, 1], [], []>} : vector<10x96xbf16>, vector<96x160xbf16>, vector<10x160xf32> -> vector<10x160xf32>
    %83 = arith.addf %77, %82 : vector<10x160xf32>
    %c0_50 = arith.constant 0 : index
    %c0_51 = arith.constant 0 : index
    %84 = vector.load %arg10[%c0_50, %c0_51] : memref<2x160xf32, #tpu.memory_space<vmem>>, vector<2x160xf32>
    %cst_52 = arith.constant 0.000000e+00 : f32
    %85 = vector.broadcast %cst_52 : f32 to vector<10x160xf32>
    %86 = arith.maximumf %83, %85 : vector<10x160xf32>
    %87 = vector.extract_strided_slice %84 {offsets = [0, 0], sizes = [1, 160], strides = [1, 1]} : vector<2x160xf32> to vector<1x160xf32>
    %88 = vector.broadcast %87 : vector<1x160xf32> to vector<10x160xf32>
    %89 = arith.mulf %86, %88 : vector<10x160xf32>
    %90 = vector.extract_strided_slice %84 {offsets = [1, 0], sizes = [1, 160], strides = [1, 1]} : vector<2x160xf32> to vector<1x160xf32>
    %91 = vector.broadcast %90 : vector<1x160xf32> to vector<10x160xf32>
    %92 = arith.addf %89, %91 : vector<10x160xf32>
    %93 = arith.truncf %92 : vector<10x160xf32> to vector<10x160xbf16>
    %c0_53 = arith.constant 0 : index
    %c0_54 = arith.constant 0 : index
    %94 = vector.load %arg11[%c0_53, %c0_54] : memref<160x80xbf16, #tpu.memory_space<vmem>>, vector<160x80xbf16>
    %cst_55 = arith.constant dense<0.000000e+00> : vector<10x80xf32>
    %95 = tpu.matmul %93, %94, %cst_55 {dimension_numbers = #tpu.dot_dimension_numbers<[1], [0], [0], [1], [0, 0, 1, 1], [], []>} : vector<10x160xbf16>, vector<160x80xbf16>, vector<10x80xf32> -> vector<10x80xf32>
    %96 = vector.extract_strided_slice %95 {offsets = [0, 0], sizes = [10, 72], strides = [1, 1]} : vector<10x80xf32> to vector<10x72xf32>
    %97 = vector.extract_strided_slice %95 {offsets = [0, 8], sizes = [10, 72], strides = [1, 1]} : vector<10x80xf32> to vector<10x72xf32>
    %98 = arith.maximumf %96, %97 : vector<10x72xf32>
    %99 = vector.extract_strided_slice %98 {offsets = [0, 0], sizes = [9, 72], strides = [1, 1]} : vector<10x72xf32> to vector<9x72xf32>
    %100 = vector.extract_strided_slice %98 {offsets = [1, 0], sizes = [9, 72], strides = [1, 1]} : vector<10x72xf32> to vector<9x72xf32>
    %101 = arith.maximumf %99, %100 : vector<9x72xf32>
    %c0_56 = arith.constant 0 : index
    %c0_57 = arith.constant 0 : index
    %102 = vector.load %arg13[%c0_56, %c0_57] : memref<72x40xf32, #tpu.memory_space<vmem>>, vector<72x40xf32>
    %cst_58 = arith.constant dense<0.000000e+00> : vector<9x40xf32>
    %103 = tpu.matmul %101, %102, %cst_58 {dimension_numbers = #tpu.dot_dimension_numbers<[1], [0], [0], [1], [0, 0, 1, 1], [], []>} : vector<9x72xf32>, vector<72x40xf32>, vector<9x40xf32> -> vector<9x40xf32>
    %c0_59 = arith.constant 0 : index
    %c0_60 = arith.constant 0 : index
    %104 = vector.load %arg12[%c0_59, %c0_60] : memref<5x9xf32, #tpu.memory_space<vmem>>, vector<5x9xf32>
    %cst_61 = arith.constant dense<0.000000e+00> : vector<5x40xf32>
    %105 = tpu.matmul %104, %103, %cst_61 {dimension_numbers = #tpu.dot_dimension_numbers<[1], [0], [0], [1], [0, 0, 1, 1], [], []>} : vector<5x9xf32>, vector<9x40xf32>, vector<5x40xf32> -> vector<5x40xf32>
    %106 = vector.extract_strided_slice %105 {offsets = [0, 0], sizes = [3, 40], strides = [1, 1]} : vector<5x40xf32> to vector<3x40xf32>
    %107 = arith.truncf %106 : vector<3x40xf32> to vector<3x40xbf16>
    %c0_62 = arith.constant 0 : index
    %c0_63 = arith.constant 0 : index
    %c0_64 = arith.constant 0 : index
    %108 = vector.load %arg14[%c0_62, %c0_63, %c0_64] : memref<3x40x144xbf16, #tpu.memory_space<vmem>>, vector<1x40x144xbf16>
    %109 = vector.shape_cast %108 : vector<1x40x144xbf16> to vector<40x144xbf16>
    %cst_65 = arith.constant dense<0.000000e+00> : vector<3x144xf32>
    %110 = tpu.matmul %107, %109, %cst_65 {dimension_numbers = #tpu.dot_dimension_numbers<[1], [0], [0], [1], [0, 0, 1, 1], [], []>} : vector<3x40xbf16>, vector<40x144xbf16>, vector<3x144xf32> -> vector<3x144xf32>
    %111 = vector.extract_strided_slice %105 {offsets = [1, 0], sizes = [3, 40], strides = [1, 1]} : vector<5x40xf32> to vector<3x40xf32>
    %112 = arith.truncf %111 : vector<3x40xf32> to vector<3x40xbf16>
    %c1_66 = arith.constant 1 : index
    %c0_67 = arith.constant 0 : index
    %c0_68 = arith.constant 0 : index
    %113 = vector.load %arg14[%c1_66, %c0_67, %c0_68] : memref<3x40x144xbf16, #tpu.memory_space<vmem>>, vector<1x40x144xbf16>
    %114 = vector.shape_cast %113 : vector<1x40x144xbf16> to vector<40x144xbf16>
    %cst_69 = arith.constant dense<0.000000e+00> : vector<3x144xf32>
    %115 = tpu.matmul %112, %114, %cst_69 {dimension_numbers = #tpu.dot_dimension_numbers<[1], [0], [0], [1], [0, 0, 1, 1], [], []>} : vector<3x40xbf16>, vector<40x144xbf16>, vector<3x144xf32> -> vector<3x144xf32>
    %116 = arith.addf %110, %115 : vector<3x144xf32>
    %117 = vector.extract_strided_slice %105 {offsets = [2, 0], sizes = [3, 40], strides = [1, 1]} : vector<5x40xf32> to vector<3x40xf32>
    %118 = arith.truncf %117 : vector<3x40xf32> to vector<3x40xbf16>
    %c2_70 = arith.constant 2 : index
    %c0_71 = arith.constant 0 : index
    %c0_72 = arith.constant 0 : index
    %119 = vector.load %arg14[%c2_70, %c0_71, %c0_72] : memref<3x40x144xbf16, #tpu.memory_space<vmem>>, vector<1x40x144xbf16>
    %120 = vector.shape_cast %119 : vector<1x40x144xbf16> to vector<40x144xbf16>
    %cst_73 = arith.constant dense<0.000000e+00> : vector<3x144xf32>
    %121 = tpu.matmul %118, %120, %cst_73 {dimension_numbers = #tpu.dot_dimension_numbers<[1], [0], [0], [1], [0, 0, 1, 1], [], []>} : vector<3x40xbf16>, vector<40x144xbf16>, vector<3x144xf32> -> vector<3x144xf32>
    %122 = arith.addf %116, %121 : vector<3x144xf32>
    %c0_74 = arith.constant 0 : index
    %c0_75 = arith.constant 0 : index
    %123 = vector.load %arg15[%c0_74, %c0_75] : memref<2x144xf32, #tpu.memory_space<vmem>>, vector<2x144xf32>
    %cst_76 = arith.constant 0.000000e+00 : f32
    %124 = vector.broadcast %cst_76 : f32 to vector<3x144xf32>
    %125 = arith.maximumf %122, %124 : vector<3x144xf32>
    %126 = vector.extract_strided_slice %123 {offsets = [0, 0], sizes = [1, 144], strides = [1, 1]} : vector<2x144xf32> to vector<1x144xf32>
    %127 = vector.broadcast %126 : vector<1x144xf32> to vector<3x144xf32>
    %128 = arith.mulf %125, %127 : vector<3x144xf32>
    %129 = vector.extract_strided_slice %123 {offsets = [1, 0], sizes = [1, 144], strides = [1, 1]} : vector<2x144xf32> to vector<1x144xf32>
    %130 = vector.broadcast %129 : vector<1x144xf32> to vector<3x144xf32>
    %131 = arith.addf %128, %130 : vector<3x144xf32>
    %132 = vector.extract_strided_slice %131 {offsets = [0, 0], sizes = [1, 144], strides = [1, 1]} : vector<3x144xf32> to vector<1x144xf32>
    %133 = vector.extract_strided_slice %131 {offsets = [1, 0], sizes = [1, 144], strides = [1, 1]} : vector<3x144xf32> to vector<1x144xf32>
    %134 = arith.addf %132, %133 : vector<1x144xf32>
    %135 = vector.extract_strided_slice %131 {offsets = [2, 0], sizes = [1, 144], strides = [1, 1]} : vector<3x144xf32> to vector<1x144xf32>
    %136 = arith.addf %134, %135 : vector<1x144xf32>
    %137 = vector.extract_strided_slice %136 {offsets = [0, 0], sizes = [1, 48], strides = [1, 1]} : vector<1x144xf32> to vector<1x48xf32>
    %138 = vector.extract_strided_slice %136 {offsets = [0, 48], sizes = [1, 48], strides = [1, 1]} : vector<1x144xf32> to vector<1x48xf32>
    %139 = arith.addf %137, %138 : vector<1x48xf32>
    %140 = vector.extract_strided_slice %136 {offsets = [0, 96], sizes = [1, 48], strides = [1, 1]} : vector<1x144xf32> to vector<1x48xf32>
    %141 = arith.addf %139, %140 : vector<1x48xf32>
    %cst_77 = arith.constant 0.111111112 : f32
    %142 = vector.broadcast %cst_77 : f32 to vector<1x48xf32>
    %143 = arith.mulf %141, %142 : vector<1x48xf32>
    %c0_78 = arith.constant 0 : index
    %c0_79 = arith.constant 0 : index
    %144 = vector.load %arg16[%c0_78, %c0_79] : memref<48x10xf32, #tpu.memory_space<vmem>>, vector<48x10xf32>
    %cst_80 = arith.constant dense<0.000000e+00> : vector<1x10xf32>
    %145 = tpu.matmul %143, %144, %cst_80 {dimension_numbers = #tpu.dot_dimension_numbers<[1], [0], [0], [1], [0, 0, 1, 1], [], []>} : vector<1x48xf32>, vector<48x10xf32>, vector<1x10xf32> -> vector<1x10xf32>
    %cst_81 = arith.constant dense<0xFF800000> : vector<1xf32>
    %146 = vector.multi_reduction <maximumf>, %145, %cst_81 [1] : vector<1x10xf32> to vector<1xf32>
    %147 = vector.shape_cast %146 : vector<1xf32> to vector<1x1xf32>
    %148 = vector.broadcast %147 : vector<1x1xf32> to vector<1x10xf32>
    %149 = arith.subf %145, %148 : vector<1x10xf32>
    %150 = math.exp %149 : vector<1x10xf32>
    %cst_82 = arith.constant dense<0.000000e+00> : vector<1xf32>
    %151 = vector.multi_reduction <add>, %150, %cst_82 [1] : vector<1x10xf32> to vector<1xf32>
    %152 = vector.shape_cast %151 : vector<1xf32> to vector<1x1xf32>
    %153 = math.log %152 : vector<1x1xf32>
    %154 = arith.addf %153, %147 : vector<1x1xf32>
    %155 = vector.broadcast %154 : vector<1x1xf32> to vector<1x10xf32>
    %156 = arith.subf %145, %155 : vector<1x10xf32>
    %c0_83 = arith.constant 0 : index
    %c0_84 = arith.constant 0 : index
    %c0_85 = arith.constant 0 : index
    %157 = vector.load %arg17[%c0_83, %c0_84, %c0_85] : memref<2x1x10xf32, #tpu.memory_space<vmem>>, vector<1x1x10xf32>
    %158 = vector.shape_cast %157 : vector<1x1x10xf32> to vector<1x10xf32>
    %159 = vector.shape_cast %156 : vector<1x10xf32> to vector<1x1x10xf32>
    tpu.vector_store %arg17[%c0_83, %c0_84, %c0_85], %159 {strides = array<i32>} : memref<2x1x10xf32, #tpu.memory_space<vmem>>, vector<1x1x10xf32>,
    %c1_86 = arith.constant 1 : index
    %c0_87 = arith.constant 0 : index
    %c0_88 = arith.constant 0 : index
    %160 = vector.load %arg1[%c1_86, %c0_87, %c0_88] : memref<2x28x28xf32, #tpu.memory_space<vmem>>, vector<1x28x28xf32>
    %161 = vector.shape_cast %160 : vector<1x28x28xf32> to vector<28x28xf32>
    %162 = vector.extract_strided_slice %161 {offsets = [0, 0], sizes = [26, 28], strides = [1, 1]} : vector<28x28xf32> to vector<26x28xf32>
    %163 = arith.truncf %162 : vector<26x28xf32> to vector<26x28xbf16>
    %c0_89 = arith.constant 0 : index
    %c0_90 = arith.constant 0 : index
    %c0_91 = arith.constant 0 : index
    %164 = vector.load %arg2[%c0_89, %c0_90, %c0_91] : memref<3x28x416xbf16, #tpu.memory_space<vmem>>, vector<1x28x416xbf16>
    %165 = vector.shape_cast %164 : vector<1x28x416xbf16> to vector<28x416xbf16>
    %cst_92 = arith.constant dense<0.000000e+00> : vector<26x416xf32>
    %166 = tpu.matmul %163, %165, %cst_92 {dimension_numbers = #tpu.dot_dimension_numbers<[1], [0], [0], [1], [0, 0, 1, 1], [], []>} : vector<26x28xbf16>, vector<28x416xbf16>, vector<26x416xf32> -> vector<26x416xf32>
    %167 = vector.extract_strided_slice %161 {offsets = [1, 0], sizes = [26, 28], strides = [1, 1]} : vector<28x28xf32> to vector<26x28xf32>
    %168 = arith.truncf %167 : vector<26x28xf32> to vector<26x28xbf16>
    %c1_93 = arith.constant 1 : index
    %c0_94 = arith.constant 0 : index
    %c0_95 = arith.constant 0 : index
    %169 = vector.load %arg2[%c1_93, %c0_94, %c0_95] : memref<3x28x416xbf16, #tpu.memory_space<vmem>>, vector<1x28x416xbf16>
    %170 = vector.shape_cast %169 : vector<1x28x416xbf16> to vector<28x416xbf16>
    %cst_96 = arith.constant dense<0.000000e+00> : vector<26x416xf32>
    %171 = tpu.matmul %168, %170, %cst_96 {dimension_numbers = #tpu.dot_dimension_numbers<[1], [0], [0], [1], [0, 0, 1, 1], [], []>} : vector<26x28xbf16>, vector<28x416xbf16>, vector<26x416xf32> -> vector<26x416xf32>
    %172 = arith.addf %166, %171 : vector<26x416xf32>
    %173 = vector.extract_strided_slice %161 {offsets = [2, 0], sizes = [26, 28], strides = [1, 1]} : vector<28x28xf32> to vector<26x28xf32>
    %174 = arith.truncf %173 : vector<26x28xf32> to vector<26x28xbf16>
    %c2_97 = arith.constant 2 : index
    %c0_98 = arith.constant 0 : index
    %c0_99 = arith.constant 0 : index
    %175 = vector.load %arg2[%c2_97, %c0_98, %c0_99] : memref<3x28x416xbf16, #tpu.memory_space<vmem>>, vector<1x28x416xbf16>
    %176 = vector.shape_cast %175 : vector<1x28x416xbf16> to vector<28x416xbf16>
    %cst_100 = arith.constant dense<0.000000e+00> : vector<26x416xf32>
    %177 = tpu.matmul %174, %176, %cst_100 {dimension_numbers = #tpu.dot_dimension_numbers<[1], [0], [0], [1], [0, 0, 1, 1], [], []>} : vector<26x28xbf16>, vector<28x416xbf16>, vector<26x416xf32> -> vector<26x416xf32>
    %178 = arith.addf %172, %177 : vector<26x416xf32>
    %c0_101 = arith.constant 0 : index
    %c0_102 = arith.constant 0 : index
    %179 = vector.load %arg3[%c0_101, %c0_102] : memref<2x416xf32, #tpu.memory_space<vmem>>, vector<2x416xf32>
    %cst_103 = arith.constant 0.000000e+00 : f32
    %180 = vector.broadcast %cst_103 : f32 to vector<26x416xf32>
    %181 = arith.maximumf %178, %180 : vector<26x416xf32>
    %182 = vector.extract_strided_slice %179 {offsets = [0, 0], sizes = [1, 416], strides = [1, 1]} : vector<2x416xf32> to vector<1x416xf32>
    %183 = vector.broadcast %182 : vector<1x416xf32> to vector<26x416xf32>
    %184 = arith.mulf %181, %183 : vector<26x416xf32>
    %185 = vector.extract_strided_slice %179 {offsets = [1, 0], sizes = [1, 416], strides = [1, 1]} : vector<2x416xf32> to vector<1x416xf32>
    %186 = vector.broadcast %185 : vector<1x416xf32> to vector<26x416xf32>
    %187 = arith.addf %184, %186 : vector<26x416xf32>
    %188 = vector.extract_strided_slice %187 {offsets = [0, 0], sizes = [24, 416], strides = [1, 1]} : vector<26x416xf32> to vector<24x416xf32>
    %189 = arith.truncf %188 : vector<24x416xf32> to vector<24x416xbf16>
    %c0_104 = arith.constant 0 : index
    %c0_105 = arith.constant 0 : index
    %c0_106 = arith.constant 0 : index
    %190 = vector.load %arg4[%c0_104, %c0_105, %c0_106] : memref<3x416x384xbf16, #tpu.memory_space<vmem>>, vector<1x416x384xbf16>
    %191 = vector.shape_cast %190 : vector<1x416x384xbf16> to vector<416x384xbf16>
    %cst_107 = arith.constant dense<0.000000e+00> : vector<24x384xf32>
    %192 = tpu.matmul %189, %191, %cst_107 {dimension_numbers = #tpu.dot_dimension_numbers<[1], [0], [0], [1], [0, 0, 1, 1], [], []>} : vector<24x416xbf16>, vector<416x384xbf16>, vector<24x384xf32> -> vector<24x384xf32>
    %193 = vector.extract_strided_slice %187 {offsets = [1, 0], sizes = [24, 416], strides = [1, 1]} : vector<26x416xf32> to vector<24x416xf32>
    %194 = arith.truncf %193 : vector<24x416xf32> to vector<24x416xbf16>
    %c1_108 = arith.constant 1 : index
    %c0_109 = arith.constant 0 : index
    %c0_110 = arith.constant 0 : index
    %195 = vector.load %arg4[%c1_108, %c0_109, %c0_110] : memref<3x416x384xbf16, #tpu.memory_space<vmem>>, vector<1x416x384xbf16>
    %196 = vector.shape_cast %195 : vector<1x416x384xbf16> to vector<416x384xbf16>
    %cst_111 = arith.constant dense<0.000000e+00> : vector<24x384xf32>
    %197 = tpu.matmul %194, %196, %cst_111 {dimension_numbers = #tpu.dot_dimension_numbers<[1], [0], [0], [1], [0, 0, 1, 1], [], []>} : vector<24x416xbf16>, vector<416x384xbf16>, vector<24x384xf32> -> vector<24x384xf32>
    %198 = arith.addf %192, %197 : vector<24x384xf32>
    %199 = vector.extract_strided_slice %187 {offsets = [2, 0], sizes = [24, 416], strides = [1, 1]} : vector<26x416xf32> to vector<24x416xf32>
    %200 = arith.truncf %199 : vector<24x416xf32> to vector<24x416xbf16>
    %c2_112 = arith.constant 2 : index
    %c0_113 = arith.constant 0 : index
    %c0_114 = arith.constant 0 : index
    %201 = vector.load %arg4[%c2_112, %c0_113, %c0_114] : memref<3x416x384xbf16, #tpu.memory_space<vmem>>, vector<1x416x384xbf16>
    %202 = vector.shape_cast %201 : vector<1x416x384xbf16> to vector<416x384xbf16>
    %cst_115 = arith.constant dense<0.000000e+00> : vector<24x384xf32>
    %203 = tpu.matmul %200, %202, %cst_115 {dimension_numbers = #tpu.dot_dimension_numbers<[1], [0], [0], [1], [0, 0, 1, 1], [], []>} : vector<24x416xbf16>, vector<416x384xbf16>, vector<24x384xf32> -> vector<24x384xf32>
    %204 = arith.addf %198, %203 : vector<24x384xf32>
    %c0_116 = arith.constant 0 : index
    %c0_117 = arith.constant 0 : index
    %205 = vector.load %arg5[%c0_116, %c0_117] : memref<2x384xf32, #tpu.memory_space<vmem>>, vector<2x384xf32>
    %cst_118 = arith.constant 0.000000e+00 : f32
    %206 = vector.broadcast %cst_118 : f32 to vector<24x384xf32>
    %207 = arith.maximumf %204, %206 : vector<24x384xf32>
    %208 = vector.extract_strided_slice %205 {offsets = [0, 0], sizes = [1, 384], strides = [1, 1]} : vector<2x384xf32> to vector<1x384xf32>
    %209 = vector.broadcast %208 : vector<1x384xf32> to vector<24x384xf32>
    %210 = arith.mulf %207, %209 : vector<24x384xf32>
    %211 = vector.extract_strided_slice %205 {offsets = [1, 0], sizes = [1, 384], strides = [1, 1]} : vector<2x384xf32> to vector<1x384xf32>
    %212 = vector.broadcast %211 : vector<1x384xf32> to vector<24x384xf32>
    %213 = arith.addf %210, %212 : vector<24x384xf32>
    %214 = arith.truncf %213 : vector<24x384xf32> to vector<24x384xbf16>
    %c0_119 = arith.constant 0 : index
    %c0_120 = arith.constant 0 : index
    %215 = vector.load %arg6[%c0_119, %c0_120] : memref<384x192xbf16, #tpu.memory_space<vmem>>, vector<384x192xbf16>
    %cst_121 = arith.constant dense<0.000000e+00> : vector<24x192xf32>
    %216 = tpu.matmul %214, %215, %cst_121 {dimension_numbers = #tpu.dot_dimension_numbers<[1], [0], [0], [1], [0, 0, 1, 1], [], []>} : vector<24x384xbf16>, vector<384x192xbf16>, vector<24x192xf32> -> vector<24x192xf32>
    %217 = vector.extract_strided_slice %216 {offsets = [0, 0], sizes = [24, 184], strides = [1, 1]} : vector<24x192xf32> to vector<24x184xf32>
    %218 = vector.extract_strided_slice %216 {offsets = [0, 8], sizes = [24, 184], strides = [1, 1]} : vector<24x192xf32> to vector<24x184xf32>
    %219 = arith.maximumf %217, %218 : vector<24x184xf32>
    %220 = vector.extract_strided_slice %219 {offsets = [0, 0], sizes = [23, 184], strides = [1, 1]} : vector<24x184xf32> to vector<23x184xf32>
    %221 = vector.extract_strided_slice %219 {offsets = [1, 0], sizes = [23, 184], strides = [1, 1]} : vector<24x184xf32> to vector<23x184xf32>
    %222 = arith.maximumf %220, %221 : vector<23x184xf32>
    %c0_122 = arith.constant 0 : index
    %c0_123 = arith.constant 0 : index
    %223 = vector.load %arg8[%c0_122, %c0_123] : memref<184x96xf32, #tpu.memory_space<vmem>>, vector<184x96xf32>
    %cst_124 = arith.constant dense<0.000000e+00> : vector<23x96xf32>
    %224 = tpu.matmul %222, %223, %cst_124 {dimension_numbers = #tpu.dot_dimension_numbers<[1], [0], [0], [1], [0, 0, 1, 1], [], []>} : vector<23x184xf32>, vector<184x96xf32>, vector<23x96xf32> -> vector<23x96xf32>
    %c0_125 = arith.constant 0 : index
    %c0_126 = arith.constant 0 : index
    %225 = vector.load %arg7[%c0_125, %c0_126] : memref<12x23xf32, #tpu.memory_space<vmem>>, vector<12x23xf32>
    %cst_127 = arith.constant dense<0.000000e+00> : vector<12x96xf32>
    %226 = tpu.matmul %225, %224, %cst_127 {dimension_numbers = #tpu.dot_dimension_numbers<[1], [0], [0], [1], [0, 0, 1, 1], [], []>} : vector<12x23xf32>, vector<23x96xf32>, vector<12x96xf32> -> vector<12x96xf32>
    %227 = vector.extract_strided_slice %226 {offsets = [0, 0], sizes = [10, 96], strides = [1, 1]} : vector<12x96xf32> to vector<10x96xf32>
    %228 = arith.truncf %227 : vector<10x96xf32> to vector<10x96xbf16>
    %c0_128 = arith.constant 0 : index
    %c0_129 = arith.constant 0 : index
    %c0_130 = arith.constant 0 : index
    %229 = vector.load %arg9[%c0_128, %c0_129, %c0_130] : memref<3x96x160xbf16, #tpu.memory_space<vmem>>, vector<1x96x160xbf16>
    %230 = vector.shape_cast %229 : vector<1x96x160xbf16> to vector<96x160xbf16>
    %cst_131 = arith.constant dense<0.000000e+00> : vector<10x160xf32>
    %231 = tpu.matmul %228, %230, %cst_131 {dimension_numbers = #tpu.dot_dimension_numbers<[1], [0], [0], [1], [0, 0, 1, 1], [], []>} : vector<10x96xbf16>, vector<96x160xbf16>, vector<10x160xf32> -> vector<10x160xf32>
    %232 = vector.extract_strided_slice %226 {offsets = [1, 0], sizes = [10, 96], strides = [1, 1]} : vector<12x96xf32> to vector<10x96xf32>
    %233 = arith.truncf %232 : vector<10x96xf32> to vector<10x96xbf16>
    %c1_132 = arith.constant 1 : index
    %c0_133 = arith.constant 0 : index
    %c0_134 = arith.constant 0 : index
    %234 = vector.load %arg9[%c1_132, %c0_133, %c0_134] : memref<3x96x160xbf16, #tpu.memory_space<vmem>>, vector<1x96x160xbf16>
    %235 = vector.shape_cast %234 : vector<1x96x160xbf16> to vector<96x160xbf16>
    %cst_135 = arith.constant dense<0.000000e+00> : vector<10x160xf32>
    %236 = tpu.matmul %233, %235, %cst_135 {dimension_numbers = #tpu.dot_dimension_numbers<[1], [0], [0], [1], [0, 0, 1, 1], [], []>} : vector<10x96xbf16>, vector<96x160xbf16>, vector<10x160xf32> -> vector<10x160xf32>
    %237 = arith.addf %231, %236 : vector<10x160xf32>
    %238 = vector.extract_strided_slice %226 {offsets = [2, 0], sizes = [10, 96], strides = [1, 1]} : vector<12x96xf32> to vector<10x96xf32>
    %239 = arith.truncf %238 : vector<10x96xf32> to vector<10x96xbf16>
    %c2_136 = arith.constant 2 : index
    %c0_137 = arith.constant 0 : index
    %c0_138 = arith.constant 0 : index
    %240 = vector.load %arg9[%c2_136, %c0_137, %c0_138] : memref<3x96x160xbf16, #tpu.memory_space<vmem>>, vector<1x96x160xbf16>
    %241 = vector.shape_cast %240 : vector<1x96x160xbf16> to vector<96x160xbf16>
    %cst_139 = arith.constant dense<0.000000e+00> : vector<10x160xf32>
    %242 = tpu.matmul %239, %241, %cst_139 {dimension_numbers = #tpu.dot_dimension_numbers<[1], [0], [0], [1], [0, 0, 1, 1], [], []>} : vector<10x96xbf16>, vector<96x160xbf16>, vector<10x160xf32> -> vector<10x160xf32>
    %243 = arith.addf %237, %242 : vector<10x160xf32>
    %c0_140 = arith.constant 0 : index
    %c0_141 = arith.constant 0 : index
    %244 = vector.load %arg10[%c0_140, %c0_141] : memref<2x160xf32, #tpu.memory_space<vmem>>, vector<2x160xf32>
    %cst_142 = arith.constant 0.000000e+00 : f32
    %245 = vector.broadcast %cst_142 : f32 to vector<10x160xf32>
    %246 = arith.maximumf %243, %245 : vector<10x160xf32>
    %247 = vector.extract_strided_slice %244 {offsets = [0, 0], sizes = [1, 160], strides = [1, 1]} : vector<2x160xf32> to vector<1x160xf32>
    %248 = vector.broadcast %247 : vector<1x160xf32> to vector<10x160xf32>
    %249 = arith.mulf %246, %248 : vector<10x160xf32>
    %250 = vector.extract_strided_slice %244 {offsets = [1, 0], sizes = [1, 160], strides = [1, 1]} : vector<2x160xf32> to vector<1x160xf32>
    %251 = vector.broadcast %250 : vector<1x160xf32> to vector<10x160xf32>
    %252 = arith.addf %249, %251 : vector<10x160xf32>
    %253 = arith.truncf %252 : vector<10x160xf32> to vector<10x160xbf16>
    %c0_143 = arith.constant 0 : index
    %c0_144 = arith.constant 0 : index
    %254 = vector.load %arg11[%c0_143, %c0_144] : memref<160x80xbf16, #tpu.memory_space<vmem>>, vector<160x80xbf16>
    %cst_145 = arith.constant dense<0.000000e+00> : vector<10x80xf32>
    %255 = tpu.matmul %253, %254, %cst_145 {dimension_numbers = #tpu.dot_dimension_numbers<[1], [0], [0], [1], [0, 0, 1, 1], [], []>} : vector<10x160xbf16>, vector<160x80xbf16>, vector<10x80xf32> -> vector<10x80xf32>
    %256 = vector.extract_strided_slice %255 {offsets = [0, 0], sizes = [10, 72], strides = [1, 1]} : vector<10x80xf32> to vector<10x72xf32>
    %257 = vector.extract_strided_slice %255 {offsets = [0, 8], sizes = [10, 72], strides = [1, 1]} : vector<10x80xf32> to vector<10x72xf32>
    %258 = arith.maximumf %256, %257 : vector<10x72xf32>
    %259 = vector.extract_strided_slice %258 {offsets = [0, 0], sizes = [9, 72], strides = [1, 1]} : vector<10x72xf32> to vector<9x72xf32>
    %260 = vector.extract_strided_slice %258 {offsets = [1, 0], sizes = [9, 72], strides = [1, 1]} : vector<10x72xf32> to vector<9x72xf32>
    %261 = arith.maximumf %259, %260 : vector<9x72xf32>
    %c0_146 = arith.constant 0 : index
    %c0_147 = arith.constant 0 : index
    %262 = vector.load %arg13[%c0_146, %c0_147] : memref<72x40xf32, #tpu.memory_space<vmem>>, vector<72x40xf32>
    %cst_148 = arith.constant dense<0.000000e+00> : vector<9x40xf32>
    %263 = tpu.matmul %261, %262, %cst_148 {dimension_numbers = #tpu.dot_dimension_numbers<[1], [0], [0], [1], [0, 0, 1, 1], [], []>} : vector<9x72xf32>, vector<72x40xf32>, vector<9x40xf32> -> vector<9x40xf32>
    %c0_149 = arith.constant 0 : index
    %c0_150 = arith.constant 0 : index
    %264 = vector.load %arg12[%c0_149, %c0_150] : memref<5x9xf32, #tpu.memory_space<vmem>>, vector<5x9xf32>
    %cst_151 = arith.constant dense<0.000000e+00> : vector<5x40xf32>
    %265 = tpu.matmul %264, %263, %cst_151 {dimension_numbers = #tpu.dot_dimension_numbers<[1], [0], [0], [1], [0, 0, 1, 1], [], []>} : vector<5x9xf32>, vector<9x40xf32>, vector<5x40xf32> -> vector<5x40xf32>
    %266 = vector.extract_strided_slice %265 {offsets = [0, 0], sizes = [3, 40], strides = [1, 1]} : vector<5x40xf32> to vector<3x40xf32>
    %267 = arith.truncf %266 : vector<3x40xf32> to vector<3x40xbf16>
    %c0_152 = arith.constant 0 : index
    %c0_153 = arith.constant 0 : index
    %c0_154 = arith.constant 0 : index
    %268 = vector.load %arg14[%c0_152, %c0_153, %c0_154] : memref<3x40x144xbf16, #tpu.memory_space<vmem>>, vector<1x40x144xbf16>
    %269 = vector.shape_cast %268 : vector<1x40x144xbf16> to vector<40x144xbf16>
    %cst_155 = arith.constant dense<0.000000e+00> : vector<3x144xf32>
    %270 = tpu.matmul %267, %269, %cst_155 {dimension_numbers = #tpu.dot_dimension_numbers<[1], [0], [0], [1], [0, 0, 1, 1], [], []>} : vector<3x40xbf16>, vector<40x144xbf16>, vector<3x144xf32> -> vector<3x144xf32>
    %271 = vector.extract_strided_slice %265 {offsets = [1, 0], sizes = [3, 40], strides = [1, 1]} : vector<5x40xf32> to vector<3x40xf32>
    %272 = arith.truncf %271 : vector<3x40xf32> to vector<3x40xbf16>
    %c1_156 = arith.constant 1 : index
    %c0_157 = arith.constant 0 : index
    %c0_158 = arith.constant 0 : index
    %273 = vector.load %arg14[%c1_156, %c0_157, %c0_158] : memref<3x40x144xbf16, #tpu.memory_space<vmem>>, vector<1x40x144xbf16>
    %274 = vector.shape_cast %273 : vector<1x40x144xbf16> to vector<40x144xbf16>
    %cst_159 = arith.constant dense<0.000000e+00> : vector<3x144xf32>
    %275 = tpu.matmul %272, %274, %cst_159 {dimension_numbers = #tpu.dot_dimension_numbers<[1], [0], [0], [1], [0, 0, 1, 1], [], []>} : vector<3x40xbf16>, vector<40x144xbf16>, vector<3x144xf32> -> vector<3x144xf32>
    %276 = arith.addf %270, %275 : vector<3x144xf32>
    %277 = vector.extract_strided_slice %265 {offsets = [2, 0], sizes = [3, 40], strides = [1, 1]} : vector<5x40xf32> to vector<3x40xf32>
    %278 = arith.truncf %277 : vector<3x40xf32> to vector<3x40xbf16>
    %c2_160 = arith.constant 2 : index
    %c0_161 = arith.constant 0 : index
    %c0_162 = arith.constant 0 : index
    %279 = vector.load %arg14[%c2_160, %c0_161, %c0_162] : memref<3x40x144xbf16, #tpu.memory_space<vmem>>, vector<1x40x144xbf16>
    %280 = vector.shape_cast %279 : vector<1x40x144xbf16> to vector<40x144xbf16>
    %cst_163 = arith.constant dense<0.000000e+00> : vector<3x144xf32>
    %281 = tpu.matmul %278, %280, %cst_163 {dimension_numbers = #tpu.dot_dimension_numbers<[1], [0], [0], [1], [0, 0, 1, 1], [], []>} : vector<3x40xbf16>, vector<40x144xbf16>, vector<3x144xf32> -> vector<3x144xf32>
    %282 = arith.addf %276, %281 : vector<3x144xf32>
    %c0_164 = arith.constant 0 : index
    %c0_165 = arith.constant 0 : index
    %283 = vector.load %arg15[%c0_164, %c0_165] : memref<2x144xf32, #tpu.memory_space<vmem>>, vector<2x144xf32>
    %cst_166 = arith.constant 0.000000e+00 : f32
    %284 = vector.broadcast %cst_166 : f32 to vector<3x144xf32>
    %285 = arith.maximumf %282, %284 : vector<3x144xf32>
    %286 = vector.extract_strided_slice %283 {offsets = [0, 0], sizes = [1, 144], strides = [1, 1]} : vector<2x144xf32> to vector<1x144xf32>
    %287 = vector.broadcast %286 : vector<1x144xf32> to vector<3x144xf32>
    %288 = arith.mulf %285, %287 : vector<3x144xf32>
    %289 = vector.extract_strided_slice %283 {offsets = [1, 0], sizes = [1, 144], strides = [1, 1]} : vector<2x144xf32> to vector<1x144xf32>
    %290 = vector.broadcast %289 : vector<1x144xf32> to vector<3x144xf32>
    %291 = arith.addf %288, %290 : vector<3x144xf32>
    %292 = vector.extract_strided_slice %291 {offsets = [0, 0], sizes = [1, 144], strides = [1, 1]} : vector<3x144xf32> to vector<1x144xf32>
    %293 = vector.extract_strided_slice %291 {offsets = [1, 0], sizes = [1, 144], strides = [1, 1]} : vector<3x144xf32> to vector<1x144xf32>
    %294 = arith.addf %292, %293 : vector<1x144xf32>
    %295 = vector.extract_strided_slice %291 {offsets = [2, 0], sizes = [1, 144], strides = [1, 1]} : vector<3x144xf32> to vector<1x144xf32>
    %296 = arith.addf %294, %295 : vector<1x144xf32>
    %297 = vector.extract_strided_slice %296 {offsets = [0, 0], sizes = [1, 48], strides = [1, 1]} : vector<1x144xf32> to vector<1x48xf32>
    %298 = vector.extract_strided_slice %296 {offsets = [0, 48], sizes = [1, 48], strides = [1, 1]} : vector<1x144xf32> to vector<1x48xf32>
    %299 = arith.addf %297, %298 : vector<1x48xf32>
    %300 = vector.extract_strided_slice %296 {offsets = [0, 96], sizes = [1, 48], strides = [1, 1]} : vector<1x144xf32> to vector<1x48xf32>
    %301 = arith.addf %299, %300 : vector<1x48xf32>
    %cst_167 = arith.constant 0.111111112 : f32
    %302 = vector.broadcast %cst_167 : f32 to vector<1x48xf32>
    %303 = arith.mulf %301, %302 : vector<1x48xf32>
    %c0_168 = arith.constant 0 : index
    %c0_169 = arith.constant 0 : index
    %304 = vector.load %arg16[%c0_168, %c0_169] : memref<48x10xf32, #tpu.memory_space<vmem>>, vector<48x10xf32>
    %cst_170 = arith.constant dense<0.000000e+00> : vector<1x10xf32>
    %305 = tpu.matmul %303, %304, %cst_170 {dimension_numbers = #tpu.dot_dimension_numbers<[1], [0], [0], [1], [0, 0, 1, 1], [], []>} : vector<1x48xf32>, vector<48x10xf32>, vector<1x10xf32> -> vector<1x10xf32>
    %cst_171 = arith.constant dense<0xFF800000> : vector<1xf32>
    %306 = vector.multi_reduction <maximumf>, %305, %cst_171 [1] : vector<1x10xf32> to vector<1xf32>
    %307 = vector.shape_cast %306 : vector<1xf32> to vector<1x1xf32>
    %308 = vector.broadcast %307 : vector<1x1xf32> to vector<1x10xf32>
    %309 = arith.subf %305, %308 : vector<1x10xf32>
    %310 = math.exp %309 : vector<1x10xf32>
    %cst_172 = arith.constant dense<0.000000e+00> : vector<1xf32>
    %311 = vector.multi_reduction <add>, %310, %cst_172 [1] : vector<1x10xf32> to vector<1xf32>
    %312 = vector.shape_cast %311 : vector<1xf32> to vector<1x1xf32>
    %313 = math.log %312 : vector<1x1xf32>
    %314 = arith.addf %313, %307 : vector<1x1xf32>
    %315 = vector.broadcast %314 : vector<1x1xf32> to vector<1x10xf32>
    %316 = arith.subf %305, %315 : vector<1x10xf32>
    %c1_173 = arith.constant 1 : index
    %c0_174 = arith.constant 0 : index
    %c0_175 = arith.constant 0 : index
    %317 = vector.load %arg17[%c1_173, %c0_174, %c0_175] : memref<2x1x10xf32, #tpu.memory_space<vmem>>, vector<1x1x10xf32>
    %318 = vector.shape_cast %317 : vector<1x1x10xf32> to vector<1x10xf32>
    %319 = vector.shape_cast %316 : vector<1x10xf32> to vector<1x1x10xf32>
    tpu.vector_store %arg17[%c1_173, %c0_174, %c0_175], %319 {strides = array<i32>} : memref<2x1x10xf32, #tpu.memory_space<vmem>>, vector<1x1x10xf32>,
    return
  }
  func.func @transform_0(%arg0: i32) -> (i32, i32, i32) {
    %c0_i32 = arith.constant 0 : i32
    %c0_i32_0 = arith.constant 0 : i32
    %c0_i32_1 = arith.constant 0 : i32
    return %arg0, %c0_i32, %c0_i32_0 : i32, i32, i32
  }
  func.func @transform_1(%arg0: i32) -> (i32, i32, i32) {
    %c0_i32 = arith.constant 0 : i32
    %c0_i32_0 = arith.constant 0 : i32
    %c0_i32_1 = arith.constant 0 : i32
    %c0_i32_2 = arith.constant 0 : i32
    return %c0_i32, %c0_i32_0, %c0_i32_1 : i32, i32, i32
  }
  func.func @transform_2(%arg0: i32) -> (i32, i32) {
    %c0_i32 = arith.constant 0 : i32
    %c0_i32_0 = arith.constant 0 : i32
    %c0_i32_1 = arith.constant 0 : i32
    return %c0_i32, %c0_i32_0 : i32, i32
  }
  func.func @transform_3(%arg0: i32) -> (i32, i32, i32) {
    %c0_i32 = arith.constant 0 : i32
    %c0_i32_0 = arith.constant 0 : i32
    %c0_i32_1 = arith.constant 0 : i32
    %c0_i32_2 = arith.constant 0 : i32
    return %c0_i32, %c0_i32_0, %c0_i32_1 : i32, i32, i32
  }
  func.func @transform_4(%arg0: i32) -> (i32, i32) {
    %c0_i32 = arith.constant 0 : i32
    %c0_i32_0 = arith.constant 0 : i32
    %c0_i32_1 = arith.constant 0 : i32
    return %c0_i32, %c0_i32_0 : i32, i32
  }
  func.func @transform_5(%arg0: i32) -> (i32, i32) {
    %c0_i32 = arith.constant 0 : i32
    %c0_i32_0 = arith.constant 0 : i32
    %c0_i32_1 = arith.constant 0 : i32
    return %c0_i32, %c0_i32_0 : i32, i32
  }
  func.func @transform_6(%arg0: i32) -> (i32, i32) {
    %c0_i32 = arith.constant 0 : i32
    %c0_i32_0 = arith.constant 0 : i32
    %c0_i32_1 = arith.constant 0 : i32
    return %c0_i32, %c0_i32_0 : i32, i32
  }
  func.func @transform_7(%arg0: i32) -> (i32, i32) {
    %c0_i32 = arith.constant 0 : i32
    %c0_i32_0 = arith.constant 0 : i32
    %c0_i32_1 = arith.constant 0 : i32
    return %c0_i32, %c0_i32_0 : i32, i32
  }
  func.func @transform_8(%arg0: i32) -> (i32, i32, i32) {
    %c0_i32 = arith.constant 0 : i32
    %c0_i32_0 = arith.constant 0 : i32
    %c0_i32_1 = arith.constant 0 : i32
    %c0_i32_2 = arith.constant 0 : i32
    return %c0_i32, %c0_i32_0, %c0_i32_1 : i32, i32, i32
  }
  func.func @transform_9(%arg0: i32) -> (i32, i32) {
    %c0_i32 = arith.constant 0 : i32
    %c0_i32_0 = arith.constant 0 : i32
    %c0_i32_1 = arith.constant 0 : i32
    return %c0_i32, %c0_i32_0 : i32, i32
  }
  func.func @transform_10(%arg0: i32) -> (i32, i32) {
    %c0_i32 = arith.constant 0 : i32
    %c0_i32_0 = arith.constant 0 : i32
    %c0_i32_1 = arith.constant 0 : i32
    return %c0_i32, %c0_i32_0 : i32, i32
  }
  func.func @transform_11(%arg0: i32) -> (i32, i32) {
    %c0_i32 = arith.constant 0 : i32
    %c0_i32_0 = arith.constant 0 : i32
    %c0_i32_1 = arith.constant 0 : i32
    return %c0_i32, %c0_i32_0 : i32, i32
  }
  func.func @transform_12(%arg0: i32) -> (i32, i32) {
    %c0_i32 = arith.constant 0 : i32
    %c0_i32_0 = arith.constant 0 : i32
    %c0_i32_1 = arith.constant 0 : i32
    return %c0_i32, %c0_i32_0 : i32, i32
  }
  func.func @transform_13(%arg0: i32) -> (i32, i32, i32) {
    %c0_i32 = arith.constant 0 : i32
    %c0_i32_0 = arith.constant 0 : i32
    %c0_i32_1 = arith.constant 0 : i32
    %c0_i32_2 = arith.constant 0 : i32
    return %c0_i32, %c0_i32_0, %c0_i32_1 : i32, i32, i32
  }
  func.func @transform_14(%arg0: i32) -> (i32, i32) {
    %c0_i32 = arith.constant 0 : i32
    %c0_i32_0 = arith.constant 0 : i32
    %c0_i32_1 = arith.constant 0 : i32
    return %c0_i32, %c0_i32_0 : i32, i32
  }
  func.func @transform_15(%arg0: i32) -> (i32, i32) {
    %c0_i32 = arith.constant 0 : i32
    %c0_i32_0 = arith.constant 0 : i32
    %c0_i32_1 = arith.constant 0 : i32
    return %c0_i32, %c0_i32_0 : i32, i32
  }
  func.func @transform_16(%arg0: i32) -> (i32, i32, i32) {
    %c0_i32 = arith.constant 0 : i32
    %c0_i32_0 = arith.constant 0 : i32
    %c0_i32_1 = arith.constant 0 : i32
    return %arg0, %c0_i32, %c0_i32_0 : i32, i32, i32
  }
}

</mosaic_0001>

<bundles_post_ra>
// kernel: tile.48
= control target key start
LH: loop header
LB: loop body
LE: loop exit
PB: predicated region body
PF: predicated region fallthrough
CT: control target
= control target key end

     0   :  { %s94_s8 = smov 112   ;;  %s95_s11 = smov 80   ;;  %vm3_vm0 = vcmask 130048   ;;  %vm9_vm1 = vcmask 1048448   ;;  %vm15_vm2 = vcmask 917248   ;;  %vm21_vm3 = vcmask 786048   ;;  %s147_s0 = inlined_call_operand.vmem [shape: f32[26,16], index: 0, kind: input, shape index: {}]   ;;  %s148_s1 = inlined_call_operand.vmem [shape: f32[1,416], index: 1, kind: output, shape index: {}]  }
   0x1   :  { %v77_v0 = vld [vmem:[%s147_s0 + $0x7] ss:$8 sm:$0x7]   ;;  %v79_v1 = vld [vmem:[%s147_s0 + $0x5] ss:$8 sm:$0x7]  }
   0x2   :  { %7 = vrot.lane.b32.xlu0 %v77_v0, %s94_s8  ;;  %19 = vrot.lane.b32.xlu1 %v79_v1, %s95_s11  ;;  %v78_v2 = vld [vmem:[%s147_s0 + $0x6] ss:$8 sm:$0x7]   ;;  %v80_v3 = vld [vmem:[%s147_s0 + $0x4] ss:$8 sm:$0x7]  }
   0x3   :  { %s96_s16 = smov 96   ;;  %v2_v4 = vld [vmem:[%s147_s0] ss:$8 sm:$0xf]   ;;  %s97_s19 = smov 64   ;;  %vm27_vm4 = vcmask 654848  }
   0x4   :  { %v81_v5 = vld [vmem:[%s147_s0 + $0x3] ss:$8 sm:$0x7]   ;;  %4 = vst.msk [vmem:[#allocation0] ss:$8 sm:$0xf] %vm3_vm0, %v2_v4  }
   0x5   :  { %v82_v6 = vld [vmem:[%s147_s0 + $0x2] ss:$8 sm:$0x7]   ;;  %s98_s24 = smov 48   ;;  %s99_s25 = smov 32   ;;  %vm33_vm5 = vcmask 523648  }
   0x6   :  { %13 = vrot.lane.b32.xlu0 %v78_v2, %s96_s16  ;;  %25 = vrot.lane.b32.xlu1 %v80_v3, %s97_s19  ;;  %v83_v7 = vld [vmem:[%s147_s0 + $0x1] ss:$8 sm:$0xf]   ;;  %s100_s0 = smov 16   ;;  %vm39_vm6 = vcmask 392448   ;;  %vm45_vm7 = vcmask 261248  }
   0xa   :  { %31 = vrot.lane.b32.xlu0 %v81_v5, %s98_s24  ;;  %37 = vrot.lane.b32.xlu1 %v82_v6, %s99_s25 }
   0xe   :  { %43 = vrot.lane.b32.xlu0 %v83_v7, %s100_s0 }
  0x74   :  { %v8_v8 = vpop.permute.xlu0 %7   ;;  %v20_v9 = vpop.permute.xlu1 %19  }
  0x75   :  { %10 = vst.msk [vmem:[#allocation0] ss:$8 sm:$0x7] %vm9_vm1, %v8_v8  }
  0x78   :  { %v14_v10 = vpop.permute.xlu0 %13   ;;  %v26_v11 = vpop.permute.xlu1 %25  }
  0x79   :  { %16 = vst.msk [vmem:[#allocation0] ss:$8 sm:$0x7] %vm15_vm2, %v14_v10  }
  0x7a   :  { %22 = vst.msk [vmem:[#allocation0] ss:$8 sm:$0x7] %vm21_vm3, %v20_v9  }
  0x7b   :  { %28 = vst.msk [vmem:[#allocation0] ss:$8 sm:$0x7] %vm27_vm4, %v26_v11  }
  0x7c   :  { %v32_v12 = vpop.permute.xlu0 %31   ;;  %v38_v13 = vpop.permute.xlu1 %37  }
  0x7d   :  { %34 = vst.msk [vmem:[#allocation0] ss:$8 sm:$0x7] %vm33_vm5, %v32_v12  }
  0x7e   :  { %40 = vst.msk [vmem:[#allocation0] ss:$8 sm:$0x7] %vm39_vm6, %v38_v13  }
  0x80   :  { %v44_v14 = vpop.permute.xlu0 %43  }
  0x81   :  { %46 = vst.msk [vmem:[#allocation0] ss:$8 sm:$0xf] %vm45_vm7, %v44_v14  }
  0x88   :  { %v51_v15 = vld [vmem:[#allocation0] sm:$0x1]  ;;  %v56_v16 = vld [vmem:[#allocation0 + $0x8] sm:$0x1]  ;;  %v62_v17 = vld [vmem:[#allocation0 + $0x10] sm:$0x1] }
  0x89   :  { %54 = vst [vmem:[%s148_s1] sm:$0x1] %v51_v15  ;;  %84 = vst [vmem:[%s148_s1 + $0x1] sm:$0x1] %v56_v16  ;;  %v69_v18 = vld [vmem:[#allocation0 + $0x18] sm:$0x1] }
  0x8a   :  { %85 = vst [vmem:[%s148_s1 + $0x2] sm:$0x1] %v62_v17  ;;  %86 = vst [vmem:[%s148_s1 + $0x3] sm:$0x1] %v69_v18 }

// kernel: tile.53
= control target key start
LH: loop header
LB: loop body
LE: loop exit
PB: predicated region body
PF: predicated region fallthrough
CT: control target
= control target key end

     0   :  { %s34_s0 = inlined_call_operand.vmem [shape: f32[16], index: 0, kind: input, shape index: {}]   ;;  %s35_s1 = inlined_call_operand.vmem [shape: f32[24,16], index: 1, kind: output, shape index: {}]  }
   0x1   :  { %v4_v0 = vld [vmem:[%s34_s0] ss:$0 sm:$0xff] }
   0x2   :  { %5 = vst [vmem:[%s35_s1] sm:$0xff] %v4_v0  ;;  %10 = vst [vmem:[%s35_s1 + $0x8] sm:$0xff] %v4_v0 }
   0x3   :  { %11 = vst [vmem:[%s35_s1 + $0x10] sm:$0xff] %v4_v0 }

// kernel: tile.58
= control target key start
LH: loop header
LB: loop body
LE: loop exit
PB: predicated region body
PF: predicated region fallthrough
CT: control target
= control target key end

     0   :  { %s85_s8 = smov 112   ;;  %s86_s11 = smov 80   ;;  %vm3_vm0 = vcmask 130048   ;;  %vm9_vm1 = vcmask 1048448   ;;  %vm15_vm2 = vcmask 917248   ;;  %vm21_vm3 = vcmask 786048   ;;  %s135_s0 = inlined_call_operand.vmem [shape: f32[24,16], index: 0, kind: input, shape index: {}]   ;;  %s136_s1 = inlined_call_operand.vmem [shape: f32[1,384], index: 1, kind: output, shape index: {}]  }
   0x1   :  { %v69_v0 = vld [vmem:[%s135_s0 + $0x7] ss:$8 sm:$0x7]   ;;  %v71_v1 = vld [vmem:[%s135_s0 + $0x5] ss:$8 sm:$0x7]  }
   0x2   :  { %7 = vrot.lane.b32.xlu0 %v69_v0, %s85_s8  ;;  %19 = vrot.lane.b32.xlu1 %v71_v1, %s86_s11  ;;  %v70_v2 = vld [vmem:[%s135_s0 + $0x6] ss:$8 sm:$0x7]   ;;  %v72_v3 = vld [vmem:[%s135_s0 + $0x4] ss:$8 sm:$0x7]  }
   0x3   :  { %s87_s16 = smov 96   ;;  %v2_v4 = vld [vmem:[%s135_s0] ss:$8 sm:$0x7]   ;;  %s88_s19 = smov 64   ;;  %vm27_vm4 = vcmask 654848  }
   0x4   :  { %v73_v5 = vld [vmem:[%s135_s0 + $0x3] ss:$8 sm:$0x7]   ;;  %4 = vst.msk [vmem:[#allocation0] ss:$8 sm:$0x7] %vm3_vm0, %v2_v4  }
   0x5   :  { %v74_v6 = vld [vmem:[%s135_s0 + $0x2] ss:$8 sm:$0x7]   ;;  %s89_s24 = smov 48   ;;  %s90_s25 = smov 32   ;;  %vm33_vm5 = vcmask 523648  }
   0x6   :  { %13 = vrot.lane.b32.xlu0 %v70_v2, %s87_s16  ;;  %25 = vrot.lane.b32.xlu1 %v72_v3, %s88_s19  ;;  %v75_v7 = vld [vmem:[%s135_s0 + $0x1] ss:$8 sm:$0x7]   ;;  %s91_s0 = smov 16   ;;  %vm39_vm6 = vcmask 392448   ;;  %vm45_vm7 = vcmask 261248  }
   0xa   :  { %31 = vrot.lane.b32.xlu0 %v73_v5, %s89_s24  ;;  %37 = vrot.lane.b32.xlu1 %v74_v6, %s90_s25 }
   0xe   :  { %43 = vrot.lane.b32.xlu0 %v75_v7, %s91_s0 }
  0x74   :  { %v8_v8 = vpop.permute.xlu0 %7   ;;  %v20_v9 = vpop.permute.xlu1 %19  }
  0x75   :  { %10 = vst.msk [vmem:[#allocation0] ss:$8 sm:$0x7] %vm9_vm1, %v8_v8  }
  0x78   :  { %v14_v10 = vpop.permute.xlu0 %13   ;;  %v26_v11 = vpop.permute.xlu1 %25  }
  0x79   :  { %16 = vst.msk [vmem:[#allocation0] ss:$8 sm:$0x7] %vm15_vm2, %v14_v10  }
  0x7a   :  { %22 = vst.msk [vmem:[#allocation0] ss:$8 sm:$0x7] %vm21_vm3, %v20_v9  }
  0x7b   :  { %28 = vst.msk [vmem:[#allocation0] ss:$8 sm:$0x7] %vm27_vm4, %v26_v11  }
  0x7c   :  { %v32_v12 = vpop.permute.xlu0 %31   ;;  %v38_v13 = vpop.permute.xlu1 %37  }
  0x7d   :  { %34 = vst.msk [vmem:[#allocation0] ss:$8 sm:$0x7] %vm33_vm5, %v32_v12  }
  0x7e   :  { %40 = vst.msk [vmem:[#allocation0] ss:$8 sm:$0x7] %vm39_vm6, %v38_v13  }
  0x80   :  { %v44_v14 = vpop.permute.xlu0 %43  }
  0x81   :  { %46 = vst.msk [vmem:[#allocation0] ss:$8 sm:$0x7] %vm45_vm7, %v44_v14  }
  0x88   :  { %v51_v15 = vld [vmem:[#allocation0] sm:$0x1]  ;;  %v56_v16 = vld [vmem:[#allocation0 + $0x8] sm:$0x1]  ;;  %v62_v17 = vld [vmem:[#allocation0 + $0x10] sm:$0x1] }
  0x89   :  { %54 = vst [vmem:[%s136_s1] sm:$0x1] %v51_v15  ;;  %76 = vst [vmem:[%s136_s1 + $0x1] sm:$0x1] %v56_v16 }
  0x8a   :  { %77 = vst [vmem:[%s136_s1 + $0x2] sm:$0x1] %v62_v17 }

// kernel: tile.63
= control target key start
LH: loop header
LB: loop body
LE: loop exit
PB: predicated region body
PF: predicated region fallthrough
CT: control target
= control target key end

     0   :  { %s28_s0 = inlined_call_operand.vmem [shape: f32[16], index: 0, kind: input, shape index: {}]   ;;  %s29_s1 = inlined_call_operand.vmem [shape: f32[10,16], index: 1, kind: output, shape index: {}]  }
   0x1   :  { %v4_v0 = vld [vmem:[%s28_s0] ss:$0 sm:$0xff] }
   0x2   :  { %5 = vst [vmem:[%s29_s1] sm:$0xff] %v4_v0  ;;  %8 = vst [vmem:[%s29_s1 + $0x8] sm:$0xff] %v4_v0 }

// kernel: tile.68
= control target key start
LH: loop header
LB: loop body
LE: loop exit
PB: predicated region body
PF: predicated region fallthrough
CT: control target
= control target key end

     0   :  { %s78_s10 = smov 112   ;;  %s79_s11 = smov 80   ;;  %vm4_vm0 = vcmask 130048   ;;  %vm10_vm1 = vcmask 1048448   ;;  %vm16_vm2 = vcmask 917248   ;;  %vm22_vm3 = vcmask 786048   ;;  %s125_s0 = inlined_call_operand.vmem [shape: f32[10,16], index: 0, kind: input, shape index: {}]   ;;  %s126_s1 = inlined_call_operand.vmem [shape: f32[1,160], index: 1, kind: output, shape index: {}]  }
   0x1   :  { %v63_v0 = vld [vmem:[%s125_s0 + $0x7] sm:$0x1]   ;;  %v65_v1 = vld [vmem:[%s125_s0 + $0x5] sm:$0x1]   ;;  %v64_v2 = vld [vmem:[%s125_s0 + $0x6] sm:$0x1]  }
   0x2   :  { %8 = vrot.lane.b32.xlu0 %v63_v0, %s78_s10  ;;  %20 = vrot.lane.b32.xlu1 %v65_v1, %s79_s11  ;;  %v66_v3 = vld [vmem:[%s125_s0 + $0x4] sm:$0x1]   ;;  %s2_s16 = smov 3  ;;  %s80_s17 = smov 96   ;;  %v67_v5 = vld [vmem:[%s125_s0 + $0x3] sm:$0x1]  }
   0x3   :  { %s81_s18 = smov 64   ;;  %v3_v4 = vld [vmem:[%s125_s0] ss:$8 sm:%s2_s16]   ;;  %v68_v6 = vld [vmem:[%s125_s0 + $0x2] sm:$0x1]   ;;  %s43_s25 = smov 3 }
   0x4   :  { %5 = vst.msk [vmem:[#allocation0] ss:$8 sm:$0x3] %vm4_vm0, %v3_v4   ;;  %s82_s26 = smov 48   ;;  %s83_s27 = smov 32   ;;  %vm28_vm4 = vcmask 654848  }
   0x5   :  { %v69_v7 = vld [vmem:[%s125_s0 + $0x1] ss:$8 sm:%s43_s25]   ;;  %s84_s0 = smov 16   ;;  %vm34_vm5 = vcmask 523648   ;;  %vm40_vm6 = vcmask 392448   ;;  %vm47_vm7 = vcmask 261248  }
   0x6   :  { %14 = vrot.lane.b32.xlu0 %v64_v2, %s80_s17  ;;  %26 = vrot.lane.b32.xlu1 %v66_v3, %s81_s18 }
   0xa   :  { %32 = vrot.lane.b32.xlu0 %v67_v5, %s82_s26  ;;  %38 = vrot.lane.b32.xlu1 %v68_v6, %s83_s27 }
   0xe   :  { %45 = vrot.lane.b32.xlu0 %v69_v7, %s84_s0 }
  0x74   :  { %v9_v8 = vpop.permute.xlu0 %8   ;;  %v21_v9 = vpop.permute.xlu1 %20  }
  0x75   :  { %11 = vst.msk [vmem:[#allocation0] sm:$0x1] %vm10_vm1, %v9_v8  }
  0x78   :  { %v15_v10 = vpop.permute.xlu0 %14   ;;  %v27_v11 = vpop.permute.xlu1 %26  }
  0x79   :  { %17 = vst.msk [vmem:[#allocation0] sm:$0x1] %vm16_vm2, %v15_v10  }
  0x7a   :  { %23 = vst.msk [vmem:[#allocation0] sm:$0x1] %vm22_vm3, %v21_v9  }
  0x7b   :  { %29 = vst.msk [vmem:[#allocation0] sm:$0x1] %vm28_vm4, %v27_v11  }
  0x7c   :  { %v33_v12 = vpop.permute.xlu0 %32   ;;  %v39_v13 = vpop.permute.xlu1 %38  }
  0x7d   :  { %35 = vst.msk [vmem:[#allocation0] sm:$0x1] %vm34_vm5, %v33_v12  }
  0x7e   :  { %41 = vst.msk [vmem:[#allocation0] sm:$0x1] %vm40_vm6, %v39_v13  }
  0x80   :  { %v46_v14 = vpop.permute.xlu0 %45  }
  0x81   :  { %48 = vst.msk [vmem:[#allocation0] ss:$8 sm:$0x3] %vm47_vm7, %v46_v14  }
  0x88   :  { %v53_v15 = vld [vmem:[#allocation0] sm:$0x1]  ;;  %v58_v16 = vld [vmem:[#allocation0 + $0x8] sm:$0x1] }
  0x89   :  { %56 = vst [vmem:[%s126_s1] sm:$0x1] %v53_v15  ;;  %70 = vst [vmem:[%s126_s1 + $0x1] sm:$0x1] %v58_v16 }

// kernel: tile.73
= control target key start
LH: loop header
LB: loop body
LE: loop exit
PB: predicated region body
PF: predicated region fallthrough
CT: control target
= control target key end

     0   :  { %s22_s0 = inlined_call_operand.vmem [shape: f32[48], index: 0, kind: input, shape index: {}]   ;;  %s23_s1 = inlined_call_operand.vmem [shape: f32[3,48], index: 1, kind: output, shape index: {}]  }
   0x1   :  { %v4_v0 = vld [vmem:[%s22_s0] ss:$0 sm:$0xff] }
   0x2   :  { %5 = vst [vmem:[%s23_s1] sm:$0xf] %v4_v0 }

// kernel: tile.78
= control target key start
LH: loop header
LB: loop body
LE: loop exit
PB: predicated region body
PF: predicated region fallthrough
CT: control target
= control target key end

     0   :  { %vm14_vm0 = vcmask 261120   ;;  %vm8_vm1 = vcmask 392192   ;;  %s47_s8 = smov 48   ;;  %vm18_vm2 = vcmask 130048   ;;  %vm21_vm3 = vcmask 1048320   ;;  %s67_s0 = inlined_call_operand.vmem [shape: f32[3,48], index: 0, kind: input, shape index: {}]   ;;  %s68_s1 = inlined_call_operand.vmem [shape: f32[1,144], index: 1, kind: output, shape index: {}]  }
   0x1   :  { %v5_v0 = vld [vmem:[%s67_s0] sm:$0xf]  ;;  %s46_s0 = smov 96   ;;  %vm27_vm4 = vcmask 785792  }
   0x2   :  { %6 = vst [vmem:[#allocation1] sm:$0xf] %v5_v0 }
   0x9   :  { %v11_v1 = vld [vmem:[#allocation1 + $0x2] sm:$0x1]   ;;  %v7_v4 = vld [vmem:[#allocation1] sm:$0x1]   ;;  %v24_v5 = vld [vmem:[#allocation1 + $0x1] sm:$0x1]  }
   0xa   :  { %v13_v2 = vld [vmem:[#allocation1 + $0x2] sm:$0x1]   ;;  %9 = vst.msk [vmem:[#allocation0] sm:$0x1] %vm8_vm1, %v7_v4  }
   0xb   :  { %v15_v3 = vsel %vm14_vm0, %v13_v2, %v11_v1 }
   0xc   :  { %16 = vrot.lane.b32.xlu0 %v15_v3, %s46_s0 }
  0x10   :  { %25 = vrot.lane.b32.xlu0 %v24_v5, %s47_s8 }
  0x7e   :  { %v17_v6 = vpop.permute.xlu0 %16  }
  0x7f   :  { %20 = vst.msk [vmem:[#allocation0 + $0x8] sm:$0x1] %vm18_vm2, %v17_v6  }
  0x80   :  { %22 = vst.msk [vmem:[#allocation0] sm:$0x1] %vm21_vm3, %v17_v6  }
  0x82   :  { %v26_v7 = vpop.permute.xlu0 %25  }
  0x83   :  { %28 = vst.msk [vmem:[#allocation0] sm:$0x1] %vm27_vm4, %v26_v7  }
  0x86   :  { %v38_v8 = vld [vmem:[#allocation0 + $0x8] sm:$0x1] }
  0x87   :  { %43 = vst [vmem:[%s68_s1 + $0x1] sm:$0x1] %v38_v8 }
  0x8a   :  { %v33_v9 = vld [vmem:[#allocation0] sm:$0x1] }
  0x8b   :  { %36 = vst [vmem:[%s68_s1] sm:$0x1] %v33_v9 }

// kernel: net2_forward.1
= control target key start
LH: loop header
LB: loop body
LE: loop exit
PB: predicated region body
PF: predicated region fallthrough
CT: control target
= control target key end

     0   :  { %s16190_s0 = inlined_call_operand.vmem [shape: f32[2,28,28], index: 0, kind: input, shape index: {}]   ;;  %s16191_s1 = inlined_call_operand.vmem [shape: bf16[3,28,416], index: 1, kind: input, shape index: {}]   ;;  %s16192_s2 = inlined_call_operand.vmem [shape: f32[2,416], index: 2, kind: input, shape index: {}]   ;;  %s16193_s3 = inlined_call_operand.vmem [shape: bf16[3,416,384], index: 3, kind: input, shape index: {}]   ;;  %s16194_s4 = inlined_call_operand.vmem [shape: f32[2,384], index: 4, kind: input, shape index: {}]   ;;  %s16195_s5 = inlined_call_operand.vmem [shape: bf16[384,192], index: 5, kind: input, shape index: {}]   ;;  %s16196_s6 = inlined_call_operand.vmem [shape: f32[12,23], index: 6, kind: input, shape index: {}]   ;;  %s16197_s7 = inlined_call_operand.vmem [shape: f32[184,96], index: 7, kind: input, shape index: {}]   ;;  %s16198_s8 = inlined_call_operand.vmem [shape: bf16[3,96,160], index: 8, kind: input, shape index: {}]   ;;  %s16199_s9 = inlined_call_operand.vmem [shape: f32[2,160], index: 9, kind: input, shape index: {}]   ;;  %s16200_s10 = inlined_call_operand.vmem [shape: bf16[160,80], index: 10, kind: input, shape index: {}]   ;;  %s16201_s11 = inlined_call_operand.vmem [shape: f32[5,9], index: 11, kind: input, shape index: {}]   ;;  %s16202_s12 = inlined_call_operand.vmem [shape: f32[72,40], index: 12, kind: input, shape index: {}]   ;;  %s16203_s13 = inlined_call_operand.vmem [shape: bf16[3,40,144], index: 13, kind: input, shape index: {}]   ;;  %s16204_s14 = inlined_call_operand.vmem [shape: f32[2,144], index: 14, kind: input, shape index: {}]   ;;  %s16205_s15 = inlined_call_operand.vmem [shape: f32[48,10], index: 15, kind: input, shape index: {}]   ;;  %s16206_s16 = inlined_call_operand.hbm [shape: f32[2,1,10], index: 16, kind: output, shape index: {}]  }
   0x1   :  { %16208 = sst [smem:[#allocation5_spill]] %s16190_s0 }
   0x2   :  { %v11469_v0 = vld [vmem:[%s16191_s1 + $0x64] ss:$16 sps:$4 sm:$0x3f]   ;;  %vm137_vm0 = vcmask 1045504   ;;  %v12515_v3 = vmov 0   ;;  %s16209_s24 = sld [smem:[#allocation5_spill]] }
   0x3   :  { %9780 = vmatprep.subr.msk.bf16.mxu0 %vm137_vm0, %v11469_v0  ;;  %v11471_v1 = vld [vmem:[%s16191_s1 + $0x6c] ss:$16 sps:$4 sm:$0x3f]   ;;  %v11473_v2 = vld [vmem:[%s16191_s1 + $0x60] ss:$16 sps:$4 sm:$0x3f]   ;;  %182 = vmatprep.mubr.bf16.mxu0 %v12515_v3 }
   0x4   :  { %v11474_v4 = vld [vmem:[%s16191_s1 + $0x68] ss:$16 sps:$4 sm:$0x3f]   ;;  %v11475_v5 = vld [vmem:[%s16191_s1 + $0x44] ss:$16 sps:$4 sm:$0xff]   ;;  %235 = vmatprep.mubr.bf16.mxu1 %v12515_v3  ;;  %9783 = vmatprep.subr.msk.bf16.mxu1 %vm137_vm0, %v11471_v1  ;;  %v139_v6 = vsel %vm137_vm0, %v11473_v2, 0 }
   0x5   :  { %v11477_v7 = vld [vmem:[%s16191_s1 + $0x4c] ss:$16 sps:$4 sm:$0xff]   ;;  %163 = vmatpush1.bf16.msra.mxu0 %v139_v6  ;;  %v145_v8 = vsel %vm137_vm0, %v11474_v4, 0  ;;  %v11479_v9 = vld [vmem:[%s16191_s1 + $0x40] ss:$16 sps:$4 sm:$0xff]   ;;  %vm130_vm2 = vcmask 228352  }
   0x6   :  { %v11480_v10 = vld [vmem:[%s16191_s1 + $0x48] ss:$16 sps:$4 sm:$0xff]   ;;  %216 = vmatpush1.bf16.msra.mxu1 %v145_v8  ;;  %164 = vmatprep.subr.bf16.mxu0 %v11475_v5  ;;  %v11481_v17 = vld [vmem:[%s16191_s1 + $0x24] ss:$16 sps:$4 sm:$0x3f]   ;;  %vm425_vm3 = vcmask 1046528  }
   0x7   :  { %217 = vmatprep.subr.bf16.mxu1 %v11477_v7  ;;  %v11483_v18 = vld [vmem:[%s16191_s1 + $0x2c] ss:$16 sps:$4 sm:$0x3f]   ;;  %v11485_v22 = vld [vmem:[%s16191_s1 + $0x20] ss:$16 sps:$4 sm:$0x3f]  }
   0x8   :  { %v55_v11 = vld [vmem:[%s16209_s24] sm:$0xff]  ;;  %v56_v12 = vld [vmem:[%s16209_s24 + $0x8] sm:$0xff]  ;;  %v57_v13 = vld [vmem:[%s16209_s24 + $0x10] sm:$0xff]  ;;  %vm78_vm1 = vsmask.f32 7424  ;;  %v297_v28 = vsel %vm137_vm0, %v11485_v22, 0 }
   0x9   :  { %v58_v14 = vld [vmem:[%s16209_s24 + $0x18] sm:$0xf]  ;;  %v12651_v15 = vpack.c.bf16 %v56_v12, %v55_v11  ;;  %165 = vmatpush1.bf16.msra.mxu0 %v11479_v9  ;;  %v11489_v30 = vld [vmem:[%s16191_s1 + $0x4] ss:$16 sps:$4 sm:$0xff]   ;;  %v11492_v31 = vld [vmem:[%s16191_s1 + $0xc] ss:$16 sps:$4 sm:$0xff]  }
   0xa   :  { %v12653_v16 = vpack.c.bf16 %v58_v14, %v57_v13  ;;  %218 = vmatpush1.bf16.msra.mxu1 %v11480_v10  ;;  %9794 = vmatprep.subr.msk.bf16.mxu0 %vm137_vm0, %v11481_v17  ;;  %v11486_v25 = vld [vmem:[%s16191_s1 + $0x28] ss:$16 sps:$4 sm:$0x3f]   ;;  %v11487_v33 = vld [vmem:[%s16191_s1] ss:$16 sps:$4 sm:$0xff]   ;;  %vm1430_vm4 = vcmask 261120  }
   0xb   :  { %v80_v19 = vshrl.u32 %v12651_v15, 16  ;;  %v82_v20 = vshll.u32 %v12651_v15, 16  ;;  %9797 = vmatprep.subr.msk.bf16.mxu1 %vm137_vm0, %v11483_v18  ;;  %v303_v29 = vsel %vm137_vm0, %v11486_v25, 0  ;;  %v11490_v34 = vld [vmem:[%s16191_s1 + $0x8] ss:$16 sps:$4 sm:$0xff]   ;;  %v426_v47 = vrot.slane %v12651_v15, 1 }
   0xc   :  { %v87_v21 = vshll.u32 %v12653_v16, 16  ;;  %v91_v32 = vshrl.u32 %v12653_v16, 16  ;;  %v11493_v35 = vld [vmem:[%s16191_s1 + $0xa4] ss:$16 sps:$4 sm:$0x3f]   ;;  %v427_v48 = vrot.slane %v12653_v16, 1 }
   0xd   :  { %v84_v23 = vrot.slane %v82_v20, 1  ;;  %v11495_v36 = vld [vmem:[%s16191_s1 + $0xac] ss:$16 sps:$4 sm:$0x3f]   ;;  %v11501_v40 = vld [vmem:[%s16191_s1 + $0x84] ss:$16 sps:$4 sm:$0xff]  }
   0xe   :  { %v89_v24 = vrot.slane %v87_v21, 1  ;;  %v11497_v38 = vld [vmem:[%s16191_s1 + $0xa0] ss:$16 sps:$4 sm:$0x3f]   ;;  %v11504_v41 = vld [vmem:[%s16191_s1 + $0x8c] ss:$16 sps:$4 sm:$0xff]   ;;  %v428_v50 = vsel %vm425_vm3, %v426_v47, %v427_v48 }
   0xf   :  { %v85_v26 = vor.u32 %v84_v23, %v80_v19  ;;  %v11498_v39 = vld [vmem:[%s16191_s1 + $0xa8] ss:$16 sps:$4 sm:$0x3f]   ;;  %v472_v42 = vsel %vm137_vm0, %v11497_v38, 0  ;;  %v11499_v44 = vld [vmem:[%s16191_s1 + $0x80] ss:$16 sps:$4 sm:$0xff]  }
  0x10   :  { %v93_v37 = vor.u32 %v91_v32, %v89_v24  ;;  %v478_v43 = vsel %vm137_vm0, %v11498_v39, 0  ;;  %v11502_v45 = vld [vmem:[%s16191_s1 + $0x88] ss:$16 sps:$4 sm:$0xff]   ;;  %v11510_v51 = vld [vmem:[%s16193_s3 + $0x304] ss:$12 sps:$4 sm:$0xff]  }
  0x11   :  { %v90_v27 = vsel %vm78_vm1, %v85_v26, %v89_v24  ;;  %v11507_v46 = vld [vmem:[%s16193_s3 + $0x31c] ss:$12 sps:$4 sm:$0xff]   ;;  %v11505_v49 = vld [vmem:[%s16193_s3 + $0x318] ss:$12 sps:$4 sm:$0xff]   ;;  %v11508_v52 = vld [vmem:[%s16193_s3 + $0x300] ss:$12 sps:$4 sm:$0xff]  }
  0x12   :  { %9781 = vmatmul.mubr.msk.bf16.vlgmr.msra.gmra.mxu0 %vm130_vm2, %v90_v27  ;;  %9784 = vmatmul.mubr.msk.bf16.vlgmr.msra.gmra.mxu1 %vm130_vm2, %v90_v27  ;;  %v11513_v53 = vld [vmem:[%s16193_s3 + $0x2ec] ss:$12 sps:$4 sm:$0xff]   ;;  %v11511_v54 = vld [vmem:[%s16193_s3 + $0x2e8] ss:$12 sps:$4 sm:$0xff]   ;;  %v11514_v56 = vld [vmem:[%s16193_s3 + $0x2d0] ss:$12 sps:$4 sm:$0xff]  }
  0x13   :  { %192 = vmatprep.mubr.bf16.mxu0 %v12515_v3  ;;  %245 = vmatprep.mubr.bf16.mxu1 %v12515_v3  ;;  %v11516_v55 = vld [vmem:[%s16193_s3 + $0x2d4] ss:$12 sps:$4 sm:$0xff]   ;;  %v11519_v57 = vld [vmem:[%s16193_s3 + $0x2bc] ss:$12 sps:$4 sm:$0xff]   ;;  %v11517_v58 = vld [vmem:[%s16193_s3 + $0x2b8] ss:$12 sps:$4 sm:$0xff]  }
  0x14   :  { %321 = vmatpush1.bf16.msra.mxu0 %v297_v28  ;;  %374 = vmatpush1.bf16.msra.mxu1 %v303_v29  ;;  %v11522_v59 = vld [vmem:[%s16193_s3 + $0x2a4] ss:$12 sps:$4 sm:$0xff]   ;;  %v11520_v60 = vld [vmem:[%s16193_s3 + $0x2a0] ss:$12 sps:$4 sm:$0xff]   ;;  %v11528_v62 = vld [vmem:[%s16193_s3 + $0x49c] ss:$12 sps:$4 sm:$0xff]  }
  0x15   :  { %322 = vmatprep.subr.bf16.mxu0 %v11489_v30  ;;  %375 = vmatprep.subr.bf16.mxu1 %v11492_v31  ;;  %v11525_v61 = vld [vmem:[%s16193_s3 + $0x28c] ss:$12 sps:$4 sm:$0xff]   ;;  %v11523_v63 = vld [vmem:[%s16193_s3 + $0x288] ss:$12 sps:$4 sm:$0xff]   ;;  %v11534_v2 = vld [vmem:[%s16193_s3 + $0x484] ss:$12 sps:$4 sm:$0xff]  }
  0x16   :  { %v11526_v0 = vld [vmem:[%s16193_s3 + $0x498] ss:$12 sps:$4 sm:$0xff]   ;;  %v11531_v1 = vld [vmem:[%s16193_s3 + $0x274] ss:$12 sps:$4 sm:$0xff]   ;;  %v11529_v4 = vld [vmem:[%s16193_s3 + $0x270] ss:$12 sps:$4 sm:$0xff]  }
  0x17   :  { %v11532_v5 = vld [vmem:[%s16193_s3 + $0x480] ss:$12 sps:$4 sm:$0xff]   ;;  %v11537_v6 = vld [vmem:[%s16193_s3 + $0x3dc] ss:$12 sps:$4 sm:$0xff]   ;;  %v11535_v8 = vld [vmem:[%s16193_s3 + $0x3d8] ss:$12 sps:$4 sm:$0xff]  }
  0x18   :  { %323 = vmatpush1.bf16.msra.mxu0 %v11487_v33  ;;  %376 = vmatpush1.bf16.msra.mxu1 %v11490_v34  ;;  %v11540_v7 = vld [vmem:[%s16193_s3 + $0x46c] ss:$12 sps:$4 sm:$0xff]   ;;  %v11538_v9 = vld [vmem:[%s16193_s3 + $0x468] ss:$12 sps:$4 sm:$0xff]   ;;  %v11543_v10 = vld [vmem:[%s16193_s3 + $0x3c4] ss:$12 sps:$4 sm:$0xff]  }
  0x19   :  { %9816 = vmatprep.subr.msk.bf16.mxu0 %vm137_vm0, %v11493_v35  ;;  %9819 = vmatprep.subr.msk.bf16.mxu1 %vm137_vm0, %v11495_v36  ;;  %v11546_v11 = vld [vmem:[%s16193_s3 + $0x454] ss:$12 sps:$4 sm:$0xff]   ;;  %v11544_v13 = vld [vmem:[%s16193_s3 + $0x450] ss:$12 sps:$4 sm:$0xff]   ;;  %v11549_v14 = vld [vmem:[%s16193_s3 + $0x3ac] ss:$12 sps:$4 sm:$0xff]  }
  0x1a   :  { %9782 = vmatmul.mubr.msk.bf16.gmra.mxu0 %vm130_vm2, %v93_v37  ;;  %9785 = vmatmul.mubr.msk.bf16.gmra.mxu1 %vm130_vm2, %v93_v37  ;;  %v11541_v12 = vld [vmem:[%s16193_s3 + $0x3c0] ss:$12 sps:$4 sm:$0xff]   ;;  %v11550_v17 = vld [vmem:[%s16193_s3 + $0x438] ss:$12 sps:$4 sm:$0xff]   ;;  %v11553_v20 = vld [vmem:[%s16193_s3 + $0x390] ss:$12 sps:$4 sm:$0xff]  }
  0x1b   :  { %340 = vmatprep.mubr.bf16.mxu0 %v12515_v3  ;;  %393 = vmatprep.mubr.bf16.mxu1 %v12515_v3  ;;  %v11555_v18 = vld [vmem:[%s16193_s3 + $0x394] ss:$12 sps:$4 sm:$0xff]   ;;  %v11558_v19 = vld [vmem:[%s16193_s3 + $0x424] ss:$12 sps:$4 sm:$0xff]   ;;  %v11561_v22 = vld [vmem:[%s16193_s3 + $0x37c] ss:$12 sps:$4 sm:$0xff]  }
  0x1c   :  { %v11556_v21 = vld [vmem:[%s16193_s3 + $0x420] ss:$12 sps:$4 sm:$0xff]   ;;  %v11559_v24 = vld [vmem:[%s16193_s3 + $0x378] ss:$12 sps:$4 sm:$0xff]   ;;  %v11562_v25 = vld [vmem:[%s16193_s3 + $0x408] ss:$12 sps:$4 sm:$0xff]  }
  0x1d   :  { %v11564_v23 = vld [vmem:[%s16193_s3 + $0x40c] ss:$12 sps:$4 sm:$0xff]   ;;  %v11567_v26 = vld [vmem:[%s16193_s3 + $0x364] ss:$12 sps:$4 sm:$0xff]   ;;  %v11570_v27 = vld [vmem:[%s16193_s3 + $0x3f4] ss:$12 sps:$4 sm:$0xff]  }
  0x1e   :  { %v11565_v28 = vld [vmem:[%s16193_s3 + $0x360] ss:$12 sps:$4 sm:$0xff]   ;;  %v11568_v29 = vld [vmem:[%s16193_s3 + $0x3f0] ss:$12 sps:$4 sm:$0xff]   ;;  %v11571_v32 = vld [vmem:[%s16193_s3 + $0x348] ss:$12 sps:$4 sm:$0xff]  }
  0x1f   :  { %v11573_v30 = vld [vmem:[%s16193_s3 + $0x34c] ss:$12 sps:$4 sm:$0xff]   ;;  %v11574_v33 = vld [vmem:[%s16193_s3 + $0x4c8] ss:$12 sps:$4 sm:$0xff]   ;;  %v11577_v34 = vld [vmem:[%s16193_s3 + $0x330] ss:$12 sps:$4 sm:$0xff]  }
  0x20   :  { %v11576_v31 = vld [vmem:[%s16193_s3 + $0x4cc] ss:$12 sps:$4 sm:$0xff]   ;;  %v11579_v35 = vld [vmem:[%s16193_s3 + $0x334] ss:$12 sps:$4 sm:$0xff]   ;;  %v11580_v36 = vld [vmem:[%s16193_s3 + $0x4b0] ss:$12 sps:$4 sm:$0xff]  }
  0x21   :  { %v11582_v37 = vld [vmem:[%s16193_s3 + $0x4b4] ss:$12 sps:$4 sm:$0xff]  }
  0x22   :  { %9795 = vmatmul.mubr.msk.bf16.vlgmr.msra.gmra.mxu0 %vm130_vm2, %v12651_v15  ;;  %9798 = vmatmul.mubr.msk.bf16.vlgmr.msra.gmra.mxu1 %vm130_vm2, %v12651_v15  ;;  %v11552_v15 = vld [vmem:[%s16193_s3 + $0x43c] ss:$12 sps:$4 sm:$0xff]   ;;  %v11583_v38 = vld [vmem:[%s16193_s3 + $0x3e0] ss:$12 sps:$4 sm:$0xff]  }
  0x23   :  { %350 = vmatprep.mubr.bf16.mxu0 %v12515_v3  ;;  %403 = vmatprep.mubr.bf16.mxu1 %v12515_v3 }
  0x24   :  { %496 = vmatpush1.bf16.msra.mxu0 %v472_v42  ;;  %549 = vmatpush1.bf16.msra.mxu1 %v478_v43 }
  0x25   :  { %497 = vmatprep.subr.bf16.mxu0 %v11501_v40  ;;  %550 = vmatprep.subr.bf16.mxu1 %v11504_v41 }
  0x28   :  { %498 = vmatpush1.bf16.msra.mxu0 %v11499_v44  ;;  %551 = vmatpush1.bf16.msra.mxu1 %v11502_v45 }
  0x29   :  { %1437 = vmatprep.subr.bf16.mxu0 %v11507_v46  ;;  %1488 = vmatprep.subr.bf16.mxu1 %v11528_v62 }
  0x2a   :  { %9796 = vmatmul.mubr.msk.bf16.gmra.mxu0 %vm130_vm2, %v12653_v16  ;;  %9799 = vmatmul.mubr.msk.bf16.gmra.mxu1 %vm130_vm2, %v12653_v16  ;;  %v11547_v16 = vld [vmem:[%s16193_s3 + $0x3a8] ss:$12 sps:$4 sm:$0xff]  }
  0x2b   :  { %515 = vmatprep.mubr.bf16.mxu0 %v12515_v3  ;;  %568 = vmatprep.mubr.bf16.mxu1 %v12515_v3 }
  0x32   :  { %9817 = vmatmul.mubr.msk.bf16.vlgmr.msra.gmra.mxu0 %vm130_vm2, %v428_v50  ;;  %9820 = vmatmul.mubr.msk.bf16.vlgmr.msra.gmra.mxu1 %vm130_vm2, %v428_v50 }
  0x33   :  { %525 = vmatprep.mubr.bf16.mxu0 %v12515_v3  ;;  %578 = vmatprep.mubr.bf16.mxu1 %v12515_v3 }
  0x34   :  { %1438 = vmatpush1.bf16.msra.mxu0 %v11505_v49  ;;  %1489 = vmatpush1.bf16.msra.mxu1 %v11526_v0 }
  0x35   :  { %1439 = vmatprep.subr.bf16.mxu0 %v11510_v51  ;;  %1490 = vmatprep.subr.bf16.mxu1 %v11534_v2 }
  0x38   :  { %1440 = vmatpush1.bf16.msra.mxu0 %v11508_v52  ;;  %1491 = vmatpush1.bf16.msra.mxu1 %v11532_v5 }
  0x39   :  { %1441 = vmatprep.subr.bf16.mxu0 %v11513_v53  ;;  %1492 = vmatprep.subr.bf16.mxu1 %v11540_v7 }
  0x3a   :  { %9818 = vmatmul.mubr.msk.bf16.gmra.mxu0 %vm130_vm2, %v427_v48  ;;  %9821 = vmatmul.mubr.msk.bf16.gmra.mxu1 %vm130_vm2, %v427_v48 }
  0x3c   :  { %1442 = vmatpush1.bf16.msra.mxu0 %v11511_v54  ;;  %1493 = vmatpush1.bf16.msra.mxu1 %v11538_v9 }
  0x3d   :  { %1443 = vmatprep.subr.bf16.mxu0 %v11516_v55  ;;  %1494 = vmatprep.subr.bf16.mxu1 %v11546_v11 }
  0x40   :  { %1444 = vmatpush1.bf16.msra.mxu0 %v11514_v56  ;;  %1495 = vmatpush1.bf16.msra.mxu1 %v11544_v13 }
  0x41   :  { %1445 = vmatprep.subr.bf16.mxu0 %v11519_v57  ;;  %1496 = vmatprep.subr.bf16.mxu1 %v11552_v15  ;;  %v623_v57 = vlaneseq }
  0x43   :  { %v12929_v62 = vshrl.u32 %v623_v57, 7 }
  0x44   :  { %1446 = vmatpush1.bf16.msra.mxu0 %v11517_v58  ;;  %1497 = vmatpush1.bf16.msra.mxu1 %v11550_v17 }
  0x45   :  { %1447 = vmatprep.subr.bf16.mxu0 %v11522_v59  ;;  %1498 = vmatprep.subr.bf16.mxu1 %v11558_v19  ;;  %v12935_v5 = vsub.s32 0, %v12929_v62  ;;  %v12941_v7 = vsub.s32 5, %v12929_v62  ;;  %v637_v9 = vsub.s32 6, %v12929_v62  ;;  %v12951_v13 = vsub.s32 3, %v12929_v62 }
  0x48   :  { %1448 = vmatpush1.bf16.msra.mxu0 %v11520_v60  ;;  %1499 = vmatpush1.bf16.msra.mxu1 %v11556_v21 }
  0x49   :  { %1449 = vmatprep.subr.bf16.mxu0 %v11525_v61  ;;  %1500 = vmatprep.subr.bf16.mxu1 %v11564_v23 }
  0x4c   :  { %1450 = vmatpush1.bf16.msra.mxu0 %v11523_v63  ;;  %1501 = vmatpush1.bf16.msra.mxu1 %v11562_v25 }
  0x4d   :  { %1451 = vmatprep.subr.bf16.mxu0 %v11531_v1  ;;  %1502 = vmatprep.subr.bf16.mxu1 %v11570_v27 }
  0x50   :  { %1452 = vmatpush1.bf16.msra.mxu0 %v11529_v4  ;;  %1503 = vmatpush1.bf16.msra.mxu1 %v11568_v29  ;;  %v605_v4 = vld [vmem:[%s16192_s2] sm:$0xff] }
  0x51   :  { %1453 = vmatprep.subr.bf16.mxu0 %v11537_v6  ;;  %1516 = vmatprep.subr.bf16.mxu1 %v11576_v31  ;;  %v12938_v6 = vsub.s32 4, %v12929_v62  ;;  %v626_v17 = vrot.slane %v605_v4, %v12935_v5  ;;  %v682_v25 = vrot.slane %v605_v4, %v12951_v13 }
  0x54   :  { %1454 = vmatpush2.bf16.msra.mxu0 %v11535_v8  ;;  %1517 = vmatpush2.bf16.msra.mxu1 %v11574_v33  ;;  %v12944_v8 = vsub.s32 2, %v12929_v62 }
  0x55   :  { %1455 = vmatprep.subr.bf16.mxu0 %v11543_v10  ;;  %1518 = vmatprep.subr.bf16.mxu1 %v11582_v37 }
  0x58   :  { %1456 = vmatpush2.bf16.msra.mxu0 %v11541_v12  ;;  %1519 = vmatpush2.bf16.msra.mxu1 %v11580_v36  ;;  %v12948_v12 = vsub.s32 1, %v12929_v62 }
  0x59   :  { %1457 = vmatprep.subr.bf16.mxu0 %v11549_v14  ;;  %11126 = vmatprep.subr.bf16.mxu1 %v11583_v38  ;;  %v689_v14 = vsub.s32 7, %v12929_v62 }
  0x5a   :  { %v678_v23 = vrot.slane %v605_v4, %v12948_v12 }
  0x5c   :  { %1458 = vmatpush2.bf16.msra.mxu0 %v11547_v16  ;;  %v12978_v37 = vrot.slane %v678_v23, %v12948_v12 }
  0x5d   :  { %1459 = vmatprep.subr.bf16.mxu0 %v11555_v18  ;;  %v634_v18 = vrot.slane %v605_v4, %v12938_v6 }
  0x60   :  { %1460 = vmatpush2.bf16.msra.mxu0 %v11553_v20  ;;  %v686_v20 = vrot.slane %v605_v4, %v12941_v7 }
  0x61   :  { %1461 = vmatprep.subr.bf16.mxu0 %v11561_v22 }
  0x62   :  { %v12975_v36 = vrot.slane %v686_v20, %v12948_v12 }
  0x64   :  { %1462 = vmatpush2.bf16.msra.mxu0 %v11559_v24  ;;  %v630_v24 = vrot.slane %v605_v4, %v12944_v8 }
  0x65   :  { %1463 = vmatprep.subr.bf16.mxu0 %v11567_v26  ;;  %v638_v26 = vrot.slane %v605_v4, %v637_v9 }
  0x67   :  { %v12987_v57 = vrot.slane %v638_v26, %v12935_v5 }
  0x68   :  { %1464 = vmatpush2.bf16.msra.mxu0 %v11565_v28  ;;  %v690_v28 = vrot.slane %v605_v4, %v689_v14 }
  0x69   :  { %1465 = vmatprep.subr.bf16.mxu0 %v11573_v30  ;;  %v12969_v30 = vrot.slane %v626_v17, %v12935_v5 }
  0x6c   :  { %1466 = vmatpush2.bf16.msra.mxu0 %v11571_v32  ;;  %v12972_v32 = vrot.slane %v634_v18, %v12935_v5 }
  0x6d   :  { %1467 = vmatprep.subr.bf16.mxu0 %v11579_v35 }
  0x70   :  { %1468 = vmatpush2.bf16.msra.mxu0 %v11577_v34 }
  0x71   :  { %1587 = vmatprep.subr.bf16.mxu0 %v12515_v3 }
  0xd2   :  { %v184_v39 = vpop.f32.mrf.mxu0  ;;  %v237_v40 = vpop.f32.mrf.mxu1 }
  0xd4   :  { %v186_v41 = vpop.f32.mrf.mxu0  ;;  %v239_v42 = vpop.f32.mrf.mxu1 }
  0xd6   :  { %v12905_v43 = vpop.f32.mrf.mxu0  ;;  %v12907_v44 = vpop.f32.mrf.mxu1 }
  0xd8   :  { %v12909_v45 = vpop.f32.mrf.mxu0  ;;  %v12911_v46 = vpop.f32.mrf.mxu1 }
  0xda   :  { %v12913_v47 = vpop.f32.mrf.mxu0  ;;  %v12915_v48 = vpop.f32.mrf.mxu1 }
  0xdc   :  { %v12917_v49 = vpop.f32.mrf.mxu0  ;;  %v12919_v50 = vpop.f32.mrf.mxu1 }
  0xde   :  { %v12921_v51 = vpop.f32.mrf.mxu0  ;;  %v12923_v52 = vpop.f32.mrf.mxu1 }
  0xe0   :  { %v12925_v53 = vpop.f32.mrf.mxu0  ;;  %v12927_v54 = vpop.f32.mrf.mxu1 }
  0xe2   :  { %v342_v55 = vpop.f32.mrf.mxu0  ;;  %v395_v56 = vpop.f32.mrf.mxu1 }
  0xe3   :  { %v343_v19 = vadd.f32 %v342_v55, %v184_v39  ;;  %v396_v33 = vadd.f32 %v395_v56, %v237_v40  ;;  %v12981_v39 = vrot.slane %v630_v24, %v12935_v5 }
  0xe4   :  { %v344_v58 = vpop.f32.mrf.mxu0  ;;  %v397_v59 = vpop.f32.mrf.mxu1 }
  0xe5   :  { %v345_v27 = vadd.f32 %v344_v58, %v186_v41  ;;  %v398_v34 = vadd.f32 %v397_v59, %v239_v42  ;;  %v12984_v41 = vrot.slane %v682_v25, %v12948_v12  ;;  %v12990_v58 = vrot.slane %v690_v28, %v12948_v12 }
  0xe6   :  { %v346_v60 = vpop.f32.mrf.mxu0  ;;  %v399_v61 = vpop.f32.mrf.mxu1 }
  0xe7   :  { %v347_v59 = vadd.f32 %v346_v60, %v12905_v43  ;;  %v400_v4 = vadd.f32 %v399_v61, %v12907_v44 }
  0xe8   :  { %v348_v63 = vpop.f32.mrf.mxu0  ;;  %v401_v0 = vpop.f32.mrf.mxu1 }
  0xe9   :  { %v349_v17 = vadd.f32 %v348_v63, %v12909_v45  ;;  %v402_v18 = vadd.f32 %v401_v0, %v12911_v46 }
  0xea   :  { %v352_v1 = vpop.f32.mrf.mxu0  ;;  %v405_v2 = vpop.f32.mrf.mxu1 }
  0xeb   :  { %v353_v23 = vadd.f32 %v352_v1, %v12913_v47  ;;  %v406_v24 = vadd.f32 %v405_v2, %v12915_v48 }
  0xec   :  { %v354_v10 = vpop.f32.mrf.mxu0  ;;  %v407_v11 = vpop.f32.mrf.mxu1 }
  0xed   :  { %v408_v44 = vadd.f32 %v407_v11, %v12919_v50 }
  0xee   :  { %v356_v15 = vpop.f32.mrf.mxu0  ;;  %v409_v16 = vpop.f32.mrf.mxu1 }
  0xef   :  { %v357_v45 = vadd.f32 %v356_v15, %v12921_v51  ;;  %v410_v46 = vadd.f32 %v409_v16, %v12923_v52 }
  0xf0   :  { %v12957_v21 = vpop.f32.mrf.mxu0  ;;  %v12959_v22 = vpop.f32.mrf.mxu1 }
  0xf2   :  { %v517_v29 = vpop.f32.mrf.mxu0  ;;  %v570_v31 = vpop.f32.mrf.mxu1 }
  0xf3   :  { %v589_v35 = vadd.f32 %v517_v29, %v343_v19  ;;  %v591_v40 = vadd.f32 %v570_v31, %v396_v33 }
  0xf4   :  { %v519_v38 = vpop.f32.mrf.mxu0  ;;  %v572_v55 = vpop.f32.mrf.mxu1 }
  0xf5   :  { %v590_v42 = vadd.f32 %v519_v38, %v345_v27  ;;  %v592_v56 = vadd.f32 %v572_v55, %v398_v34  ;;  %v606_v25 = vmax.f32 %v589_v35, 0.0  ;;  %v355_v27 = vadd.f32 %v354_v10, %v12917_v49 }
  0xf6   :  { %v521_v19 = vpop.f32.mrf.mxu0  ;;  %v574_v20 = vpop.f32.mrf.mxu1  ;;  %v608_v61 = vmax.f32 %v591_v40, 0.0 }
  0xf7   :  { %v607_v26 = vmax.f32 %v590_v42, 0.0  ;;  %v609_v28 = vmax.f32 %v592_v56, 0.0  ;;  %v593_v29 = vadd.f32 %v521_v19, %v347_v59  ;;  %v595_v31 = vadd.f32 %v574_v20, %v400_v4 }
  0xf8   :  { %v523_v43 = vpop.f32.mrf.mxu0  ;;  %v576_v60 = vpop.f32.mrf.mxu1  ;;  %v659_v49 = vmul.f32 %v12969_v30, %v606_v25  ;;  %v661_v16 = vmul.f32 %v12972_v32, %v608_v61  ;;  %v359_v42 = vadd.f32 %v12957_v21, %v12925_v53  ;;  %v412_v56 = vadd.f32 %v12959_v22, %v12927_v54 }
  0xf9   :  { %v610_v63 = vmax.f32 %v593_v29, 0.0  ;;  %v612_v47 = vmax.f32 %v595_v31, 0.0  ;;  %v594_v0 = vadd.f32 %v523_v43, %v349_v17  ;;  %v596_v48 = vadd.f32 %v576_v60, %v402_v18 }
  0xfa   :  { %v527_v1 = vpop.f32.mrf.mxu0  ;;  %v580_v2 = vpop.f32.mrf.mxu1  ;;  %v660_v10 = vmul.f32 %v12981_v39, %v607_v26  ;;  %v662_v35 = vmul.f32 %v12987_v57, %v609_v28  ;;  %v713_v28 = vadd.f32 %v12975_v36, %v661_v16 }
  0xfb   :  { %v597_v33 = vadd.f32 %v527_v1, %v353_v23  ;;  %v599_v34 = vadd.f32 %v580_v2, %v406_v24  ;;  %v663_v50 = vmul.f32 %v12969_v30, %v610_v63  ;;  %v611_v51 = vmax.f32 %v594_v0, 0.0 }
  0xfc   :  { %v613_v11 = vmax.f32 %v596_v48, 0.0  ;;  %v529_v52 = vpop.f32.mrf.mxu0  ;;  %v582_v15 = vpop.f32.mrf.mxu1  ;;  %v665_v38 = vmul.f32 %v12972_v32, %v612_v47  ;;  %v712_v19 = vadd.f32 %v12984_v41, %v660_v10  ;;  %v714_v25 = vadd.f32 %v12990_v58, %v662_v35 }
  0xfd   :  { %v598_v55 = vadd.f32 %v529_v52, %v355_v27  ;;  %v600_v40 = vadd.f32 %v582_v15, %v408_v44  ;;  %v664_v59 = vmul.f32 %v12981_v39, %v611_v51  ;;  %v614_v20 = vmax.f32 %v597_v33, 0.0 }
  0xfe   :  { %v666_v4 = vmul.f32 %v12987_v57, %v613_v11  ;;  %v531_v17 = vpop.f32.mrf.mxu0  ;;  %v584_v18 = vpop.f32.mrf.mxu1  ;;  %v616_v23 = vmax.f32 %v599_v34, 0.0  ;;  %v715_v26 = vadd.f32 %v12978_v37, %v663_v50  ;;  %v711_v27 = vadd.f32 %v12978_v37, %v659_v49 }
  0xff   :  { %v615_v24 = vmax.f32 %v598_v55, 0.0  ;;  %v716_v53 = vadd.f32 %v12984_v41, %v664_v59  ;;  %v717_v29 = vadd.f32 %v12975_v36, %v665_v38  ;;  %v617_v31 = vmax.f32 %v600_v40, 0.0 }
 0x100   :  { %v718_v21 = vadd.f32 %v12990_v58, %v666_v4  ;;  %v533_v54 = vpop.f32.mrf.mxu0  ;;  %v586_v22 = vpop.f32.mrf.mxu1  ;;  %v601_v44 = vadd.f32 %v531_v17, %v357_v45  ;;  %v603_v61 = vadd.f32 %v584_v18, %v410_v46  ;;  %v667_v63 = vmul.f32 %v12969_v30, %v614_v20 }
 0x101   :  { %v13022_v43 = vpack.c.bf16 %v716_v53, %v712_v19  ;;  %v669_v47 = vmul.f32 %v12972_v32, %v616_v23  ;;  %v602_v0 = vadd.f32 %v533_v54, %v359_v42  ;;  %v604_v48 = vadd.f32 %v586_v22, %v412_v56 }
 0x102   :  { %v13024_v60 = vpack.c.bf16 %v718_v21, %v714_v25  ;;  %v13028_v1 = vpack.c.bf16 %v715_v26, %v711_v27  ;;  %v668_v2 = vmul.f32 %v12981_v39, %v615_v24  ;;  %v618_v49 = vmax.f32 %v601_v44, 0.0 }
 0x103   :  { %v620_v10 = vmax.f32 %v603_v61, 0.0  ;;  %v670_v33 = vmul.f32 %v12987_v57, %v617_v31  ;;  %v619_v34 = vmax.f32 %v602_v0, 0.0  ;;  %v621_v35 = vmax.f32 %v604_v48, 0.0  ;;  %v11584_v0 = vld [vmem:[%s16193_s3 + $0x320] ss:$12 sps:$4 sm:$0xff]  }
 0x104   :  { %v963_v50 = vshll.u32 %v13022_v43, 16  ;;  %v13033_v45 = vpack.c.bf16 %v717_v29, %v713_v28  ;;  %v671_v46 = vmul.f32 %v12969_v30, %v618_v49  ;;  %v987_v11 = vshll.u32 %v13024_v60, 16  ;;  %v11585_v48 = vld [vmem:[%s16193_s3 + $0x4a0] ss:$12 sps:$4 sm:$0xff]  }
 0x105   :  { %v673_v51 = vmul.f32 %v12972_v32, %v620_v10  ;;  %v13039_v52 = vadd.f32 %v12978_v37, %v667_v63  ;;  %v13042_v15 = vadd.f32 %v12975_v36, %v669_v47  ;;  %v672_v16 = vmul.f32 %v12981_v39, %v619_v34 }
 0x106   :  { %v674_v38 = vmul.f32 %v12987_v57, %v621_v35  ;;  %v13047_v55 = vadd.f32 %v12984_v41, %v668_v2  ;;  %v723_v30 = vadd.f32 %v12978_v37, %v671_v46  ;;  %v951_v40 = vshll.u32 %v13028_v1, 16  ;;  %v11587_v46 = vld [vmem:[%s16193_s3 + $0x308] ss:$12 sps:$4 sm:$0xff]  }
 0x107   :  { %v725_v32 = vadd.f32 %v12975_v36, %v673_v51  ;;  %v13053_v42 = vadd.f32 %v12990_v58, %v670_v33  ;;  %v724_v56 = vadd.f32 %v12984_v41, %v672_v16  ;;  %v965_v39 = vrot.slane %v963_v50, 1  ;;  %v11586_v50 = vld [vmem:[%s16193_s3 + $0x3c8] ss:$12 sps:$4 sm:$0xff]  }
 0x108   :  { %v726_v59 = vadd.f32 %v12990_v58, %v674_v38  ;;  %v13058_v57 = vpack.c.bf16 %v723_v30, %v13039_v52  ;;  %v989_v17 = vrot.slane %v987_v11, 1  ;;  %v975_v37 = vshll.u32 %v13033_v45, 16  ;;  %v11588_v51 = vld [vmem:[%s16193_s3 + $0x488] ss:$12 sps:$4 sm:$0xff]   ;;  %v11589_v11 = vld [vmem:[%s16193_s3 + $0x3b0] ss:$12 sps:$4 sm:$0xff]  }
 0x109   :  { %v13061_v4 = vpack.c.bf16 %v725_v32, %v13042_v15  ;;  %v13065_v36 = vpack.c.bf16 %v724_v56, %v13047_v55  ;;  %v961_v41 = vshrl.u32 %v13022_v43, 16  ;;  %v985_v58 = vshrl.u32 %v13024_v60, 16  ;;  %v11590_v30 = vld [vmem:[%s16193_s3 + $0x2f0] ss:$12 sps:$4 sm:$0xff]  }
 0x10a   :  { %v13068_v18 = vpack.c.bf16 %v726_v59, %v13053_v42  ;;  %v953_v19 = vrot.slane %v951_v40, 1  ;;  %v956_v20 = vshll.u32 %v13058_v57, 16  ;;  %v977_v23 = vrot.slane %v975_v37, 1  ;;  %v11591_v32 = vld [vmem:[%s16193_s3 + $0x470] ss:$12 sps:$4 sm:$0xff]  }
 0x10b   :  { %v980_v24 = vshll.u32 %v13061_v4, 16  ;;  %v966_v25 = vor.u32 %v965_v39, %v961_v41  ;;  %v968_v26 = vshll.u32 %v13065_v36, 16  ;;  %v949_v21 = vshrl.u32 %v13028_v1, 16  ;;  %v11592_v40 = vld [vmem:[%s16193_s3 + $0x398] ss:$12 sps:$4 sm:$0xff]  }
 0x10c   :  { %v992_v53 = vshll.u32 %v13068_v18, 16  ;;  %v990_v54 = vor.u32 %v989_v17, %v985_v58  ;;  %v958_v22 = vrot.slane %v956_v20, 1  ;;  %v973_v27 = vshrl.u32 %v13033_v45, 16  ;;  %v11593_v39 = vld [vmem:[%s16193_s3 + $0x2d8] ss:$12 sps:$4 sm:$0xff]  }
 0x10d   :  { %v982_v28 = vrot.slane %v980_v24, 1  ;;  %v970_v29 = vrot.slane %v968_v26, 1  ;;  %v999_v44 = vshrl.u32 %v13065_v36, 16  ;;  %v1005_v61 = vshrl.u32 %v13068_v18, 16  ;;  %v11594_v17 = vld [vmem:[%s16193_s3 + $0x458] ss:$12 sps:$4 sm:$0xff]  }
 0x10e   :  { %v994_v31 = vrot.slane %v992_v53, 1  ;;  %v954_v63 = vor.u32 %v953_v19, %v949_v21  ;;  %v978_v47 = vor.u32 %v977_v23, %v973_v27  ;;  %v996_v16 = vshrl.u32 %v13058_v57, 16  ;;  %v11595_v37 = vld [vmem:[%s16193_s3 + $0x380] ss:$12 sps:$4 sm:$0xff]   ;;  %v11598_v19 = vld [vmem:[%s16193_s3 + $0x368] ss:$12 sps:$4 sm:$0xff]  }
 0x10f   :  { %v971_v2 = vsel %vm78_vm1, %v966_v25, %v970_v29  ;;  %v13088_v10 = vor.u32 %v999_v44, %v970_v29  ;;  %v1002_v38 = vshrl.u32 %v13061_v4, 16  ;;  %v11596_v41 = vld [vmem:[%s16193_s3 + $0x2c0] ss:$12 sps:$4 sm:$0xff]   ;;  %v11599_v20 = vld [vmem:[%s16193_s3 + $0x2a8] ss:$12 sps:$4 sm:$0xff]  }
 0x110   :  { %v995_v49 = vsel %vm78_vm1, %v990_v54, %v994_v31  ;;  %v13090_v33 = vor.u32 %v1005_v61, %v994_v31  ;;  %1469 = vmatprep.mubr.bf16.mxu0 %v971_v2  ;;  %v13094_v34 = vsel %vm78_vm1, %v954_v63, %v958_v22  ;;  %v13097_v35 = vsel %vm78_vm1, %v978_v47, %v982_v28  ;;  %v11597_v58 = vld [vmem:[%s16193_s3 + $0x440] ss:$12 sps:$4 sm:$0xff]   ;;  %v11600_v23 = vld [vmem:[%s16193_s3 + $0x428] ss:$12 sps:$4 sm:$0xff]   ;;  %v11601_v24 = vld [vmem:[%s16193_s3 + $0x350] ss:$12 sps:$4 sm:$0xff]  }
 0x111   :  { %10004 = vmatprep.mubr.msk.bf16.mxu1 %vm1430_vm4, %v995_v49  ;;  %1470 = vmatmul.mubr.bf16.vlgmr.msra.gmra.mxu0 %v13094_v34  ;;  %v13129_v56 = vor.u32 %v996_v16, %v958_v22  ;;  %v13131_v59 = vor.u32 %v1002_v38, %v982_v28  ;;  %v11602_v25 = vld [vmem:[%s16193_s3 + $0x290] ss:$12 sps:$4 sm:$0xff]   ;;  %v11604_v53 = vld [vmem:[%s16193_s3 + $0x338] ss:$12 sps:$4 sm:$0xff]   ;;  %v11607_v27 = vld [vmem:[%s16193_s3 + $0xa8] ss:$12 sps:$4 sm:$0xff]  }
 0x112   :  { %1521 = vmatmul.mubr.bf16.vlgmr.msra.gmra.mxu1 %v13097_v35  ;;  %1588 = vmatpush1.bf16.msra.mxu0 %v11585_v48  ;;  %v11603_v26 = vld [vmem:[%s16193_s3 + $0x410] ss:$12 sps:$4 sm:$0xff]   ;;  %v11605_v21 = vld [vmem:[%s16193_s3 + $0x278] ss:$12 sps:$4 sm:$0xff]   ;;  %v11613_v29 = vld [vmem:[%s16193_s3 + $0x94] ss:$12 sps:$4 sm:$0xff]  }
 0x113   :  { %11127 = vmatpush3.bf16.msra.mxu1 %v11584_v0  ;;  %1479 = vmatprep.mubr.bf16.mxu0 %v13088_v10  ;;  %v11606_v54 = vld [vmem:[%s16193_s3 + $0x3f8] ss:$12 sps:$4 sm:$0xff]   ;;  %v11610_v28 = vld [vmem:[%s16193_s3 + $0x4d0] ss:$12 sps:$4 sm:$0xff]   ;;  %v11618_v0 = vld [vmem:[%s16193_s3 + $0x228] ss:$12 sps:$4 sm:$0xff]  }
 0x114   :  { %10005 = vmatprep.mubr.msk.bf16.mxu1 %vm1430_vm4, %v13090_v33  ;;  %11128 = vmatprep.subr.bf16.mxu1 %v11586_v50  ;;  %v11609_v22 = vld [vmem:[%s16193_s3 + $0xac] ss:$12 sps:$4 sm:$0xff]   ;;  %v11611_v44 = vld [vmem:[%s16193_s3 + $0x90] ss:$12 sps:$4 sm:$0xff]   ;;  %v11627_v50 = vld [vmem:[%s16193_s3 + $0x48] ss:$12 sps:$4 sm:$0xff]  }
 0x115   :  { %1589 = vmatprep.subr.bf16.mxu0 %v12515_v3  ;;  %v11614_v31 = vld [vmem:[%s16193_s3 + $0x4b8] ss:$12 sps:$4 sm:$0xff]   ;;  %v11617_v63 = vld [vmem:[%s16193_s3 + $0x7c] ss:$12 sps:$4 sm:$0xff]   ;;  %v11636_v16 = vld [vmem:[%s16193_s3 + $0x1e0] ss:$12 sps:$4 sm:$0xff]  }
 0x116   :  { %1590 = vmatpush1.bf16.msra.mxu0 %v11588_v51  ;;  %v11620_v61 = vld [vmem:[%s16193_s3 + $0x22c] ss:$12 sps:$4 sm:$0xff]   ;;  %v11623_v48 = vld [vmem:[%s16193_s3 + $0x64] ss:$12 sps:$4 sm:$0xff]   ;;  %v11641_v38 = vld [vmem:[%s16193_s3 + $0x1c] ss:$12 sps:$4 sm:$0xff]  }
 0x117   :  { %11129 = vmatpush3.bf16.msra.mxu1 %v11587_v46  ;;  %1591 = vmatprep.subr.bf16.mxu0 %v12515_v3  ;;  %v11615_v47 = vld [vmem:[%s16193_s3 + $0x78] ss:$12 sps:$4 sm:$0xff]   ;;  %v11635_v46 = vld [vmem:[%s16193_s3 + $0x34] ss:$12 sps:$4 sm:$0xff]  }
 0x118   :  { %11130 = vmatprep.subr.bf16.mxu1 %v11589_v11  ;;  %v11638_v51 = vld [vmem:[%s16193_s3 + $0x1e4] ss:$12 sps:$4 sm:$0xff]  }
 0x119   :  { %1480 = vmatmul.mubr.bf16.gmra.mxu0 %v13129_v56  ;;  %v11633_v11 = vld [vmem:[%s16193_s3 + $0x30] ss:$12 sps:$4 sm:$0xff]  }
 0x11a   :  { %1531 = vmatmul.mubr.bf16.gmra.mxu1 %v13131_v59  ;;  %1592 = vmatpush1.bf16.msra.mxu0 %v11591_v32  ;;  %v11639_v32 = vld [vmem:[%s16193_s3 + $0x18] ss:$12 sps:$4 sm:$0xff]  }
 0x11b   :  { %11131 = vmatpush3.bf16.msra.mxu1 %v11590_v30  ;;  %1571 = vmatprep.mubr.bf16.mxu1 %v971_v2  ;;  %v11626_v2 = vld [vmem:[%s16193_s3 + $0x214] ss:$12 sps:$4 sm:$0xff]   ;;  %v11644_v30 = vld [vmem:[%s16193_s3 + $0x1cc] ss:$12 sps:$4 sm:$0xff]  }
 0x11c   :  { %10006 = vmatprep.mubr.msk.bf16.mxu0 %vm1430_vm4, %v995_v49  ;;  %11132 = vmatprep.subr.bf16.mxu1 %v11592_v40  ;;  %v11621_v49 = vld [vmem:[%s16193_s3 + $0x60] ss:$12 sps:$4 sm:$0xff]   ;;  %v11642_v40 = vld [vmem:[%s16193_s3 + $0x1c8] ss:$12 sps:$4 sm:$0xff]  }
 0x11d   :  { %1593 = vmatprep.subr.bf16.mxu0 %v12515_v3 }
 0x11e   :  { %1594 = vmatpush1.bf16.msra.mxu0 %v11594_v17  ;;  %v11648_v17 = vld [vmem:[%s16193_s3 + $0x1b0] ss:$12 sps:$4 sm:$0xff]  }
 0x11f   :  { %11133 = vmatpush3.bf16.msra.mxu1 %v11593_v39  ;;  %1595 = vmatprep.subr.bf16.mxu0 %v12515_v3  ;;  %v11645_v39 = vld [vmem:[%s16193_s3] ss:$12 sps:$4 sm:$0xff]  }
 0x120   :  { %11134 = vmatprep.subr.bf16.mxu1 %v11595_v37  ;;  %v11653_v37 = vld [vmem:[%s16193_s3 + $0x16c] ss:$12 sps:$4 sm:$0xff]  }
 0x122   :  { %1596 = vmatpush1.bf16.msra.mxu0 %v11597_v58  ;;  %v11651_v58 = vld [vmem:[%s16193_s3 + $0x168] ss:$12 sps:$4 sm:$0xff]  }
 0x123   :  { %11135 = vmatpush3.bf16.msra.mxu1 %v11596_v41  ;;  %1597 = vmatprep.subr.bf16.mxu0 %v12515_v3  ;;  %v11656_v41 = vld [vmem:[%s16193_s3 + $0x19c] ss:$12 sps:$4 sm:$0xff]  }
 0x124   :  { %11136 = vmatprep.subr.bf16.mxu1 %v11598_v19  ;;  %v11654_v19 = vld [vmem:[%s16193_s3 + $0x198] ss:$12 sps:$4 sm:$0xff]  }
 0x126   :  { %1598 = vmatpush1.bf16.msra.mxu0 %v11600_v23  ;;  %v11662_v23 = vld [vmem:[%s16193_s3 + $0x184] ss:$12 sps:$4 sm:$0xff]  }
 0x127   :  { %11137 = vmatpush3.bf16.msra.mxu1 %v11599_v20  ;;  %1599 = vmatprep.subr.bf16.mxu0 %v12515_v3  ;;  %v11659_v20 = vld [vmem:[%s16193_s3 + $0x154] ss:$12 sps:$4 sm:$0xff]  }
 0x128   :  { %11138 = vmatprep.subr.bf16.mxu1 %v11601_v24  ;;  %v11657_v24 = vld [vmem:[%s16193_s3 + $0x150] ss:$12 sps:$4 sm:$0xff]  }
 0x12a   :  { %1600 = vmatpush1.bf16.msra.mxu0 %v11603_v26  ;;  %v11665_v26 = vld [vmem:[%s16193_s3 + $0x13c] ss:$12 sps:$4 sm:$0xff]  }
 0x12b   :  { %11139 = vmatpush3.bf16.msra.mxu1 %v11602_v25  ;;  %1601 = vmatprep.subr.bf16.mxu0 %v12515_v3  ;;  %v11660_v25 = vld [vmem:[%s16193_s3 + $0x180] ss:$12 sps:$4 sm:$0xff]  }
 0x12c   :  { %11140 = vmatprep.subr.bf16.mxu1 %v11604_v53  ;;  %v11668_v53 = vld [vmem:[%s16193_s3 + $0x25c] ss:$12 sps:$4 sm:$0xff]  }
 0x12e   :  { %1602 = vmatpush1.bf16.msra.mxu0 %v11606_v54  ;;  %v11666_v54 = vld [vmem:[%s16193_s3 + $0x258] ss:$12 sps:$4 sm:$0xff]  }
 0x12f   :  { %11141 = vmatpush3.bf16.msra.mxu1 %v11605_v21  ;;  %1615 = vmatprep.subr.bf16.mxu0 %v12515_v3  ;;  %v11663_v21 = vld [vmem:[%s16193_s3 + $0x138] ss:$12 sps:$4 sm:$0xff]  }
 0x130   :  { %2056 = vmatprep.subr.bf16.mxu1 %v11609_v22  ;;  %v11671_v22 = vld [vmem:[%s16193_s3 + $0x124] ss:$12 sps:$4 sm:$0xff]  }
 0x132   :  { %1572 = vmatmul.mubr.bf16.vlgmr.msra.gmra.mxu1 %v13094_v34  ;;  %1616 = vmatpush2.bf16.msra.mxu0 %v11610_v28  ;;  %v11629_v34 = vld [vmem:[%s16193_s3 + $0x4c] ss:$12 sps:$4 sm:$0xff]  }
 0x133   :  { %1579 = vmatprep.mubr.bf16.mxu1 %v13088_v10  ;;  %2057 = vmatpush1.bf16.msra.mxu1 %v11607_v27  ;;  %v11624_v10 = vld [vmem:[%s16193_s3 + $0x210] ss:$12 sps:$4 sm:$0xff]   ;;  %v11669_v28 = vld [vmem:[%s16193_s3 + $0x120] ss:$12 sps:$4 sm:$0xff]  }
 0x134   :  { %1617 = vmatprep.subr.bf16.mxu0 %v12515_v3  ;;  %2058 = vmatprep.subr.bf16.mxu1 %v11613_v29  ;;  %v11674_v27 = vld [vmem:[%s16193_s3 + $0x244] ss:$12 sps:$4 sm:$0xff]   ;;  %v11672_v29 = vld [vmem:[%s16193_s3 + $0x240] ss:$12 sps:$4 sm:$0xff]  }
 0x136   :  { %1618 = vmatpush2.bf16.msra.mxu0 %v11614_v31  ;;  %v11677_v31 = vld [vmem:[%s16193_s3 + $0x10c] ss:$12 sps:$4 sm:$0xff]  }
 0x137   :  { %2059 = vmatpush1.bf16.msra.mxu1 %v11611_v44  ;;  %2107 = vmatprep.subr.bf16.mxu0 %v11620_v61  ;;  %v11675_v44 = vld [vmem:[%s16193_s3 + $0x108] ss:$12 sps:$4 sm:$0xff]   ;;  %v11678_v61 = vld [vmem:[%s16193_s3 + $0x230] ss:$12 sps:$4 sm:$0xff]  }
 0x138   :  { %2060 = vmatprep.subr.bf16.mxu1 %v11617_v63  ;;  %v11681_v63 = vld [vmem:[%s16193_s3 + $0xf4] ss:$12 sps:$4 sm:$0xff]  }
 0x139   :  { %1620 = vmatmul.mubr.bf16.vlgmr.msra.gmra.mxu0 %v13097_v35  ;;  %v11632_v35 = vld [vmem:[%s16193_s3 + $0x1fc] ss:$12 sps:$4 sm:$0xff]  }
 0x13a   :  { %1580 = vmatmul.mubr.bf16.gmra.mxu1 %v13129_v56  ;;  %10007 = vmatprep.mubr.msk.bf16.mxu0 %vm1430_vm4, %v13090_v33  ;;  %v11630_v33 = vld [vmem:[%s16193_s3 + $0x1f8] ss:$12 sps:$4 sm:$0xff]  }
 0x13b   :  { %2088 = vmatprep.mubr.bf16.mxu1 %v13022_v43  ;;  %2061 = vmatpush1.bf16.msra.mxu1 %v11615_v47  ;;  %v11647_v56 = vld [vmem:[%s16193_s3 + $0x4] ss:$12 sps:$4 sm:$0xff]   ;;  %v13348_v47 = vpack.c.bf16 %v13053_v42, %v13053_v42 }
 0x13c   :  { %2108 = vmatpush1.bf16.msra.mxu0 %v11618_v0  ;;  %2062 = vmatprep.subr.bf16.mxu1 %v11623_v48  ;;  %v11679_v0 = vld [vmem:[%s16193_s3 + $0xf0] ss:$12 sps:$4 sm:$0xff]   ;;  %v11682_v48 = vld [vmem:[%s16193_s3 + $0x218] ss:$12 sps:$4 sm:$0xff]  }
 0x13d   :  { %2109 = vmatprep.subr.bf16.mxu0 %v11626_v2  ;;  %v11685_v2 = vld [vmem:[%s16193_s3 + $0xdc] ss:$12 sps:$4 sm:$0xff]   ;;  %v11683_v42 = vld [vmem:[%s16193_s3 + $0xd8] ss:$12 sps:$4 sm:$0xff]  }
 0x13f   :  { %2063 = vmatpush1.bf16.msra.mxu1 %v11621_v49  ;;  %v11686_v49 = vld [vmem:[%s16193_s3 + $0x200] ss:$12 sps:$4 sm:$0xff]  }
 0x140   :  { %2110 = vmatpush1.bf16.msra.mxu0 %v11624_v10  ;;  %2064 = vmatprep.subr.bf16.mxu1 %v11629_v34  ;;  %v11689_v10 = vld [vmem:[%s16193_s3 + $0xc4] ss:$12 sps:$4 sm:$0xff]   ;;  %v13374_v34 = vpack.c.bf16 %v13042_v15, %v13042_v15 }
 0x141   :  { %2111 = vmatprep.subr.bf16.mxu0 %v11632_v35  ;;  %1628 = vmatmul.mubr.bf16.gmra.mxu0 %v13131_v59  ;;  %v11650_v59 = vld [vmem:[%s16193_s3 + $0x1b4] ss:$12 sps:$4 sm:$0xff]   ;;  %v11692_v15 = vld [vmem:[%s16193_s3 + $0xb0] ss:$12 sps:$4 sm:$0xff]  }
 0x142   :  { %10086 = vmatprep.mubr.msk.bf16.mxu0 %vm1430_vm4, %v13024_v60  ;;  %v11687_v35 = vld [vmem:[%s16193_s3 + $0xc0] ss:$12 sps:$4 sm:$0xff]  }
 0x143   :  { %2065 = vmatpush1.bf16.msra.mxu1 %v11627_v50  ;;  %v11690_v50 = vld [vmem:[%s16193_s3 + $0x1e8] ss:$12 sps:$4 sm:$0xff]  }
 0x144   :  { %2112 = vmatpush1.bf16.msra.mxu0 %v11630_v33  ;;  %2066 = vmatprep.subr.bf16.mxu1 %v11635_v46  ;;  %v11691_v33 = vld [vmem:[%s16193_s3 + $0x170] ss:$12 sps:$4 sm:$0xff]  }
 0x145   :  { %2113 = vmatprep.subr.bf16.mxu0 %v11638_v51  ;;  %v11693_v46 = vld [vmem:[%s16193_s3 + $0x1d0] ss:$12 sps:$4 sm:$0xff]   ;;  %v11694_v51 = vld [vmem:[%s16193_s3 + $0x158] ss:$12 sps:$4 sm:$0xff]  }
 0x147   :  { %2067 = vmatpush1.bf16.msra.mxu1 %v11633_v11  ;;  %v13402_v11 = vpack.c.bf16 %v13047_v55, %v13047_v55  ;;  %v11698_v55 = vld [vmem:[%s16193_s3 + $0x80] ss:$12 sps:$4 sm:$0xff]  }
 0x148   :  { %2114 = vmatpush1.bf16.msra.mxu0 %v11636_v16  ;;  %2068 = vmatprep.subr.bf16.mxu1 %v11641_v38  ;;  %v11695_v16 = vld [vmem:[%s16193_s3 + $0x98] ss:$12 sps:$4 sm:$0xff]  }
 0x149   :  { %2115 = vmatprep.subr.bf16.mxu0 %v11644_v30  ;;  %v11696_v38 = vld [vmem:[%s16193_s3 + $0x1b8] ss:$12 sps:$4 sm:$0xff]   ;;  %v11697_v30 = vld [vmem:[%s16193_s3 + $0x140] ss:$12 sps:$4 sm:$0xff]  }
 0x14b   :  { %2069 = vmatpush1.bf16.msra.mxu1 %v11639_v32  ;;  %v11699_v32 = vld [vmem:[%s16193_s3 + $0x1a0] ss:$12 sps:$4 sm:$0xff]  }
 0x14c   :  { %2116 = vmatpush1.bf16.msra.mxu0 %v11642_v40  ;;  %2070 = vmatprep.subr.bf16.mxu1 %v11647_v56  ;;  %v11700_v40 = vld [vmem:[%s16193_s3 + $0x128] ss:$12 sps:$4 sm:$0xff]   ;;  %v13427_v56 = vpack.c.bf16 %v13039_v52, %v13039_v52  ;;  %v11704_v52 = vld [vmem:[%s16193_s3 + $0x50] ss:$12 sps:$4 sm:$0xff]  }
 0x14d   :  { %2117 = vmatprep.subr.bf16.mxu0 %v11650_v59  ;;  %v11701_v59 = vld [vmem:[%s16193_s3 + $0x68] ss:$12 sps:$4 sm:$0xff]  }
 0x14f   :  { %2071 = vmatpush1.bf16.msra.mxu1 %v11645_v39  ;;  %v11702_v39 = vld [vmem:[%s16193_s3 + $0x188] ss:$12 sps:$4 sm:$0xff]  }
 0x150   :  { %2118 = vmatpush1.bf16.msra.mxu0 %v11648_v17  ;;  %2072 = vmatprep.subr.bf16.mxu1 %v11653_v37  ;;  %v11703_v17 = vld [vmem:[%s16193_s3 + $0x110] ss:$12 sps:$4 sm:$0xff]   ;;  %v11705_v37 = vld [vmem:[%s16193_s3 + $0x260] ss:$12 sps:$4 sm:$0xff]  }
 0x151   :  { %2119 = vmatprep.subr.bf16.mxu0 %v11656_v41  ;;  %v11706_v41 = vld [vmem:[%s16193_s3 + $0xf8] ss:$12 sps:$4 sm:$0xff]  }
 0x153   :  { %2073 = vmatpush2.bf16.msra.mxu1 %v11651_v58  ;;  %v11707_v58 = vld [vmem:[%s16193_s3 + $0x38] ss:$12 sps:$4 sm:$0xff]  }
 0x154   :  { %2120 = vmatpush1.bf16.msra.mxu0 %v11654_v19  ;;  %2074 = vmatprep.subr.bf16.mxu1 %v11659_v20  ;;  %v11708_v19 = vld [vmem:[%s16193_s3 + $0x248] ss:$12 sps:$4 sm:$0xff]   ;;  %v11709_v20 = vld [vmem:[%s16193_s3 + $0xe0] ss:$12 sps:$4 sm:$0xff]  }
 0x155   :  { %2121 = vmatprep.subr.bf16.mxu0 %v11662_v23  ;;  %v11712_v23 = vld [vmem:[%s16193_s3 + $0x70c] ss:$12 sps:$4 sm:$0xff]  }
 0x157   :  { %2075 = vmatpush2.bf16.msra.mxu1 %v11657_v24  ;;  %v11713_v24 = vld [vmem:[%s16193_s3 + $0x20] ss:$12 sps:$4 sm:$0xff]  }
 0x158   :  { %2122 = vmatpush1.bf16.msra.mxu0 %v11660_v25  ;;  %2076 = vmatprep.subr.bf16.mxu1 %v11665_v26  ;;  %v11710_v25 = vld [vmem:[%s16193_s3 + $0x708] ss:$12 sps:$4 sm:$0xff]  }
 0x159   :  { %2135 = vmatprep.subr.bf16.mxu0 %v11668_v53  ;;  %v11714_v26 = vld [vmem:[%s16193_s3 + $0xc8] ss:$12 sps:$4 sm:$0xff]  }
 0x15a   :  { %v11717_v53 = vld [vmem:[%s16193_s3 + $0x6f4] ss:$12 sps:$4 sm:$0xff]  }
 0x15b   :  { %2077 = vmatpush2.bf16.msra.mxu1 %v11663_v21  ;;  %v11718_v21 = vld [vmem:[%s16193_s3 + $0x8] ss:$12 sps:$4 sm:$0xff]  }
 0x15c   :  { %2136 = vmatpush2.bf16.msra.mxu0 %v11666_v54  ;;  %2078 = vmatprep.subr.bf16.mxu1 %v11671_v22  ;;  %v11715_v54 = vld [vmem:[%s16193_s3 + $0x6f0] ss:$12 sps:$4 sm:$0xff]   ;;  %v11721_v22 = vld [vmem:[%s16193_s3 + $0x58c] ss:$12 sps:$4 sm:$0xff]  }
 0x15d   :  { %2137 = vmatprep.subr.bf16.mxu0 %v11674_v27  ;;  %v11724_v27 = vld [vmem:[%s16193_s3 + $0x6dc] ss:$12 sps:$4 sm:$0xff]  }
 0x15f   :  { %2079 = vmatpush2.bf16.msra.mxu1 %v11669_v28 }
 0x160   :  { %2138 = vmatpush2.bf16.msra.mxu0 %v11672_v29  ;;  %2080 = vmatprep.subr.bf16.mxu1 %v11677_v31 }
 0x161   :  { %2206 = vmatprep.subr.bf16.mxu0 %v12515_v3 }
 0x163   :  { %2140 = vmatmul.mubr.bf16.vlgmr.msra.gmra.mxu0 %v13033_v45  ;;  %2081 = vmatpush2.bf16.msra.mxu1 %v11675_v44 }
 0x164   :  { %10087 = vmatprep.mubr.msk.bf16.mxu0 %vm1430_vm4, %v13348_v47  ;;  %2207 = vmatpush1.bf16.msra.mxu0 %v11678_v61 }
 0x165   :  { %2082 = vmatprep.subr.bf16.mxu1 %v11681_v63  ;;  %2208 = vmatprep.subr.bf16.mxu0 %v12515_v3 }
 0x167   :  { %2083 = vmatpush2.bf16.msra.mxu1 %v11679_v0 }
 0x168   :  { %2209 = vmatpush1.bf16.msra.mxu0 %v11682_v48  ;;  %2084 = vmatprep.subr.bf16.mxu1 %v11685_v2 }
 0x169   :  { %2210 = vmatprep.subr.bf16.mxu0 %v12515_v3 }
 0x16b   :  { %2150 = vmatmul.mubr.bf16.gmra.mxu0 %v13374_v34  ;;  %2085 = vmatpush2.bf16.msra.mxu1 %v11683_v42 }
 0x16c   :  { %10088 = vmatprep.mubr.msk.bf16.mxu0 %vm1430_vm4, %v13024_v60  ;;  %2211 = vmatpush1.bf16.msra.mxu0 %v11686_v49 }
 0x16d   :  { %2086 = vmatprep.subr.bf16.mxu1 %v11689_v10  ;;  %2212 = vmatprep.subr.bf16.mxu0 %v12515_v3 }
 0x16f   :  { %2087 = vmatpush2.bf16.msra.mxu1 %v11687_v35 }
 0x170   :  { %2213 = vmatpush1.bf16.msra.mxu0 %v11690_v50  ;;  %11154 = vmatprep.subr.bf16.mxu1 %v11691_v33 }
 0x171   :  { %2214 = vmatprep.subr.bf16.mxu0 %v12515_v3 }
 0x172   :  { %2089 = vmatmul.mubr.bf16.vlgmr.msra.gmra.mxu1 %v13028_v1 }
 0x173   :  { %2098 = vmatprep.mubr.bf16.mxu1 %v13402_v11  ;;  %11155 = vmatpush3.bf16.msra.mxu1 %v11692_v15 }
 0x174   :  { %2215 = vmatpush1.bf16.msra.mxu0 %v11693_v46  ;;  %11156 = vmatprep.subr.bf16.mxu1 %v11694_v51 }
 0x175   :  { %2216 = vmatprep.subr.bf16.mxu0 %v12515_v3 }
 0x177   :  { %11157 = vmatpush3.bf16.msra.mxu1 %v11695_v16 }
 0x178   :  { %2217 = vmatpush1.bf16.msra.mxu0 %v11696_v38  ;;  %11158 = vmatprep.subr.bf16.mxu1 %v11697_v30 }
 0x179   :  { %2218 = vmatprep.subr.bf16.mxu0 %v12515_v3 }
 0x17a   :  { %2099 = vmatmul.mubr.bf16.gmra.mxu1 %v13427_v56 }
 0x17b   :  { %11159 = vmatpush3.bf16.msra.mxu1 %v11698_v55  ;;  %2190 = vmatprep.mubr.bf16.mxu1 %v13022_v43 }
 0x17c   :  { %2219 = vmatpush1.bf16.msra.mxu0 %v11699_v32  ;;  %11160 = vmatprep.subr.bf16.mxu1 %v11700_v40 }
 0x17d   :  { %2220 = vmatprep.subr.bf16.mxu0 %v12515_v3 }
 0x17f   :  { %11161 = vmatpush3.bf16.msra.mxu1 %v11701_v59 }
 0x180   :  { %2221 = vmatpush1.bf16.msra.mxu0 %v11702_v39  ;;  %11162 = vmatprep.subr.bf16.mxu1 %v11703_v17 }
 0x181   :  { %2234 = vmatprep.subr.bf16.mxu0 %v12515_v3 }
 0x183   :  { %11163 = vmatpush3.bf16.msra.mxu1 %v11704_v52 }
 0x184   :  { %2235 = vmatpush2.bf16.msra.mxu0 %v11705_v37  ;;  %11164 = vmatprep.subr.bf16.mxu1 %v11706_v41 }
 0x185   :  { %2236 = vmatprep.subr.bf16.mxu0 %v12515_v3 }
 0x187   :  { %11165 = vmatpush3.bf16.msra.mxu1 %v11707_v58 }
 0x188   :  { %2237 = vmatpush2.bf16.msra.mxu0 %v11708_v19  ;;  %11166 = vmatprep.subr.bf16.mxu1 %v11709_v20 }
 0x189   :  { %2858 = vmatprep.subr.bf16.mxu0 %v11712_v23 }
 0x18b   :  { %2239 = vmatmul.mubr.bf16.vlgmr.msra.gmra.mxu0 %v13033_v45  ;;  %11167 = vmatpush3.bf16.msra.mxu1 %v11713_v24 }
 0x18c   :  { %10089 = vmatprep.mubr.msk.bf16.mxu0 %vm1430_vm4, %v13348_v47  ;;  %2859 = vmatpush1.bf16.msra.mxu0 %v11710_v25 }
 0x18d   :  { %11168 = vmatprep.subr.bf16.mxu1 %v11714_v26  ;;  %2860 = vmatprep.subr.bf16.mxu0 %v11717_v53 }
 0x18e   :  { %21 = vsyncpa [#allocation3], 0  ;;  %v11719_v28 = vld [vmem:[%s16193_s3 + $0x588] ss:$12 sps:$4 sm:$0xff]   ;;  %v11722_v29 = vld [vmem:[%s16193_s3 + $0x6d8] ss:$12 sps:$4 sm:$0xff]  }
 0x18f   :  { %11169 = vmatpush3.bf16.msra.mxu1 %v11718_v21  ;;  %v13499_v31 = vrot.slane %v13068_v18, 1  ;;  %v11727_v44 = vld [vmem:[%s16193_s3 + $0x574] ss:$12 sps:$4 sm:$0xff]   ;;  %v2376_v61 = vrot.slane %v13024_v60, 1  ;;  %v11730_v63 = vld [vmem:[%s16193_s3 + $0x6c4] ss:$12 sps:$4 sm:$0xff]  }
 0x190   :  { %2861 = vmatpush1.bf16.msra.mxu0 %v11715_v54  ;;  %2807 = vmatprep.subr.bf16.mxu1 %v11721_v22  ;;  %v11725_v47 = vld [vmem:[%s16193_s3 + $0x570] ss:$12 sps:$4 sm:$0xff]   ;;  %v11728_v60 = vld [vmem:[%s16193_s3 + $0x6c0] ss:$12 sps:$4 sm:$0xff]   ;;  %v13530_v2 = vrot.slane %v13065_v36, 1  ;;  %v2370_v10 = vrot.slane %v13022_v43, 1 }
 0x191   :  { %2862 = vmatprep.subr.bf16.mxu0 %v11724_v27  ;;  %v13513_v18 = vsel %vm425_vm3, %v2376_v61, %v13499_v31  ;;  %v11733_v0 = vld [vmem:[%s16193_s3 + $0x55c] ss:$12 sps:$4 sm:$0xff]   ;;  %v11736_v48 = vld [vmem:[%s16193_s3 + $0x6ac] ss:$12 sps:$4 sm:$0xff]   ;;  %v11742_v36 = vld [vmem:[%s16193_s3 + $0x694] ss:$12 sps:$4 sm:$0xff]  }
 0x192   :  { %2191 = vmatmul.mubr.bf16.vlgmr.msra.gmra.mxu1 %v13028_v1  ;;  %v11731_v42 = vld [vmem:[%s16193_s3 + $0x558] ss:$12 sps:$4 sm:$0xff]   ;;  %v11734_v49 = vld [vmem:[%s16193_s3 + $0x6a8] ss:$12 sps:$4 sm:$0xff]   ;;  %v13548_v35 = vsel %vm425_vm3, %v2370_v10, %v13530_v2  ;;  %v11737_v43 = vld [vmem:[%s16193_s3 + $0x540] ss:$12 sps:$4 sm:$0xff]  }
 0x193   :  { %2247 = vmatmul.mubr.bf16.gmra.mxu0 %v13374_v34  ;;  %2198 = vmatprep.mubr.bf16.mxu1 %v13402_v11  ;;  %v11739_v34 = vld [vmem:[%s16193_s3 + $0x544] ss:$12 sps:$4 sm:$0xff]   ;;  %v11745_v33 = vld [vmem:[%s16193_s3 + $0x52c] ss:$12 sps:$4 sm:$0xff]   ;;  %v11748_v15 = vld [vmem:[%s16193_s3 + $0x67c] ss:$12 sps:$4 sm:$0xff]  }
 0x194   :  { %2808 = vmatpush1.bf16.msra.mxu1 %v11719_v28  ;;  %2863 = vmatpush1.bf16.msra.mxu0 %v11722_v29  ;;  %v11740_v50 = vld [vmem:[%s16193_s3 + $0x690] ss:$12 sps:$4 sm:$0xff]   ;;  %v11743_v46 = vld [vmem:[%s16193_s3 + $0x528] ss:$12 sps:$4 sm:$0xff]   ;;  %v11746_v51 = vld [vmem:[%s16193_s3 + $0x678] ss:$12 sps:$4 sm:$0xff]  }
 0x195   :  { %10272 = vmatprep.mubr.msk.bf16.mxu0 %vm1430_vm4, %v13513_v18  ;;  %2809 = vmatprep.subr.bf16.mxu1 %v11727_v44  ;;  %v11751_v11 = vld [vmem:[%s16193_s3 + $0x514] ss:$12 sps:$4 sm:$0xff]   ;;  %v11754_v16 = vld [vmem:[%s16193_s3 + $0x664] ss:$12 sps:$4 sm:$0xff]   ;;  %v11757_v55 = vld [vmem:[%s16193_s3 + $0x4fc] ss:$12 sps:$4 sm:$0xff]  }
 0x196   :  { %2864 = vmatprep.subr.bf16.mxu0 %v11730_v63  ;;  %v11749_v38 = vld [vmem:[%s16193_s3 + $0x510] ss:$12 sps:$4 sm:$0xff]   ;;  %v11752_v30 = vld [vmem:[%s16193_s3 + $0x660] ss:$12 sps:$4 sm:$0xff]   ;;  %v11755_v40 = vld [vmem:[%s16193_s3 + $0x4f8] ss:$12 sps:$4 sm:$0xff]  }
 0x197   :  { %v11760_v32 = vld [vmem:[%s16193_s3 + $0x73c] ss:$12 sps:$4 sm:$0xff]   ;;  %v11763_v59 = vld [vmem:[%s16193_s3 + $0x4e4] ss:$12 sps:$4 sm:$0xff]   ;;  %v11761_v17 = vld [vmem:[%s16193_s3 + $0x4e0] ss:$12 sps:$4 sm:$0xff]  }
 0x198   :  { %2810 = vmatpush1.bf16.msra.mxu1 %v11725_v47  ;;  %2865 = vmatpush1.bf16.msra.mxu0 %v11728_v60  ;;  %v11766_v39 = vld [vmem:[%s16193_s3 + $0x724] ss:$12 sps:$4 sm:$0xff]   ;;  %v11764_v52 = vld [vmem:[%s16193_s3 + $0x720] ss:$12 sps:$4 sm:$0xff]   ;;  %v13612_v58 = vrot.slane %v13061_v4, 1  ;;  %v2373_v20 = vrot.slane %v13033_v45, 1 }
 0x199   :  { %2811 = vmatprep.subr.bf16.mxu1 %v11733_v0  ;;  %2866 = vmatprep.subr.bf16.mxu0 %v11736_v48  ;;  %v11769_v37 = vld [vmem:[%s16193_s3 + $0x64c] ss:$12 sps:$4 sm:$0xff]   ;;  %v11770_v41 = vld [vmem:[%s16193_s3 + $0x650] ss:$12 sps:$4 sm:$0xff]   ;;  %v11767_v19 = vld [vmem:[%s16193_s3 + $0x648] ss:$12 sps:$4 sm:$0xff]  }
 0x19a   :  { %2199 = vmatmul.mubr.bf16.gmra.mxu1 %v13427_v56  ;;  %v11758_v56 = vld [vmem:[%s16193_s3 + $0x738] ss:$12 sps:$4 sm:$0xff]   ;;  %v11771_v23 = vld [vmem:[%s16193_s3 + $0x590] ss:$12 sps:$4 sm:$0xff]   ;;  %v11774_v24 = vld [vmem:[%s16193_s3 + $0x634] ss:$12 sps:$4 sm:$0xff]   ;;  %v13626_v4 = vsel %vm425_vm3, %v2373_v20, %v13612_v58 }
 0x19b   :  { %2839 = vmatprep.mubr.bf16.mxu1 %v13548_v35  ;;  %v11775_v25 = vld [vmem:[%s16193_s3 + $0x638] ss:$12 sps:$4 sm:$0xff]   ;;  %v11772_v45 = vld [vmem:[%s16193_s3 + $0x630] ss:$12 sps:$4 sm:$0xff]   ;;  %v11780_v21 = vld [vmem:[%s16193_s3 + $0x620] ss:$12 sps:$4 sm:$0xff]  }
 0x19c   :  { %2812 = vmatpush1.bf16.msra.mxu1 %v11731_v42  ;;  %2867 = vmatpush1.bf16.msra.mxu0 %v11734_v49  ;;  %v11776_v26 = vld [vmem:[%s16193_s3 + $0x578] ss:$12 sps:$4 sm:$0xff]   ;;  %v11779_v53 = vld [vmem:[%s16193_s3 + $0x61c] ss:$12 sps:$4 sm:$0xff]   ;;  %v11781_v22 = vld [vmem:[%s16193_s3 + $0x560] ss:$12 sps:$4 sm:$0xff]  }
 0x19d   :  { %2813 = vmatprep.subr.bf16.mxu1 %v11739_v34  ;;  %2868 = vmatprep.subr.bf16.mxu0 %v11742_v36  ;;  %v11777_v54 = vld [vmem:[%s16193_s3 + $0x618] ss:$12 sps:$4 sm:$0xff]   ;;  %v11785_v28 = vld [vmem:[%s16193_s3 + $0x608] ss:$12 sps:$4 sm:$0xff]   ;;  %v11782_v29 = vld [vmem:[%s16193_s3 + $0x600] ss:$12 sps:$4 sm:$0xff]  }
 0x19e   :  { %v11784_v27 = vld [vmem:[%s16193_s3 + $0x604] ss:$12 sps:$4 sm:$0xff]   ;;  %v11786_v44 = vld [vmem:[%s16193_s3 + $0x548] ss:$12 sps:$4 sm:$0xff]   ;;  %v11789_v61 = vld [vmem:[%s16193_s3 + $0x5ec] ss:$12 sps:$4 sm:$0xff]  }
 0x19f   :  { %v11790_v63 = vld [vmem:[%s16193_s3 + $0x5f0] ss:$12 sps:$4 sm:$0xff]   ;;  %v11787_v47 = vld [vmem:[%s16193_s3 + $0x5e8] ss:$12 sps:$4 sm:$0xff]   ;;  %v11795_v48 = vld [vmem:[%s16193_s3 + $0x5d8] ss:$12 sps:$4 sm:$0xff]  }
 0x1a0   :  { %2814 = vmatpush1.bf16.msra.mxu1 %v11737_v43  ;;  %2869 = vmatpush1.bf16.msra.mxu0 %v11740_v50  ;;  %v11791_v60 = vld [vmem:[%s16193_s3 + $0x530] ss:$12 sps:$4 sm:$0xff]   ;;  %v11794_v0 = vld [vmem:[%s16193_s3 + $0x5d4] ss:$12 sps:$4 sm:$0xff]   ;;  %v11796_v49 = vld [vmem:[%s16193_s3 + $0x518] ss:$12 sps:$4 sm:$0xff]  }
 0x1a1   :  { %2815 = vmatprep.subr.bf16.mxu1 %v11745_v33  ;;  %2870 = vmatprep.subr.bf16.mxu0 %v11748_v15  ;;  %v11792_v42 = vld [vmem:[%s16193_s3 + $0x5d0] ss:$12 sps:$4 sm:$0xff]   ;;  %v11800_v34 = vld [vmem:[%s16193_s3 + $0x5c0] ss:$12 sps:$4 sm:$0xff]   ;;  %v11797_v36 = vld [vmem:[%s16193_s3 + $0x5b8] ss:$12 sps:$4 sm:$0xff]  }
 0x1a2   :  { %v11799_v10 = vld [vmem:[%s16193_s3 + $0x5bc] ss:$12 sps:$4 sm:$0xff]   ;;  %v11804_v43 = vld [vmem:[%s16193_s3 + $0x5a4] ss:$12 sps:$4 sm:$0xff]   ;;  %v11802_v33 = vld [vmem:[%s16193_s3 + $0x5a0] ss:$12 sps:$4 sm:$0xff]  }
 0x1a3   :  { %v11805_v50 = vld [vmem:[%s16193_s3 + $0x5a8] ss:$12 sps:$4 sm:$0xff]   ;;  %s12517_s27 = smov 120   ;;  %vm3511_vm5 = vcmask 982016   ;;  %vm3579_vm6 = vcmask 457728   ;;  %vm3671_vm7 = vcmask 187392  }
 0x1a4   :  { %2816 = vmatpush1.bf16.msra.mxu1 %v11743_v46  ;;  %2871 = vmatpush1.bf16.msra.mxu0 %v11746_v51  ;;  %v11806_v15 = vld [vmem:[%s16193_s3 + $0x4e8] ss:$12 sps:$4 sm:$0xff]   ;;  %v2368_v46 = vrot.slane %v13058_v57, 1  ;;  %v2367_v51 = vrot.slane %v13028_v1, 1  ;;  %vm3849_vm8 = vcmask 785408   ;;  %vm4330_vm9 = vcmask 588800  }
 0x1a5   :  { %2817 = vmatprep.subr.bf16.mxu1 %v11751_v11  ;;  %2872 = vmatprep.subr.bf16.mxu0 %v11754_v16  ;;  %vm12518_vm10 = vmmov 0   ;;  %vm4539_vm11 = vcmask 1043456   ;;  %vm4417_vm12 = vcmask 1040384   ;;  %vm4413_vm13 = vcmask 72704   ;;  %s12519_s17 = smov 32   ;;  %s12520_s18 = smov 80  }
 0x1a6   :  { %vm4535_vm14 = vcmask 326656   ;;  %vm4824_vm15 = vcmask 392192  }
 0x1a8   :  { %2818 = vmatpush1.bf16.msra.mxu1 %v11749_v38  ;;  %2873 = vmatpush1.bf16.msra.mxu0 %v11752_v30  ;;  %v11807_v38 = vld [vmem:[%s16193_s3 + $0x710] ss:$12 sps:$4 sm:$0xff]   ;;  %v2369_v30 = vsel %vm425_vm3, %v2367_v51, %v2368_v46  ;;  %v11832_v51 = vld [vmem:[%s16195_s5 + $0x20] ss:$8 sps:$4 sm:$0xff]  }
 0x1a9   :  { %2819 = vmatprep.subr.bf16.mxu1 %v11757_v55  ;;  %2886 = vmatprep.subr.bf16.mxu0 %v11760_v32 }
 0x1ac   :  { %2820 = vmatpush1.bf16.msra.mxu1 %v11755_v40  ;;  %2887 = vmatpush2.bf16.msra.mxu0 %v11758_v56  ;;  %v11808_v56 = vld [vmem:[%s16193_s3 + $0x6f8] ss:$12 sps:$4 sm:$0xff]  }
 0x1ad   :  { %2821 = vmatprep.subr.bf16.mxu1 %v11763_v59  ;;  %2888 = vmatprep.subr.bf16.mxu0 %v11766_v39 }
 0x1b0   :  { %2822 = vmatpush1.bf16.msra.mxu1 %v11761_v17  ;;  %2889 = vmatpush2.bf16.msra.mxu0 %v11764_v52 }
 0x1b1   :  { %2823 = vmatprep.subr.bf16.mxu1 %v11769_v37  ;;  %11182 = vmatprep.subr.bf16.mxu0 %v11770_v41 }
 0x1b3   :  { %2891 = vmatmul.mubr.bf16.vlgmr.msra.gmra.mxu0 %v13626_v4 }
 0x1b4   :  { %2824 = vmatpush2.bf16.msra.mxu1 %v11767_v19  ;;  %10273 = vmatprep.mubr.msk.bf16.mxu0 %vm1430_vm4, %v13499_v31 }
 0x1b5   :  { %11183 = vmatpush3.bf16.msra.mxu0 %v11771_v23  ;;  %2825 = vmatprep.subr.bf16.mxu1 %v11774_v24 }
 0x1b6   :  { %11184 = vmatprep.subr.bf16.mxu0 %v11775_v25  ;;  %v11810_v25 = vld [vmem:[%s16193_s3 + $0x6c8] ss:$12 sps:$4 sm:$0xff]  }
 0x1b8   :  { %2826 = vmatpush2.bf16.msra.mxu1 %v11772_v45 }
 0x1b9   :  { %11185 = vmatpush3.bf16.msra.mxu0 %v11776_v26  ;;  %2827 = vmatprep.subr.bf16.mxu1 %v11779_v53  ;;  %v11817_v53 = vld [vmem:[%s16195_s5 + $0x70] ss:$8 sps:$4 sm:$0xff]  }
 0x1ba   :  { %11186 = vmatprep.subr.bf16.mxu0 %v11780_v21  ;;  %v11819_v21 = vld [vmem:[%s16195_s5 + $0x74] ss:$8 sps:$4 sm:$0xff]  }
 0x1bb   :  { %2901 = vmatmul.mubr.bf16.gmra.mxu0 %v13612_v58 }
 0x1bc   :  { %2828 = vmatpush2.bf16.msra.mxu1 %v11777_v54  ;;  %2941 = vmatprep.mubr.bf16.mxu0 %v13548_v35  ;;  %v11801_v35 = vld [vmem:[%s16193_s3 + $0x500] ss:$12 sps:$4 sm:$0xff]  }
 0x1bd   :  { %11187 = vmatpush3.bf16.msra.mxu0 %v11781_v22  ;;  %2829 = vmatprep.subr.bf16.mxu1 %v11784_v27  ;;  %v11822_v54 = vld [vmem:[%s16195_s5 + $0x64] ss:$8 sps:$4 sm:$0xff]   ;;  %v11820_v22 = vld [vmem:[%s16195_s5 + $0x60] ss:$8 sps:$4 sm:$0xff]   ;;  %v11825_v27 = vld [vmem:[%s16195_s5 + $0x54] ss:$8 sps:$4 sm:$0xff]  }
 0x1be   :  { %11188 = vmatprep.subr.bf16.mxu0 %v11785_v28  ;;  %v11812_v28 = vld [vmem:[%s16193_s3 + $0x698] ss:$12 sps:$4 sm:$0xff]  }
 0x1c0   :  { %2830 = vmatpush2.bf16.msra.mxu1 %v11782_v29  ;;  %v11823_v29 = vld [vmem:[%s16195_s5 + $0x50] ss:$8 sps:$4 sm:$0xff]  }
 0x1c1   :  { %11189 = vmatpush3.bf16.msra.mxu0 %v11786_v44  ;;  %2831 = vmatprep.subr.bf16.mxu1 %v11789_v61  ;;  %v11813_v44 = vld [vmem:[%s16193_s3 + $0x680] ss:$12 sps:$4 sm:$0xff]   ;;  %v11814_v61 = vld [vmem:[%s16193_s3 + $0x668] ss:$12 sps:$4 sm:$0xff]  }
 0x1c2   :  { %11190 = vmatprep.subr.bf16.mxu0 %v11790_v63 }
 0x1c4   :  { %2832 = vmatpush2.bf16.msra.mxu1 %v11787_v47  ;;  %v11815_v47 = vld [vmem:[%s16193_s3 + $0x740] ss:$12 sps:$4 sm:$0xff]  }
 0x1c5   :  { %11191 = vmatpush3.bf16.msra.mxu0 %v11791_v60  ;;  %2833 = vmatprep.subr.bf16.mxu1 %v11794_v0  ;;  %v11826_v0 = vld [vmem:[%s16195_s5 + $0x40] ss:$8 sps:$4 sm:$0xff]  }
 0x1c6   :  { %11192 = vmatprep.subr.bf16.mxu0 %v11795_v48  ;;  %v11828_v48 = vld [vmem:[%s16195_s5 + $0x44] ss:$8 sps:$4 sm:$0xff]  }
 0x1c8   :  { %2834 = vmatpush2.bf16.msra.mxu1 %v11792_v42 }
 0x1c9   :  { %11193 = vmatpush3.bf16.msra.mxu0 %v11796_v49  ;;  %2835 = vmatprep.subr.bf16.mxu1 %v11799_v10  ;;  %v11816_v10 = vld [vmem:[%s16193_s3 + $0x728] ss:$12 sps:$4 sm:$0xff]  }
 0x1ca   :  { %11194 = vmatprep.subr.bf16.mxu0 %v11800_v34 }
 0x1cc   :  { %2836 = vmatpush2.bf16.msra.mxu1 %v11797_v36  ;;  %v11829_v36 = vld [vmem:[%s16195_s5 + $0x30] ss:$8 sps:$4 sm:$0xff]  }
 0x1cd   :  { %11195 = vmatpush3.bf16.msra.mxu0 %v11801_v35  ;;  %2837 = vmatprep.subr.bf16.mxu1 %v11804_v43  ;;  %v11831_v35 = vld [vmem:[%s16195_s5 + $0x34] ss:$8 sps:$4 sm:$0xff]  }
 0x1ce   :  { %11196 = vmatprep.subr.bf16.mxu0 %v11805_v50 }
 0x1d0   :  { %2838 = vmatpush2.bf16.msra.mxu1 %v11802_v33 }
 0x1d1   :  { %11197 = vmatpush3.bf16.msra.mxu0 %v11806_v15  ;;  %2957 = vmatprep.subr.bf16.mxu1 %v12515_v3  ;;  %v1471_v11 = vpop.f32.mrf.mxu0 }
 0x1d2   :  { %v1522_v16 = vpop.f32.mrf.mxu1  ;;  %3391 = vmatprep.subr.bf16.mxu0 %v11819_v21 }
 0x1d3   :  { %v13721_v55 = vadd.f32 %v1522_v16, %v1471_v11  ;;  %2840 = vmatmul.mubr.bf16.vlgmr.msra.gmra.mxu1 %v2369_v30  ;;  %v13723_v32 = vpop.f32.mrf.mxu0  ;;  %v11834_v11 = vld [vmem:[%s16195_s5 + $0x24] ss:$8 sps:$4 sm:$0xff]  }
 0x1d4   :  { %v13725_v57 = vpop.f32.mrf.mxu1  ;;  %2942 = vmatmul.mubr.bf16.vlgmr.msra.gmra.mxu0 %v2369_v30  ;;  %2849 = vmatprep.mubr.bf16.mxu1 %v13530_v2 }
 0x1d5   :  { %2949 = vmatprep.mubr.bf16.mxu0 %v13530_v2  ;;  %2958 = vmatpush1.bf16.msra.mxu1 %v11807_v38  ;;  %v1475_v1 = vpop.f32.mrf.mxu0  ;;  %v11809_v2 = vld [vmem:[%s16193_s3 + $0x6e0] ss:$12 sps:$4 sm:$0xff]  }
 0x1d6   :  { %v1526_v40 = vpop.f32.mrf.mxu1  ;;  %2959 = vmatprep.subr.bf16.mxu1 %v12515_v3  ;;  %3392 = vmatpush1.bf16.msra.mxu0 %v11817_v53  ;;  %v11841_v53 = vld [vmem:[%s16195_s5 + $0xf0] ss:$8 sps:$4 sm:$0xff]  }
 0x1d7   :  { %v13733_v59 = vadd.f32 %v1526_v40, %v1475_v1  ;;  %v13735_v39 = vpop.f32.mrf.mxu0  ;;  %3393 = vmatprep.subr.bf16.mxu0 %v11822_v54  ;;  %v11844_v54 = vld [vmem:[%s16195_s5 + $0xe0] ss:$8 sps:$4 sm:$0xff]  }
 0x1d8   :  { %v13737_v17 = vpop.f32.mrf.mxu1 }
 0x1d9   :  { %2960 = vmatpush1.bf16.msra.mxu1 %v11808_v56  ;;  %v1481_v52 = vpop.f32.mrf.mxu0 }
 0x1da   :  { %v1532_v37 = vpop.f32.mrf.mxu1  ;;  %2961 = vmatprep.subr.bf16.mxu1 %v12515_v3  ;;  %3394 = vmatpush1.bf16.msra.mxu0 %v11820_v22  ;;  %v11847_v22 = vld [vmem:[%s16195_s5 + $0xd0] ss:$8 sps:$4 sm:$0xff]  }
 0x1db   :  { %v13743_v41 = vadd.f32 %v1532_v37, %v1481_v52  ;;  %2850 = vmatmul.mubr.bf16.gmra.mxu1 %v2368_v46  ;;  %v13745_v19 = vpop.f32.mrf.mxu0  ;;  %3395 = vmatprep.subr.bf16.mxu0 %v11825_v27  ;;  %v11835_v37 = vld [vmem:[%s16195_s5 + $0x10] ss:$8 sps:$4 sm:$0xff]   ;;  %v11850_v27 = vld [vmem:[%s16195_s5 + $0xc0] ss:$8 sps:$4 sm:$0xff]  }
 0x1dc   :  { %v13747_v20 = vpop.f32.mrf.mxu1  ;;  %2950 = vmatmul.mubr.bf16.gmra.mxu0 %v2368_v46  ;;  %10274 = vmatprep.mubr.msk.bf16.mxu1 %vm1430_vm4, %v13513_v18  ;;  %v11811_v18 = vld [vmem:[%s16193_s3 + $0x6b0] ss:$12 sps:$4 sm:$0xff]  }
 0x1dd   :  { %2962 = vmatpush1.bf16.msra.mxu1 %v11809_v2  ;;  %v1485_v23 = vpop.f32.mrf.mxu0 }
 0x1de   :  { %v1536_v24 = vpop.f32.mrf.mxu1  ;;  %2963 = vmatprep.subr.bf16.mxu1 %v12515_v3  ;;  %3396 = vmatpush1.bf16.msra.mxu0 %v11823_v29 }
 0x1df   :  { %v1486_v45 = vpop.f32.mrf.mxu0  ;;  %3397 = vmatprep.subr.bf16.mxu0 %v11828_v48  ;;  %v11838_v24 = vld [vmem:[%s16195_s5] ss:$8 sps:$4 sm:$0xff]   ;;  %v11861_v48 = vld [vmem:[%s16195_s5 + $0x94] ss:$8 sps:$4 sm:$0xff]  }
 0x1e0   :  { %v1537_v26 = vpop.f32.mrf.mxu1  ;;  %v11843_v45 = vld [vmem:[%s16195_s5 + $0xf4] ss:$8 sps:$4 sm:$0xff]  }
 0x1e1   :  { %2964 = vmatpush1.bf16.msra.mxu1 %v11810_v25 }
 0x1e2   :  { %2965 = vmatprep.subr.bf16.mxu1 %v12515_v3  ;;  %3398 = vmatpush1.bf16.msra.mxu0 %v11826_v0 }
 0x1e3   :  { %3399 = vmatprep.subr.bf16.mxu0 %v11831_v35  ;;  %v11867_v35 = vld [vmem:[%s16195_s5 + $0x174] ss:$8 sps:$4 sm:$0xff]  }
 0x1e5   :  { %2966 = vmatpush1.bf16.msra.mxu1 %v11811_v18  ;;  %v11846_v18 = vld [vmem:[%s16195_s5 + $0xe4] ss:$8 sps:$4 sm:$0xff]  }
 0x1e6   :  { %2967 = vmatprep.subr.bf16.mxu1 %v12515_v3  ;;  %3400 = vmatpush1.bf16.msra.mxu0 %v11829_v36  ;;  %v11865_v36 = vld [vmem:[%s16195_s5 + $0x170] ss:$8 sps:$4 sm:$0xff]  }
 0x1e7   :  { %3401 = vmatprep.subr.bf16.mxu0 %v11834_v11 }
 0x1e9   :  { %2968 = vmatpush1.bf16.msra.mxu1 %v11812_v28  ;;  %v11852_v28 = vld [vmem:[%s16195_s5 + $0xc4] ss:$8 sps:$4 sm:$0xff]  }
 0x1ea   :  { %2969 = vmatprep.subr.bf16.mxu1 %v12515_v3  ;;  %3402 = vmatpush1.bf16.msra.mxu0 %v11832_v51  ;;  %v11870_v51 = vld [vmem:[%s16195_s5 + $0x164] ss:$8 sps:$4 sm:$0xff]  }
 0x1ed   :  { %2970 = vmatpush1.bf16.msra.mxu1 %v11813_v44  ;;  %v11853_v44 = vld [vmem:[%s16195_s5 + $0xb0] ss:$8 sps:$4 sm:$0xff]  }
 0x1ee   :  { %2971 = vmatprep.subr.bf16.mxu1 %v12515_v3 }
 0x1f1   :  { %2972 = vmatpush1.bf16.msra.mxu1 %v11814_v61  ;;  %v11855_v61 = vld [vmem:[%s16195_s5 + $0xb4] ss:$8 sps:$4 sm:$0xff]  }
 0x1f2   :  { %v11142_v63 = vpop.f32.mrf.mxu1  ;;  %2985 = vmatprep.subr.bf16.mxu1 %v12515_v3 }
 0x1f4   :  { %v11143_v60 = vpop.f32.mrf.mxu1 }
 0x1f5   :  { %v11144_v42 = vadd.f32 %v11143_v60, %v11142_v63  ;;  %2986 = vmatpush2.bf16.msra.mxu1 %v11815_v47  ;;  %v11858_v63 = vld [vmem:[%s16195_s5 + $0xa4] ss:$8 sps:$4 sm:$0xff]   ;;  %v11856_v60 = vld [vmem:[%s16195_s5 + $0xa0] ss:$8 sps:$4 sm:$0xff]  }
 0x1f6   :  { %v11145_v49 = vpop.f32.mrf.mxu1  ;;  %2987 = vmatprep.subr.bf16.mxu1 %v12515_v3 }
 0x1f8   :  { %v11146_v34 = vpop.f32.mrf.mxu1 }
 0x1f9   :  { %2988 = vmatpush2.bf16.msra.mxu1 %v11816_v10  ;;  %v1621_v50 = vpop.f32.mrf.mxu0  ;;  %v11147_v16 = vadd.f32 %v11146_v34, %v11145_v49  ;;  %v11859_v49 = vld [vmem:[%s16195_s5 + $0x90] ss:$8 sps:$4 sm:$0xff]   ;;  %v11864_v34 = vld [vmem:[%s16195_s5 + $0x84] ss:$8 sps:$4 sm:$0xff]  }
 0x1fa   :  { %v11148_v43 = vpop.f32.mrf.mxu1  ;;  %v13809_v33 = vadd.f32 %v11144_v42, %v1621_v50  ;;  %3442 = vmatprep.subr.bf16.mxu1 %v11867_v35  ;;  %v11862_v50 = vld [vmem:[%s16195_s5 + $0x80] ss:$8 sps:$4 sm:$0xff]  }
 0x1fb   :  { %v1623_v46 = vpop.f32.mrf.mxu0 }
 0x1fc   :  { %v11149_v15 = vpop.f32.mrf.mxu1  ;;  %2990 = vmatmul.mubr.bf16.vlgmr.msra.gmra.mxu1 %v13626_v4  ;;  %v11837_v4 = vld [vmem:[%s16195_s5 + $0x14] ss:$8 sps:$4 sm:$0xff]   ;;  %v11868_v46 = vld [vmem:[%s16195_s5 + $0x160] ss:$8 sps:$4 sm:$0xff]  }
 0x1fd   :  { %v11150_v38 = vadd.f32 %v11149_v15, %v11148_v43  ;;  %10275 = vmatprep.mubr.msk.bf16.mxu1 %vm1430_vm4, %v13499_v31  ;;  %v1624_v1 = vpop.f32.mrf.mxu0  ;;  %3403 = vmatprep.subr.bf16.mxu0 %v11837_v4  ;;  %v11840_v31 = vld [vmem:[%s16195_s5 + $0x4] ss:$8 sps:$4 sm:$0xff]  }
 0x1fe   :  { %v11151_v30 = vpop.f32.mrf.mxu1  ;;  %v13820_v40 = vadd.f32 %v11147_v16, %v1624_v1  ;;  %3404 = vmatpush1.bf16.msra.mxu0 %v11835_v37  ;;  %3443 = vmatpush1.bf16.msra.mxu1 %v11865_v36  ;;  %v11873_v16 = vld [vmem:[%s16195_s5 + $0x154] ss:$8 sps:$4 sm:$0xff]   ;;  %v1525_v1 = vadd.f32 %v13725_v57, %v13723_v32  ;;  %v1529_v32 = vadd.f32 %v13737_v17, %v13735_v39 }
 0x1ff   :  { %v1626_v52 = vpop.f32.mrf.mxu0  ;;  %3405 = vmatprep.subr.bf16.mxu0 %v11840_v31  ;;  %3444 = vmatprep.subr.bf16.mxu1 %v11870_v51  ;;  %v11871_v30 = vld [vmem:[%s16195_s5 + $0x150] ss:$8 sps:$4 sm:$0xff]  }
 0x200   :  { %v11152_v56 = vpop.f32.mrf.mxu1  ;;  %v11876_v52 = vld [vmem:[%s16195_s5 + $0x144] ss:$8 sps:$4 sm:$0xff]  }
 0x201   :  { %v1629_v2 = vpop.f32.mrf.mxu0 }
 0x202   :  { %v13831_v23 = vadd.f32 %v11150_v38, %v1629_v2  ;;  %3406 = vmatpush1.bf16.msra.mxu0 %v11838_v24  ;;  %3445 = vmatpush1.bf16.msra.mxu1 %v11868_v46  ;;  %v11874_v24 = vld [vmem:[%s16195_s5 + $0x140] ss:$8 sps:$4 sm:$0xff]  }
 0x203   :  { %v1631_v25 = vpop.f32.mrf.mxu0  ;;  %3407 = vmatprep.subr.bf16.mxu0 %v11843_v45  ;;  %3446 = vmatprep.subr.bf16.mxu1 %v11873_v16 }
 0x204   :  { %2998 = vmatmul.mubr.bf16.gmra.mxu1 %v13612_v58  ;;  %v11849_v58 = vld [vmem:[%s16195_s5 + $0xd4] ss:$8 sps:$4 sm:$0xff]  }
 0x205   :  { %v1632_v26 = vpop.f32.mrf.mxu0  ;;  %3474 = vmatprep.mubr.bf16.mxu1 %v12515_v3 }
 0x206   :  { %3408 = vmatpush2.bf16.msra.mxu0 %v11841_v53  ;;  %3447 = vmatpush1.bf16.msra.mxu1 %v11871_v30  ;;  %v1535_v53 = vadd.f32 %v13747_v20, %v13745_v19  ;;  %v11882_v20 = vld [vmem:[%s16195_s5 + $0x124] ss:$8 sps:$4 sm:$0xff]  }
 0x207   :  { %v1633_v21 = vpop.f32.mrf.mxu0  ;;  %3409 = vmatprep.subr.bf16.mxu0 %v11846_v18  ;;  %3448 = vmatprep.subr.bf16.mxu1 %v11876_v52 }
 0x20a   :  { %3410 = vmatpush2.bf16.msra.mxu0 %v11844_v54  ;;  %3449 = vmatpush1.bf16.msra.mxu1 %v11874_v24 }
 0x20b   :  { %3411 = vmatprep.subr.bf16.mxu0 %v11849_v58 }
 0x20e   :  { %3412 = vmatpush2.bf16.msra.mxu0 %v11847_v22  ;;  %v11877_v22 = vld [vmem:[%s16195_s5 + $0x130] ss:$8 sps:$4 sm:$0xff]  }
 0x20f   :  { %3413 = vmatprep.subr.bf16.mxu0 %v11852_v28  ;;  %v11885_v28 = vld [vmem:[%s16195_s5 + $0x114] ss:$8 sps:$4 sm:$0xff]  }
 0x212   :  { %3414 = vmatpush2.bf16.msra.mxu0 %v11850_v27  ;;  %v11879_v27 = vld [vmem:[%s16195_s5 + $0x134] ss:$8 sps:$4 sm:$0xff]  }
 0x213   :  { %3415 = vmatprep.subr.bf16.mxu0 %v11855_v61  ;;  %3450 = vmatprep.subr.bf16.mxu1 %v11879_v27 }
 0x214   :  { %3451 = vmatpush1.bf16.msra.mxu1 %v11877_v22 }
 0x215   :  { %3452 = vmatprep.subr.bf16.mxu1 %v11882_v20 }
 0x216   :  { %3416 = vmatpush2.bf16.msra.mxu0 %v11853_v44  ;;  %v11883_v44 = vld [vmem:[%s16195_s5 + $0x110] ss:$8 sps:$4 sm:$0xff]  }
 0x217   :  { %3417 = vmatprep.subr.bf16.mxu0 %v11858_v63  ;;  %v11888_v63 = vld [vmem:[%s16195_s5 + $0x104] ss:$8 sps:$4 sm:$0xff]  }
 0x21a   :  { %3418 = vmatpush2.bf16.msra.mxu0 %v11856_v60 }
 0x21b   :  { %3419 = vmatprep.subr.bf16.mxu0 %v11861_v48  ;;  %v11886_v48 = vld [vmem:[%s16195_s5 + $0x100] ss:$8 sps:$4 sm:$0xff]  }
 0x21e   :  { %3420 = vmatpush2.bf16.msra.mxu0 %v11859_v49 }
 0x21f   :  { %3421 = vmatprep.subr.bf16.mxu0 %v11864_v34 }
 0x222   :  { %3422 = vmatpush2.bf16.msra.mxu0 %v11862_v50 }
 0x223   :  { %v2141_v29 = vpop.f32.mrf.mxu0 }
 0x225   :  { %v13871_v47 = vpop.f32.mrf.mxu0 }
 0x227   :  { %v2145_v0 = vpop.f32.mrf.mxu0 }
 0x229   :  { %v2147_v42 = vpop.f32.mrf.mxu0 }
 0x22b   :  { %v2151_v10 = vpop.f32.mrf.mxu0 }
 0x22d   :  { %v13891_v43 = vpop.f32.mrf.mxu0 }
 0x22f   :  { %v2155_v15 = vpop.f32.mrf.mxu0 }
 0x231   :  { %v2156_v11 = vpop.f32.mrf.mxu0 }
 0x232   :  { %v2090_v38 = vpop.f32.mrf.mxu1 }
 0x233   :  { %v2091_v56 = vadd.f32 %v2090_v38, %v13721_v55 }
 0x234   :  { %v2092_v37 = vpop.f32.mrf.mxu1 }
 0x235   :  { %v13914_v4 = vadd.f32 %v2141_v29, %v2091_v56  ;;  %v13916_v2 = vadd.f32 %v2092_v37, %v1525_v1 }
 0x236   :  { %v2094_v31 = vpop.f32.mrf.mxu1 }
 0x237   :  { %v2095_v55 = vadd.f32 %v2094_v31, %v13733_v59  ;;  %v2144_v27 = vadd.f32 %v13871_v47, %v13916_v2 }
 0x238   :  { %v2096_v57 = vpop.f32.mrf.mxu1 }
 0x239   :  { %v13924_v25 = vadd.f32 %v2145_v0, %v2095_v55  ;;  %v2097_v45 = vadd.f32 %v2096_v57, %v1529_v32 }
 0x23a   :  { %v2100_v26 = vpop.f32.mrf.mxu1 }
 0x23b   :  { %v13928_v21 = vadd.f32 %v2147_v42, %v2097_v45  ;;  %v2101_v18 = vadd.f32 %v2100_v26, %v13743_v41  ;;  %v11880_v41 = vld [vmem:[%s16195_s5 + $0x120] ss:$8 sps:$4 sm:$0xff]  }
 0x23c   :  { %v2102_v54 = vpop.f32.mrf.mxu1  ;;  %3453 = vmatpush1.bf16.msra.mxu1 %v11880_v41 }
 0x23d   :  { %v13931_v58 = vadd.f32 %v2151_v10, %v2101_v18  ;;  %v13933_v39 = vadd.f32 %v2102_v54, %v1535_v53  ;;  %3454 = vmatprep.subr.bf16.mxu1 %v11885_v28 }
 0x23e   :  { %v2104_v59 = vpop.f32.mrf.mxu1 }
 0x240   :  { %v2105_v17 = vpop.f32.mrf.mxu1  ;;  %3455 = vmatpush1.bf16.msra.mxu1 %v11883_v44 }
 0x241   :  { %3456 = vmatprep.subr.bf16.mxu1 %v11888_v63 }
 0x244   :  { %3457 = vmatpush1.bf16.msra.mxu1 %v11886_v48 }
 0x24b   :  { %v2240_v19 = vpop.f32.mrf.mxu0 }
 0x24d   :  { %v2242_v29 = vpop.f32.mrf.mxu0 }
 0x24f   :  { %v2243_v61 = vpop.f32.mrf.mxu0 }
 0x251   :  { %v2245_v60 = vpop.f32.mrf.mxu0 }
 0x252   :  { %v11170_v0 = vpop.f32.mrf.mxu1 }
 0x253   :  { %v2248_v42 = vpop.f32.mrf.mxu0 }
 0x254   :  { %v11171_v49 = vpop.f32.mrf.mxu1 }
 0x255   :  { %v11172_v10 = vadd.f32 %v11171_v49, %v11170_v0  ;;  %v2250_v34 = vpop.f32.mrf.mxu0 }
 0x256   :  { %v11173_v36 = vpop.f32.mrf.mxu1 }
 0x257   :  { %v2193_v35 = vadd.f32 %v11172_v10, %v13809_v33  ;;  %v2251_v50 = vpop.f32.mrf.mxu0 }
 0x258   :  { %v11174_v15 = vpop.f32.mrf.mxu1 }
 0x259   :  { %v11175_v46 = vadd.f32 %v11174_v15, %v11173_v36  ;;  %v2252_v51 = vpop.f32.mrf.mxu0  ;;  %v13960_v11 = vadd.f32 %v2240_v19, %v2193_v35 }
 0x25a   :  { %v11176_v16 = vpop.f32.mrf.mxu1 }
 0x25b   :  { %v2196_v38 = vadd.f32 %v11175_v46, %v13820_v40  ;;  %v13971_v40 = vld [vmem:[%s16194_s4] sm:$0x3f] }
 0x25c   :  { %v11177_v30 = vpop.f32.mrf.mxu1  ;;  %v3032_v20 = vrot.slane %v13971_v40, %v12944_v8  ;;  %v3064_v63 = vrot.slane %v13971_v40, %v12948_v12  ;;  %v3068_v47 = vrot.slane %v13971_v40, %v12951_v13 }
 0x25d   :  { %v11178_v1 = vadd.f32 %v11177_v30, %v11176_v16  ;;  %v13963_v56 = vadd.f32 %v2243_v61, %v2196_v38  ;;  %v2154_v16 = vadd.f32 %v13891_v43, %v13933_v39 }
 0x25e   :  { %v11179_v52 = vpop.f32.mrf.mxu1  ;;  %v3047_v2 = vrot.slane %v3032_v20, %v12935_v5  ;;  %v3079_v50 = vrot.slane %v3064_v63, %v12948_v12 }
 0x25f   :  { %v2201_v37 = vadd.f32 %v11178_v1, %v13831_v23  ;;  %v3028_v23 = vrot.slane %v13971_v40, %v12935_v5  ;;  %v3083_v1 = vrot.slane %v3068_v47, %v12948_v12 }
 0x260   :  { %v11180_v31 = vpop.f32.mrf.mxu1 }
 0x261   :  { %v13966_v24 = vadd.f32 %v2248_v42, %v2201_v37  ;;  %v3043_v29 = vrot.slane %v3028_v23, %v12935_v5 }
 0x273   :  { %v2892_v33 = vpop.f32.mrf.mxu0 }
 0x275   :  { %v2894_v32 = vpop.f32.mrf.mxu0 }
 0x277   :  { %v2896_v55 = vpop.f32.mrf.mxu0 }
 0x279   :  { %v2898_v57 = vpop.f32.mrf.mxu0 }
 0x27b   :  { %v2902_v45 = vpop.f32.mrf.mxu0 }
 0x27d   :  { %v2904_v26 = vpop.f32.mrf.mxu0 }
 0x27f   :  { %v2906_v53 = vpop.f32.mrf.mxu0 }
 0x281   :  { %v2907_v18 = vpop.f32.mrf.mxu0 }
 0x293   :  { %v2841_v54 = vpop.f32.mrf.mxu1 }
 0x294   :  { %v2893_v59 = vadd.f32 %v2892_v33, %v2841_v54  ;;  %v11198_v17 = vpop.f32.mrf.mxu0 }
 0x295   :  { %v2843_v22 = vpop.f32.mrf.mxu1 }
 0x296   :  { %v3005_v19 = vadd.f32 %v2893_v59, %v13914_v4  ;;  %v2895_v41 = vadd.f32 %v2894_v32, %v2843_v22  ;;  %v11199_v28 = vpop.f32.mrf.mxu0 }
 0x297   :  { %v2845_v44 = vpop.f32.mrf.mxu1  ;;  %v11200_v63 = vadd.f32 %v11199_v28, %v11198_v17 }
 0x298   :  { %v3015_v61 = vmax.f32 %v3005_v19, 0.0  ;;  %v3006_v60 = vadd.f32 %v2895_v41, %v2144_v27  ;;  %v2897_v0 = vadd.f32 %v2896_v55, %v2845_v44  ;;  %v11201_v48 = vpop.f32.mrf.mxu0 }
 0x299   :  { %v2847_v42 = vpop.f32.mrf.mxu1 }
 0x29a   :  { %v3016_v4 = vmax.f32 %v3006_v60, 0.0  ;;  %v3008_v49 = vadd.f32 %v2897_v0, %v13924_v25  ;;  %v2899_v10 = vadd.f32 %v2898_v57, %v2847_v42  ;;  %v11202_v34 = vpop.f32.mrf.mxu0  ;;  %v3052_v35 = vmul.f32 %v3043_v29, %v3015_v61 }
 0x29b   :  { %v2851_v36 = vpop.f32.mrf.mxu1  ;;  %v3036_v42 = vrot.slane %v13971_v40, %v12938_v6 }
 0x29c   :  { %v3018_v15 = vmax.f32 %v3008_v49, 0.0  ;;  %v3009_v46 = vadd.f32 %v2899_v10, %v13928_v21  ;;  %v11204_v51 = vpop.f32.mrf.mxu0  ;;  %v2903_v38 = vadd.f32 %v2902_v45, %v2851_v36  ;;  %v3053_v52 = vmul.f32 %v3047_v2, %v3016_v4 }
 0x29d   :  { %v2853_v30 = vpop.f32.mrf.mxu1  ;;  %v3088_v57 = vadd.f32 %v3079_v50, %v3052_v35  ;;  %v11203_v4 = vadd.f32 %v11202_v34, %v11201_v48  ;;  %v3051_v10 = vrot.slane %v3036_v42, %v12935_v5  ;;  %v3072_v36 = vrot.slane %v13971_v40, %v12941_v7  ;;  %v3578_v42 = vld [vmem:[%s16197_s7 + $0xb0] sm:$0xff] }
 0x29e   :  { %v3055_v37 = vmul.f32 %v3043_v29, %v3018_v15  ;;  %v3019_v25 = vmax.f32 %v3009_v46, 0.0  ;;  %v2905_v31 = vadd.f32 %v2904_v26, %v2853_v30  ;;  %v11205_v33 = vpop.f32.mrf.mxu0  ;;  %v3011_v32 = vadd.f32 %v2903_v38, %v13931_v58 }
 0x29f   :  { %v2855_v55 = vpop.f32.mrf.mxu1  ;;  %v3089_v22 = vadd.f32 %v3083_v1, %v3053_v52  ;;  %v11206_v15 = vadd.f32 %v11205_v33, %v11204_v51  ;;  %v3571_v33 = vld [vmem:[%s16197_s7 + $0x78] sm:$0xff] }
 0x2a0   :  { %v3091_v53 = vadd.f32 %v3079_v50, %v3055_v37  ;;  %v3056_v18 = vmul.f32 %v3047_v2, %v3019_v25  ;;  %v3012_v21 = vadd.f32 %v2905_v31, %v2154_v16  ;;  %v11207_v54 = vpop.f32.mrf.mxu0  ;;  %v3021_v23 = vmax.f32 %v3011_v32, 0.0 }
 0x2a1   :  { %v2856_v59 = vpop.f32.mrf.mxu1  ;;  %v3087_v16 = vrot.slane %v3072_v36, %v12948_v12  ;;  %v12516_v55 = vmov 0.0   ;;  %v3565_v54 = vld [vmem:[%s16197_s7 + $0x48] sm:$0xff]  ;;  %v3575_v36 = vld [vmem:[%s16197_s7 + $0x98] sm:$0xff] }
 0x2a2   :  { %v3097_v43 = vpack.c.bf16 %v3091_v53, %v3088_v57  ;;  %v3022_v39 = vmax.f32 %v3012_v21, 0.0  ;;  %v11208_v45 = vpop.f32.mrf.mxu0  ;;  %v3092_v27 = vadd.f32 %v3083_v1, %v3056_v18  ;;  %v3058_v20 = vmul.f32 %v3043_v29, %v3021_v23  ;;  %3589 = vmatprep.subr.mxu1 %v12516_v55  ;;  %v3569_v57 = vld [vmem:[%s16197_s7 + $0x68] sm:$0xff]  ;;  %v3568_v53 = vld [vmem:[%s16197_s7 + $0x60] sm:$0xff]  ;;  %v3567_v18 = vld [vmem:[%s16197_s7 + $0x58] sm:$0xff] }
 0x2a3   :  { %v3566_v21 = vld [vmem:[%s16197_s7 + $0x50] sm:$0xff]  ;;  %v3564_v23 = vld [vmem:[%s16197_s7 + $0x40] sm:$0xff]  ;;  %v3563_v59 = vld [vmem:[%s16197_s7 + $0x38] sm:$0xff] }
 0x2a4   :  { %v3059_v19 = vmul.f32 %v3047_v2, %v3022_v39  ;;  %v3098_v41 = vpack.c.bf16 %v3092_v27, %v3089_v22  ;;  %v3094_v44 = vadd.f32 %v3079_v50, %v3058_v20  ;;  %v3561_v39 = vld [vmem:[%s16197_s7 + $0x28] sm:$0xff]  ;;  %v3560_v45 = vld [vmem:[%s16197_s7 + $0x20] sm:$0xff]  ;;  %v3559_v22 = vld [vmem:[%s16197_s7 + $0x18] sm:$0xff] }
 0x2a5   :  { %v3558_v27 = vld [vmem:[%s16197_s7 + $0x10] sm:$0xff] }
 0x2a6   :  { %3423 = vmatprep.mubr.bf16.mxu0 %v3098_v41  ;;  %v3095_v26 = vadd.f32 %v3083_v1, %v3059_v19  ;;  %v3100_v61 = vpack.c.bf16 %v3094_v44, %v3094_v44  ;;  %v3557_v19 = vld [vmem:[%s16197_s7 + $0x8] sm:$0xff]  ;;  %v3556_v41 = vld [vmem:[%s16197_s7] sm:$0xff] }
 0x2a7   :  { %3424 = vmatmul.mubr.bf16.vlgmr.msra.gmra.mxu0 %v3097_v43  ;;  %v3562_v43 = vld [vmem:[%s16197_s7 + $0x30] sm:$0xff] }
 0x2a8   :  { %v3101_v58 = vpack.c.bf16 %v3095_v26, %v3095_v26 }
 0x2aa   :  { %3433 = vmatprep.mubr.bf16.mxu0 %v3101_v58 }
 0x2af   :  { %3434 = vmatmul.mubr.bf16.gmra.mxu0 %v3100_v61 }
 0x2bc   :  { %v2991_v60 = vpop.f32.mrf.mxu1 }
 0x2bd   :  { %v2992_v0 = vadd.f32 %v11200_v63, %v2991_v60 }
 0x2be   :  { %v2993_v47 = vpop.f32.mrf.mxu1 }
 0x2bf   :  { %v3007_v2 = vadd.f32 %v2992_v0, %v13960_v11  ;;  %v3577_v47 = vld [vmem:[%s16197_s7 + $0xa8] sm:$0xff] }
 0x2c0   :  { %v2994_v49 = vpop.f32.mrf.mxu1 }
 0x2c1   :  { %v3017_v29 = vmax.f32 %v3007_v2, 0.0  ;;  %v2995_v35 = vadd.f32 %v11203_v4, %v2994_v49 }
 0x2c2   :  { %v2996_v50 = vpop.f32.mrf.mxu1 }
 0x2c3   :  { %v3010_v17 = vadd.f32 %v2995_v35, %v13963_v56  ;;  %v3054_v46 = vmul.f32 %v3051_v10, %v3017_v29 }
 0x2c4   :  { %v2999_v28 = vpop.f32.mrf.mxu1 }
 0x2c5   :  { %v3020_v38 = vmax.f32 %v3010_v17, 0.0  ;;  %v3000_v48 = vadd.f32 %v11206_v15, %v2999_v28  ;;  %v3090_v52 = vadd.f32 %v3087_v16, %v3054_v46  ;;  %v3574_v46 = vld [vmem:[%s16197_s7 + $0x90] sm:$0xff] }
 0x2c6   :  { %v3001_v34 = vpop.f32.mrf.mxu1 }
 0x2c7   :  { %v3057_v11 = vmul.f32 %v3051_v10, %v3020_v38  ;;  %v3013_v30 = vadd.f32 %v3000_v48, %v13966_v24  ;;  %v3570_v24 = vld [vmem:[%s16197_s7 + $0x70] sm:$0xff]  ;;  %v3573_v38 = vld [vmem:[%s16197_s7 + $0x88] sm:$0xff] }
 0x2c8   :  { %v3002_v1 = vpop.f32.mrf.mxu1 }
 0x2c9   :  { %v3093_v37 = vadd.f32 %v3087_v16, %v3057_v11  ;;  %v3023_v25 = vmax.f32 %v3013_v30, 0.0  ;;  %v3572_v1 = vld [vmem:[%s16197_s7 + $0x80] sm:$0xff] }
 0x2ca   :  { %v3003_v40 = vpop.f32.mrf.mxu1 }
 0x2cb   :  { %v3099_v31 = vpack.c.bf16 %v3093_v37, %v3090_v52  ;;  %v3060_v32 = vmul.f32 %v3051_v10, %v3023_v25  ;;  %v3576_v10 = vld [vmem:[%s16197_s7 + $0xa0] sm:$0xff] }
 0x2cd   :  { %3475 = vmatmul.mubr.bf16.vlgmr.msra.gmra.mxu1 %v3099_v31  ;;  %v3096_v56 = vadd.f32 %v3087_v16, %v3060_v32 }
 0x2ce   :  { %3484 = vmatprep.mubr.bf16.mxu1 %v12515_v3  ;;  %3590 = vmatpush1.msra.mxu1 %v3571_v33 }
 0x2cf   :  { %v3102_v51 = vpack.c.bf16 %v3096_v56, %v3096_v56  ;;  %3591 = vmatprep.subr.mxu1 %v12516_v55 }
 0x2d0   :  { %3592 = vmatpush1.msra.mxu1 %v3570_v24 }
 0x2d1   :  { %3593 = vmatprep.subr.mxu1 %v12516_v55 }
 0x2d2   :  { %3594 = vmatpush1.msra.mxu1 %v3569_v57 }
 0x2d3   :  { %3595 = vmatprep.subr.mxu1 %v12516_v55 }
 0x2d4   :  { %3596 = vmatpush1.msra.mxu1 %v3568_v53 }
 0x2d5   :  { %3485 = vmatmul.mubr.bf16.gmra.mxu1 %v3102_v51  ;;  %3597 = vmatprep.subr.mxu1 %v12516_v55 }
 0x2d6   :  { %3598 = vmatpush1.msra.mxu1 %v3567_v18 }
 0x2d7   :  { %3599 = vmatprep.subr.mxu1 %v12516_v55 }
 0x2d8   :  { %3600 = vmatpush1.msra.mxu1 %v3566_v21 }
 0x2d9   :  { %3601 = vmatprep.subr.mxu1 %v12516_v55 }
 0x2da   :  { %3602 = vmatpush1.msra.mxu1 %v3565_v54 }
 0x2db   :  { %3603 = vmatprep.subr.mxu1 %v12516_v55 }
 0x2dc   :  { %3604 = vmatpush1.msra.mxu1 %v3564_v23 }
 0x2dd   :  { %3605 = vmatprep.subr.mxu1 %v12516_v55 }
 0x2de   :  { %3606 = vmatpush1.msra.mxu1 %v3563_v59 }
 0x2df   :  { %3607 = vmatprep.subr.mxu1 %v12516_v55 }
 0x2e0   :  { %3608 = vmatpush1.msra.mxu1 %v3562_v43 }
 0x2e1   :  { %3609 = vmatprep.subr.mxu1 %v12516_v55 }
 0x2e2   :  { %3610 = vmatpush1.msra.mxu1 %v3561_v39 }
 0x2e3   :  { %3611 = vmatprep.subr.mxu1 %v12516_v55 }
 0x2e4   :  { %3612 = vmatpush1.msra.mxu1 %v3560_v45 }
 0x2e5   :  { %3613 = vmatprep.subr.mxu1 %v12516_v55 }
 0x2e6   :  { %3614 = vmatpush1.msra.mxu1 %v3559_v22 }
 0x2e7   :  { %3615 = vmatprep.subr.mxu1 %v12516_v55 }
 0x2e8   :  { %3616 = vmatpush1.msra.mxu1 %v3558_v27 }
 0x2e9   :  { %3617 = vmatprep.subr.mxu1 %v12516_v55 }
 0x2ea   :  { %3618 = vmatpush1.msra.mxu1 %v3557_v19 }
 0x2eb   :  { %3619 = vmatprep.subr.mxu1 %v12516_v55 }
 0x2ec   :  { %3620 = vmatpush1.msra.mxu1 %v3556_v41 }
 0x2ed   :  { %3639 = vmatprep.subr.mxu1 %v12516_v55 }
 0x2ee   :  { %3640 = vmatpush2.msra.mxu1 %v3578_v42 }
 0x2ef   :  { %3641 = vmatprep.subr.mxu1 %v12516_v55 }
 0x2f0   :  { %3642 = vmatpush2.msra.mxu1 %v3577_v47  ;;  %v3669_v47 = vld [vmem:[%s16196_s6] sm:$0xff] }
 0x2f1   :  { %3643 = vmatprep.subr.mxu1 %v12516_v55  ;;  %11352 = vmatprep.mubr.msk.f32.mxu0 %vm3671_vm7, %v3669_v47  ;;  %v11944_v47 = vld [vmem:[%s16200_s10 + $0x30] sm:$0xff]  }
 0x2f2   :  { %3644 = vmatpush2.msra.mxu1 %v3576_v10  ;;  %v11900_v10 = vld [vmem:[%s16198_s8 + $0x34] ss:$8 sps:$4 sm:$0xff]  }
 0x2f3   :  { %3645 = vmatprep.subr.mxu1 %v12516_v55 }
 0x2f4   :  { %3646 = vmatpush2.msra.mxu1 %v3575_v36  ;;  %v11898_v36 = vld [vmem:[%s16198_s8 + $0x30] ss:$8 sps:$4 sm:$0xff]  }
 0x2f5   :  { %3647 = vmatprep.subr.mxu1 %v12516_v55 }
 0x2f6   :  { %3648 = vmatpush2.msra.mxu1 %v3574_v46 }
 0x2f7   :  { %3649 = vmatprep.subr.mxu1 %v12516_v55 }
 0x2f8   :  { %3650 = vmatpush2.msra.mxu1 %v3573_v38 }
 0x2f9   :  { %3651 = vmatprep.subr.mxu1 %v12516_v55 }
 0x2fa   :  { %3652 = vmatpush2.msra.mxu1 %v3572_v1  ;;  %v11895_v1 = vld [vmem:[%s16198_s8 + $0xb0] ss:$8 sps:$4 sm:$0xff]  }
 0x367   :  { %v3425_v20 = vpop.f32.mrf.mxu0 }
 0x369   :  { %v3427_v26 = vpop.f32.mrf.mxu0 }
 0x36b   :  { %v3429_v58 = vpop.f32.mrf.mxu0 }
 0x36d   :  { %v3431_v44 = vpop.f32.mrf.mxu0 }
 0x36f   :  { %v3435_v61 = vpop.f32.mrf.mxu0 }
 0x371   :  { %v3437_v63 = vpop.f32.mrf.mxu0 }
 0x373   :  { %v3439_v60 = vpop.f32.mrf.mxu0 }
 0x375   :  { %v3440_v0 = vpop.f32.mrf.mxu0 }
 0x38d   :  { %v3476_v4 = vpop.f32.mrf.mxu1 }
 0x38e   :  { %v3477_v35 = vadd.f32 %v3476_v4, %v3425_v20  ;;  %v11889_v4 = vld [vmem:[%s16198_s8 + $0x50] ss:$8 sps:$4 sm:$0xff]  }
 0x38f   :  { %v3478_v2 = vpop.f32.mrf.mxu1 }
 0x390   :  { %v3479_v49 = vadd.f32 %v3478_v2, %v3427_v26  ;;  %v11891_v2 = vld [vmem:[%s16198_s8 + $0x54] ss:$8 sps:$4 sm:$0xff]  }
 0x391   :  { %v3480_v29 = vpop.f32.mrf.mxu1  ;;  %3962 = vmatprep.subr.bf16.mxu1 %v11891_v2  ;;  %v11946_v2 = vld [vmem:[%s16200_s10 + $0x20] sm:$0xff]  }
 0x392   :  { %v3481_v50 = vadd.f32 %v3480_v29, %v3429_v58  ;;  %3501 = vrot.lane.b32.xlu0 %v3479_v49, %s12517_s27  ;;  %v11892_v29 = vld [vmem:[%s16198_s8 + $0x40] ss:$8 sps:$4 sm:$0xff]  }
 0x393   :  { %v3482_v15 = vpop.f32.mrf.mxu1 }
 0x394   :  { %v11459_v17 = vpack.i.bf16 %v3481_v50, %v3477_v35  ;;  %v3483_v28 = vadd.f32 %v3482_v15, %v3431_v44  ;;  %v11912_v15 = vld [vmem:[%s16198_s8 + $0x14] ss:$8 sps:$4 sm:$0xff]  }
 0x395   :  { %v3486_v16 = vpop.f32.mrf.mxu1 }
 0x396   :  { %3505 = vrot.lane.b32.xlu1 %v3483_v28, %s12517_s27  ;;  %11460 = vrot.lane.b32.xlu0 %v11459_v17, %s12517_s27  ;;  %v3487_v34 = vadd.f32 %v3486_v16, %v3435_v61  ;;  %v11910_v17 = vld [vmem:[%s16198_s8 + $0x10] ss:$8 sps:$4 sm:$0xff]  }
 0x397   :  { %v3488_v48 = vpop.f32.mrf.mxu1 }
 0x398   :  { %v3489_v11 = vadd.f32 %v3488_v48, %v3437_v63 }
 0x399   :  { %v3490_v30 = vpop.f32.mrf.mxu1 }
 0x39a   :  { %3507 = vrot.lane.b32.xlu1 %v3487_v34, %s12517_s27  ;;  %3509 = vrot.lane.b32.xlu0 %v3489_v11, %s12517_s27  ;;  %v3670_v30 = vld [vmem:[%s16196_s6 + $0x8] sm:$0xf] }
 0x39b   :  { %v3491_v52 = vpop.f32.mrf.mxu1 }
 0x39c   :  { %v11903_v52 = vld [vmem:[%s16198_s8 + $0xa4] ss:$8 sps:$4 sm:$0xff]  }
 0x404   :  { %v3502_v37 = vpop.permute.xlu0 %3501 }
 0x405   :  { %v3522_v25 = vmax.f32 %v3479_v49, %v3502_v37  ;;  %v11894_v49 = vld [vmem:[%s16198_s8 + $0x44] ss:$8 sps:$4 sm:$0xff]  }
 0x407   :  { %v3537_v33 = vrot.slane %v3522_v25, 1 }
 0x408   :  { %v3506_v40 = vpop.permute.xlu1 %3505  ;;  %v11461_v31 = vpop.permute.xlu0 %11460 }
 0x409   :  { %v3524_v32 = vmax.f32 %v3483_v28, %v3506_v40  ;;  %v11463_v56 = vunpack.i.h.bf16 %v11461_v31  ;;  %v11462_v51 = vunpack.i.l.bf16 %v11461_v31  ;;  %v11915_v31 = vld [vmem:[%s16198_s8 + $0x84] ss:$8 sps:$4 sm:$0xff]  }
 0x40b   :  { %v3538_v24 = vrot.slane %v3524_v32, 1  ;;  %v3513_v57 = vsel %vm3511_vm5, %v11463_v56, %v3506_v40  ;;  %v3512_v53 = vsel %vm3511_vm5, %v11462_v51, %v3502_v37  ;;  %v11901_v37 = vld [vmem:[%s16198_s8 + $0xa0] ss:$8 sps:$4 sm:$0xff]   ;;  %v11907_v40 = vld [vmem:[%s16198_s8 + $0x90] ss:$8 sps:$4 sm:$0xff]  }
 0x40c   :  { %v3523_v18 = vmax.f32 %v3481_v50, %v3513_v57  ;;  %v3521_v21 = vmax.f32 %v3477_v35, %v3512_v53  ;;  %v3508_v54 = vpop.permute.xlu1 %3507  ;;  %v3510_v23 = vpop.permute.xlu0 %3509  ;;  %v11906_v35 = vld [vmem:[%s16198_s8 + $0x24] ss:$8 sps:$4 sm:$0xff]   ;;  %v11904_v50 = vld [vmem:[%s16198_s8 + $0x20] ss:$8 sps:$4 sm:$0xff]  }
 0x40d   :  { %v3539_v59 = vsel %vm425_vm3, %v3537_v33, %v3538_v24  ;;  %v3514_v43 = vsel %vm3511_vm5, %v3508_v54, %v3510_v23  ;;  %v3526_v39 = vmax.f32 %v3489_v11, %v3510_v23  ;;  %v11897_v11 = vld [vmem:[%s16198_s8 + $0xb4] ss:$8 sps:$4 sm:$0xff]   ;;  %v11916_v56 = vld [vmem:[%s16198_s8] ss:$8 sps:$4 sm:$0xff]   ;;  %v11918_v51 = vld [vmem:[%s16198_s8 + $0x4] ss:$8 sps:$4 sm:$0xff]  }
 0x40e   :  { %v3535_v45 = vrot.slane %v3523_v18, 1  ;;  %v3534_v22 = vrot.slane %v3521_v21, 1  ;;  %v3525_v27 = vmax.f32 %v3487_v34, %v3514_v43  ;;  %v3551_v19 = vmax.f32 %v3522_v25, %v3539_v59  ;;  %v11909_v25 = vld [vmem:[%s16198_s8 + $0x94] ss:$8 sps:$4 sm:$0xff]   ;;  %v11919_v33 = vld [vmem:[%s16198_s8 + $0x70] ss:$8 sps:$4 sm:$0xff]  }
 0x40f   :  { %v3542_v41 = vrot.slane %v3526_v39, 1  ;;  %v11924_v57 = vld [vmem:[%s16198_s8 + $0x64] ss:$8 sps:$4 sm:$0xff]   ;;  %v11922_v53 = vld [vmem:[%s16198_s8 + $0x60] ss:$8 sps:$4 sm:$0xff]  }
 0x410   :  { %v3536_v20 = vsel %vm425_vm3, %v3534_v22, %v3535_v45  ;;  %v3540_v26 = vrot.slane %v3525_v27, 1  ;;  %10324 = vmatprep.mubr.msk.f32.mxu1 %vm3579_vm6, %v3551_v19  ;;  %v11928_v19 = vld [vmem:[%s16198_s8 + $0x100] ss:$8 sps:$4 sm:$0xff]  }
 0x411   :  { %v3550_v58 = vmax.f32 %v3521_v21, %v3536_v20  ;;  %v3543_v44 = vsel %vm425_vm3, %v3538_v24, %v3542_v41  ;;  %v3555_v0 = vmax.f32 %v3526_v39, %v3542_v41  ;;  %v11921_v24 = vld [vmem:[%s16198_s8 + $0x74] ss:$8 sps:$4 sm:$0xff]   ;;  %v11931_v20 = vld [vmem:[%s16198_s8 + $0xf0] ss:$8 sps:$4 sm:$0xff]  }
 0x412   :  { %v3553_v61 = vmax.f32 %v3524_v32, %v3543_v44  ;;  %v3541_v63 = vsel %vm425_vm3, %v3535_v45, %v3540_v26  ;;  %v3554_v42 = vmax.f32 %v3525_v27, %v3540_v26  ;;  %v11913_v32 = vld [vmem:[%s16198_s8 + $0x80] ss:$8 sps:$4 sm:$0xff]   ;;  %v11925_v45 = vld [vmem:[%s16198_s8 + $0x110] ss:$8 sps:$4 sm:$0xff]   ;;  %v11930_v27 = vld [vmem:[%s16198_s8 + $0x104] ss:$8 sps:$4 sm:$0xff]  }
 0x413   :  { %3654 = vmatmul.mubr.f32.vlgmr.msra.gmra.mxu1 %v3550_v58  ;;  %v3552_v60 = vmax.f32 %v3523_v18, %v3541_v63  ;;  %v11927_v18 = vld [vmem:[%s16198_s8 + $0x114] ss:$8 sps:$4 sm:$0xff]   ;;  %v11936_v26 = vld [vmem:[%s16198_s8 + $0xe4] ss:$8 sps:$4 sm:$0xff]   ;;  %v11934_v58 = vld [vmem:[%s16198_s8 + $0xe0] ss:$8 sps:$4 sm:$0xff]  }
 0x414   :  { %10325 = vmatprep.mubr.msk.f32.mxu1 %vm3579_vm6, %v3553_v61  ;;  %3963 = vmatpush1.bf16.msra.mxu1 %v11889_v4  ;;  %v11933_v41 = vld [vmem:[%s16198_s8 + $0xf4] ss:$8 sps:$4 sm:$0xff]   ;;  %v11937_v61 = vld [vmem:[%s16198_s8 + $0xd0] ss:$8 sps:$4 sm:$0xff]   ;;  %v11942_v63 = vld [vmem:[%s16198_s8 + $0xc4] ss:$8 sps:$4 sm:$0xff]  }
 0x415   :  { %3964 = vmatprep.subr.bf16.mxu1 %v11894_v49  ;;  %v11939_v44 = vld [vmem:[%s16198_s8 + $0xd4] ss:$8 sps:$4 sm:$0xff]   ;;  %v11945_v4 = vld [vmem:[%s16200_s10 + $0x28] sm:$0xff]  }
 0x416   :  { %v11947_v49 = vld [vmem:[%s16200_s10 + $0x18] sm:$0xff]  }
 0x417   :  { %3659 = vmatmul.mubr.f32.gmra.mxu1 %v3552_v60  ;;  %v11940_v60 = vld [vmem:[%s16198_s8 + $0xc0] ss:$8 sps:$4 sm:$0xff]  }
 0x418   :  { %10326 = vmatprep.mubr.msk.f32.mxu1 %vm3579_vm6, %v3555_v0  ;;  %3965 = vmatpush1.bf16.msra.mxu1 %v11892_v29  ;;  %v11948_v29 = vld [vmem:[%s16200_s10 + $0x10] sm:$0xff]  }
 0x419   :  { %3966 = vmatprep.subr.bf16.mxu1 %v11900_v10  ;;  %v11949_v10 = vld [vmem:[%s16200_s10 + $0x8] sm:$0xff]  }
 0x41b   :  { %3664 = vmatmul.mubr.f32.gmra.mxu1 %v3554_v42  ;;  %v11943_v42 = vld [vmem:[%s16200_s10 + $0x38] sm:$0xff]  }
 0x41c   :  { %3990 = vmatprep.mubr.bf16.mxu1 %v12515_v3  ;;  %3967 = vmatpush1.bf16.msra.mxu1 %v11898_v36  ;;  %v11950_v36 = vld [vmem:[%s16200_s10] sm:$0xff]  }
 0x41d   :  { %3968 = vmatprep.subr.bf16.mxu1 %v11906_v35  ;;  %v11951_v35 = vld [vmem:[%s16200_s10 + $0x48] sm:$0xff]  }
 0x420   :  { %3969 = vmatpush1.bf16.msra.mxu1 %v11904_v50  ;;  %v11952_v50 = vld [vmem:[%s16200_s10 + $0x40] sm:$0xff]  }
 0x421   :  { %3970 = vmatprep.subr.bf16.mxu1 %v11912_v15 }
 0x424   :  { %3971 = vmatpush1.bf16.msra.mxu1 %v11910_v17 }
 0x425   :  { %3972 = vmatprep.subr.bf16.mxu1 %v11918_v51 }
 0x428   :  { %3973 = vmatpush1.bf16.msra.mxu1 %v11916_v56 }
 0x429   :  { %4261 = vmatprep.subr.bf16.mxu1 %v12515_v3 }
 0x4d3   :  { %v3655_v28 = vpop.f32.mrf.mxu1 }
 0x4d5   :  { %v3657_v46 = vpop.f32.mrf.mxu1 }
 0x4d7   :  { %v3660_v16 = vpop.f32.mrf.mxu1 }
 0x4d9   :  { %v3662_v38 = vpop.f32.mrf.mxu1 }
 0x4db   :  { %v3665_v48 = vpop.f32.mrf.mxu1 }
 0x4dc   :  { %11346 = vmatprep.subr.msk.mxu0 %vm425_vm3, %v3665_v48 }
 0x4dd   :  { %v3667_v34 = vpop.f32.mrf.mxu1  ;;  %11347 = vmatpush3.msk.msra.mxu0 %vm425_vm3, %v3665_v48  ;;  %v4126_v48 = vld [vmem:[%s16199_s9] sm:$0xf] }
 0x4de   :  { %11348 = vmatprep.subr.mxu0 %v3660_v16  ;;  %v4161_v51 = vrot.slane %v4126_v48, %v12951_v13 }
 0x4df   :  { %11349 = vmatpush3.msra.mxu0 %v3660_v16 }
 0x4e0   :  { %11350 = vmatprep.subr.mxu0 %v3655_v28 }
 0x4e1   :  { %11351 = vmatpush3.msra.mxu0 %v3655_v28 }
 0x4e2   :  { %11353 = vmatmul.mubr.msk.f32.vlgmr.msra.gmra.mxu0 %vm3671_vm7, %v3670_v30  ;;  %3857 = vmatprep.subr.bf16.mxu0 %v11897_v11 }
 0x4e3   :  { %3858 = vmatpush1.bf16.msra.mxu0 %v11895_v1  ;;  %3885 = vmatprep.mubr.bf16.mxu0 %v12515_v3 }
 0x4e4   :  { %3859 = vmatprep.subr.bf16.mxu0 %v11903_v52  ;;  %v4139_v52 = vrot.slane %v4126_v48, %v12944_v8 }
 0x4e7   :  { %3860 = vmatpush1.bf16.msra.mxu0 %v11901_v37 }
 0x4e8   :  { %3861 = vmatprep.subr.bf16.mxu0 %v11909_v25  ;;  %v4135_v25 = vrot.slane %v4126_v48, %v12935_v5 }
 0x4eb   :  { %3862 = vmatpush1.bf16.msra.mxu0 %v11907_v40 }
 0x4ec   :  { %3863 = vmatprep.subr.bf16.mxu0 %v11915_v31 }
 0x4ef   :  { %3864 = vmatpush1.bf16.msra.mxu0 %v11913_v32 }
 0x4f0   :  { %3865 = vmatprep.subr.bf16.mxu0 %v11921_v24 }
 0x4f3   :  { %3866 = vmatpush1.bf16.msra.mxu0 %v11919_v33 }
 0x4f4   :  { %3867 = vmatprep.subr.bf16.mxu0 %v11924_v57 }
 0x4f7   :  { %3868 = vmatpush1.bf16.msra.mxu0 %v11922_v53  ;;  %v4149_v53 = vrot.slane %v4139_v52, %v12935_v5 }
 0x4f8   :  { %4083 = vmatprep.subr.bf16.mxu0 %v11927_v18 }
 0x5a2   :  { %v11354_v21 = vpop.f32.mrf.mxu0 }
 0x5a4   :  { %v3747_v54 = vpop.f32.mrf.mxu0 }
 0x5a5   :  { %v3756_v23 = vpack.c.bf16 %v11354_v21, %v3747_v54  ;;  %v4145_v54 = vrot.slane %v4135_v25, %v12935_v5 }
 0x5a7   :  { %v3785_v59 = vshll.u32 %v3756_v23, 16  ;;  %10367 = vmatmul.mubr.msk.bf16.vlgmr.msra.gmra.mxu1 %vm3849_vm8, %v3756_v23  ;;  %v3783_v43 = vshrl.u32 %v3756_v23, 16  ;;  %v4015_v0 = vrot.slane %v3756_v23, 1  ;;  %v4157_v23 = vrot.slane %v4126_v48, %v12948_v12 }
 0x5a8   :  { %4262 = vmatpush1.bf16.msra.mxu1 %v11943_v42  ;;  %v4329_v42 = vld [vmem:[%s16202_s12 + $0x40] sm:$0xff] }
 0x5a9   :  { %v3787_v39 = vrot.slane %v3785_v59, 1  ;;  %4263 = vmatprep.subr.bf16.mxu1 %v12515_v3 }
 0x5ab   :  { %v3788_v22 = vor.u32 %v3787_v39, %v3783_v43 }
 0x5ac   :  { %4264 = vmatpush1.bf16.msra.mxu1 %v11944_v47  ;;  %v4328_v47 = vld [vmem:[%s16202_s12 + $0x38] sm:$0xff] }
 0x5ad   :  { %10354 = vmatmul.mubr.msk.bf16.vlgmr.msra.gmra.mxu0 %vm3849_vm8, %v3788_v22  ;;  %4265 = vmatprep.subr.bf16.mxu1 %v12515_v3  ;;  %v4171_v22 = vrot.slane %v4161_v51, %v12948_v12  ;;  %v11962_v51 = vld [vmem:[%s16203_s13 + $0x4] ss:$8 sps:$4 sm:$0xff]  }
 0x5ae   :  { %4084 = vmatpush1.bf16.msra.mxu0 %v11925_v45  ;;  %4111 = vmatprep.mubr.bf16.mxu0 %v12515_v3 }
 0x5af   :  { %4085 = vmatprep.subr.bf16.mxu0 %v11930_v27 }
 0x5b0   :  { %4266 = vmatpush1.bf16.msra.mxu1 %v11945_v4  ;;  %v4327_v4 = vld [vmem:[%s16202_s12 + $0x30] sm:$0xff] }
 0x5b1   :  { %4267 = vmatprep.subr.bf16.mxu1 %v12515_v3 }
 0x5b2   :  { %4086 = vmatpush1.bf16.msra.mxu0 %v11928_v19 }
 0x5b3   :  { %4087 = vmatprep.subr.bf16.mxu0 %v11933_v41 }
 0x5b4   :  { %4268 = vmatpush1.bf16.msra.mxu1 %v11946_v2  ;;  %v4326_v2 = vld [vmem:[%s16202_s12 + $0x28] sm:$0xff] }
 0x5b5   :  { %4269 = vmatprep.subr.bf16.mxu1 %v12515_v3 }
 0x5b6   :  { %4088 = vmatpush1.bf16.msra.mxu0 %v11931_v20  ;;  %v4167_v20 = vrot.slane %v4157_v23, %v12948_v12 }
 0x5b7   :  { %4089 = vmatprep.subr.bf16.mxu0 %v11936_v26 }
 0x5b8   :  { %4270 = vmatpush1.bf16.msra.mxu1 %v11947_v49  ;;  %v4325_v49 = vld [vmem:[%s16202_s12 + $0x20] sm:$0xff] }
 0x5b9   :  { %4271 = vmatprep.subr.bf16.mxu1 %v12515_v3 }
 0x5ba   :  { %4090 = vmatpush1.bf16.msra.mxu0 %v11934_v58 }
 0x5bb   :  { %4091 = vmatprep.subr.bf16.mxu0 %v11939_v44 }
 0x5bc   :  { %4272 = vmatpush1.bf16.msra.mxu1 %v11948_v29  ;;  %v4324_v29 = vld [vmem:[%s16202_s12 + $0x18] sm:$0xff] }
 0x5bd   :  { %4273 = vmatprep.subr.bf16.mxu1 %v12515_v3 }
 0x5be   :  { %4092 = vmatpush1.bf16.msra.mxu0 %v11937_v61 }
 0x5bf   :  { %4093 = vmatprep.subr.bf16.mxu0 %v11942_v63 }
 0x5c0   :  { %4274 = vmatpush1.bf16.msra.mxu1 %v11949_v10  ;;  %v4323_v10 = vld [vmem:[%s16202_s12 + $0x10] sm:$0xff] }
 0x5c1   :  { %4275 = vmatprep.subr.bf16.mxu1 %v12515_v3 }
 0x5c2   :  { %4094 = vmatpush1.bf16.msra.mxu0 %v11940_v60 }
 0x5c3   :  { %11355 = vmatprep.subr.mxu0 %v4329_v42 }
 0x5c4   :  { %4276 = vmatpush1.bf16.msra.mxu1 %v11950_v36  ;;  %v4322_v36 = vld [vmem:[%s16202_s12 + $0x8] sm:$0xff] }
 0x5c5   :  { %10392 = vmatmul.mubr.msk.bf16.vlgmr.msra.gmra.mxu0 %vm3849_vm8, %v4015_v0  ;;  %4289 = vmatprep.subr.bf16.mxu1 %v12515_v3 }
 0x5c6   :  { %11356 = vmatpush3.msra.mxu0 %v4329_v42  ;;  %v11971_v42 = vld [vmem:[%s16203_s13 + $0x60] ss:$8 sps:$4 sm:$0xff]  }
 0x5c7   :  { %11357 = vmatprep.subr.mxu0 %v4328_v47 }
 0x5c8   :  { %4290 = vmatpush2.bf16.msra.mxu1 %v11951_v35  ;;  %11358 = vmatpush3.msra.mxu0 %v4328_v47  ;;  %v11976_v47 = vld [vmem:[%s16203_s13 + $0x54] ss:$8 sps:$4 sm:$0xff]  }
 0x5c9   :  { %4291 = vmatprep.subr.bf16.mxu1 %v12515_v3  ;;  %11359 = vmatprep.subr.mxu0 %v4327_v4 }
 0x5ca   :  { %11360 = vmatpush3.msra.mxu0 %v4327_v4  ;;  %v11974_v4 = vld [vmem:[%s16203_s13 + $0x50] ss:$8 sps:$4 sm:$0xff]  }
 0x5cb   :  { %11361 = vmatprep.subr.mxu0 %v4326_v2 }
 0x5cc   :  { %4292 = vmatpush2.bf16.msra.mxu1 %v11952_v50  ;;  %11362 = vmatpush3.msra.mxu0 %v4326_v2  ;;  %v4321_v50 = vld [vmem:[%s16202_s12] sm:$0xff] }
 0x5cd   :  { %11363 = vmatprep.subr.mxu0 %v4325_v49 }
 0x5ce   :  { %11364 = vmatpush3.msra.mxu0 %v4325_v49  ;;  %v11977_v49 = vld [vmem:[%s16191_s1 + $0x64] ss:$16 sps:$4 sm:$0x3f]  }
 0x5cf   :  { %11365 = vmatprep.subr.mxu0 %v4324_v29 }
 0x5d0   :  { %11366 = vmatpush3.msra.mxu0 %v4324_v29  ;;  %v11979_v29 = vld [vmem:[%s16191_s1 + $0x60] ss:$16 sps:$4 sm:$0x3f]  }
 0x5d1   :  { %11367 = vmatprep.subr.mxu0 %v4323_v10 }
 0x5d2   :  { %11368 = vmatpush3.msra.mxu0 %v4323_v10  ;;  %v11982_v10 = vld [vmem:[%s16191_s1 + $0x44] ss:$16 sps:$4 sm:$0xff]  }
 0x5d3   :  { %11369 = vmatprep.subr.mxu0 %v4322_v36 }
 0x5d4   :  { %11370 = vmatpush3.msra.mxu0 %v4322_v36  ;;  %v10443_v36 = vld [vmem:[%s16209_s24 + $0x20] sm:$0xff] }
 0x5d5   :  { %11371 = vmatprep.subr.mxu0 %v4321_v50 }
 0x5d6   :  { %11372 = vmatpush3.msra.mxu0 %v4321_v50  ;;  %v10444_v50 = vld [vmem:[%s16209_s24 + $0x28] sm:$0xff] }
 0x5d7   :  { %11376 = vmatprep.subr.mxu0 %v12516_v55 }
 0x667   :  { %v3992_v28 = vpop.f32.mrf.mxu1 }
 0x669   :  { %v3994_v16 = vpop.f32.mrf.mxu1 }
 0x66b   :  { %v3996_v34 = vpop.f32.mrf.mxu1 }
 0x66d   :  { %v3887_v15 = vpop.f32.mrf.mxu0  ;;  %v3998_v56 = vpop.f32.mrf.mxu1 }
 0x66e   :  { %v3993_v11 = vadd.f32 %v3992_v28, %v3887_v15 }
 0x66f   :  { %v3889_v17 = vpop.f32.mrf.mxu0 }
 0x670   :  { %v3995_v1 = vadd.f32 %v3994_v16, %v3889_v17 }
 0x671   :  { %v3891_v46 = vpop.f32.mrf.mxu0 }
 0x672   :  { %v3997_v31 = vadd.f32 %v3996_v34, %v3891_v46 }
 0x673   :  { %v3893_v38 = vpop.f32.mrf.mxu0 }
 0x674   :  { %v3999_v24 = vadd.f32 %v3998_v56, %v3893_v38  ;;  %v11955_v56 = vld [vmem:[%s16203_s13 + $0x10] ss:$8 sps:$4 sm:$0xff]  }
 0x685   :  { %v4113_v30 = vpop.f32.mrf.mxu0 }
 0x686   :  { %v4122_v37 = vadd.f32 %v4113_v30, %v3993_v11 }
 0x687   :  { %v4115_v40 = vpop.f32.mrf.mxu0 }
 0x688   :  { %v4123_v32 = vadd.f32 %v4115_v40, %v3995_v1  ;;  %v4127_v21 = vmax.f32 %v4122_v37, 0.0  ;;  %v4496_v37 = vld [vmem:[%s16203_s13 + $0x20] sm:$0xff] }
 0x689   :  { %v4117_v33 = vpop.f32.mrf.mxu0  ;;  %v10426_v25 = vcombine.high %v4496_v37, %v4496_v37  ;;  %v10425_v40 = vcombine.low %v4496_v37, %v4496_v37  ;;  %v4823_v37 = vld [vmem:[%s16205_s15 + $0x28] sm:$0xff] }
 0x68a   :  { %v4128_v57 = vmax.f32 %v4123_v32, 0.0  ;;  %v4124_v18 = vadd.f32 %v4117_v33, %v3997_v31  ;;  %v4150_v41 = vmul.f32 %v4145_v54, %v4127_v21  ;;  %v11957_v31 = vld [vmem:[%s16203_s13 + $0x14] ss:$8 sps:$4 sm:$0xff]   ;;  %v11960_v33 = vld [vmem:[%s16203_s13] ss:$8 sps:$4 sm:$0xff]  }
 0x68b   :  { %v4119_v59 = vpop.f32.mrf.mxu0  ;;  %10427 = vmatprep.subr.msk.bf16.mxu1 %vm4539_vm11, %v10426_v25  ;;  %v4615_v32 = vsel %vm4539_vm11, %v10425_v40, 0  ;;  %v4412_v21 = vld [vmem:[%s16201_s11] sm:$0x1f] }
 0x68c   :  { %v4129_v43 = vmax.f32 %v4124_v18, 0.0  ;;  %v4125_v39 = vadd.f32 %v4119_v59, %v3999_v24  ;;  %v4151_v45 = vmul.f32 %v4149_v53, %v4128_v57  ;;  %v4172_v63 = vadd.f32 %v4167_v20, %v4150_v41  ;;  %v10412_v24 = vld [vmem:[%s16203_s13 + $0x48] sm:$0xff]  ;;  %v11963_v59 = vld [vmem:[%s16203_s13 + $0x38] ss:$8 sps:$4 sm:$0xff]  }
 0x68d   :  { %v10417_v57 = vcombine.low %v10412_v24, %v10412_v24  ;;  %v10418_v18 = vcombine.high %v10412_v24, %v10412_v24  ;;  %v4822_v25 = vld [vmem:[%s16205_s15 + $0x20] sm:$0xff] }
 0x68e   :  { %v4152_v27 = vmul.f32 %v4145_v54, %v4129_v43  ;;  %v4130_v19 = vmax.f32 %v4125_v39, 0.0  ;;  %v4173_v44 = vadd.f32 %v4171_v22, %v4151_v45  ;;  %v11965_v43 = vld [vmem:[%s16203_s13 + $0x3c] ss:$8 sps:$4 sm:$0xff]   ;;  %v11968_v39 = vld [vmem:[%s16203_s13 + $0x2c] ss:$8 sps:$4 sm:$0xff]  }
 0x68f   :  { %v4541_v23 = vsel %vm4539_vm11, %v10417_v57, 0  ;;  %v10433_v45 = vld [vmem:[%s16203_s13 + $0x70] sm:$0xff] }
 0x690   :  { %v4153_v26 = vmul.f32 %v4149_v53, %v4130_v19  ;;  %v4174_v58 = vadd.f32 %v4167_v20, %v4152_v27  ;;  %v10439_v27 = vcombine.high %v10433_v45, %v10433_v45  ;;  %v11989_v24 = vld [vmem:[%s16191_s1 + $0xa4] ss:$16 sps:$4 sm:$0x3f]  }
 0x692   :  { %v4175_v61 = vadd.f32 %v4171_v22, %v4153_v26  ;;  %v4176_v0 = vpack.c.bf16 %v4174_v58, %v4172_v63  ;;  %v11966_v22 = vld [vmem:[%s16203_s13 + $0x28] ss:$8 sps:$4 sm:$0xff]   ;;  %v10438_v58 = vcombine.low %v10433_v45, %v10433_v45 }
 0x694   :  { %v4177_v60 = vpack.c.bf16 %v4175_v61, %v4173_v44 }
 0x696   :  { %10403 = vmatprep.mubr.msk.bf16.mxu1 %vm1430_vm4, %v4177_v60  ;;  %v4698_v60 = vsel %vm4539_vm11, %v10438_v58, 0  ;;  %v4746_v58 = vld [vmem:[%s16204_s14] sm:$0xf] }
 0x697   :  { %4294 = vmatmul.mubr.bf16.vlgmr.msra.gmra.mxu1 %v4176_v0  ;;  %v11973_v0 = vld [vmem:[%s16203_s13 + $0x64] ss:$8 sps:$4 sm:$0xff]  }
 0x698   :  { %4652 = vmatprep.mubr.bf16.mxu1 %v12515_v3  ;;  %4631 = vmatpush1.bf16.msra.mxu1 %v4615_v32  ;;  %v11988_v32 = vld [vmem:[%s16191_s1 + $0x4] ss:$16 sps:$4 sm:$0xff]  }
 0x699   :  { %4632 = vmatprep.subr.bf16.mxu1 %v11957_v31 }
 0x69c   :  { %4633 = vmatpush1.bf16.msra.mxu1 %v11955_v56 }
 0x69d   :  { %4634 = vmatprep.subr.bf16.mxu1 %v11962_v51 }
 0x6a0   :  { %4635 = vmatpush1.bf16.msra.mxu1 %v11960_v33  ;;  %v11986_v33 = vld [vmem:[%s16191_s1] ss:$16 sps:$4 sm:$0xff]  }
 0x6a1   :  { %11383 = vmatprep.subr.mxu1 %v12516_v55 }
 0x757   :  { %v4295_v35 = vpop.f32.mrf.mxu1 }
 0x758   :  { %4304 = vrot.lane.b32.xlu1 %v4295_v35, %s12517_s27 }
 0x759   :  { %v4297_v15 = vpop.f32.mrf.mxu1 }
 0x75a   :  { %v10445_v15 = vld [vmem:[%s16209_s24 + $0x30] sm:$0xff] }
 0x75b   :  { %v4298_v17 = vpop.f32.mrf.mxu1 }
 0x75c   :  { %4306 = vrot.lane.b32.xlu0 %v4298_v17, %s12517_s27 }
 0x75d   :  { %v4300_v28 = vpop.f32.mrf.mxu1 }
 0x75e   :  { %v11980_v28 = vld [vmem:[%s16191_s1 + $0x40] ss:$16 sps:$4 sm:$0xff]  }
 0x7ca   :  { %v4305_v46 = vpop.permute.xlu1 %4304 }
 0x7cb   :  { %v4310_v16 = vmax.f32 %v4295_v35, %v4305_v46  ;;  %v4994_v35 = vsel %vm137_vm0, %v11979_v29, 0  ;;  %v14414_v46 = vpack.c.bf16 %v10444_v50, %v10443_v36  ;;  %v4821_v29 = vld [vmem:[%s16205_s15 + $0x18] sm:$0xff] }
 0x7cd   :  { %v4314_v34 = vrot.slane %v4310_v16, 1 }
 0x7ce   :  { %v4307_v38 = vpop.permute.xlu0 %4306 }
 0x7cf   :  { %v4311_v48 = vmax.f32 %v4298_v17, %v4307_v38  ;;  %v10446_v17 = vld [vmem:[%s16209_s24 + $0x38] sm:$0xf]  ;;  %v11983_v38 = vld [vmem:[%s16191_s1 + $0x24] ss:$16 sps:$4 sm:$0x3f]  }
 0x7d1   :  { %v4315_v11 = vrot.slane %v4311_v48, 1 }
 0x7d3   :  { %v4316_v30 = vsel %vm425_vm3, %v4314_v34, %v4315_v11  ;;  %v4320_v52 = vmax.f32 %v4311_v48, %v4315_v11  ;;  %v4937_v48 = vshrl.u32 %v14414_v46, 16  ;;  %v4939_v34 = vshll.u32 %v14414_v46, 16 }
 0x7d4   :  { %v4319_v1 = vmax.f32 %v4310_v16, %v4316_v30  ;;  %v14416_v16 = vpack.c.bf16 %v10446_v17, %v10445_v15  ;;  %v11985_v30 = vld [vmem:[%s16191_s1 + $0x20] ss:$16 sps:$4 sm:$0x3f]  }
 0x7d5   :  { %v5152_v31 = vsel %vm137_vm0, %v11985_v30, 0 }
 0x7d6   :  { %11373 = vmatprep.mubr.msk.f32.mxu0 %vm4330_vm9, %v4319_v1  ;;  %v4944_v11 = vshll.u32 %v14416_v16, 16  ;;  %v4941_v1 = vrot.slane %v4939_v34, 1  ;;  %v4948_v51 = vshrl.u32 %v14416_v16, 16 }
 0x7d7   :  { %11374 = vmatmul.mubr.msk.f32.vlgmr.msra.gmra.mxu0 %vm4330_vm9, %v4320_v52 }
 0x7d8   :  { %11380 = vmatprep.mubr.msk.f32.mxu0 %vm12518_vm10, %v12516_v55  ;;  %v4946_v52 = vrot.slane %v4944_v11, 1  ;;  %v4942_v40 = vor.u32 %v4941_v1, %v4937_v48 }
 0x7da   :  { %v14440_v56 = vsel %vm78_vm1, %v4942_v40, %v4946_v52  ;;  %v14453_v57 = vor.u32 %v4948_v51, %v4946_v52  ;;  %v11995_v40 = vld [vmem:[%s16191_s1 + $0x6c] ss:$16 sps:$4 sm:$0x3f]  }
 0x897   :  { %v11375_v53 = vpop.f32.mrf.mxu0 }
 0x898   :  { %11377 = vmatpush3.msk.msra.mxu0 %vm4417_vm12, %v11375_v53  ;;  %v11991_v53 = vld [vmem:[%s16191_s1 + $0xa0] ss:$16 sps:$4 sm:$0x3f]  }
 0x899   :  { %v4403_v54 = vpop.f32.mrf.mxu0  ;;  %11378 = vmatprep.subr.mxu0 %v12516_v55 }
 0x89a   :  { %11379 = vmatpush3.msra.mxu0 %v4403_v54  ;;  %v11992_v54 = vld [vmem:[%s16191_s1 + $0x80] ss:$16 sps:$4 sm:$0xff]  }
 0x89b   :  { %11381 = vmatmul.mubr.msk.f32.vlgmr.msra.gmra.mxu0 %vm4413_vm13, %v4412_v21  ;;  %10419 = vmatprep.subr.msk.bf16.mxu0 %vm4539_vm11, %v10418_v18  ;;  %v5325_v18 = vsel %vm137_vm0, %v11991_v53, 0  ;;  %v11994_v21 = vld [vmem:[%s16191_s1 + $0x84] ss:$16 sps:$4 sm:$0xff]  }
 0x89c   :  { %4557 = vmatpush1.bf16.msra.mxu0 %v4541_v23  ;;  %4578 = vmatprep.mubr.bf16.mxu0 %v12515_v3  ;;  %v5279_v23 = vrot.slane %v14414_v46, 1 }
 0x89d   :  { %4558 = vmatprep.subr.bf16.mxu0 %v11965_v43 }
 0x8a0   :  { %4559 = vmatpush1.bf16.msra.mxu0 %v11963_v59  ;;  %v14477_v59 = vrot.slane %v14416_v16, 1 }
 0x8a1   :  { %4560 = vmatprep.subr.bf16.mxu0 %v11968_v39 }
 0x8a2   :  { %v14481_v43 = vsel %vm425_vm3, %v5279_v23, %v14477_v59  ;;  %v12018_v23 = vld [vmem:[%s16193_s3 + $0x304] ss:$12 sps:$4 sm:$0xff]  }
 0x8a4   :  { %4561 = vmatpush1.bf16.msra.mxu0 %v11966_v22 }
 0x8a5   :  { %10440 = vmatprep.subr.msk.bf16.mxu0 %vm4539_vm11, %v10439_v27 }
 0x95b   :  { %v4487_v19 = vpop.f32.mrf.mxu0 }
 0x95c   :  { %v4491_v41 = vpack.c.bf16 %v4487_v19, %v4487_v19 }
 0x95d   :  { %v11382_v20 = vpop.f32.mrf.mxu0 }
 0x95e   :  { %v4506_v26 = vshll.u32 %v4491_v41, 16  ;;  %10428 = vmatmul.mubr.msk.bf16.vlgmr.msra.gmra.mxu1 %vm4535_vm14, %v4491_v41  ;;  %v4504_v44 = vshrl.u32 %v4491_v41, 16  ;;  %v4668_v2 = vrot.slane %v4491_v41, 1 }
 0x95f   :  { %11395 = vmatprep.mubr.msk.f32.mxu1 %vm12518_vm10, %v12516_v55  ;;  %11384 = vmatpush3.msra.mxu1 %v4823_v37  ;;  %v4819_v37 = vld [vmem:[%s16205_s15 + $0x8] sm:$0xff] }
 0x960   :  { %v4508_v61 = vrot.slane %v4506_v26, 1  ;;  %11385 = vmatprep.subr.mxu1 %v12516_v55 }
 0x961   :  { %11386 = vmatpush3.msra.mxu1 %v4822_v25  ;;  %v4818_v25 = vld [vmem:[%s16205_s15] sm:$0xff] }
 0x962   :  { %v4509_v63 = vor.u32 %v4508_v61, %v4504_v44  ;;  %11387 = vmatprep.subr.mxu1 %v12516_v55  ;;  %v4753_v44 = vrot.slane %v4746_v58, %v12935_v5 }
 0x963   :  { %11388 = vmatpush3.msra.mxu1 %v4821_v29  ;;  %v12048_v29 = vld [vmem:[%s16193_s3 + $0x394] ss:$12 sps:$4 sm:$0xff]  }
 0x964   :  { %10420 = vmatmul.mubr.msk.bf16.vlgmr.msra.gmra.mxu0 %vm4535_vm14, %v4509_v63  ;;  %v4773_v63 = vrot.slane %v4746_v58, %v12948_v12  ;;  %11389 = vmatprep.subr.mxu1 %v12516_v55 }
 0x965   :  { %4714 = vmatpush1.bf16.msra.mxu0 %v4698_v60  ;;  %4735 = vmatprep.mubr.bf16.mxu0 %v12515_v3  ;;  %v4757_v60 = vrot.slane %v4746_v58, %v12944_v8 }
 0x966   :  { %4715 = vmatprep.subr.bf16.mxu0 %v11973_v0 }
 0x967   :  { %v4767_v15 = vrot.slane %v4757_v60, %v12935_v5  ;;  %v12034_v60 = vld [vmem:[%s16193_s3 + $0x270] ss:$12 sps:$4 sm:$0xff]  }
 0x969   :  { %4716 = vmatpush1.bf16.msra.mxu0 %v11971_v42 }
 0x96a   :  { %4717 = vmatprep.subr.bf16.mxu0 %v11976_v47 }
 0x96d   :  { %4718 = vmatpush1.bf16.msra.mxu0 %v11974_v4  ;;  %v4763_v4 = vrot.slane %v4753_v44, %v12935_v5  ;;  %v12033_v44 = vld [vmem:[%s16193_s3 + $0x28c] ss:$12 sps:$4 sm:$0xff]  }
 0x96e   :  { %10463 = vmatprep.subr.msk.bf16.mxu0 %vm137_vm0, %v11977_v49 }
 0x970   :  { %10441 = vmatmul.mubr.msk.bf16.vlgmr.msra.gmra.mxu0 %vm4535_vm14, %v4668_v2  ;;  %v4777_v2 = vrot.slane %v4746_v58, %v12951_v13  ;;  %v12028_v58 = vld [vmem:[%s16193_s3 + $0x2a0] ss:$12 sps:$4 sm:$0xff]  }
 0x971   :  { %5037 = vmatprep.mubr.bf16.mxu0 %v12515_v3  ;;  %5018 = vmatpush1.bf16.msra.mxu0 %v4994_v35  ;;  %v4783_v35 = vrot.slane %v4773_v63, %v12948_v12  ;;  %v12036_v63 = vld [vmem:[%s16193_s3 + $0x274] ss:$12 sps:$4 sm:$0xff]  }
 0x972   :  { %5019 = vmatprep.subr.bf16.mxu0 %v11982_v10  ;;  %v4820_v10 = vld [vmem:[%s16205_s15 + $0x10] sm:$0xff]  ;;  %v4787_v48 = vrot.slane %v4777_v2, %v12948_v12  ;;  %v12045_v2 = vld [vmem:[%s16193_s3 + $0x3ac] ss:$12 sps:$4 sm:$0xff]  }
 0x973   :  { %11390 = vmatpush3.msra.mxu1 %v4820_v10 }
 0x974   :  { %11391 = vmatprep.subr.mxu1 %v12516_v55 }
 0x975   :  { %5020 = vmatpush1.bf16.msra.mxu0 %v11980_v28  ;;  %11392 = vmatpush3.msra.mxu1 %v4819_v37 }
 0x976   :  { %10477 = vmatprep.subr.msk.bf16.mxu0 %vm137_vm0, %v11983_v38  ;;  %11393 = vmatprep.subr.mxu1 %v12516_v55 }
 0x977   :  { %11394 = vmatpush3.msra.mxu1 %v4818_v25  ;;  %v11997_v25 = vld [vmem:[%s16191_s1 + $0x68] ss:$16 sps:$4 sm:$0x3f]  }
 0x978   :  { %10464 = vmatmul.mubr.msk.bf16.vlgmr.msra.gmra.mxu0 %vm130_vm2, %v14440_v56  ;;  %10466 = vmatprep.subr.msk.bf16.mxu1 %vm137_vm0, %v11995_v40 }
 0x979   :  { %5047 = vmatprep.mubr.bf16.mxu0 %v12515_v3  ;;  %5176 = vmatpush1.bf16.msra.mxu0 %v5152_v31 }
 0x97a   :  { %5177 = vmatprep.subr.bf16.mxu0 %v11988_v32 }
 0x97d   :  { %5178 = vmatpush1.bf16.msra.mxu0 %v11986_v33 }
 0x97e   :  { %10499 = vmatprep.subr.msk.bf16.mxu0 %vm137_vm0, %v11989_v24 }
 0x980   :  { %10465 = vmatmul.mubr.msk.bf16.gmra.mxu0 %vm130_vm2, %v14453_v57 }
 0x981   :  { %5195 = vmatprep.mubr.bf16.mxu0 %v12515_v3 }
 0x988   :  { %10478 = vmatmul.mubr.msk.bf16.vlgmr.msra.gmra.mxu0 %vm130_vm2, %v14414_v46 }
 0x989   :  { %5205 = vmatprep.mubr.bf16.mxu0 %v12515_v3  ;;  %5349 = vmatpush1.bf16.msra.mxu0 %v5325_v18 }
 0x98a   :  { %5350 = vmatprep.subr.bf16.mxu0 %v11994_v21  ;;  %v12013_v21 = vld [vmem:[%s16193_s3 + $0x318] ss:$12 sps:$4 sm:$0xff]  }
 0x98d   :  { %5351 = vmatpush1.bf16.msra.mxu0 %v11992_v54  ;;  %v12015_v54 = vld [vmem:[%s16193_s3 + $0x31c] ss:$12 sps:$4 sm:$0xff]  }
 0x98e   :  { %6288 = vmatprep.subr.bf16.mxu0 %v12015_v54  ;;  %v12003_v54 = vld [vmem:[%s16191_s1 + $0x28] ss:$16 sps:$4 sm:$0x3f]  }
 0x990   :  { %10479 = vmatmul.mubr.msk.bf16.gmra.mxu0 %vm130_vm2, %v14416_v16 }
 0x991   :  { %5368 = vmatprep.mubr.bf16.mxu0 %v12515_v3 }
 0x998   :  { %10500 = vmatmul.mubr.msk.bf16.vlgmr.msra.gmra.mxu0 %vm130_vm2, %v14481_v43 }
 0x999   :  { %5378 = vmatprep.mubr.bf16.mxu0 %v12515_v3  ;;  %6289 = vmatpush1.bf16.msra.mxu0 %v12013_v21  ;;  %v12001_v21 = vld [vmem:[%s16191_s1 + $0x2c] ss:$16 sps:$4 sm:$0x3f]  }
 0x99a   :  { %6290 = vmatprep.subr.bf16.mxu0 %v12018_v23 }
 0x9a0   :  { %10501 = vmatmul.mubr.msk.bf16.gmra.mxu0 %vm130_vm2, %v14477_v59 }
 0xa1e   :  { %v4654_v39 = vpop.f32.mrf.mxu1 }
 0xa20   :  { %v4656_v45 = vpop.f32.mrf.mxu1 }
 0xa22   :  { %v4658_v22 = vpop.f32.mrf.mxu1 }
 0xa23   :  { %v12019_v22 = vld [vmem:[%s16193_s3 + $0x2e8] ss:$12 sps:$4 sm:$0xff]  }
 0xa24   :  { %v4580_v27 = vpop.f32.mrf.mxu0  ;;  %v4659_v19 = vpop.f32.mrf.mxu1 }
 0xa25   :  { %v4655_v61 = vadd.f32 %v4654_v39, %v4580_v27  ;;  %v12016_v39 = vld [vmem:[%s16193_s3 + $0x300] ss:$12 sps:$4 sm:$0xff]   ;;  %v12022_v19 = vld [vmem:[%s16193_s3 + $0x2d0] ss:$12 sps:$4 sm:$0xff]  }
 0xa26   :  { %v4582_v41 = vpop.f32.mrf.mxu0  ;;  %6291 = vmatpush1.bf16.msra.mxu0 %v12016_v39  ;;  %v12024_v27 = vld [vmem:[%s16193_s3 + $0x2d4] ss:$12 sps:$4 sm:$0xff]   ;;  %v5158_v39 = vsel %vm137_vm0, %v12003_v54, 0 }
 0xa27   :  { %v4657_v42 = vadd.f32 %v4656_v45, %v4582_v41  ;;  %v12021_v45 = vld [vmem:[%s16193_s3 + $0x2ec] ss:$12 sps:$4 sm:$0xff]   ;;  %v12027_v41 = vld [vmem:[%s16193_s3 + $0x2bc] ss:$12 sps:$4 sm:$0xff]  }
 0xa28   :  { %v4584_v20 = vpop.f32.mrf.mxu0  ;;  %6292 = vmatprep.subr.bf16.mxu0 %v12021_v45  ;;  %v12006_v45 = vld [vmem:[%s16191_s1 + $0xc] ss:$16 sps:$4 sm:$0xff]  }
 0xa29   :  { %v12025_v20 = vld [vmem:[%s16193_s3 + $0x2b8] ss:$12 sps:$4 sm:$0xff]  }
 0xa2a   :  { %v4585_v26 = vpop.f32.mrf.mxu0  ;;  %6293 = vmatpush1.bf16.msra.mxu0 %v12019_v22 }
 0xa2b   :  { %6294 = vmatprep.subr.bf16.mxu0 %v12024_v27  ;;  %v12030_v26 = vld [vmem:[%s16193_s3 + $0x2a4] ss:$12 sps:$4 sm:$0xff]   ;;  %v12004_v27 = vld [vmem:[%s16191_s1 + $0x8] ss:$16 sps:$4 sm:$0xff]  }
 0xa2e   :  { %6295 = vmatpush1.bf16.msra.mxu0 %v12022_v19  ;;  %v12007_v19 = vld [vmem:[%s16191_s1 + $0xac] ss:$16 sps:$4 sm:$0x3f]  }
 0xa2f   :  { %6296 = vmatprep.subr.bf16.mxu0 %v12027_v41 }
 0xa30   :  { %v4737_v0 = vpop.f32.mrf.mxu0 }
 0xa31   :  { %v4744_v47 = vadd.f32 %v4737_v0, %v4655_v61  ;;  %v12031_v61 = vld [vmem:[%s16193_s3 + $0x288] ss:$12 sps:$4 sm:$0xff]  }
 0xa32   :  { %v4739_v49 = vpop.f32.mrf.mxu0  ;;  %6297 = vmatpush1.bf16.msra.mxu0 %v12025_v20  ;;  %v12039_v0 = vld [vmem:[%s16193_s3 + $0x3dc] ss:$12 sps:$4 sm:$0xff]  }
 0xa33   :  { %v4747_v36 = vmax.f32 %v4744_v47, 0.0  ;;  %v4745_v50 = vadd.f32 %v4739_v49, %v4657_v42  ;;  %6298 = vmatprep.subr.bf16.mxu0 %v12030_v26  ;;  %v12037_v42 = vld [vmem:[%s16193_s3 + $0x3d8] ss:$12 sps:$4 sm:$0xff]   ;;  %v12043_v49 = vld [vmem:[%s16193_s3 + $0x3a8] ss:$12 sps:$4 sm:$0xff]  }
 0xa34   :  { %v4741_v17 = vpop.f32.mrf.mxu0  ;;  %v12042_v47 = vld [vmem:[%s16193_s3 + $0x3c4] ss:$12 sps:$4 sm:$0xff]  }
 0xa35   :  { %v4768_v28 = vmul.f32 %v4763_v4, %v4747_v36  ;;  %v4748_v38 = vmax.f32 %v4745_v50, 0.0  ;;  %v12040_v4 = vld [vmem:[%s16193_s3 + $0x3c0] ss:$12 sps:$4 sm:$0xff]   ;;  %v12046_v36 = vld [vmem:[%s16193_s3 + $0x390] ss:$12 sps:$4 sm:$0xff]  }
 0xa36   :  { %v4742_v34 = vpop.f32.mrf.mxu0  ;;  %6299 = vmatpush1.bf16.msra.mxu0 %v12028_v58 }
 0xa37   :  { %v4788_v11 = vadd.f32 %v4783_v35, %v4768_v28  ;;  %v4769_v30 = vmul.f32 %v4767_v15, %v4748_v38  ;;  %6300 = vmatprep.subr.bf16.mxu0 %v12033_v44  ;;  %v12051_v35 = vld [vmem:[%s16193_s3 + $0x37c] ss:$12 sps:$4 sm:$0xff]   ;;  %v12049_v15 = vld [vmem:[%s16193_s3 + $0x378] ss:$12 sps:$4 sm:$0xff]  }
 0xa38   :  { %v14594_v10 = vpop.f32.mrf.mxu0  ;;  %v12012_v44 = vld [vmem:[%s16191_s1 + $0x8c] ss:$16 sps:$4 sm:$0xff]  }
 0xa39   :  { %v4789_v1 = vadd.f32 %v4787_v48, %v4769_v30  ;;  %v4792_v52 = vrot.slane %v4788_v11, 1  ;;  %v4798_v32 = vrot.slane %v4788_v11, 2 }
 0xa3a   :  { %6301 = vmatpush1.bf16.msra.mxu0 %v12031_v61  ;;  %v14602_v50 = vpop.f32.mrf.mxu0 }
 0xa3b   :  { %v4796_v31 = vadd.f32 %v4792_v52, %v4788_v11  ;;  %v4793_v51 = vrot.slane %v4789_v1, 1  ;;  %v4799_v53 = vrot.slane %v4789_v1, 2  ;;  %6302 = vmatprep.subr.bf16.mxu0 %v12036_v63 }
 0xa3c   :  { %v14607_v17 = vpop.f32.mrf.mxu0 }
 0xa3d   :  { %v14517_v33 = vadd.f32 %v4798_v32, %v4796_v31  ;;  %v4797_v24 = vadd.f32 %v4793_v51, %v4789_v1 }
 0xa3e   :  { %6303 = vmatpush1.bf16.msra.mxu0 %v12034_v60  ;;  %v14609_v28 = vpop.f32.mrf.mxu0 }
 0xa3f   :  { %4810 = vrot.lane.b32.xlu0 %v14517_v33, %s12519_s17  ;;  %4805 = vrot.lane.b32.xlu1 %v14517_v33, %s12520_s18  ;;  %v4803_v18 = vadd.f32 %v4799_v53, %v4797_v24  ;;  %v5000_v24 = vsel %vm137_vm0, %v11997_v25, 0  ;;  %v12000_v53 = vld [vmem:[%s16191_s1 + $0x4c] ss:$16 sps:$4 sm:$0xff]  }
 0xa40   :  { %6304 = vmatprep.subr.bf16.mxu0 %v12039_v0  ;;  %v14611_v38 = vpop.f32.mrf.mxu0 }
 0xa42   :  { %6305 = vmatpush2.bf16.msra.mxu0 %v12037_v42  ;;  %v14613_v48 = vpop.f32.mrf.mxu0 }
 0xa43   :  { %4812 = vrot.lane.b32.xlu1 %v4803_v18, %s12519_s17  ;;  %6306 = vmatprep.subr.bf16.mxu0 %v12042_v47 }
 0xa44   :  { %v14615_v34 = vpop.f32.mrf.mxu0 }
 0xa46   :  { %6307 = vmatpush2.bf16.msra.mxu0 %v12040_v4  ;;  %v14617_v30 = vpop.f32.mrf.mxu0 }
 0xa47   :  { %6308 = vmatprep.subr.bf16.mxu0 %v12045_v2 }
 0xa48   :  { %v5197_v31 = vpop.f32.mrf.mxu0 }
 0xa4a   :  { %6309 = vmatpush2.bf16.msra.mxu0 %v12043_v49  ;;  %v5199_v18 = vpop.f32.mrf.mxu0 }
 0xa4b   :  { %6310 = vmatprep.subr.bf16.mxu0 %v12048_v29 }
 0xa4c   :  { %v5201_v23 = vpop.f32.mrf.mxu0 }
 0xa4e   :  { %6311 = vmatpush2.bf16.msra.mxu0 %v12046_v36  ;;  %v5203_v22 = vpop.f32.mrf.mxu0 }
 0xa4f   :  { %6312 = vmatprep.subr.bf16.mxu0 %v12051_v35  ;;  %v5204_v29 = vadd.f32 %v5203_v22, %v14609_v28  ;;  %v14687_v35 = vld [vmem:[%s16192_s2] sm:$0xff] }
 0xa50   :  { %v5207_v41 = vpop.f32.mrf.mxu0 }
 0xa51   :  { %v5208_v2 = vadd.f32 %v5207_v41, %v14611_v38 }
 0xa52   :  { %6313 = vmatpush2.bf16.msra.mxu0 %v12049_v15  ;;  %v5209_v20 = vpop.f32.mrf.mxu0  ;;  %v5202_v15 = vadd.f32 %v5201_v23, %v14607_v17 }
 0xa53   :  { %v5210_v36 = vadd.f32 %v5209_v20, %v14613_v48  ;;  %v12052_v20 = vld [vmem:[%s16193_s3 + $0x360] ss:$12 sps:$4 sm:$0xff]  }
 0xa54   :  { %v5211_v26 = vpop.f32.mrf.mxu0 }
 0xa55   :  { %v5212_v49 = vadd.f32 %v5211_v26, %v14615_v34  ;;  %v5483_v34 = vrot.slane %v14687_v35, %v12944_v8 }
 0xa56   :  { %v5213_v61 = vpop.f32.mrf.mxu0 }
 0xa58   :  { %v5370_v63 = vpop.f32.mrf.mxu0 }
 0xa5a   :  { %v5372_v60 = vpop.f32.mrf.mxu0 }
 0xa5c   :  { %v5374_v0 = vpop.f32.mrf.mxu0 }
 0xa5d   :  { %v5446_v25 = vadd.f32 %v5374_v0, %v5202_v15 }
 0xa5e   :  { %v5376_v42 = vpop.f32.mrf.mxu0 }
 0xa5f   :  { %v5463_v54 = vmax.f32 %v5446_v25, 0.0 }
 0xab1   :  { %v4806_v11 = vpop.permute.xlu1 %4805  ;;  %v4811_v1 = vpop.permute.xlu0 %4810 }
 0xab2   :  { %v4808_v52 = vadd.f32 %v4806_v11, %v14517_v33  ;;  %v11998_v33 = vld [vmem:[%s16191_s1 + $0x48] ss:$16 sps:$4 sm:$0xff]  }
 0xab5   :  { %v4813_v37 = vpop.permute.xlu1 %4812 }
 0xab6   :  { %v4814_v40 = vsel %vm1430_vm4, %v4811_v1, %v4813_v37  ;;  %v5447_v1 = vadd.f32 %v5376_v42, %v5204_v29  ;;  %v5479_v37 = vrot.slane %v14687_v35, %v12935_v5 }
 0xab7   :  { %v4816_v32 = vadd.f32 %v4814_v40, %v4808_v52  ;;  %v5503_v40 = vrot.slane %v5483_v34, %v12935_v5 }
 0xab9   :  { %v4817_v51 = vmul.f32 0.11111111, %v4816_v32 }
 0xabb   :  { %11396 = vmatmul.mubr.msk.f32.vlgmr.msra.gmra.mxu1 %vm4824_vm15, %v4817_v51  ;;  %v5464_v51 = vmax.f32 %v5447_v1, 0.0 }
 0xabc   :  { %5071 = vmatpush1.bf16.msra.mxu1 %v5000_v24  ;;  %5090 = vmatprep.mubr.bf16.mxu1 %v12515_v3 }
 0xabd   :  { %5072 = vmatprep.subr.bf16.mxu1 %v12000_v53 }
 0xac0   :  { %5073 = vmatpush1.bf16.msra.mxu1 %v11998_v33  ;;  %v5499_v33 = vrot.slane %v5479_v37, %v12935_v5 }
 0xac1   :  { %10480 = vmatprep.subr.msk.bf16.mxu1 %vm137_vm0, %v12001_v21  ;;  %v5531_v21 = vrot.slane %v14687_v35, %v12948_v12 }
 0xac3   :  { %10467 = vmatmul.mubr.msk.bf16.vlgmr.msra.gmra.mxu1 %vm130_vm2, %v14440_v56  ;;  %v12009_v56 = vld [vmem:[%s16191_s1 + $0xa8] ss:$16 sps:$4 sm:$0x3f]  }
 0xac4   :  { %5100 = vmatprep.mubr.bf16.mxu1 %v12515_v3  ;;  %5229 = vmatpush1.bf16.msra.mxu1 %v5158_v39  ;;  %v5331_v58 = vsel %vm137_vm0, %v12009_v56, 0  ;;  %v12054_v56 = vld [vmem:[%s16193_s3 + $0x364] ss:$12 sps:$4 sm:$0xff]  }
 0xac5   :  { %5230 = vmatprep.subr.bf16.mxu1 %v12006_v45  ;;  %6314 = vmatprep.subr.bf16.mxu0 %v12054_v56  ;;  %v12080_v56 = vld [vmem:[%s16193_s3 + $0x440] ss:$12 sps:$4 sm:$0xff]  }
 0xac6   :  { %6315 = vmatpush2.bf16.msra.mxu0 %v12052_v20  ;;  %v12077_v20 = vld [vmem:[%s16193_s3 + $0x438] ss:$12 sps:$4 sm:$0xff]  }
 0xac8   :  { %5231 = vmatpush1.bf16.msra.mxu1 %v12004_v27  ;;  %v5517_v27 = vmul.f32 %v5503_v40, %v5464_v51 }
 0xac9   :  { %10502 = vmatprep.subr.msk.bf16.mxu1 %vm137_vm0, %v12007_v19  ;;  %vm4898_vm0 = vcmask 73728  }
 0xacb   :  { %10468 = vmatmul.mubr.msk.bf16.gmra.mxu1 %vm130_vm2, %v14453_v57  ;;  %v12010_v57 = vld [vmem:[%s16191_s1 + $0x88] ss:$16 sps:$4 sm:$0xff]  }
 0xacc   :  { %5248 = vmatprep.mubr.bf16.mxu1 %v12515_v3 }
 0xad3   :  { %10481 = vmatmul.mubr.msk.bf16.vlgmr.msra.gmra.mxu1 %vm130_vm2, %v14414_v46  ;;  %v5380_v46 = vpop.f32.mrf.mxu0 }
 0xad4   :  { %5258 = vmatprep.mubr.bf16.mxu1 %v12515_v3  ;;  %5402 = vmatpush1.bf16.msra.mxu1 %v5331_v58  ;;  %v5551_v58 = vrot.slane %v5531_v21, %v12948_v12  ;;  %v12067_v21 = vld [vmem:[%s16193_s3 + $0x484] ss:$12 sps:$4 sm:$0xff]  }
 0xad5   :  { %5403 = vmatprep.subr.bf16.mxu1 %v12012_v44  ;;  %v5382_v47 = vpop.f32.mrf.mxu0  ;;  %v5516_v44 = vmul.f32 %v5499_v33, %v5463_v54  ;;  %v12068_v54 = vld [vmem:[%s16193_s3 + $0x488] ss:$12 sps:$4 sm:$0xff]  }
 0xad6   :  { %v5451_v48 = vadd.f32 %v5382_v47, %v5210_v36  ;;  %v12058_v36 = vld [vmem:[%s16193_s3 + $0x330] ss:$12 sps:$4 sm:$0xff]  }
 0xad7   :  { %v5384_v4 = vpop.f32.mrf.mxu0 }
 0xad8   :  { %5404 = vmatpush1.bf16.msra.mxu1 %v12010_v57  ;;  %v5454_v11 = vadd.f32 %v5384_v4, %v5212_v49  ;;  %v5468_v24 = vmax.f32 %v5451_v48, 0.0 }
 0xad9   :  { %v5386_v38 = vpop.f32.mrf.mxu0 }
 0xada   :  { %v5521_v19 = vmul.f32 %v5503_v40, %v5468_v24  ;;  %v12061_v24 = vld [vmem:[%s16193_s3 + $0x498] ss:$12 sps:$4 sm:$0xff]  }
 0xadb   :  { %10482 = vmatmul.mubr.msk.bf16.gmra.mxu1 %vm130_vm2, %v14416_v16  ;;  %v5200_v16 = vadd.f32 %v5199_v18, %v14602_v50  ;;  %v5450_v50 = vadd.f32 %v5380_v46, %v5208_v2  ;;  %v5568_v2 = vadd.f32 %v5551_v58, %v5516_v44  ;;  %v12084_v44 = vld [vmem:[%s16193_s3 + $0x428] ss:$12 sps:$4 sm:$0xff]  }
 0xadc   :  { %5421 = vmatprep.mubr.bf16.mxu1 %v12515_v3 }
 0xadd   :  { %v5443_v28 = vadd.f32 %v5372_v60, %v5200_v16  ;;  %v5467_v17 = vmax.f32 %v5450_v50, 0.0  ;;  %v12055_v60 = vld [vmem:[%s16193_s3 + $0x348] ss:$12 sps:$4 sm:$0xff]  }
 0xadf   :  { %v5460_v32 = vmax.f32 %v5443_v28, 0.0  ;;  %v5520_v39 = vmul.f32 %v5499_v33, %v5467_v17 }
 0xae1   :  { %v5513_v22 = vmul.f32 %v5503_v40, %v5460_v32  ;;  %v14712_v57 = vadd.f32 %v5551_v58, %v5520_v39  ;;  %v12071_v39 = vld [vmem:[%s16193_s3 + $0x46c] ss:$12 sps:$4 sm:$0xff]  }
 0xae3   :  { %10503 = vmatmul.mubr.msk.bf16.vlgmr.msra.gmra.mxu1 %vm130_vm2, %v14481_v43  ;;  %v5214_v43 = vadd.f32 %v5213_v61, %v14617_v30  ;;  %v12057_v61 = vld [vmem:[%s16193_s3 + $0x34c] ss:$12 sps:$4 sm:$0xff]  }
 0xae4   :  { %5431 = vmatprep.mubr.bf16.mxu1 %v12515_v3  ;;  %6316 = vmatprep.subr.bf16.mxu0 %v12057_v61  ;;  %v12087_v61 = vld [vmem:[%s16193_s3 + $0x40c] ss:$12 sps:$4 sm:$0xff]  }
 0xae5   :  { %v5455_v52 = vadd.f32 %v5386_v38, %v5214_v43  ;;  %6317 = vmatpush2.bf16.msra.mxu0 %v12055_v60  ;;  %v12060_v43 = vld [vmem:[%s16193_s3 + $0x334] ss:$12 sps:$4 sm:$0xff]   ;;  %v12088_v60 = vld [vmem:[%s16193_s3 + $0x410] ss:$12 sps:$4 sm:$0xff]  }
 0xae6   :  { %6318 = vmatprep.subr.bf16.mxu0 %v12060_v43  ;;  %v12099_v43 = vld [vmem:[%s16193_s3 + $0x4b4] ss:$12 sps:$4 sm:$0xff]  }
 0xae7   :  { %v5472_v53 = vmax.f32 %v5455_v52, 0.0 }
 0xae9   :  { %v5525_v41 = vmul.f32 %v5503_v40, %v5472_v53  ;;  %6319 = vmatpush2.bf16.msra.mxu0 %v12058_v36  ;;  %v12063_v53 = vld [vmem:[%s16193_s3 + $0x49c] ss:$12 sps:$4 sm:$0xff]  }
 0xaea   :  { %6438 = vmatprep.subr.bf16.mxu0 %v12515_v3  ;;  %6339 = vmatprep.subr.bf16.mxu1 %v12063_v53  ;;  %v12096_v36 = vld [vmem:[%s16193_s3 + $0x4d0] ss:$12 sps:$4 sm:$0xff]  }
 0xaeb   :  { %10504 = vmatmul.mubr.msk.bf16.gmra.mxu1 %vm130_vm2, %v14477_v59  ;;  %v5198_v59 = vadd.f32 %v5197_v31, %v14594_v10  ;;  %v5535_v10 = vrot.slane %v14687_v35, %v12951_v13  ;;  %v5471_v31 = vmax.f32 %v5454_v11, 0.0 }
 0xaec   :  { %6340 = vmatpush1.bf16.msra.mxu1 %v12061_v24 }
 0xaed   :  { %v5442_v30 = vadd.f32 %v5370_v63, %v5198_v59  ;;  %v5555_v23 = vrot.slane %v5535_v10, %v12948_v12  ;;  %v5524_v45 = vmul.f32 %v5499_v33, %v5471_v31  ;;  %6341 = vmatprep.subr.bf16.mxu1 %v12067_v21 }
 0xaef   :  { %v5459_v18 = vmax.f32 %v5442_v30, 0.0  ;;  %v5576_v63 = vadd.f32 %v5551_v58, %v5524_v45  ;;  %v5565_v0 = vadd.f32 %v5555_v23, %v5513_v22  ;;  %v5569_v42 = vadd.f32 %v5555_v23, %v5517_v27  ;;  %v12072_v45 = vld [vmem:[%s16193_s3 + $0x470] ss:$12 sps:$4 sm:$0xff]   ;;  %v12075_v27 = vld [vmem:[%s16193_s3 + $0x454] ss:$12 sps:$4 sm:$0xff]  }
 0xaf0   :  { %v14717_v46 = vadd.f32 %v5555_v23, %v5521_v19  ;;  %v5577_v47 = vadd.f32 %v5555_v23, %v5525_v41  ;;  %v12069_v23 = vld [vmem:[%s16193_s3 + $0x468] ss:$12 sps:$4 sm:$0xff]   ;;  %v12073_v22 = vld [vmem:[%s16193_s3 + $0x450] ss:$12 sps:$4 sm:$0xff]   ;;  %v12076_v19 = vld [vmem:[%s16193_s3 + $0x458] ss:$12 sps:$4 sm:$0xff]  }
 0xaf1   :  { %v5512_v26 = vmul.f32 %v5499_v33, %v5459_v18  ;;  %v14720_v49 = vpack.c.bf16 %v5576_v63, %v14712_v57  ;;  %v14722_v16 = vpack.c.bf16 %v5569_v42, %v5565_v0  ;;  %v12064_v18 = vld [vmem:[%s16193_s3 + $0x4a0] ss:$12 sps:$4 sm:$0xff]   ;;  %v12079_v41 = vld [vmem:[%s16193_s3 + $0x43c] ss:$12 sps:$4 sm:$0xff]  }
 0xaf2   :  { %v14725_v29 = vpack.c.bf16 %v5577_v47, %v14717_v46  ;;  %v12065_v33 = vld [vmem:[%s16193_s3 + $0x480] ss:$12 sps:$4 sm:$0xff]   ;;  %v12085_v63 = vld [vmem:[%s16193_s3 + $0x408] ss:$12 sps:$4 sm:$0xff]   ;;  %v12089_v42 = vld [vmem:[%s16193_s3 + $0x3f0] ss:$12 sps:$4 sm:$0xff]  }
 0xaf3   :  { %v5564_v4 = vadd.f32 %v5551_v58, %v5512_v26  ;;  %v5808_v15 = vshll.u32 %v14720_v49, 16  ;;  %v5813_v38 = vshrl.u32 %v14722_v16, 16  ;;  %v5815_v34 = vshll.u32 %v14722_v16, 16  ;;  %6342 = vmatpush1.bf16.msra.mxu1 %v12065_v33  ;;  %v12083_v26 = vld [vmem:[%s16193_s3 + $0x424] ss:$12 sps:$4 sm:$0xff]  }
 0xaf4   :  { %v5820_v50 = vshll.u32 %v14725_v29, 16  ;;  %v5851_v17 = vshrl.u32 %v14725_v29, 16  ;;  %v5848_v31 = vshrl.u32 %v14720_v49, 16  ;;  %6343 = vmatprep.subr.bf16.mxu1 %v12071_v39  ;;  %v12081_v58 = vld [vmem:[%s16193_s3 + $0x420] ss:$12 sps:$4 sm:$0xff]  }
 0xaf5   :  { %v14733_v59 = vpack.c.bf16 %v5568_v2, %v5564_v4  ;;  %v5817_v1 = vrot.slane %v5815_v34, 1  ;;  %v5810_v52 = vrot.slane %v5808_v15, 1  ;;  %v12091_v0 = vld [vmem:[%s16193_s3 + $0x3f4] ss:$12 sps:$4 sm:$0xff]   ;;  %v12092_v47 = vld [vmem:[%s16193_s3 + $0x3f8] ss:$12 sps:$4 sm:$0xff]  }
 0xaf6   :  { %v5822_v48 = vrot.slane %v5820_v50, 1  ;;  %v12095_v4 = vld [vmem:[%s16193_s3 + $0x4cc] ss:$12 sps:$4 sm:$0xff]   ;;  %v12093_v2 = vld [vmem:[%s16193_s3 + $0x4c8] ss:$12 sps:$4 sm:$0xff]  }
 0xaf7   :  { %v5801_v11 = vshrl.u32 %v14733_v59, 16  ;;  %v5803_v28 = vshll.u32 %v14733_v59, 16  ;;  %v5818_v37 = vor.u32 %v5817_v1, %v5813_v38  ;;  %v14755_v51 = vor.u32 %v5848_v31, %v5810_v52  ;;  %6344 = vmatpush1.bf16.msra.mxu1 %v12069_v23  ;;  %v12097_v15 = vld [vmem:[%s16193_s3 + $0x4b0] ss:$12 sps:$4 sm:$0xff]   ;;  %v12100_v38 = vld [vmem:[%s16193_s3 + $0x4b8] ss:$12 sps:$4 sm:$0xff]  }
 0xaf8   :  { %v14752_v32 = vor.u32 %v5851_v17, %v5822_v48  ;;  %6345 = vmatprep.subr.bf16.mxu1 %v12075_v27  ;;  %v12101_v34 = vld [vmem:[%s16193_s3 + $0x3e0] ss:$12 sps:$4 sm:$0xff]  }
 0xaf9   :  { %v5805_v30 = vrot.slane %v5803_v28, 1  ;;  %v14743_v40 = vsel %vm78_vm1, %v5818_v37, %v5822_v48  ;;  %v12104_v50 = vld [vmem:[%s16193_s3 + $0x22c] ss:$12 sps:$4 sm:$0xff]  }
 0xafa   :  { %6320 = vmatprep.mubr.bf16.mxu0 %v14743_v40 }
 0xafb   :  { %v5806_v25 = vor.u32 %v5805_v30, %v5801_v11  ;;  %6346 = vmatpush1.bf16.msra.mxu1 %v12073_v22 }
 0xafc   :  { %6347 = vmatprep.subr.bf16.mxu1 %v12079_v41 }
 0xafd   :  { %v14747_v10 = vsel %vm78_vm1, %v5806_v25, %v5810_v52 }
 0xafe   :  { %6321 = vmatmul.mubr.bf16.vlgmr.msra.gmra.mxu0 %v14747_v10 }
 0xaff   :  { %6330 = vmatprep.mubr.bf16.mxu0 %v14752_v32  ;;  %6439 = vmatpush1.bf16.msra.mxu0 %v12064_v18 }
 0xb00   :  { %6440 = vmatprep.subr.bf16.mxu0 %v12515_v3  ;;  %6348 = vmatpush1.bf16.msra.mxu1 %v12077_v20  ;;  %v5487_v20 = vrot.slane %v14687_v35, %v12938_v6 }
 0xb01   :  { %6349 = vmatprep.subr.bf16.mxu1 %v12083_v26 }
 0xb03   :  { %6441 = vmatpush1.bf16.msra.mxu0 %v12068_v54 }
 0xb04   :  { %6442 = vmatprep.subr.bf16.mxu0 %v12515_v3  ;;  %6350 = vmatpush1.bf16.msra.mxu1 %v12081_v58 }
 0xb05   :  { %6351 = vmatprep.subr.bf16.mxu1 %v12087_v61 }
 0xb06   :  { %6331 = vmatmul.mubr.bf16.gmra.mxu0 %v14755_v51 }
 0xb07   :  { %6443 = vmatpush1.bf16.msra.mxu0 %v12072_v45 }
 0xb08   :  { %6444 = vmatprep.subr.bf16.mxu0 %v12515_v3  ;;  %6352 = vmatpush1.bf16.msra.mxu1 %v12085_v63 }
 0xb09   :  { %6353 = vmatprep.subr.bf16.mxu1 %v12091_v0 }
 0xb0b   :  { %6445 = vmatpush1.bf16.msra.mxu0 %v12076_v19  ;;  %v5491_v19 = vrot.slane %v14687_v35, %v637_v9  ;;  %v5507_v9 = vrot.slane %v5487_v20, %v12935_v5 }
 0xb0c   :  { %6446 = vmatprep.subr.bf16.mxu0 %v12515_v3  ;;  %6354 = vmatpush1.bf16.msra.mxu1 %v12089_v42 }
 0xb0d   :  { %6367 = vmatprep.subr.bf16.mxu1 %v12095_v4  ;;  %v5511_v0 = vrot.slane %v5491_v19, %v12935_v5  ;;  %v5539_v4 = vrot.slane %v14687_v35, %v12941_v7 }
 0xb0f   :  { %6447 = vmatpush1.bf16.msra.mxu0 %v12080_v56 }
 0xb10   :  { %6448 = vmatprep.subr.bf16.mxu0 %v12515_v3  ;;  %6368 = vmatpush2.bf16.msra.mxu1 %v12093_v2 }
 0xb11   :  { %6369 = vmatprep.subr.bf16.mxu1 %v12099_v43 }
 0xb13   :  { %6449 = vmatpush1.bf16.msra.mxu0 %v12084_v44  ;;  %v5543_v44 = vrot.slane %v14687_v35, %v689_v14 }
 0xb14   :  { %6450 = vmatprep.subr.bf16.mxu0 %v12515_v3  ;;  %6370 = vmatpush2.bf16.msra.mxu1 %v12097_v15 }
 0xb15   :  { %11236 = vmatprep.subr.bf16.mxu1 %v12101_v34  ;;  %v5563_v62 = vrot.slane %v5543_v44, %v12948_v12 }
 0xb17   :  { %6451 = vmatpush1.bf16.msra.mxu0 %v12088_v60 }
 0xb18   :  { %6452 = vmatprep.subr.bf16.mxu0 %v12515_v3 }
 0xb1b   :  { %6453 = vmatpush1.bf16.msra.mxu0 %v12092_v47 }
 0xb1c   :  { %6466 = vmatprep.subr.bf16.mxu0 %v12515_v3 }
 0xb1f   :  { %6467 = vmatpush2.bf16.msra.mxu0 %v12096_v36 }
 0xb20   :  { %6468 = vmatprep.subr.bf16.mxu0 %v12515_v3 }
 0xb23   :  { %6469 = vmatpush2.bf16.msra.mxu0 %v12100_v38 }
 0xb24   :  { %6958 = vmatprep.subr.bf16.mxu0 %v12104_v50 }
 0xb7b   :  { %v14863_v11 = vpop.f32.mrf.mxu1 }
 0xb7d   :  { %v11397_v28 = vpop.f32.mrf.mxu1 }
 0xb83   :  { %v5092_v1 = vpop.f32.mrf.mxu1 }
 0xb85   :  { %v5094_v48 = vpop.f32.mrf.mxu1 }
 0xb87   :  { %v5096_v52 = vpop.f32.mrf.mxu1 }
 0xb89   :  { %v5098_v30 = vpop.f32.mrf.mxu1 }
 0xb8b   :  { %v5102_v37 = vpop.f32.mrf.mxu1 }
 0xb8d   :  { %v5104_v25 = vpop.f32.mrf.mxu1 }
 0xb8f   :  { %v5106_v17 = vpop.f32.mrf.mxu1 }
 0xb91   :  { %v5108_v31 = vpop.f32.mrf.mxu1 }
 0xb93   :  { %v5250_v24 = vpop.f32.mrf.mxu1 }
 0xb94   :  { %v5251_v45 = vadd.f32 %v5250_v24, %v5092_v1 }
 0xb95   :  { %v5252_v53 = vpop.f32.mrf.mxu1 }
 0xb96   :  { %v5253_v27 = vadd.f32 %v5252_v53, %v5094_v48 }
 0xb97   :  { %v5254_v18 = vpop.f32.mrf.mxu1 }
 0xb98   :  { %v5255_v26 = vadd.f32 %v5254_v18, %v5096_v52  ;;  %v5559_v52 = vrot.slane %v5539_v4, %v12948_v12 }
 0xb99   :  { %v5256_v33 = vpop.f32.mrf.mxu1 }
 0xb9a   :  { %v5257_v63 = vadd.f32 %v5256_v33, %v5098_v30 }
 0xb9b   :  { %v5260_v21 = vpop.f32.mrf.mxu1 }
 0xb9c   :  { %v5261_v36 = vadd.f32 %v5260_v21, %v5102_v37 }
 0xb9d   :  { %v5262_v54 = vpop.f32.mrf.mxu1 }
 0xb9e   :  { %v5263_v38 = vadd.f32 %v5262_v54, %v5104_v25 }
 0xb9f   :  { %v5264_v23 = vpop.f32.mrf.mxu1 }
 0xba0   :  { %v5265_v18 = vadd.f32 %v5264_v23, %v5106_v17 }
 0xba1   :  { %v5266_v39 = vpop.f32.mrf.mxu1 }
 0xba2   :  { %v5267_v21 = vadd.f32 %v5266_v39, %v5108_v31 }
 0xba3   :  { %v5423_v22 = vpop.f32.mrf.mxu1 }
 0xba4   :  { %v5444_v41 = vadd.f32 %v5423_v22, %v5251_v45 }
 0xba5   :  { %v5425_v56 = vpop.f32.mrf.mxu1 }
 0xba6   :  { %v5445_v58 = vadd.f32 %v5425_v56, %v5253_v27  ;;  %v5461_v47 = vmax.f32 %v5444_v41, 0.0 }
 0xba7   :  { %v5427_v61 = vpop.f32.mrf.mxu1 }
 0xba8   :  { %v5462_v60 = vmax.f32 %v5445_v58, 0.0  ;;  %v5448_v42 = vadd.f32 %v5427_v61, %v5255_v26  ;;  %v5514_v48 = vmul.f32 %v5507_v9, %v5461_v47 }
 0xba9   :  { %v5429_v2 = vpop.f32.mrf.mxu1 }
 0xbaa   :  { %v5465_v43 = vmax.f32 %v5448_v42, 0.0  ;;  %v5449_v15 = vadd.f32 %v5429_v2, %v5257_v63  ;;  %v5515_v34 = vmul.f32 %v5511_v0, %v5462_v60  ;;  %v5566_v22 = vadd.f32 %v5559_v52, %v5514_v48  ;;  %v12105_v48 = vld [vmem:[%s16193_s3 + $0x320] ss:$12 sps:$4 sm:$0xff]  }
 0xbab   :  { %v5433_v14 = vpop.f32.mrf.mxu1 }
 0xbac   :  { %v5518_v50 = vmul.f32 %v5507_v9, %v5465_v43  ;;  %v5466_v28 = vmax.f32 %v5449_v15, 0.0  ;;  %v5452_v1 = vadd.f32 %v5433_v14, %v5261_v36  ;;  %v5567_v45 = vadd.f32 %v5563_v62, %v5515_v34 }
 0xbad   :  { %v5435_v30 = vpop.f32.mrf.mxu1 }
 0xbae   :  { %v5519_v24 = vmul.f32 %v5511_v0, %v5466_v28  ;;  %v5453_v53 = vadd.f32 %v5435_v30, %v5263_v38  ;;  %v5570_v35 = vadd.f32 %v5559_v52, %v5518_v50  ;;  %v5469_v33 = vmax.f32 %v5452_v1, 0.0  ;;  %v12102_v28 = vld [vmem:[%s16193_s3 + $0x228] ss:$12 sps:$4 sm:$0xff]  }
 0xbaf   :  { %v5437_v37 = vpop.f32.mrf.mxu1 }
 0xbb0   :  { %v5571_v25 = vadd.f32 %v5563_v62, %v5519_v24  ;;  %v5470_v54 = vmax.f32 %v5453_v53, 0.0  ;;  %v5456_v27 = vadd.f32 %v5437_v37, %v5265_v18  ;;  %v14881_v56 = vpack.c.bf16 %v5570_v35, %v5566_v22  ;;  %v12106_v53 = vld [vmem:[%s16193_s3 + $0x3c8] ss:$12 sps:$4 sm:$0xff]   ;;  %v12107_v35 = vld [vmem:[%s16193_s3 + $0x210] ss:$12 sps:$4 sm:$0xff]  }
 0xbb1   :  { %v5439_v19 = vpop.f32.mrf.mxu1  ;;  %v5522_v26 = vmul.f32 %v5507_v9, %v5469_v33  ;;  %v12109_v18 = vld [vmem:[%s16193_s3 + $0x214] ss:$12 sps:$4 sm:$0xff]   ;;  %v12111_v37 = vld [vmem:[%s16193_s3 + $0x3b0] ss:$12 sps:$4 sm:$0xff]  }
 0xbb2   :  { %v14879_v41 = vpack.c.bf16 %v5571_v25, %v5567_v45  ;;  %v5457_v20 = vadd.f32 %v5439_v19, %v5267_v21  ;;  %v5473_v58 = vmax.f32 %v5456_v27, 0.0  ;;  %v5523_v44 = vmul.f32 %v5511_v0, %v5470_v54  ;;  %v12110_v33 = vld [vmem:[%s16193_s3 + $0x308] ss:$12 sps:$4 sm:$0xff]   ;;  %v12112_v25 = vld [vmem:[%s16193_s3 + $0x1f8] ss:$12 sps:$4 sm:$0xff]  }
 0xbb3   :  { %v14884_v31 = vadd.f32 %v5559_v52, %v5522_v26  ;;  %v5827_v60 = vshll.u32 %v14881_v56, 16  ;;  %v5825_v14 = vshrl.u32 %v14881_v56, 16  ;;  %v12114_v21 = vld [vmem:[%s16193_s3 + $0x1fc] ss:$12 sps:$4 sm:$0xff]   ;;  %v12116_v27 = vld [vmem:[%s16193_s3 + $0x398] ss:$12 sps:$4 sm:$0xff]  }
 0xbb4   :  { %v5474_v61 = vmax.f32 %v5457_v20, 0.0  ;;  %v5526_v17 = vmul.f32 %v5507_v9, %v5473_v58  ;;  %v5839_v63 = vshll.u32 %v14879_v41, 16  ;;  %v14887_v42 = vadd.f32 %v5563_v62, %v5523_v44  ;;  %v12115_v54 = vld [vmem:[%s16193_s3 + $0x2f0] ss:$12 sps:$4 sm:$0xff]   ;;  %v12117_v20 = vld [vmem:[%s16193_s3 + $0x1e0] ss:$12 sps:$4 sm:$0xff]  }
 0xbb5   :  { %v5837_v43 = vshrl.u32 %v14879_v41, 16  ;;  %v12119_v19 = vld [vmem:[%s16193_s3 + $0x1e4] ss:$12 sps:$4 sm:$0xff]   ;;  %v12121_v58 = vld [vmem:[%s16193_s3 + $0x380] ss:$12 sps:$4 sm:$0xff]  }
 0xbb6   :  { %v5527_v23 = vmul.f32 %v5511_v0, %v5474_v61  ;;  %v5578_v39 = vadd.f32 %v5559_v52, %v5526_v17  ;;  %v5841_v36 = vrot.slane %v5839_v63, 1  ;;  %v5829_v0 = vrot.slane %v5827_v60, 1  ;;  %v12120_v26 = vld [vmem:[%s16193_s3 + $0x2d8] ss:$12 sps:$4 sm:$0xff]   ;;  %v12122_v61 = vld [vmem:[%s16193_s3 + $0x1c8] ss:$12 sps:$4 sm:$0xff]  }
 0xbb7   :  { %v12124_v44 = vld [vmem:[%s16193_s3 + $0x1cc] ss:$12 sps:$4 sm:$0xff]   ;;  %v12126_v17 = vld [vmem:[%s16193_s3 + $0x368] ss:$12 sps:$4 sm:$0xff]  }
 0xbb8   :  { %v5579_v47 = vadd.f32 %v5563_v62, %v5527_v23  ;;  %v14890_v4 = vpack.c.bf16 %v5578_v39, %v14884_v31  ;;  %v5842_v34 = vor.u32 %v5841_v36, %v5837_v43  ;;  %v5830_v1 = vor.u32 %v5829_v0, %v5825_v14  ;;  %v12129_v23 = vld [vmem:[%s16193_s3 + $0x1b4] ss:$12 sps:$4 sm:$0xff]   ;;  %v12127_v39 = vld [vmem:[%s16193_s3 + $0x1b0] ss:$12 sps:$4 sm:$0xff]   ;;  %v12132_v43 = vld [vmem:[%s16193_s3 + $0x198] ss:$12 sps:$4 sm:$0xff]  }
 0xbb9   :  { %v12130_v60 = vld [vmem:[%s16193_s3 + $0x2a8] ss:$12 sps:$4 sm:$0xff]   ;;  %v12131_v36 = vld [vmem:[%s16193_s3 + $0x350] ss:$12 sps:$4 sm:$0xff]   ;;  %v12136_v14 = vld [vmem:[%s16193_s3 + $0x338] ss:$12 sps:$4 sm:$0xff]  }
 0xbba   :  { %v14893_v2 = vpack.c.bf16 %v5579_v47, %v14887_v42  ;;  %v5832_v9 = vshll.u32 %v14890_v4, 16  ;;  %v5854_v45 = vshrl.u32 %v14890_v4, 16 }
 0xbbc   :  { %v5844_v15 = vshll.u32 %v14893_v2, 16  ;;  %v5834_v38 = vrot.slane %v5832_v9, 1  ;;  %v5857_v62 = vshrl.u32 %v14893_v2, 16  ;;  %v12134_v9 = vld [vmem:[%s16193_s3 + $0x19c] ss:$12 sps:$4 sm:$0xff]  }
 0xbbe   :  { %v5846_v50 = vrot.slane %v5844_v15, 1  ;;  %v5835_v24 = vsel %vm78_vm1, %v5830_v1, %v5834_v38  ;;  %v5856_v22 = vor.u32 %v5854_v45, %v5834_v38  ;;  %v14970_v63 = vpop.f32.mrf.mxu0  ;;  %v12135_v15 = vld [vmem:[%s16193_s3 + $0x290] ss:$12 sps:$4 sm:$0xff]  }
 0xbbf   :  { %v12155_v45 = vld [vmem:[%s16193_s3 + $0x7c] ss:$12 sps:$4 sm:$0xff]  }
 0xbc0   :  { %v5847_v52 = vsel %vm78_vm1, %v5842_v34, %v5846_v50  ;;  %v5859_v30 = vor.u32 %v5857_v62, %v5846_v50  ;;  %v14978_v47 = vpop.f32.mrf.mxu0  ;;  %v12139_v34 = vld [vmem:[%s16193_s3 + $0x184] ss:$12 sps:$4 sm:$0xff]   ;;  %v12137_v62 = vld [vmem:[%s16193_s3 + $0x180] ss:$12 sps:$4 sm:$0xff]  }
 0xbc1   :  { %10687 = vmatprep.mubr.msk.bf16.mxu1 %vm1430_vm4, %v5847_v52  ;;  %10689 = vmatprep.mubr.msk.bf16.mxu0 %vm1430_vm4, %v5847_v52  ;;  %v12146_v52 = vld [vmem:[%s16193_s3 + $0x25c] ss:$12 sps:$4 sm:$0xff]  }
 0xbc2   :  { %6372 = vmatmul.mubr.bf16.vlgmr.msra.gmra.mxu1 %v5835_v24  ;;  %6471 = vmatmul.mubr.bf16.vlgmr.msra.gmra.mxu0 %v5835_v24  ;;  %v14986_v0 = vpop.f32.mrf.mxu0  ;;  %v12141_v24 = vld [vmem:[%s16193_s3 + $0xa8] ss:$12 sps:$4 sm:$0xff]  }
 0xbc3   :  { %11237 = vmatpush3.bf16.msra.mxu1 %v12105_v48  ;;  %6959 = vmatpush1.bf16.msra.mxu0 %v12102_v28  ;;  %v12140_v28 = vld [vmem:[%s16193_s3 + $0x278] ss:$12 sps:$4 sm:$0xff]  }
 0xbc4   :  { %10688 = vmatprep.mubr.msk.bf16.mxu1 %vm1430_vm4, %v5859_v30  ;;  %10690 = vmatprep.mubr.msk.bf16.mxu0 %vm1430_vm4, %v5859_v30  ;;  %v14994_v38 = vpop.f32.mrf.mxu0  ;;  %v12143_v48 = vld [vmem:[%s16193_s3 + $0xac] ss:$12 sps:$4 sm:$0xff]  }
 0xbc5   :  { %11238 = vmatprep.subr.bf16.mxu1 %v12106_v53  ;;  %6960 = vmatprep.subr.bf16.mxu0 %v12109_v18  ;;  %v12144_v18 = vld [vmem:[%s16193_s3 + $0x258] ss:$12 sps:$4 sm:$0xff]  }
 0xbc6   :  { %v15002_v50 = vpop.f32.mrf.mxu0 }
 0xbc7   :  { %11239 = vmatpush3.bf16.msra.mxu1 %v12110_v33  ;;  %6961 = vmatpush1.bf16.msra.mxu0 %v12107_v35  ;;  %v12149_v35 = vld [vmem:[%s16193_s3 + $0x94] ss:$12 sps:$4 sm:$0xff]   ;;  %v12152_v33 = vld [vmem:[%s16193_s3 + $0x244] ss:$12 sps:$4 sm:$0xff]  }
 0xbc8   :  { %11240 = vmatprep.subr.bf16.mxu1 %v12111_v37  ;;  %6962 = vmatprep.subr.bf16.mxu0 %v12114_v21  ;;  %v15010_v1 = vpop.f32.mrf.mxu0  ;;  %v12147_v37 = vld [vmem:[%s16193_s3 + $0x90] ss:$12 sps:$4 sm:$0xff]   ;;  %v12150_v21 = vld [vmem:[%s16193_s3 + $0x240] ss:$12 sps:$4 sm:$0xff]  }
 0xbca   :  { %6382 = vmatmul.mubr.bf16.gmra.mxu1 %v5856_v22  ;;  %6479 = vmatmul.mubr.bf16.gmra.mxu0 %v5856_v22  ;;  %v6336_v30 = vpop.f32.mrf.mxu0  ;;  %v15055_v22 = vpack.c.bf16 %v14887_v42, %v14887_v42  ;;  %v12162_v42 = vld [vmem:[%s16193_s3 + $0x98] ss:$12 sps:$4 sm:$0xff]  }
 0xbcb   :  { %11241 = vmatpush3.bf16.msra.mxu1 %v12115_v54  ;;  %6963 = vmatpush1.bf16.msra.mxu0 %v12112_v25  ;;  %v12157_v25 = vld [vmem:[%s16193_s3 + $0xb0] ss:$12 sps:$4 sm:$0xff]   ;;  %v12191_v30 = vld [vmem:[%s16193_s3 + $0xc8] ss:$12 sps:$4 sm:$0xff]  }
 0xbcc   :  { %6422 = vmatprep.mubr.bf16.mxu1 %v14743_v40  ;;  %10769 = vmatprep.mubr.msk.bf16.mxu0 %vm1430_vm4, %v14879_v41  ;;  %v12125_v40 = vld [vmem:[%s16193_s3 + $0x2c0] ss:$12 sps:$4 sm:$0xff]   ;;  %v6337_v53 = vpop.f32.mrf.mxu0  ;;  %v12160_v54 = vld [vmem:[%s16193_s3 + $0x64] ss:$12 sps:$4 sm:$0xff]  }
 0xbcd   :  { %11242 = vmatprep.subr.bf16.mxu1 %v12116_v27  ;;  %6964 = vmatprep.subr.bf16.mxu0 %v12119_v19  ;;  %v12161_v27 = vld [vmem:[%s16193_s3 + $0x158] ss:$12 sps:$4 sm:$0xff]   ;;  %v12158_v19 = vld [vmem:[%s16193_s3 + $0x60] ss:$12 sps:$4 sm:$0xff]   ;;  %v12195_v53 = vld [vmem:[%s16193_s3 + $0x13c] ss:$12 sps:$4 sm:$0xff]  }
 0xbcf   :  { %11243 = vmatpush3.bf16.msra.mxu1 %v12120_v26  ;;  %6965 = vmatpush1.bf16.msra.mxu0 %v12117_v20  ;;  %v12166_v20 = vld [vmem:[%s16193_s3 + $0x140] ss:$12 sps:$4 sm:$0xff]   ;;  %v12163_v26 = vld [vmem:[%s16193_s3 + $0x48] ss:$12 sps:$4 sm:$0xff]  }
 0xbd0   :  { %11244 = vmatprep.subr.bf16.mxu1 %v12121_v58  ;;  %6966 = vmatprep.subr.bf16.mxu0 %v12124_v44  ;;  %v12170_v58 = vld [vmem:[%s16193_s3 + $0x34] ss:$12 sps:$4 sm:$0xff]   ;;  %v15085_v44 = vpack.c.bf16 %v14884_v31, %v14884_v31  ;;  %v12175_v31 = vld [vmem:[%s16193_s3 + $0x1c] ss:$12 sps:$4 sm:$0xff]  }
 0xbd3   :  { %11245 = vmatpush3.bf16.msra.mxu1 %v12125_v40  ;;  %6967 = vmatpush1.bf16.msra.mxu0 %v12122_v61  ;;  %v12167_v61 = vld [vmem:[%s16193_s3 + $0x80] ss:$12 sps:$4 sm:$0xff]   ;;  %v12171_v40 = vld [vmem:[%s16193_s3 + $0x128] ss:$12 sps:$4 sm:$0xff]  }
 0xbd4   :  { %11246 = vmatprep.subr.bf16.mxu1 %v12126_v17  ;;  %6968 = vmatprep.subr.bf16.mxu0 %v12129_v23  ;;  %v12168_v17 = vld [vmem:[%s16193_s3 + $0x30] ss:$12 sps:$4 sm:$0xff]   ;;  %v12172_v23 = vld [vmem:[%s16193_s3 + $0x68] ss:$12 sps:$4 sm:$0xff]  }
 0xbd7   :  { %11247 = vmatpush3.bf16.msra.mxu1 %v12130_v60  ;;  %6969 = vmatpush1.bf16.msra.mxu0 %v12127_v39  ;;  %v12176_v39 = vld [vmem:[%s16193_s3 + $0x110] ss:$12 sps:$4 sm:$0xff]   ;;  %v12173_v60 = vld [vmem:[%s16193_s3 + $0x18] ss:$12 sps:$4 sm:$0xff]  }
 0xbd8   :  { %11248 = vmatprep.subr.bf16.mxu1 %v12131_v36  ;;  %6970 = vmatprep.subr.bf16.mxu0 %v12134_v9  ;;  %v12180_v36 = vld [vmem:[%s16193_s3 + $0x4] ss:$12 sps:$4 sm:$0xff]  }
 0xbd9   :  { %v12177_v9 = vld [vmem:[%s16193_s3 + $0x50] ss:$12 sps:$4 sm:$0xff]  }
 0xbdb   :  { %11249 = vmatpush3.bf16.msra.mxu1 %v12135_v15  ;;  %6971 = vmatpush1.bf16.msra.mxu0 %v12132_v43  ;;  %v12181_v43 = vld [vmem:[%s16193_s3 + $0xf8] ss:$12 sps:$4 sm:$0xff]   ;;  %v12178_v15 = vld [vmem:[%s16193_s3] ss:$12 sps:$4 sm:$0xff]  }
 0xbdc   :  { %11250 = vmatprep.subr.bf16.mxu1 %v12136_v14  ;;  %6972 = vmatprep.subr.bf16.mxu0 %v12139_v34  ;;  %v12185_v14 = vld [vmem:[%s16193_s3 + $0x16c] ss:$12 sps:$4 sm:$0xff]  }
 0xbdd   :  { %v12182_v34 = vld [vmem:[%s16193_s3 + $0x38] ss:$12 sps:$4 sm:$0xff]  }
 0xbdf   :  { %11251 = vmatpush3.bf16.msra.mxu1 %v12140_v28  ;;  %6973 = vmatpush1.bf16.msra.mxu0 %v12137_v62  ;;  %v12186_v62 = vld [vmem:[%s16193_s3 + $0xe0] ss:$12 sps:$4 sm:$0xff]   ;;  %v12183_v28 = vld [vmem:[%s16193_s3 + $0x168] ss:$12 sps:$4 sm:$0xff]  }
 0xbe0   :  { %6907 = vmatprep.subr.bf16.mxu1 %v12143_v48  ;;  %6986 = vmatprep.subr.bf16.mxu0 %v12146_v52  ;;  %v12190_v48 = vld [vmem:[%s16193_s3 + $0x154] ss:$12 sps:$4 sm:$0xff]  }
 0xbe1   :  { %v12187_v52 = vld [vmem:[%s16193_s3 + $0x20] ss:$12 sps:$4 sm:$0xff]  }
 0xbe2   :  { %6423 = vmatmul.mubr.bf16.vlgmr.msra.gmra.mxu1 %v14747_v10  ;;  %v12156_v10 = vld [vmem:[%s16193_s3 + $0x170] ss:$12 sps:$4 sm:$0xff]  }
 0xbe3   :  { %6430 = vmatprep.mubr.bf16.mxu1 %v14752_v32  ;;  %6908 = vmatpush1.bf16.msra.mxu1 %v12141_v24  ;;  %v12153_v32 = vld [vmem:[%s16193_s3 + $0x78] ss:$12 sps:$4 sm:$0xff]   ;;  %v12188_v24 = vld [vmem:[%s16193_s3 + $0x150] ss:$12 sps:$4 sm:$0xff]  }
 0xbe4   :  { %6987 = vmatpush2.bf16.msra.mxu0 %v12144_v18  ;;  %6909 = vmatprep.subr.bf16.mxu1 %v12149_v35  ;;  %v12192_v18 = vld [vmem:[%s16193_s3 + $0x8] ss:$12 sps:$4 sm:$0xff]   ;;  %v12198_v35 = vld [vmem:[%s16193_s3 + $0x58c] ss:$12 sps:$4 sm:$0xff]  }
 0xbe5   :  { %6988 = vmatprep.subr.bf16.mxu0 %v12152_v33  ;;  %v12193_v33 = vld [vmem:[%s16193_s3 + $0x138] ss:$12 sps:$4 sm:$0xff]  }
 0xbe7   :  { %6910 = vmatpush1.bf16.msra.mxu1 %v12147_v37  ;;  %v12201_v37 = vld [vmem:[%s16193_s3 + $0x124] ss:$12 sps:$4 sm:$0xff]  }
 0xbe8   :  { %6989 = vmatpush2.bf16.msra.mxu0 %v12150_v21  ;;  %6911 = vmatprep.subr.bf16.mxu1 %v12155_v45  ;;  %v12196_v21 = vld [vmem:[%s16193_s3 + $0x588] ss:$12 sps:$4 sm:$0xff]  }
 0xbe9   :  { %11264 = vmatprep.subr.bf16.mxu0 %v12156_v10  ;;  %v12204_v45 = vld [vmem:[%s16193_s3 + $0x574] ss:$12 sps:$4 sm:$0xff]   ;;  %v5585_v10 = vpack.c.bf16 %v14717_v46, %v14717_v46  ;;  %v12210_v46 = vld [vmem:[%s16193_s3 + $0x55c] ss:$12 sps:$4 sm:$0xff]  }
 0xbea   :  { %6431 = vmatmul.mubr.bf16.gmra.mxu1 %v14755_v51  ;;  %v12165_v51 = vld [vmem:[%s16193_s3 + $0x4c] ss:$12 sps:$4 sm:$0xff]  }
 0xbeb   :  { %6991 = vmatmul.mubr.bf16.vlgmr.msra.gmra.mxu0 %v14881_v56  ;;  %6912 = vmatpush1.bf16.msra.mxu1 %v12153_v32  ;;  %v12199_v32 = vld [vmem:[%s16193_s3 + $0x120] ss:$12 sps:$4 sm:$0xff]  }
 0xbec   :  { %6939 = vmatprep.mubr.bf16.mxu1 %v14722_v16  ;;  %10770 = vmatprep.mubr.msk.bf16.mxu0 %vm1430_vm4, %v15055_v22 }
 0xbed   :  { %11265 = vmatpush3.bf16.msra.mxu0 %v12157_v25  ;;  %6913 = vmatprep.subr.bf16.mxu1 %v12160_v54  ;;  %v12207_v25 = vld [vmem:[%s16193_s3 + $0x10c] ss:$12 sps:$4 sm:$0xff]   ;;  %v12202_v54 = vld [vmem:[%s16193_s3 + $0x570] ss:$12 sps:$4 sm:$0xff]  }
 0xbee   :  { %11266 = vmatprep.subr.bf16.mxu0 %v12161_v27  ;;  %v12205_v27 = vld [vmem:[%s16193_s3 + $0x108] ss:$12 sps:$4 sm:$0xff]  }
 0xbef   :  { %6914 = vmatpush1.bf16.msra.mxu1 %v12158_v19  ;;  %v7220_v19 = vrot.slane %v14722_v16, 1 }
 0xbf0   :  { %6915 = vmatprep.subr.bf16.mxu1 %v12165_v51  ;;  %v15187_v51 = vrot.slane %v14725_v29, 1  ;;  %v12211_v29 = vld [vmem:[%s16193_s3 + $0xf0] ss:$12 sps:$4 sm:$0xff]  }
 0xbf1   :  { %11267 = vmatpush3.bf16.msra.mxu0 %v12162_v42  ;;  %v12213_v42 = vld [vmem:[%s16193_s3 + $0xf4] ss:$12 sps:$4 sm:$0xff]  }
 0xbf2   :  { %11268 = vmatprep.subr.bf16.mxu0 %v12166_v20  ;;  %v12208_v20 = vld [vmem:[%s16193_s3 + $0x558] ss:$12 sps:$4 sm:$0xff]  }
 0xbf3   :  { %7001 = vmatmul.mubr.bf16.gmra.mxu0 %v15085_v44  ;;  %6916 = vmatpush1.bf16.msra.mxu1 %v12163_v26  ;;  %v5584_v26 = vpack.c.bf16 %v14712_v57, %v14712_v57  ;;  %v12219_v57 = vld [vmem:[%s16193_s3 + $0xdc] ss:$12 sps:$4 sm:$0xff]  }
 0xbf4   :  { %7041 = vmatprep.mubr.bf16.mxu0 %v14722_v16  ;;  %6917 = vmatprep.subr.bf16.mxu1 %v12170_v58  ;;  %v12216_v16 = vld [vmem:[%s16193_s3 + $0x544] ss:$12 sps:$4 sm:$0xff]   ;;  %v15205_v58 = vsel %vm425_vm3, %v7220_v19, %v15187_v51  ;;  %v12263_v19 = vld [vmem:[%s16193_s3 + $0x5bc] ss:$12 sps:$4 sm:$0xff]  }
 0xbf5   :  { %11269 = vmatpush3.bf16.msra.mxu0 %v12167_v61  ;;  %v12214_v61 = vld [vmem:[%s16193_s3 + $0x540] ss:$12 sps:$4 sm:$0xff]  }
 0xbf6   :  { %11270 = vmatprep.subr.bf16.mxu0 %v12171_v40  ;;  %v12222_v40 = vld [vmem:[%s16193_s3 + $0x52c] ss:$12 sps:$4 sm:$0xff]  }
 0xbf7   :  { %6918 = vmatpush1.bf16.msra.mxu1 %v12168_v17  ;;  %v12217_v17 = vld [vmem:[%s16193_s3 + $0xd8] ss:$12 sps:$4 sm:$0xff]  }
 0xbf8   :  { %6919 = vmatprep.subr.bf16.mxu1 %v12175_v31  ;;  %v12225_v31 = vld [vmem:[%s16193_s3 + $0xc4] ss:$12 sps:$4 sm:$0xff]  }
 0xbf9   :  { %11271 = vmatpush3.bf16.msra.mxu0 %v12172_v23  ;;  %v12220_v23 = vld [vmem:[%s16193_s3 + $0x528] ss:$12 sps:$4 sm:$0xff]  }
 0xbfa   :  { %11272 = vmatprep.subr.bf16.mxu0 %v12176_v39  ;;  %v12228_v39 = vld [vmem:[%s16193_s3 + $0x514] ss:$12 sps:$4 sm:$0xff]  }
 0xbfb   :  { %6920 = vmatpush1.bf16.msra.mxu1 %v12173_v60  ;;  %v12223_v60 = vld [vmem:[%s16193_s3 + $0xc0] ss:$12 sps:$4 sm:$0xff]  }
 0xbfc   :  { %6921 = vmatprep.subr.bf16.mxu1 %v12180_v36  ;;  %v12226_v36 = vld [vmem:[%s16193_s3 + $0x510] ss:$12 sps:$4 sm:$0xff]  }
 0xbfd   :  { %11273 = vmatpush3.bf16.msra.mxu0 %v12177_v9  ;;  %v12231_v9 = vld [vmem:[%s16193_s3 + $0x4fc] ss:$12 sps:$4 sm:$0xff]  }
 0xbfe   :  { %11274 = vmatprep.subr.bf16.mxu0 %v12181_v43  ;;  %v12232_v43 = vld [vmem:[%s16193_s3 + $0x230] ss:$12 sps:$4 sm:$0xff]  }
 0xbff   :  { %6922 = vmatpush1.bf16.msra.mxu1 %v12178_v15  ;;  %v12229_v15 = vld [vmem:[%s16193_s3 + $0x4f8] ss:$12 sps:$4 sm:$0xff]  }
 0xc00   :  { %6923 = vmatprep.subr.bf16.mxu1 %v12185_v14  ;;  %v12235_v14 = vld [vmem:[%s16193_s3 + $0x4e4] ss:$12 sps:$4 sm:$0xff]  }
 0xc01   :  { %11275 = vmatpush3.bf16.msra.mxu0 %v12182_v34  ;;  %v12236_v34 = vld [vmem:[%s16193_s3 + $0x218] ss:$12 sps:$4 sm:$0xff]  }
 0xc02   :  { %11276 = vmatprep.subr.bf16.mxu0 %v12186_v62  ;;  %v12233_v62 = vld [vmem:[%s16193_s3 + $0x4e0] ss:$12 sps:$4 sm:$0xff]  }
 0xc03   :  { %6924 = vmatpush2.bf16.msra.mxu1 %v12183_v28  ;;  %v12239_v28 = vld [vmem:[%s16193_s3 + $0x64c] ss:$12 sps:$4 sm:$0xff]  }
 0xc04   :  { %6925 = vmatprep.subr.bf16.mxu1 %v12190_v48  ;;  %v12240_v48 = vld [vmem:[%s16193_s3 + $0x200] ss:$12 sps:$4 sm:$0xff]  }
 0xc05   :  { %11277 = vmatpush3.bf16.msra.mxu0 %v12187_v52  ;;  %v12237_v52 = vld [vmem:[%s16193_s3 + $0x648] ss:$12 sps:$4 sm:$0xff]  }
 0xc06   :  { %11278 = vmatprep.subr.bf16.mxu0 %v12191_v30  ;;  %v12243_v30 = vld [vmem:[%s16193_s3 + $0x634] ss:$12 sps:$4 sm:$0xff]  }
 0xc07   :  { %6926 = vmatpush2.bf16.msra.mxu1 %v12188_v24  ;;  %v12244_v24 = vld [vmem:[%s16193_s3 + $0x1e8] ss:$12 sps:$4 sm:$0xff]  }
 0xc08   :  { %6927 = vmatprep.subr.bf16.mxu1 %v12195_v53  ;;  %v12241_v53 = vld [vmem:[%s16193_s3 + $0x630] ss:$12 sps:$4 sm:$0xff]  }
 0xc09   :  { %11279 = vmatpush3.bf16.msra.mxu0 %v12192_v18  ;;  %v12247_v18 = vld [vmem:[%s16193_s3 + $0x61c] ss:$12 sps:$4 sm:$0xff]  }
 0xc0a   :  { %7657 = vmatprep.subr.bf16.mxu0 %v12198_v35  ;;  %v12248_v35 = vld [vmem:[%s16193_s3 + $0x1d0] ss:$12 sps:$4 sm:$0xff]  }
 0xc0b   :  { %6928 = vmatpush2.bf16.msra.mxu1 %v12193_v33  ;;  %v12245_v33 = vld [vmem:[%s16193_s3 + $0x618] ss:$12 sps:$4 sm:$0xff]  }
 0xc0c   :  { %7042 = vmatmul.mubr.bf16.vlgmr.msra.gmra.mxu0 %v14733_v59  ;;  %6929 = vmatprep.subr.bf16.mxu1 %v12201_v37  ;;  %v12251_v37 = vld [vmem:[%s16193_s3 + $0x604] ss:$12 sps:$4 sm:$0xff]  }
 0xc0d   :  { %7049 = vmatprep.mubr.bf16.mxu0 %v5585_v10  ;;  %7658 = vmatpush1.bf16.msra.mxu0 %v12196_v21  ;;  %v12252_v21 = vld [vmem:[%s16193_s3 + $0x1b8] ss:$12 sps:$4 sm:$0xff]  }
 0xc0e   :  { %7659 = vmatprep.subr.bf16.mxu0 %v12204_v45  ;;  %v12249_v45 = vld [vmem:[%s16193_s3 + $0x600] ss:$12 sps:$4 sm:$0xff]  }
 0xc0f   :  { %6930 = vmatpush2.bf16.msra.mxu1 %v12199_v32  ;;  %v12256_v32 = vld [vmem:[%s16193_s3 + $0x1a0] ss:$12 sps:$4 sm:$0xff]  }
 0xc10   :  { %6931 = vmatprep.subr.bf16.mxu1 %v12207_v25  ;;  %v12253_v25 = vld [vmem:[%s16193_s3 + $0x5e8] ss:$12 sps:$4 sm:$0xff]  }
 0xc11   :  { %7660 = vmatpush1.bf16.msra.mxu0 %v12202_v54  ;;  %v12259_v54 = vld [vmem:[%s16193_s3 + $0x5d4] ss:$12 sps:$4 sm:$0xff]  }
 0xc12   :  { %7661 = vmatprep.subr.bf16.mxu0 %v12210_v46  ;;  %v12260_v46 = vld [vmem:[%s16193_s3 + $0x188] ss:$12 sps:$4 sm:$0xff]  }
 0xc13   :  { %6932 = vmatpush2.bf16.msra.mxu1 %v12205_v27  ;;  %v12257_v27 = vld [vmem:[%s16193_s3 + $0x5d0] ss:$12 sps:$4 sm:$0xff]  }
 0xc14   :  { %7050 = vmatmul.mubr.bf16.gmra.mxu0 %v5584_v26  ;;  %6933 = vmatprep.subr.bf16.mxu1 %v12213_v42  ;;  %v12264_v42 = vld [vmem:[%s16193_s3 + $0x260] ss:$12 sps:$4 sm:$0xff]  }
 0xc15   :  { %7662 = vmatpush1.bf16.msra.mxu0 %v12208_v20  ;;  %7689 = vmatprep.mubr.bf16.mxu0 %v15205_v58  ;;  %v12261_v20 = vld [vmem:[%s16193_s3 + $0x5b8] ss:$12 sps:$4 sm:$0xff]  }
 0xc16   :  { %7663 = vmatprep.subr.bf16.mxu0 %v12216_v16  ;;  %v12268_v16 = vld [vmem:[%s16193_s3 + $0x248] ss:$12 sps:$4 sm:$0xff]  }
 0xc17   :  { %6934 = vmatpush2.bf16.msra.mxu1 %v12211_v29  ;;  %v12271_v29 = vld [vmem:[%s16193_s3 + $0x70c] ss:$12 sps:$4 sm:$0xff]  }
 0xc18   :  { %6935 = vmatprep.subr.bf16.mxu1 %v12219_v57  ;;  %v12265_v57 = vld [vmem:[%s16193_s3 + $0x5a0] ss:$12 sps:$4 sm:$0xff]  }
 0xc19   :  { %7664 = vmatpush1.bf16.msra.mxu0 %v12214_v61  ;;  %v15342_v61 = vrot.slane %v14720_v49, 1 }
 0xc1a   :  { %7665 = vmatprep.subr.bf16.mxu0 %v12222_v40  ;;  %v7217_v40 = vrot.slane %v14733_v59, 1 }
 0xc1b   :  { %6936 = vmatpush2.bf16.msra.mxu1 %v12217_v17  ;;  %v12269_v17 = vld [vmem:[%s16193_s3 + $0x708] ss:$12 sps:$4 sm:$0xff]  }
 0xc1c   :  { %6937 = vmatprep.subr.bf16.mxu1 %v12225_v31  ;;  %v12275_v31 = vld [vmem:[%s16193_s3 + $0x6f4] ss:$12 sps:$4 sm:$0xff]   ;;  %v15358_v49 = vsel %vm425_vm3, %v7217_v40, %v15342_v61  ;;  %v12318_v40 = vld [vmem:[%s16193_s3 + $0x530] ss:$12 sps:$4 sm:$0xff]  }
 0xc1d   :  { %7666 = vmatpush1.bf16.msra.mxu0 %v12220_v23  ;;  %v12272_v23 = vld [vmem:[%s16193_s3 + $0x710] ss:$12 sps:$4 sm:$0xff]  }
 0xc1e   :  { %7667 = vmatprep.subr.bf16.mxu0 %v12228_v39  ;;  %v12279_v39 = vld [vmem:[%s16193_s3 + $0x6dc] ss:$12 sps:$4 sm:$0xff]  }
 0xc1f   :  { %6938 = vmatpush2.bf16.msra.mxu1 %v12223_v60  ;;  %v12276_v60 = vld [vmem:[%s16193_s3 + $0x6f8] ss:$12 sps:$4 sm:$0xff]  }
 0xc20   :  { %7057 = vmatprep.subr.bf16.mxu1 %v12515_v3 }
 0xc21   :  { %7668 = vmatpush1.bf16.msra.mxu0 %v12226_v36  ;;  %v12277_v36 = vld [vmem:[%s16193_s3 + $0x6d8] ss:$12 sps:$4 sm:$0xff]  }
 0xc22   :  { %6940 = vmatmul.mubr.bf16.vlgmr.msra.gmra.mxu1 %v14733_v59  ;;  %7669 = vmatprep.subr.bf16.mxu0 %v12231_v9  ;;  %v12273_v59 = vld [vmem:[%s16193_s3 + $0x6f0] ss:$12 sps:$4 sm:$0xff]   ;;  %v7226_v9 = vrot.slane %v14879_v41, 1 }
 0xc23   :  { %6949 = vmatprep.mubr.bf16.mxu1 %v5585_v10  ;;  %7058 = vmatpush1.bf16.msra.mxu1 %v12232_v43  ;;  %v12255_v10 = vld [vmem:[%s16193_s3 + $0x5ec] ss:$12 sps:$4 sm:$0xff]   ;;  %v12283_v43 = vld [vmem:[%s16193_s3 + $0x6c4] ss:$12 sps:$4 sm:$0xff]  }
 0xc24   :  { %7059 = vmatprep.subr.bf16.mxu1 %v12515_v3 }
 0xc25   :  { %7670 = vmatpush1.bf16.msra.mxu0 %v12229_v15  ;;  %v12280_v15 = vld [vmem:[%s16193_s3 + $0x6e0] ss:$12 sps:$4 sm:$0xff]  }
 0xc26   :  { %7671 = vmatprep.subr.bf16.mxu0 %v12235_v14  ;;  %v12287_v14 = vld [vmem:[%s16193_s3 + $0x6ac] ss:$12 sps:$4 sm:$0xff]  }
 0xc27   :  { %7060 = vmatpush1.bf16.msra.mxu1 %v12236_v34  ;;  %v12285_v34 = vld [vmem:[%s16193_s3 + $0x6a8] ss:$12 sps:$4 sm:$0xff]  }
 0xc28   :  { %7061 = vmatprep.subr.bf16.mxu1 %v12515_v3 }
 0xc29   :  { %7672 = vmatpush1.bf16.msra.mxu0 %v12233_v62  ;;  %v12291_v62 = vld [vmem:[%s16193_s3 + $0x694] ss:$12 sps:$4 sm:$0xff]  }
 0xc2a   :  { %6950 = vmatmul.mubr.bf16.gmra.mxu1 %v5584_v26  ;;  %7673 = vmatprep.subr.bf16.mxu0 %v12239_v28  ;;  %v12267_v26 = vld [vmem:[%s16193_s3 + $0x5a4] ss:$12 sps:$4 sm:$0xff]  }
 0xc2b   :  { %7062 = vmatpush1.bf16.msra.mxu1 %v12240_v48  ;;  %10771 = vmatprep.mubr.msk.bf16.mxu1 %vm1430_vm4, %v14879_v41  ;;  %v12281_v41 = vld [vmem:[%s16193_s3 + $0x6c0] ss:$12 sps:$4 sm:$0xff]   ;;  %v12288_v28 = vld [vmem:[%s16193_s3 + $0x6b0] ss:$12 sps:$4 sm:$0xff]  }
 0xc2c   :  { %7063 = vmatprep.subr.bf16.mxu1 %v12515_v3  ;;  %v12289_v48 = vld [vmem:[%s16193_s3 + $0x690] ss:$12 sps:$4 sm:$0xff]  }
 0xc2d   :  { %7674 = vmatpush2.bf16.msra.mxu0 %v12237_v52  ;;  %v12295_v52 = vld [vmem:[%s16193_s3 + $0x67c] ss:$12 sps:$4 sm:$0xff]  }
 0xc2e   :  { %7675 = vmatprep.subr.bf16.mxu0 %v12243_v30  ;;  %v12292_v30 = vld [vmem:[%s16193_s3 + $0x698] ss:$12 sps:$4 sm:$0xff]  }
 0xc2f   :  { %7064 = vmatpush1.bf16.msra.mxu1 %v12244_v24  ;;  %v12293_v24 = vld [vmem:[%s16193_s3 + $0x678] ss:$12 sps:$4 sm:$0xff]  }
 0xc30   :  { %7065 = vmatprep.subr.bf16.mxu1 %v12515_v3 }
 0xc31   :  { %7676 = vmatpush2.bf16.msra.mxu0 %v12241_v53  ;;  %v12299_v53 = vld [vmem:[%s16193_s3 + $0x664] ss:$12 sps:$4 sm:$0xff]  }
 0xc32   :  { %7677 = vmatprep.subr.bf16.mxu0 %v12247_v18  ;;  %v12296_v18 = vld [vmem:[%s16193_s3 + $0x680] ss:$12 sps:$4 sm:$0xff]  }
 0xc33   :  { %7066 = vmatpush1.bf16.msra.mxu1 %v12248_v35  ;;  %v12297_v35 = vld [vmem:[%s16193_s3 + $0x660] ss:$12 sps:$4 sm:$0xff]  }
 0xc34   :  { %7067 = vmatprep.subr.bf16.mxu1 %v12515_v3 }
 0xc35   :  { %7678 = vmatpush2.bf16.msra.mxu0 %v12245_v33  ;;  %v12303_v33 = vld [vmem:[%s16193_s3 + $0x73c] ss:$12 sps:$4 sm:$0xff]  }
 0xc36   :  { %7679 = vmatprep.subr.bf16.mxu0 %v12251_v37  ;;  %v12300_v37 = vld [vmem:[%s16193_s3 + $0x668] ss:$12 sps:$4 sm:$0xff]  }
 0xc37   :  { %7068 = vmatpush1.bf16.msra.mxu1 %v12252_v21  ;;  %v12301_v21 = vld [vmem:[%s16193_s3 + $0x738] ss:$12 sps:$4 sm:$0xff]  }
 0xc38   :  { %7069 = vmatprep.subr.bf16.mxu1 %v12515_v3 }
 0xc39   :  { %7680 = vmatpush2.bf16.msra.mxu0 %v12249_v45  ;;  %v12307_v45 = vld [vmem:[%s16193_s3 + $0x724] ss:$12 sps:$4 sm:$0xff]  }
 0xc3a   :  { %7681 = vmatprep.subr.bf16.mxu0 %v12255_v10  ;;  %v12304_v10 = vld [vmem:[%s16193_s3 + $0x740] ss:$12 sps:$4 sm:$0xff]  }
 0xc3b   :  { %7070 = vmatpush1.bf16.msra.mxu1 %v12256_v32  ;;  %v12305_v32 = vld [vmem:[%s16193_s3 + $0x720] ss:$12 sps:$4 sm:$0xff]  }
 0xc3c   :  { %7071 = vmatprep.subr.bf16.mxu1 %v12515_v3 }
 0xc3d   :  { %7682 = vmatpush2.bf16.msra.mxu0 %v12253_v25  ;;  %v12309_v25 = vld [vmem:[%s16193_s3 + $0x650] ss:$12 sps:$4 sm:$0xff]  }
 0xc3e   :  { %7683 = vmatprep.subr.bf16.mxu0 %v12259_v54  ;;  %v7224_v54 = vrot.slane %v14890_v4, 1 }
 0xc3f   :  { %7072 = vmatpush1.bf16.msra.mxu1 %v12260_v46  ;;  %v12308_v46 = vld [vmem:[%s16193_s3 + $0x728] ss:$12 sps:$4 sm:$0xff]  }
 0xc40   :  { %7085 = vmatprep.subr.bf16.mxu1 %v12515_v3 }
 0xc41   :  { %7684 = vmatpush2.bf16.msra.mxu0 %v12257_v27  ;;  %v7223_v27 = vrot.slane %v14881_v56, 1 }
 0xc42   :  { %7685 = vmatprep.subr.bf16.mxu0 %v12263_v19  ;;  %v12310_v19 = vld [vmem:[%s16193_s3 + $0x590] ss:$12 sps:$4 sm:$0xff]  }
 0xc43   :  { %7086 = vmatpush2.bf16.msra.mxu1 %v12264_v42  ;;  %v12311_v42 = vld [vmem:[%s16193_s3 + $0x638] ss:$12 sps:$4 sm:$0xff]   ;;  %v7225_v4 = vsel %vm425_vm3, %v7223_v27, %v7224_v54 }
 0xc44   :  { %7087 = vmatprep.subr.bf16.mxu1 %v12515_v3 }
 0xc45   :  { %7686 = vmatpush2.bf16.msra.mxu0 %v12261_v20  ;;  %v12313_v20 = vld [vmem:[%s16193_s3 + $0x620] ss:$12 sps:$4 sm:$0xff]  }
 0xc46   :  { %7687 = vmatprep.subr.bf16.mxu0 %v12267_v26  ;;  %v12314_v26 = vld [vmem:[%s16193_s3 + $0x560] ss:$12 sps:$4 sm:$0xff]  }
 0xc47   :  { %7088 = vmatpush2.bf16.msra.mxu1 %v12268_v16  ;;  %v12315_v16 = vld [vmem:[%s16193_s3 + $0x608] ss:$12 sps:$4 sm:$0xff]  }
 0xc48   :  { %7708 = vmatprep.subr.bf16.mxu1 %v12271_v29  ;;  %v12316_v29 = vld [vmem:[%s16193_s3 + $0x548] ss:$12 sps:$4 sm:$0xff]  }
 0xc49   :  { %7688 = vmatpush2.bf16.msra.mxu0 %v12265_v57  ;;  %v12317_v57 = vld [vmem:[%s16193_s3 + $0x5f0] ss:$12 sps:$4 sm:$0xff]  }
 0xc4a   :  { %7090 = vmatmul.mubr.bf16.vlgmr.msra.gmra.mxu1 %v14881_v56  ;;  %7807 = vmatprep.subr.bf16.mxu0 %v12515_v3  ;;  %v12312_v56 = vld [vmem:[%s16193_s3 + $0x578] ss:$12 sps:$4 sm:$0xff]  }
 0xc4b   :  { %10772 = vmatprep.mubr.msk.bf16.mxu1 %vm1430_vm4, %v15055_v22  ;;  %7709 = vmatpush1.bf16.msra.mxu1 %v12269_v17  ;;  %v15375_v22 = vrot.slane %v14893_v2, 1 }
 0xc4c   :  { %7690 = vmatmul.mubr.bf16.vlgmr.msra.gmra.mxu0 %v15358_v49  ;;  %7710 = vmatprep.subr.bf16.mxu1 %v12275_v31 }
 0xc4d   :  { %7699 = vmatprep.mubr.bf16.mxu0 %v15187_v51  ;;  %7808 = vmatpush1.bf16.msra.mxu0 %v12272_v23  ;;  %v7228_v2 = vsel %vm425_vm3, %v7226_v9, %v15375_v22  ;;  %v12320_v23 = vld [vmem:[%s16193_s3 + $0x518] ss:$12 sps:$4 sm:$0xff]   ;;  %v12322_v9 = vld [vmem:[%s16193_s3 + $0x500] ss:$12 sps:$4 sm:$0xff]  }
 0xc4e   :  { %7809 = vmatprep.subr.bf16.mxu0 %v12515_v3 }
 0xc4f   :  { %7711 = vmatpush1.bf16.msra.mxu1 %v12273_v59 }
 0xc50   :  { %7712 = vmatprep.subr.bf16.mxu1 %v12279_v39 }
 0xc51   :  { %7810 = vmatpush1.bf16.msra.mxu0 %v12276_v60  ;;  %v12321_v60 = vld [vmem:[%s16193_s3 + $0x5c0] ss:$12 sps:$4 sm:$0xff]  }
 0xc52   :  { %7098 = vmatmul.mubr.bf16.gmra.mxu1 %v15085_v44  ;;  %7811 = vmatprep.subr.bf16.mxu0 %v12515_v3  ;;  %v12284_v44 = vld [vmem:[%s16193_s3 + $0x6c8] ss:$12 sps:$4 sm:$0xff]  }
 0xc53   :  { %7713 = vmatpush1.bf16.msra.mxu1 %v12277_v36  ;;  %10955 = vmatprep.mubr.msk.bf16.mxu1 %vm1430_vm4, %v7228_v2 }
 0xc54   :  { %7700 = vmatmul.mubr.bf16.gmra.mxu0 %v15342_v61  ;;  %7714 = vmatprep.subr.bf16.mxu1 %v12283_v43 }
 0xc55   :  { %7812 = vmatpush1.bf16.msra.mxu0 %v12280_v15  ;;  %10957 = vmatprep.mubr.msk.bf16.mxu0 %vm1430_vm4, %v7228_v2  ;;  %v12323_v2 = vld [vmem:[%s16193_s3 + $0x5a8] ss:$12 sps:$4 sm:$0xff]  }
 0xc56   :  { %7813 = vmatprep.subr.bf16.mxu0 %v12515_v3 }
 0xc57   :  { %7715 = vmatpush1.bf16.msra.mxu1 %v12281_v41 }
 0xc58   :  { %7716 = vmatprep.subr.bf16.mxu1 %v12287_v14 }
 0xc59   :  { %7814 = vmatpush1.bf16.msra.mxu0 %v12284_v44  ;;  %v12324_v44 = vld [vmem:[%s16193_s3 + $0x4e8] ss:$12 sps:$4 sm:$0xff]  }
 0xc5a   :  { %7815 = vmatprep.subr.bf16.mxu0 %v12515_v3 }
 0xc5b   :  { %7717 = vmatpush1.bf16.msra.mxu1 %v12285_v34 }
 0xc5c   :  { %7718 = vmatprep.subr.bf16.mxu1 %v12291_v62 }
 0xc5d   :  { %7816 = vmatpush1.bf16.msra.mxu0 %v12288_v28  ;;  %v12327_v28 = vld [vmem:[%s16195_s5 + $0x74] ss:$8 sps:$4 sm:$0xff]  }
 0xc5e   :  { %7817 = vmatprep.subr.bf16.mxu0 %v12515_v3 }
 0xc5f   :  { %7719 = vmatpush1.bf16.msra.mxu1 %v12289_v48 }
 0xc60   :  { %7720 = vmatprep.subr.bf16.mxu1 %v12295_v52 }
 0xc61   :  { %7818 = vmatpush1.bf16.msra.mxu0 %v12292_v30  ;;  %v12325_v30 = vld [vmem:[%s16195_s5 + $0x70] ss:$8 sps:$4 sm:$0xff]  }
 0xc62   :  { %7819 = vmatprep.subr.bf16.mxu0 %v12515_v3 }
 0xc63   :  { %7721 = vmatpush1.bf16.msra.mxu1 %v12293_v24 }
 0xc64   :  { %7722 = vmatprep.subr.bf16.mxu1 %v12299_v53 }
 0xc65   :  { %7820 = vmatpush1.bf16.msra.mxu0 %v12296_v18  ;;  %v12330_v18 = vld [vmem:[%s16195_s5 + $0x64] ss:$8 sps:$4 sm:$0xff]  }
 0xc66   :  { %7821 = vmatprep.subr.bf16.mxu0 %v12515_v3 }
 0xc67   :  { %7723 = vmatpush1.bf16.msra.mxu1 %v12297_v35  ;;  %v12328_v35 = vld [vmem:[%s16195_s5 + $0x60] ss:$8 sps:$4 sm:$0xff]  }
 0xc68   :  { %7736 = vmatprep.subr.bf16.mxu1 %v12303_v33  ;;  %v12333_v33 = vld [vmem:[%s16195_s5 + $0x54] ss:$8 sps:$4 sm:$0xff]  }
 0xc69   :  { %7822 = vmatpush1.bf16.msra.mxu0 %v12300_v37  ;;  %v12331_v37 = vld [vmem:[%s16195_s5 + $0x50] ss:$8 sps:$4 sm:$0xff]  }
 0xc6a   :  { %7835 = vmatprep.subr.bf16.mxu0 %v12515_v3 }
 0xc6b   :  { %7737 = vmatpush2.bf16.msra.mxu1 %v12301_v21  ;;  %v12339_v21 = vld [vmem:[%s16195_s5 + $0x34] ss:$8 sps:$4 sm:$0xff]  }
 0xc6c   :  { %7738 = vmatprep.subr.bf16.mxu1 %v12307_v45  ;;  %v12337_v45 = vld [vmem:[%s16195_s5 + $0x30] ss:$8 sps:$4 sm:$0xff]  }
 0xc6d   :  { %7836 = vmatpush2.bf16.msra.mxu0 %v12304_v10 }
 0xc6e   :  { %7837 = vmatprep.subr.bf16.mxu0 %v12515_v3 }
 0xc6f   :  { %7739 = vmatpush2.bf16.msra.mxu1 %v12305_v32  ;;  %v12340_v32 = vld [vmem:[%s16195_s5 + $0x20] ss:$8 sps:$4 sm:$0xff]  }
 0xc70   :  { %11292 = vmatprep.subr.bf16.mxu1 %v12309_v25 }
 0xc71   :  { %7838 = vmatpush2.bf16.msra.mxu0 %v12308_v46 }
 0xc72   :  { %7741 = vmatmul.mubr.bf16.vlgmr.msra.gmra.mxu1 %v7225_v4 }
 0xc73   :  { %10956 = vmatprep.mubr.msk.bf16.mxu1 %vm1430_vm4, %v15375_v22  ;;  %11293 = vmatpush3.bf16.msra.mxu1 %v12310_v19 }
 0xc74   :  { %7840 = vmatmul.mubr.bf16.vlgmr.msra.gmra.mxu0 %v7225_v4  ;;  %11294 = vmatprep.subr.bf16.mxu1 %v12311_v42  ;;  %v12343_v42 = vld [vmem:[%s16195_s5 + $0x10] ss:$8 sps:$4 sm:$0xff]  }
 0xc75   :  { %10958 = vmatprep.mubr.msk.bf16.mxu0 %vm1430_vm4, %v15375_v22 }
 0xc77   :  { %11295 = vmatpush3.bf16.msra.mxu1 %v12312_v56  ;;  %v12348_v56 = vld [vmem:[%s16195_s5 + $0x4] ss:$8 sps:$4 sm:$0xff]  }
 0xc78   :  { %11296 = vmatprep.subr.bf16.mxu1 %v12313_v20 }
 0xc7a   :  { %7751 = vmatmul.mubr.bf16.gmra.mxu1 %v7224_v54 }
 0xc7b   :  { %11297 = vmatpush3.bf16.msra.mxu1 %v12314_v26  ;;  %7791 = vmatprep.mubr.bf16.mxu1 %v15205_v58  ;;  %v12319_v58 = vld [vmem:[%s16193_s3 + $0x5d8] ss:$12 sps:$4 sm:$0xff]  }
 0xc7c   :  { %7848 = vmatmul.mubr.bf16.gmra.mxu0 %v7224_v54  ;;  %11298 = vmatprep.subr.bf16.mxu1 %v12315_v16  ;;  %v12345_v54 = vld [vmem:[%s16195_s5 + $0x14] ss:$8 sps:$4 sm:$0xff]  }
 0xc7d   :  { %8324 = vmatprep.mubr.bf16.mxu0 %v12515_v3 }
 0xc7f   :  { %11299 = vmatpush3.bf16.msra.mxu1 %v12316_v29 }
 0xc80   :  { %11300 = vmatprep.subr.bf16.mxu1 %v12317_v57  ;;  %v12346_v57 = vld [vmem:[%s16195_s5] ss:$8 sps:$4 sm:$0xff]  }
 0xc82   :  { %v15503_v17 = vpop.f32.mrf.mxu1  ;;  %v6472_v31 = vpop.f32.mrf.mxu0 }
 0xc83   :  { %11301 = vmatpush3.bf16.msra.mxu1 %v12318_v40 }
 0xc84   :  { %v15508_v59 = vpop.f32.mrf.mxu1  ;;  %v6474_v39 = vpop.f32.mrf.mxu0  ;;  %11302 = vmatprep.subr.bf16.mxu1 %v12319_v58  ;;  %v12351_v58 = vld [vmem:[%s16195_s5 + $0xf4] ss:$8 sps:$4 sm:$0xff]  }
 0xc86   :  { %v15513_v22 = vpop.f32.mrf.mxu1  ;;  %v6475_v36 = vpop.f32.mrf.mxu0 }
 0xc87   :  { %11303 = vmatpush3.bf16.msra.mxu1 %v12320_v23 }
 0xc88   :  { %v15518_v43 = vpop.f32.mrf.mxu1  ;;  %v6477_v15 = vpop.f32.mrf.mxu0  ;;  %11304 = vmatprep.subr.bf16.mxu1 %v12321_v60 }
 0xc8a   :  { %v15523_v41 = vpop.f32.mrf.mxu1  ;;  %v6480_v14 = vpop.f32.mrf.mxu0 }
 0xc8b   :  { %11305 = vmatpush3.bf16.msra.mxu1 %v12322_v9  ;;  %v12349_v9 = vld [vmem:[%s16195_s5 + $0xf0] ss:$8 sps:$4 sm:$0xff]  }
 0xc8c   :  { %v15528_v34 = vpop.f32.mrf.mxu1  ;;  %v6482_v62 = vpop.f32.mrf.mxu0  ;;  %11306 = vmatprep.subr.bf16.mxu1 %v12323_v2  ;;  %v12354_v2 = vld [vmem:[%s16195_s5 + $0xe4] ss:$8 sps:$4 sm:$0xff]  }
 0xc8e   :  { %v6387_v48 = vpop.f32.mrf.mxu1  ;;  %v6483_v52 = vpop.f32.mrf.mxu0 }
 0xc8f   :  { %11307 = vmatpush3.bf16.msra.mxu1 %v12324_v44 }
 0xc90   :  { %v6388_v24 = vpop.f32.mrf.mxu1  ;;  %v6484_v53 = vpop.f32.mrf.mxu0  ;;  %8241 = vmatprep.subr.bf16.mxu1 %v12327_v28  ;;  %v12357_v28 = vld [vmem:[%s16195_s5 + $0xd4] ss:$8 sps:$4 sm:$0xff]  }
 0xc91   :  { %v12360_v24 = vld [vmem:[%s16195_s5 + $0xc4] ss:$8 sps:$4 sm:$0xff]  }
 0xc92   :  { %7792 = vmatmul.mubr.bf16.vlgmr.msra.gmra.mxu1 %v15358_v49  ;;  %v12334_v49 = vld [vmem:[%s16195_s5 + $0x40] ss:$8 sps:$4 sm:$0xff]  }
 0xc93   :  { %7799 = vmatprep.mubr.bf16.mxu1 %v15187_v51  ;;  %8242 = vmatpush1.bf16.msra.mxu1 %v12325_v30  ;;  %v12336_v51 = vld [vmem:[%s16195_s5 + $0x44] ss:$8 sps:$4 sm:$0xff]   ;;  %v12355_v30 = vld [vmem:[%s16195_s5 + $0xd0] ss:$8 sps:$4 sm:$0xff]  }
 0xc94   :  { %8243 = vmatprep.subr.bf16.mxu1 %v12330_v18  ;;  %v12358_v18 = vld [vmem:[%s16195_s5 + $0xc0] ss:$8 sps:$4 sm:$0xff]  }
 0xc97   :  { %8244 = vmatpush1.bf16.msra.mxu1 %v12328_v35  ;;  %v12363_v35 = vld [vmem:[%s16195_s5 + $0xb4] ss:$8 sps:$4 sm:$0xff]  }
 0xc98   :  { %8245 = vmatprep.subr.bf16.mxu1 %v12333_v33  ;;  %v12361_v33 = vld [vmem:[%s16195_s5 + $0xb0] ss:$8 sps:$4 sm:$0xff]  }
 0xc9a   :  { %7800 = vmatmul.mubr.bf16.gmra.mxu1 %v15342_v61  ;;  %v12342_v61 = vld [vmem:[%s16195_s5 + $0x24] ss:$8 sps:$4 sm:$0xff]  }
 0xc9b   :  { %8246 = vmatpush1.bf16.msra.mxu1 %v12331_v37  ;;  %v12366_v37 = vld [vmem:[%s16195_s5 + $0xa4] ss:$8 sps:$4 sm:$0xff]  }
 0xc9c   :  { %8247 = vmatprep.subr.bf16.mxu1 %v12336_v51  ;;  %v12364_v51 = vld [vmem:[%s16195_s5 + $0xa0] ss:$8 sps:$4 sm:$0xff]  }
 0xc9f   :  { %8248 = vmatpush1.bf16.msra.mxu1 %v12334_v49  ;;  %v12369_v49 = vld [vmem:[%s16195_s5 + $0x94] ss:$8 sps:$4 sm:$0xff]  }
 0xca0   :  { %8249 = vmatprep.subr.bf16.mxu1 %v12339_v21  ;;  %v12373_v21 = vld [vmem:[%s16195_s5 + $0x170] ss:$8 sps:$4 sm:$0xff]  }
 0xca2   :  { %v11252_v10 = vpop.f32.mrf.mxu1 }
 0xca3   :  { %8250 = vmatpush1.bf16.msra.mxu1 %v12337_v45  ;;  %v12375_v45 = vld [vmem:[%s16195_s5 + $0x174] ss:$8 sps:$4 sm:$0xff]  }
 0xca4   :  { %v11253_v25 = vpop.f32.mrf.mxu1  ;;  %8251 = vmatprep.subr.bf16.mxu1 %v12342_v61  ;;  %v12367_v61 = vld [vmem:[%s16195_s5 + $0x90] ss:$8 sps:$4 sm:$0xff]   ;;  %8292 = vmatprep.subr.bf16.mxu0 %v12375_v45  ;;  %v12394_v45 = vld [vmem:[%s16195_s5 + $0x100] ss:$8 sps:$4 sm:$0xff]  }
 0xca5   :  { %v11254_v46 = vadd.f32 %v11253_v25, %v11252_v10  ;;  %v12372_v10 = vld [vmem:[%s16195_s5 + $0x84] ss:$8 sps:$4 sm:$0xff]   ;;  %8293 = vmatpush1.bf16.msra.mxu0 %v12373_v21 }
 0xca6   :  { %v11255_v27 = vpop.f32.mrf.mxu1  ;;  %v12378_v25 = vld [vmem:[%s16195_s5 + $0x164] ss:$8 sps:$4 sm:$0xff]  }
 0xca7   :  { %v15572_v19 = vadd.f32 %v11254_v46, %v6472_v31  ;;  %8252 = vmatpush1.bf16.msra.mxu1 %v12340_v32  ;;  %v12376_v32 = vld [vmem:[%s16195_s5 + $0x160] ss:$8 sps:$4 sm:$0xff]   ;;  %8294 = vmatprep.subr.bf16.mxu0 %v12378_v25 }
 0xca8   :  { %v11256_v4 = vpop.f32.mrf.mxu1  ;;  %8253 = vmatprep.subr.bf16.mxu1 %v12345_v54  ;;  %v12370_v54 = vld [vmem:[%s16195_s5 + $0x80] ss:$8 sps:$4 sm:$0xff]  }
 0xca9   :  { %v11257_v20 = vadd.f32 %v11256_v4, %v11255_v27  ;;  %8295 = vmatpush1.bf16.msra.mxu0 %v12376_v32  ;;  %v12381_v4 = vld [vmem:[%s16195_s5 + $0x154] ss:$8 sps:$4 sm:$0xff]  }
 0xcaa   :  { %v11258_v26 = vpop.f32.mrf.mxu1  ;;  %8296 = vmatprep.subr.bf16.mxu0 %v12381_v4 }
 0xcab   :  { %v15580_v16 = vadd.f32 %v11257_v20, %v6475_v36  ;;  %v15582_v29 = vpop.f32.mrf.mxu0  ;;  %8254 = vmatpush1.bf16.msra.mxu1 %v12343_v42  ;;  %v12379_v42 = vld [vmem:[%s16195_s5 + $0x150] ss:$8 sps:$4 sm:$0xff]  }
 0xcac   :  { %v11259_v40 = vpop.f32.mrf.mxu1  ;;  %8255 = vmatprep.subr.bf16.mxu1 %v12348_v56 }
 0xcad   :  { %v11260_v31 = vadd.f32 %v11259_v40, %v11258_v26  ;;  %v15590_v23 = vpop.f32.mrf.mxu0  ;;  %8297 = vmatpush1.bf16.msra.mxu0 %v12379_v42  ;;  %v12382_v40 = vld [vmem:[%s16195_s5 + $0x140] ss:$8 sps:$4 sm:$0xff]  }
 0xcae   :  { %v11261_v39 = vpop.f32.mrf.mxu1 }
 0xcaf   :  { %v15592_v60 = vadd.f32 %v11260_v31, %v6480_v14  ;;  %v15594_v36 = vpop.f32.mrf.mxu0  ;;  %8256 = vmatpush1.bf16.msra.mxu1 %v12346_v57  ;;  %v12352_v14 = vld [vmem:[%s16195_s5 + $0xe0] ss:$8 sps:$4 sm:$0xff]  }
 0xcb0   :  { %v11262_v15 = vpop.f32.mrf.mxu1  ;;  %8257 = vmatprep.subr.bf16.mxu1 %v12351_v58  ;;  %v12384_v58 = vld [vmem:[%s16195_s5 + $0x144] ss:$8 sps:$4 sm:$0xff]  }
 0xcb1   :  { %v15602_v44 = vpop.f32.mrf.mxu0  ;;  %8298 = vmatprep.subr.bf16.mxu0 %v12384_v58 }
 0xcb2   :  { %8299 = vmatpush1.bf16.msra.mxu0 %v12382_v40 }
 0xcb3   :  { %v15604_v62 = vpop.f32.mrf.mxu0  ;;  %8258 = vmatpush2.bf16.msra.mxu1 %v12349_v9 }
 0xcb4   :  { %8259 = vmatprep.subr.bf16.mxu1 %v12354_v2 }
 0xcb5   :  { %v15612_v48 = vpop.f32.mrf.mxu0 }
 0xcb7   :  { %v7006_v52 = vpop.f32.mrf.mxu0  ;;  %8260 = vmatpush2.bf16.msra.mxu1 %v12352_v14 }
 0xcb8   :  { %8261 = vmatprep.subr.bf16.mxu1 %v12357_v28  ;;  %v12387_v52 = vld [vmem:[%s16195_s5 + $0x134] ss:$8 sps:$4 sm:$0xff]  }
 0xcb9   :  { %v7007_v53 = vpop.f32.mrf.mxu0  ;;  %8300 = vmatprep.subr.bf16.mxu0 %v12387_v52  ;;  %v15728_v52 = vld [vmem:[%s16194_s4] sm:$0x3f] }
 0xcbb   :  { %8262 = vmatpush2.bf16.msra.mxu1 %v12355_v30  ;;  %v12385_v30 = vld [vmem:[%s16195_s5 + $0x130] ss:$8 sps:$4 sm:$0xff]  }
 0xcbc   :  { %8263 = vmatprep.subr.bf16.mxu1 %v12360_v24  ;;  %8301 = vmatpush1.bf16.msra.mxu0 %v12385_v30  ;;  %v12390_v24 = vld [vmem:[%s16195_s5 + $0x124] ss:$8 sps:$4 sm:$0xff]   ;;  %v7878_v30 = vrot.slane %v15728_v52, %v12935_v5 }
 0xcbd   :  { %8302 = vmatprep.subr.bf16.mxu0 %v12390_v24 }
 0xcbf   :  { %8264 = vmatpush2.bf16.msra.mxu1 %v12358_v18  ;;  %v6376_v18 = vadd.f32 %v15508_v59, %v14978_v47  ;;  %v12396_v47 = vld [vmem:[%s16195_s5 + $0x104] ss:$8 sps:$4 sm:$0xff]   ;;  %v6380_v59 = vadd.f32 %v15518_v43, %v14994_v38  ;;  %v6386_v38 = vadd.f32 %v15528_v34, %v15010_v1 }
 0xcc0   :  { %8265 = vmatprep.subr.bf16.mxu1 %v12363_v35 }
 0xcc3   :  { %8266 = vmatpush2.bf16.msra.mxu1 %v12361_v33 }
 0xcc4   :  { %8267 = vmatprep.subr.bf16.mxu1 %v12366_v37  ;;  %v6378_v37 = vadd.f32 %v15513_v22, %v14986_v0 }
 0xcc7   :  { %8268 = vmatpush2.bf16.msra.mxu1 %v12364_v51  ;;  %v12391_v51 = vld [vmem:[%s16195_s5 + $0x110] ss:$8 sps:$4 sm:$0xff]  }
 0xcc8   :  { %8269 = vmatprep.subr.bf16.mxu1 %v12369_v49  ;;  %v12393_v49 = vld [vmem:[%s16195_s5 + $0x114] ss:$8 sps:$4 sm:$0xff]  }
 0xccb   :  { %8270 = vmatpush2.bf16.msra.mxu1 %v12367_v61  ;;  %v6384_v61 = vadd.f32 %v15523_v41, %v15002_v50 }
 0xccc   :  { %v11280_v46 = vpop.f32.mrf.mxu0  ;;  %8271 = vmatprep.subr.bf16.mxu1 %v12372_v10 }
 0xcce   :  { %v11281_v27 = vpop.f32.mrf.mxu0 }
 0xccf   :  { %v11282_v56 = vadd.f32 %v11281_v27, %v11280_v46  ;;  %8272 = vmatpush2.bf16.msra.mxu1 %v12370_v54 }
 0xcd0   :  { %v11283_v20 = vpop.f32.mrf.mxu0 }
 0xcd1   :  { %v7044_v26 = vadd.f32 %v11282_v56, %v15572_v19 }
 0xcd2   :  { %v11284_v57 = vpop.f32.mrf.mxu0 }
 0xcd3   :  { %v11285_v31 = vadd.f32 %v11284_v57, %v11283_v20 }
 0xcd4   :  { %v11286_v39 = vpop.f32.mrf.mxu0 }
 0xcd5   :  { %v7047_v9 = vadd.f32 %v11285_v31, %v15580_v16  ;;  %v6374_v16 = vadd.f32 %v15503_v17, %v14970_v63 }
 0xcd6   :  { %v11287_v15 = vpop.f32.mrf.mxu0 }
 0xcd7   :  { %v11288_v2 = vadd.f32 %v11287_v15, %v11286_v39 }
 0xcd8   :  { %v11289_v14 = vpop.f32.mrf.mxu0 }
 0xcd9   :  { %v7052_v19 = vadd.f32 %v11288_v2, %v15592_v60  ;;  %v12388_v60 = vld [vmem:[%s16195_s5 + $0x120] ss:$8 sps:$4 sm:$0xff]  }
 0xcda   :  { %v11290_v28 = vpop.f32.mrf.mxu0  ;;  %8303 = vmatpush1.bf16.msra.mxu0 %v12388_v60 }
 0xcdb   :  { %8304 = vmatprep.subr.bf16.mxu0 %v12393_v49 }
 0xcde   :  { %8305 = vmatpush1.bf16.msra.mxu0 %v12391_v51  ;;  %v7914_v51 = vrot.slane %v15728_v52, %v12948_v12 }
 0xcdf   :  { %8306 = vmatprep.subr.bf16.mxu0 %v12396_v47 }
 0xce2   :  { %v6941_v53 = vpop.f32.mrf.mxu1  ;;  %8307 = vmatpush1.bf16.msra.mxu0 %v12394_v45 }
 0xce3   :  { %v6942_v35 = vadd.f32 %v6941_v53, %v6374_v16  ;;  %8436 = vmatprep.subr.mxu0 %v12516_v55 }
 0xce4   :  { %v6943_v33 = vpop.f32.mrf.mxu1 }
 0xce5   :  { %v6993_v63 = vadd.f32 %v15582_v29, %v6942_v35  ;;  %v6944_v17 = vadd.f32 %v6943_v33, %v6376_v18  ;;  %v7882_v18 = vrot.slane %v15728_v52, %v12944_v8  ;;  %v7893_v35 = vrot.slane %v7878_v30, %v12935_v5 }
 0xce6   :  { %v6945_v21 = vpop.f32.mrf.mxu1 }
 0xce7   :  { %v6995_v0 = vadd.f32 %v15590_v23, %v6944_v17  ;;  %v6946_v22 = vadd.f32 %v6945_v21, %v6378_v37 }
 0xce8   :  { %v6947_v29 = vpop.f32.mrf.mxu1 }
 0xce9   :  { %v6997_v10 = vadd.f32 %v15594_v36, %v6946_v22  ;;  %v6948_v32 = vadd.f32 %v6947_v29, %v6380_v59  ;;  %v7918_v22 = vrot.slane %v15728_v52, %v12951_v13  ;;  %v7897_v29 = vrot.slane %v7882_v18, %v12935_v5 }
 0xcea   :  { %v6951_v25 = vpop.f32.mrf.mxu1 }
 0xceb   :  { %v6999_v43 = vadd.f32 %v15602_v44, %v6948_v32  ;;  %v6952_v23 = vadd.f32 %v6951_v25, %v6384_v61 }
 0xcec   :  { %v6953_v54 = vpop.f32.mrf.mxu1 }
 0xced   :  { %v7003_v46 = vadd.f32 %v15604_v62, %v6952_v23  ;;  %v6954_v27 = vadd.f32 %v6953_v54, %v6386_v38  ;;  %v7929_v23 = vrot.slane %v7914_v51, %v12948_v12 }
 0xcee   :  { %v6955_v42 = vpop.f32.mrf.mxu1 }
 0xcef   :  { %v15717_v50 = vadd.f32 %v15612_v48, %v6954_v27 }
 0xcf0   :  { %v6956_v41 = vpop.f32.mrf.mxu1 }
 0xd0a   :  { %v7091_v36 = vpop.f32.mrf.mxu1 }
 0xd0b   :  { %v15719_v4 = vadd.f32 %v7091_v36, %v7044_v26  ;;  %v7933_v36 = vrot.slane %v7918_v22, %v12948_v12 }
 0xd0c   :  { %v7691_v56 = vpop.f32.mrf.mxu0  ;;  %v7093_v1 = vpop.f32.mrf.mxu1 }
 0xd0e   :  { %v7693_v34 = vpop.f32.mrf.mxu0  ;;  %v7094_v44 = vpop.f32.mrf.mxu1 }
 0xd0f   :  { %v15721_v20 = vadd.f32 %v7094_v44, %v7047_v9 }
 0xd10   :  { %v7695_v57 = vpop.f32.mrf.mxu0  ;;  %v7096_v40 = vpop.f32.mrf.mxu1 }
 0xd12   :  { %v7697_v62 = vpop.f32.mrf.mxu0  ;;  %v7099_v58 = vpop.f32.mrf.mxu1 }
 0xd13   :  { %v15723_v31 = vadd.f32 %v7099_v58, %v7052_v19 }
 0xd14   :  { %v7701_v39 = vpop.f32.mrf.mxu0  ;;  %v7101_v15 = vpop.f32.mrf.mxu1 }
 0xd16   :  { %v7703_v48 = vpop.f32.mrf.mxu0  ;;  %v7102_v2 = vpop.f32.mrf.mxu1 }
 0xd18   :  { %v7705_v14 = vpop.f32.mrf.mxu0  ;;  %v7103_v28 = vpop.f32.mrf.mxu1 }
 0xd1a   :  { %v7706_v26 = vpop.f32.mrf.mxu0 }
 0xd32   :  { %v7742_v9 = vpop.f32.mrf.mxu1 }
 0xd33   :  { %v7743_v16 = vadd.f32 %v7742_v9, %v7691_v56 }
 0xd34   :  { %v15732_v24 = vpop.f32.mrf.mxu0  ;;  %v7744_v19 = vpop.f32.mrf.mxu1 }
 0xd35   :  { %v7855_v53 = vadd.f32 %v7743_v16, %v6993_v63  ;;  %v7745_v60 = vadd.f32 %v7744_v19, %v7693_v34 }
 0xd36   :  { %v7843_v33 = vpop.f32.mrf.mxu0  ;;  %v7746_v37 = vpop.f32.mrf.mxu1 }
 0xd37   :  { %v7865_v17 = vmax.f32 %v7855_v53, 0.0  ;;  %v7856_v49 = vadd.f32 %v7745_v60, %v6995_v0  ;;  %v7747_v21 = vadd.f32 %v7746_v37, %v7695_v57 }
 0xd38   :  { %v7844_v47 = vpop.f32.mrf.mxu0  ;;  %v7748_v59 = vpop.f32.mrf.mxu1 }
 0xd39   :  { %v7866_v63 = vmax.f32 %v7856_v49, 0.0  ;;  %v7858_v45 = vadd.f32 %v7747_v21, %v6997_v10  ;;  %v7749_v61 = vadd.f32 %v7748_v59, %v7697_v62  ;;  %v7902_v38 = vmul.f32 %v7893_v35, %v7865_v17 }
 0xd3a   :  { %v7846_v32 = vpop.f32.mrf.mxu0  ;;  %v7752_v25 = vpop.f32.mrf.mxu1  ;;  %v7886_v21 = vrot.slane %v15728_v52, %v12938_v6 }
 0xd3b   :  { %v7868_v54 = vmax.f32 %v7858_v45, 0.0  ;;  %v7859_v27 = vadd.f32 %v7749_v61, %v6999_v43  ;;  %v7753_v42 = vadd.f32 %v7752_v25, %v7701_v39  ;;  %v7903_v56 = vmul.f32 %v7897_v29, %v7866_v63 }
 0xd3c   :  { %v7849_v0 = vpop.f32.mrf.mxu0  ;;  %v7754_v41 = vpop.f32.mrf.mxu1  ;;  %v7938_v62 = vadd.f32 %v7929_v23, %v7902_v38  ;;  %v7901_v45 = vrot.slane %v7886_v21, %v12935_v5  ;;  %v7922_v61 = vrot.slane %v15728_v52, %v12941_v7 }
 0xd3d   :  { %v7905_v1 = vmul.f32 %v7893_v35, %v7868_v54  ;;  %v7869_v34 = vmax.f32 %v7859_v27, 0.0  ;;  %v7755_v44 = vadd.f32 %v7754_v41, %v7703_v48  ;;  %v7861_v57 = vadd.f32 %v7753_v42, %v7003_v46 }
 0xd3e   :  { %v7851_v40 = vpop.f32.mrf.mxu0  ;;  %v7756_v10 = vpop.f32.mrf.mxu1  ;;  %v7939_v9 = vadd.f32 %v7933_v36, %v7903_v56  ;;  %v7937_v6 = vrot.slane %v7922_v61, %v12948_v12 }
 0xd3f   :  { %v7941_v58 = vadd.f32 %v7929_v23, %v7905_v1  ;;  %v7906_v15 = vmul.f32 %v7897_v29, %v7869_v34  ;;  %v7862_v2 = vadd.f32 %v7755_v44, %v15717_v50  ;;  %v7871_v14 = vmax.f32 %v7861_v57, 0.0  ;;  %v8416_v57 = vld [vmem:[%s16197_s7 + $0x60] sm:$0xff]  ;;  %v8415_v40 = vld [vmem:[%s16197_s7 + $0x58] sm:$0xff]  ;;  %v8414_v10 = vld [vmem:[%s16197_s7 + $0x50] sm:$0xff] }
 0xd40   :  { %v7852_v28 = vpop.f32.mrf.mxu0  ;;  %v7757_v43 = vpop.f32.mrf.mxu1 }
 0xd41   :  { %v7947_v39 = vpack.c.bf16 %v7941_v58, %v7938_v62  ;;  %v7872_v26 = vmax.f32 %v7862_v2, 0.0  ;;  %v7942_v30 = vadd.f32 %v7933_v36, %v7906_v15  ;;  %v7908_v60 = vmul.f32 %v7893_v35, %v7871_v14  ;;  %v8413_v62 = vld [vmem:[%s16197_s7 + $0x48] sm:$0xff]  ;;  %v8412_v58 = vld [vmem:[%s16197_s7 + $0x40] sm:$0xff]  ;;  %v8411_v15 = vld [vmem:[%s16197_s7 + $0x38] sm:$0xff] }
 0xd42   :  { %v7853_v16 = vpop.f32.mrf.mxu0  ;;  %v8410_v2 = vld [vmem:[%s16197_s7 + $0x30] sm:$0xff]  ;;  %v8409_v14 = vld [vmem:[%s16197_s7 + $0x28] sm:$0xff]  ;;  %v8408_v28 = vld [vmem:[%s16197_s7 + $0x20] sm:$0xff] }
 0xd43   :  { %v7909_v19 = vmul.f32 %v7897_v29, %v7872_v26  ;;  %v7948_v53 = vpack.c.bf16 %v7942_v30, %v7939_v9  ;;  %v7944_v18 = vadd.f32 %v7929_v23, %v7908_v60  ;;  %v8407_v43 = vld [vmem:[%s16197_s7 + $0x18] sm:$0xff]  ;;  %v8405_v26 = vld [vmem:[%s16197_s7 + $0x8] sm:$0xff] }
 0xd45   :  { %8273 = vmatprep.mubr.bf16.mxu1 %v7948_v53  ;;  %v7945_v46 = vadd.f32 %v7933_v36, %v7909_v19  ;;  %v7950_v33 = vpack.c.bf16 %v7944_v18, %v7944_v18  ;;  %v8404_v18 = vld [vmem:[%s16197_s7] sm:$0xff] }
 0xd46   :  { %8274 = vmatmul.mubr.bf16.vlgmr.msra.gmra.mxu1 %v7947_v39  ;;  %v8406_v39 = vld [vmem:[%s16197_s7 + $0x10] sm:$0xff] }
 0xd47   :  { %v7951_v48 = vpack.c.bf16 %v7945_v46, %v7945_v46 }
 0xd49   :  { %8283 = vmatprep.mubr.bf16.mxu1 %v7951_v48 }
 0xd4e   :  { %8284 = vmatmul.mubr.bf16.gmra.mxu1 %v7950_v33  ;;  %v8426_v33 = vld [vmem:[%s16197_s7 + $0xb0] sm:$0xff] }
 0xd52   :  { %v11308_v50 = vpop.f32.mrf.mxu1 }
 0xd54   :  { %v11309_v37 = vpop.f32.mrf.mxu1 }
 0xd55   :  { %v11310_v17 = vadd.f32 %v11309_v37, %v11308_v50  ;;  %v8425_v37 = vld [vmem:[%s16197_s7 + $0xa8] sm:$0xff] }
 0xd56   :  { %v11311_v51 = vpop.f32.mrf.mxu1 }
 0xd57   :  { %v7842_v49 = vadd.f32 %v11310_v17, %v15732_v24  ;;  %v8424_v17 = vld [vmem:[%s16197_s7 + $0xa0] sm:$0xff] }
 0xd58   :  { %v11312_v59 = vpop.f32.mrf.mxu1 }
 0xd59   :  { %v7857_v35 = vadd.f32 %v7842_v49, %v15719_v4  ;;  %v11313_v22 = vadd.f32 %v11312_v59, %v11311_v51 }
 0xd5a   :  { %v11314_v63 = vpop.f32.mrf.mxu1 }
 0xd5b   :  { %v7867_v29 = vmax.f32 %v7857_v35, 0.0  ;;  %v7845_v32 = vadd.f32 %v11313_v22, %v7844_v47  ;;  %v8419_v47 = vld [vmem:[%s16197_s7 + $0x78] sm:$0xff] }
 0xd5c   :  { %v11315_v25 = vpop.f32.mrf.mxu1 }
 0xd5d   :  { %v7860_v38 = vadd.f32 %v7845_v32, %v15721_v20  ;;  %v11316_v23 = vadd.f32 %v11315_v25, %v11314_v63  ;;  %v7904_v54 = vmul.f32 %v7901_v45, %v7867_v29  ;;  %v8423_v63 = vld [vmem:[%s16197_s7 + $0x98] sm:$0xff]  ;;  %v8422_v29 = vld [vmem:[%s16197_s7 + $0x90] sm:$0xff]  ;;  %v8421_v25 = vld [vmem:[%s16197_s7 + $0x88] sm:$0xff] }
 0xd5e   :  { %v11317_v24 = vpop.f32.mrf.mxu1 }
 0xd5f   :  { %v7870_v27 = vmax.f32 %v7860_v38, 0.0  ;;  %v7850_v42 = vadd.f32 %v11316_v23, %v7849_v0  ;;  %v7940_v56 = vadd.f32 %v7937_v6, %v7904_v54  ;;  %v8418_v0 = vld [vmem:[%s16197_s7 + $0x70] sm:$0xff]  ;;  %v8420_v23 = vld [vmem:[%s16197_s7 + $0x80] sm:$0xff] }
 0xd60   :  { %v11318_v4 = vpop.f32.mrf.mxu1 }
 0xd61   :  { %v7907_v41 = vmul.f32 %v7901_v45, %v7870_v27  ;;  %v7863_v36 = vadd.f32 %v7850_v42, %v15723_v31  ;;  %v8417_v31 = vld [vmem:[%s16197_s7 + $0x68] sm:$0xff] }
 0xd63   :  { %v7943_v1 = vadd.f32 %v7937_v6, %v7907_v41  ;;  %v7873_v34 = vmax.f32 %v7863_v36, 0.0 }
 0xd65   :  { %v7949_v44 = vpack.c.bf16 %v7943_v1, %v7940_v56  ;;  %v7910_v7 = vmul.f32 %v7901_v45, %v7873_v34 }
 0xd67   :  { %8325 = vmatmul.mubr.bf16.vlgmr.msra.gmra.mxu0 %v7949_v44  ;;  %v7946_v20 = vadd.f32 %v7937_v6, %v7910_v7 }
 0xd68   :  { %8334 = vmatprep.mubr.bf16.mxu0 %v12515_v3  ;;  %8437 = vmatpush1.msra.mxu0 %v8419_v47 }
 0xd69   :  { %v7952_v52 = vpack.c.bf16 %v7946_v20, %v7946_v20  ;;  %8438 = vmatprep.subr.mxu0 %v12516_v55 }
 0xd6a   :  { %8439 = vmatpush1.msra.mxu0 %v8418_v0 }
 0xd6b   :  { %8440 = vmatprep.subr.mxu0 %v12516_v55 }
 0xd6c   :  { %8441 = vmatpush1.msra.mxu0 %v8417_v31 }
 0xd6d   :  { %8442 = vmatprep.subr.mxu0 %v12516_v55 }
 0xd6e   :  { %8443 = vmatpush1.msra.mxu0 %v8416_v57 }
 0xd6f   :  { %8335 = vmatmul.mubr.bf16.gmra.mxu0 %v7952_v52  ;;  %8444 = vmatprep.subr.mxu0 %v12516_v55 }
 0xd70   :  { %8445 = vmatpush1.msra.mxu0 %v8415_v40 }
 0xd71   :  { %8446 = vmatprep.subr.mxu0 %v12516_v55 }
 0xd72   :  { %8447 = vmatpush1.msra.mxu0 %v8414_v10 }
 0xd73   :  { %8448 = vmatprep.subr.mxu0 %v12516_v55 }
 0xd74   :  { %8449 = vmatpush1.msra.mxu0 %v8413_v62 }
 0xd75   :  { %8450 = vmatprep.subr.mxu0 %v12516_v55 }
 0xd76   :  { %8451 = vmatpush1.msra.mxu0 %v8412_v58 }
 0xd77   :  { %8452 = vmatprep.subr.mxu0 %v12516_v55 }
 0xd78   :  { %8453 = vmatpush1.msra.mxu0 %v8411_v15 }
 0xd79   :  { %8454 = vmatprep.subr.mxu0 %v12516_v55 }
 0xd7a   :  { %8455 = vmatpush1.msra.mxu0 %v8410_v2 }
 0xd7b   :  { %8456 = vmatprep.subr.mxu0 %v12516_v55 }
 0xd7c   :  { %8457 = vmatpush1.msra.mxu0 %v8409_v14 }
 0xd7d   :  { %8458 = vmatprep.subr.mxu0 %v12516_v55 }
 0xd7e   :  { %8459 = vmatpush1.msra.mxu0 %v8408_v28 }
 0xd7f   :  { %8460 = vmatprep.subr.mxu0 %v12516_v55 }
 0xd80   :  { %8461 = vmatpush1.msra.mxu0 %v8407_v43 }
 0xd81   :  { %8462 = vmatprep.subr.mxu0 %v12516_v55 }
 0xd82   :  { %8463 = vmatpush1.msra.mxu0 %v8406_v39 }
 0xd83   :  { %8464 = vmatprep.subr.mxu0 %v12516_v55 }
 0xd84   :  { %8465 = vmatpush1.msra.mxu0 %v8405_v26 }
 0xd85   :  { %8466 = vmatprep.subr.mxu0 %v12516_v55 }
 0xd86   :  { %8467 = vmatpush1.msra.mxu0 %v8404_v18  ;;  %v12399_v18 = vld [vmem:[%s16198_s8 + $0x54] ss:$8 sps:$4 sm:$0xff]  }
 0xd87   :  { %8486 = vmatprep.subr.mxu0 %v12516_v55 }
 0xd88   :  { %8487 = vmatpush2.msra.mxu0 %v8426_v33  ;;  %v12405_v33 = vld [vmem:[%s16198_s8 + $0x44] ss:$8 sps:$4 sm:$0xff]  }
 0xd89   :  { %8488 = vmatprep.subr.mxu0 %v12516_v55 }
 0xd8a   :  { %8489 = vmatpush2.msra.mxu0 %v8425_v37  ;;  %v12411_v37 = vld [vmem:[%s16198_s8 + $0x34] ss:$8 sps:$4 sm:$0xff]  }
 0xd8b   :  { %8490 = vmatprep.subr.mxu0 %v12516_v55 }
 0xd8c   :  { %8491 = vmatpush2.msra.mxu0 %v8424_v17  ;;  %v12409_v17 = vld [vmem:[%s16198_s8 + $0x30] ss:$8 sps:$4 sm:$0xff]  }
 0xd8d   :  { %8492 = vmatprep.subr.mxu0 %v12516_v55 }
 0xd8e   :  { %8493 = vmatpush2.msra.mxu0 %v8423_v63 }
 0xd8f   :  { %8494 = vmatprep.subr.mxu0 %v12516_v55 }
 0xd90   :  { %8495 = vmatpush2.msra.mxu0 %v8422_v29 }
 0xd91   :  { %8496 = vmatprep.subr.mxu0 %v12516_v55 }
 0xd92   :  { %8497 = vmatpush2.msra.mxu0 %v8421_v25  ;;  %v8517_v25 = vld [vmem:[%s16196_s6 + $0x8] sm:$0xf] }
 0xd93   :  { %8498 = vmatprep.subr.mxu0 %v12516_v55 }
 0xd94   :  { %8499 = vmatpush2.msra.mxu0 %v8420_v23  ;;  %v12408_v23 = vld [vmem:[%s16198_s8 + $0xa4] ss:$8 sps:$4 sm:$0xff]  }
 0xd95   :  { %8806 = vmatprep.subr.bf16.mxu0 %v12399_v18  ;;  %v12458_v18 = vld [vmem:[%s16200_s10] sm:$0xff]  }
 0xe06   :  { %v8275_v9 = vpop.f32.mrf.mxu1 }
 0xe08   :  { %v8277_v30 = vpop.f32.mrf.mxu1 }
 0xe0a   :  { %v8279_v16 = vpop.f32.mrf.mxu1 }
 0xe0c   :  { %v8281_v19 = vpop.f32.mrf.mxu1 }
 0xe0e   :  { %v8285_v53 = vpop.f32.mrf.mxu1 }
 0xe10   :  { %v8287_v60 = vpop.f32.mrf.mxu1 }
 0xe12   :  { %v8289_v46 = vpop.f32.mrf.mxu1 }
 0xe13   :  { %v8516_v46 = vld [vmem:[%s16196_s6] sm:$0xff] }
 0xe14   :  { %v8290_v48 = vpop.f32.mrf.mxu1  ;;  %11404 = vmatprep.mubr.msk.f32.mxu1 %vm3671_vm7, %v8516_v46  ;;  %v12456_v46 = vld [vmem:[%s16200_s10 + $0x10] sm:$0xff]  }
 0xe15   :  { %v12397_v48 = vld [vmem:[%s16198_s8 + $0x50] ss:$8 sps:$4 sm:$0xff]  }
 0xe27   :  { %v8326_v50 = vpop.f32.mrf.mxu0 }
 0xe28   :  { %v8327_v59 = vadd.f32 %v8326_v50, %v8275_v9  ;;  %v12403_v50 = vld [vmem:[%s16198_s8 + $0x40] ss:$8 sps:$4 sm:$0xff]  }
 0xe29   :  { %v8328_v51 = vpop.f32.mrf.mxu0 }
 0xe2a   :  { %v8329_v49 = vadd.f32 %v8328_v51, %v8277_v30  ;;  %v12417_v51 = vld [vmem:[%s16198_s8 + $0x24] ss:$8 sps:$4 sm:$0xff]  }
 0xe2b   :  { %v8330_v21 = vpop.f32.mrf.mxu0 }
 0xe2c   :  { %v8331_v35 = vadd.f32 %v8330_v21, %v8279_v16  ;;  %8351 = vrot.lane.b32.xlu1 %v8329_v49, %s12517_s27  ;;  %v12423_v21 = vld [vmem:[%s16198_s8 + $0x14] ss:$8 sps:$4 sm:$0xff]  }
 0xe2d   :  { %v8332_v22 = vpop.f32.mrf.mxu0 }
 0xe2e   :  { %v11464_v45 = vpack.i.bf16 %v8331_v35, %v8327_v59  ;;  %v8333_v24 = vadd.f32 %v8332_v22, %v8281_v19 }
 0xe2f   :  { %v8336_v61 = vpop.f32.mrf.mxu0 }
 0xe30   :  { %v8337_v32 = vadd.f32 %v8336_v61, %v8285_v53  ;;  %11465 = vrot.lane.b32.xlu0 %v11464_v45, %s12517_s27 }
 0xe31   :  { %v8338_v38 = vpop.f32.mrf.mxu0 }
 0xe32   :  { %8357 = vrot.lane.b32.xlu1 %v8337_v32, %s12517_s27  ;;  %v8339_v27 = vadd.f32 %v8338_v38, %v8287_v60  ;;  %v12400_v38 = vld [vmem:[%s16198_s8 + $0xb0] ss:$8 sps:$4 sm:$0xff]  }
 0xe33   :  { %v8340_v54 = vpop.f32.mrf.mxu0 }
 0xe34   :  { %8355 = vrot.lane.b32.xlu0 %v8333_v24, %s12517_s27  ;;  %v12414_v54 = vld [vmem:[%s16198_s8 + $0x94] ss:$8 sps:$4 sm:$0xff]  }
 0xe35   :  { %v8341_v6 = vpop.f32.mrf.mxu0 }
 0xe36   :  { %v12412_v6 = vld [vmem:[%s16198_s8 + $0x90] ss:$8 sps:$4 sm:$0xff]  }
 0xe38   :  { %8359 = vrot.lane.b32.xlu0 %v8339_v27, %s12517_s27 }
 0xe9e   :  { %v8352_v42 = vpop.permute.xlu1 %8351 }
 0xe9f   :  { %v8371_v36 = vmax.f32 %v8329_v49, %v8352_v42  ;;  %v12415_v49 = vld [vmem:[%s16198_s8 + $0x20] ss:$8 sps:$4 sm:$0xff]  }
 0xea1   :  { %v8385_v47 = vrot.slane %v8371_v36, 1 }
 0xea2   :  { %v11466_v4 = vpop.permute.xlu0 %11465 }
 0xea3   :  { %v11467_v41 = vunpack.i.l.bf16 %v11466_v4  ;;  %v11468_v56 = vunpack.i.h.bf16 %v11466_v4  ;;  %v12429_v4 = vld [vmem:[%s16198_s8 + $0x4] ss:$8 sps:$4 sm:$0xff]  }
 0xea4   :  { %v8358_v57 = vpop.permute.xlu1 %8357 }
 0xea5   :  { %v8361_v1 = vsel %vm3511_vm5, %v11467_v41, %v8352_v42  ;;  %v12418_v42 = vld [vmem:[%s16198_s8 + $0x80] ss:$8 sps:$4 sm:$0xff]   ;;  %v12426_v41 = vld [vmem:[%s16198_s8 + $0x74] ss:$8 sps:$4 sm:$0xff]  }
 0xea6   :  { %v8370_v34 = vmax.f32 %v8327_v59, %v8361_v1  ;;  %v8356_v44 = vpop.permute.xlu0 %8355  ;;  %v12421_v59 = vld [vmem:[%s16198_s8 + $0x10] ss:$8 sps:$4 sm:$0xff]   ;;  %v12432_v1 = vld [vmem:[%s16198_s8 + $0x64] ss:$8 sps:$4 sm:$0xff]  }
 0xea7   :  { %v8362_v7 = vsel %vm3511_vm5, %v11468_v56, %v8356_v44  ;;  %v8373_v20 = vmax.f32 %v8333_v24, %v8356_v44  ;;  %v12406_v24 = vld [vmem:[%s16198_s8 + $0xa0] ss:$8 sps:$4 sm:$0xff]   ;;  %v12424_v56 = vld [vmem:[%s16198_s8 + $0x70] ss:$8 sps:$4 sm:$0xff]   ;;  %v12435_v44 = vld [vmem:[%s16198_s8 + $0x114] ss:$8 sps:$4 sm:$0xff]  }
 0xea8   :  { %v8372_v52 = vmax.f32 %v8331_v35, %v8362_v7  ;;  %v8382_v31 = vrot.slane %v8370_v34, 1 }
 0xea9   :  { %v8386_v0 = vrot.slane %v8373_v20, 1 }
 0xeaa   :  { %v8383_v40 = vrot.slane %v8372_v52, 1  ;;  %v8360_v10 = vpop.permute.xlu0 %8359 }
 0xeab   :  { %v8387_v62 = vsel %vm425_vm3, %v8385_v47, %v8386_v0  ;;  %v8363_v58 = vsel %vm3511_vm5, %v8358_v57, %v8360_v10  ;;  %v8375_v15 = vmax.f32 %v8339_v27, %v8360_v10  ;;  %v12420_v27 = vld [vmem:[%s16198_s8 + $0x84] ss:$8 sps:$4 sm:$0xff]   ;;  %v12433_v57 = vld [vmem:[%s16198_s8 + $0x110] ss:$8 sps:$4 sm:$0xff]  }
 0xeac   :  { %v8384_v2 = vsel %vm425_vm3, %v8382_v31, %v8383_v40  ;;  %v8374_v14 = vmax.f32 %v8337_v32, %v8363_v58  ;;  %v8399_v28 = vmax.f32 %v8371_v36, %v8387_v62  ;;  %v12402_v32 = vld [vmem:[%s16198_s8 + $0xb4] ss:$8 sps:$4 sm:$0xff]   ;;  %v12427_v36 = vld [vmem:[%s16198_s8] ss:$8 sps:$4 sm:$0xff]   ;;  %v12438_v10 = vld [vmem:[%s16198_s8 + $0x104] ss:$8 sps:$4 sm:$0xff]  }
 0xead   :  { %v8398_v43 = vmax.f32 %v8370_v34, %v8384_v2  ;;  %v8390_v39 = vrot.slane %v8375_v15, 1  ;;  %v12430_v34 = vld [vmem:[%s16198_s8 + $0x60] ss:$8 sps:$4 sm:$0xff]   ;;  %v12441_v58 = vld [vmem:[%s16198_s8 + $0xf4] ss:$8 sps:$4 sm:$0xff]  }
 0xeae   :  { %v8388_v26 = vrot.slane %v8374_v14, 1  ;;  %11007 = vmatprep.mubr.msk.f32.mxu0 %vm3579_vm6, %v8399_v28  ;;  %v12436_v62 = vld [vmem:[%s16198_s8 + $0x100] ss:$8 sps:$4 sm:$0xff]   ;;  %v12444_v2 = vld [vmem:[%s16198_s8 + $0xe4] ss:$8 sps:$4 sm:$0xff]  }
 0xeaf   :  { %v8391_v9 = vsel %vm425_vm3, %v8386_v0, %v8390_v39  ;;  %8501 = vmatmul.mubr.f32.vlgmr.msra.gmra.mxu0 %v8398_v43  ;;  %v8403_v53 = vmax.f32 %v8375_v15, %v8390_v39  ;;  %v12439_v15 = vld [vmem:[%s16198_s8 + $0xf0] ss:$8 sps:$4 sm:$0xff]   ;;  %v12447_v28 = vld [vmem:[%s16198_s8 + $0xd4] ss:$8 sps:$4 sm:$0xff]   ;;  %v12450_v39 = vld [vmem:[%s16198_s8 + $0xc4] ss:$8 sps:$4 sm:$0xff]  }
 0xeb0   :  { %v8401_v30 = vmax.f32 %v8373_v20, %v8391_v9  ;;  %v8389_v16 = vsel %vm425_vm3, %v8383_v40, %v8388_v26  ;;  %v8402_v60 = vmax.f32 %v8374_v14, %v8388_v26  ;;  %8807 = vmatpush1.bf16.msra.mxu0 %v12397_v48  ;;  %v12442_v14 = vld [vmem:[%s16198_s8 + $0xe0] ss:$8 sps:$4 sm:$0xff]   ;;  %v12445_v43 = vld [vmem:[%s16198_s8 + $0xd0] ss:$8 sps:$4 sm:$0xff]  }
 0xeb1   :  { %v8400_v19 = vmax.f32 %v8372_v52, %v8389_v16  ;;  %8808 = vmatprep.subr.bf16.mxu0 %v12405_v33  ;;  %v12448_v26 = vld [vmem:[%s16198_s8 + $0xc0] ss:$8 sps:$4 sm:$0xff]   ;;  %v12452_v16 = vld [vmem:[%s16200_s10 + $0x30] sm:$0xff]  }
 0xeb2   :  { %11008 = vmatprep.mubr.msk.f32.mxu0 %vm3579_vm6, %v8401_v30  ;;  %v12451_v30 = vld [vmem:[%s16200_s10 + $0x38] sm:$0xff]   ;;  %v12457_v48 = vld [vmem:[%s16200_s10 + $0x8] sm:$0xff]  }
 0xeb3   :  { %8506 = vmatmul.mubr.f32.gmra.mxu0 %v8400_v19  ;;  %v12453_v19 = vld [vmem:[%s16200_s10 + $0x28] sm:$0xff]  }
 0xeb4   :  { %11009 = vmatprep.mubr.msk.f32.mxu0 %vm3579_vm6, %v8403_v53  ;;  %8809 = vmatpush1.bf16.msra.mxu0 %v12403_v50  ;;  %v12454_v53 = vld [vmem:[%s16200_s10 + $0x20] sm:$0xff]   ;;  %v12459_v33 = vld [vmem:[%s16200_s10 + $0x48] sm:$0xff]  }
 0xeb5   :  { %8810 = vmatprep.subr.bf16.mxu0 %v12411_v37  ;;  %v12460_v50 = vld [vmem:[%s16200_s10 + $0x40] sm:$0xff]  }
 0xeb7   :  { %8511 = vmatmul.mubr.f32.gmra.mxu0 %v8402_v60  ;;  %v12455_v60 = vld [vmem:[%s16200_s10 + $0x18] sm:$0xff]  }
 0xeb8   :  { %8834 = vmatprep.mubr.bf16.mxu0 %v12515_v3  ;;  %8811 = vmatpush1.bf16.msra.mxu0 %v12409_v17 }
 0xeb9   :  { %8812 = vmatprep.subr.bf16.mxu0 %v12417_v51 }
 0xebc   :  { %8813 = vmatpush1.bf16.msra.mxu0 %v12415_v49 }
 0xebd   :  { %8814 = vmatprep.subr.bf16.mxu0 %v12423_v21 }
 0xec0   :  { %8815 = vmatpush1.bf16.msra.mxu0 %v12421_v59 }
 0xec1   :  { %8816 = vmatprep.subr.bf16.mxu0 %v12429_v4 }
 0xec4   :  { %8817 = vmatpush1.bf16.msra.mxu0 %v12427_v36 }
 0xec5   :  { %9104 = vmatprep.subr.bf16.mxu0 %v12515_v3 }
 0xf6f   :  { %v8502_v35 = vpop.f32.mrf.mxu0 }
 0xf71   :  { %v8504_v22 = vpop.f32.mrf.mxu0 }
 0xf73   :  { %v8507_v63 = vpop.f32.mrf.mxu0 }
 0xf75   :  { %v8509_v29 = vpop.f32.mrf.mxu0 }
 0xf77   :  { %v8512_v45 = vpop.f32.mrf.mxu0 }
 0xf78   :  { %11398 = vmatprep.subr.msk.mxu1 %vm425_vm3, %v8512_v45 }
 0xf79   :  { %v8514_v61 = vpop.f32.mrf.mxu0  ;;  %11399 = vmatpush3.msk.msra.mxu1 %vm425_vm3, %v8512_v45 }
 0xf7a   :  { %11400 = vmatprep.subr.mxu1 %v8507_v63 }
 0xf7b   :  { %11401 = vmatpush3.msra.mxu1 %v8507_v63 }
 0xf7c   :  { %11402 = vmatprep.subr.mxu1 %v8502_v35 }
 0xf7d   :  { %11403 = vmatpush3.msra.mxu1 %v8502_v35  ;;  %v8969_v35 = vld [vmem:[%s16199_s9] sm:$0xf] }
 0xf7e   :  { %11405 = vmatmul.mubr.msk.f32.vlgmr.msra.gmra.mxu1 %vm3671_vm7, %v8517_v25  ;;  %8701 = vmatprep.subr.bf16.mxu1 %v12402_v32  ;;  %v8982_v61 = vrot.slane %v8969_v35, %v12944_v8  ;;  %v8978_v25 = vrot.slane %v8969_v35, %v12935_v5 }
 0xf7f   :  { %8702 = vmatpush1.bf16.msra.mxu1 %v12400_v38  ;;  %8729 = vmatprep.mubr.bf16.mxu1 %v12515_v3 }
 0xf80   :  { %8703 = vmatprep.subr.bf16.mxu1 %v12408_v23 }
 0xf83   :  { %8704 = vmatpush1.bf16.msra.mxu1 %v12406_v24 }
 0xf84   :  { %8705 = vmatprep.subr.bf16.mxu1 %v12414_v54 }
 0xf87   :  { %8706 = vmatpush1.bf16.msra.mxu1 %v12412_v6  ;;  %v9004_v6 = vrot.slane %v8969_v35, %v12951_v13 }
 0xf88   :  { %8707 = vmatprep.subr.bf16.mxu1 %v12420_v27 }
 0xf8b   :  { %8708 = vmatpush1.bf16.msra.mxu1 %v12418_v42 }
 0xf8c   :  { %8709 = vmatprep.subr.bf16.mxu1 %v12426_v41  ;;  %v8992_v41 = vrot.slane %v8982_v61, %v12935_v5 }
 0xf8f   :  { %8710 = vmatpush1.bf16.msra.mxu1 %v12424_v56 }
 0xf90   :  { %8711 = vmatprep.subr.bf16.mxu1 %v12432_v1  ;;  %v8988_v1 = vrot.slane %v8978_v25, %v12935_v5 }
 0xf93   :  { %8712 = vmatpush1.bf16.msra.mxu1 %v12430_v34  ;;  %v9000_v34 = vrot.slane %v8969_v35, %v12948_v12 }
 0xf94   :  { %8926 = vmatprep.subr.bf16.mxu1 %v12435_v44 }
0x103e   :  { %v11406_v7 = vpop.f32.mrf.mxu1 }
0x1040   :  { %v8593_v20 = vpop.f32.mrf.mxu1 }
0x1041   :  { %v8602_v52 = vpack.c.bf16 %v11406_v7, %v8593_v20 }
0x1043   :  { %v8630_v47 = vshll.u32 %v8602_v52, 16  ;;  %11050 = vmatmul.mubr.msk.bf16.vlgmr.msra.gmra.mxu0 %vm3849_vm8, %v8602_v52  ;;  %v8628_v0 = vshrl.u32 %v8602_v52, 16  ;;  %v8858_v9 = vrot.slane %v8602_v52, 1 }
0x1044   :  { %9105 = vmatpush1.bf16.msra.mxu0 %v12451_v30  ;;  %v9168_v30 = vld [vmem:[%s16202_s12 + $0x20] sm:$0xff] }
0x1045   :  { %v8632_v31 = vrot.slane %v8630_v47, 1  ;;  %9106 = vmatprep.subr.bf16.mxu0 %v12515_v3  ;;  %v9014_v47 = vrot.slane %v9004_v6, %v12948_v12 }
0x1047   :  { %v8633_v40 = vor.u32 %v8632_v31, %v8628_v0 }
0x1048   :  { %9107 = vmatpush1.bf16.msra.mxu0 %v12452_v16  ;;  %v9167_v16 = vld [vmem:[%s16202_s12 + $0x18] sm:$0xff] }
0x1049   :  { %11037 = vmatmul.mubr.msk.bf16.vlgmr.msra.gmra.mxu1 %vm3849_vm8, %v8633_v40  ;;  %9108 = vmatprep.subr.bf16.mxu0 %v12515_v3  ;;  %v9010_v40 = vrot.slane %v9000_v34, %v12948_v12  ;;  %v12471_v34 = vld [vmem:[%s16203_s13 + $0x28] ss:$8 sps:$4 sm:$0xff]  }
0x104a   :  { %8927 = vmatpush1.bf16.msra.mxu1 %v12433_v57  ;;  %8954 = vmatprep.mubr.bf16.mxu1 %v12515_v3 }
0x104b   :  { %8928 = vmatprep.subr.bf16.mxu1 %v12438_v10 }
0x104c   :  { %9109 = vmatpush1.bf16.msra.mxu0 %v12453_v19  ;;  %v9166_v19 = vld [vmem:[%s16202_s12 + $0x10] sm:$0xff] }
0x104d   :  { %9110 = vmatprep.subr.bf16.mxu0 %v12515_v3 }
0x104e   :  { %8929 = vmatpush1.bf16.msra.mxu1 %v12436_v62 }
0x104f   :  { %8930 = vmatprep.subr.bf16.mxu1 %v12441_v58 }
0x1050   :  { %9111 = vmatpush1.bf16.msra.mxu0 %v12454_v53  ;;  %v9165_v53 = vld [vmem:[%s16202_s12 + $0x8] sm:$0xff] }
0x1051   :  { %9112 = vmatprep.subr.bf16.mxu0 %v12515_v3 }
0x1052   :  { %8931 = vmatpush1.bf16.msra.mxu1 %v12439_v15 }
0x1053   :  { %8932 = vmatprep.subr.bf16.mxu1 %v12444_v2 }
0x1054   :  { %9113 = vmatpush1.bf16.msra.mxu0 %v12455_v60 }
0x1055   :  { %9114 = vmatprep.subr.bf16.mxu0 %v12515_v3 }
0x1056   :  { %8933 = vmatpush1.bf16.msra.mxu1 %v12442_v14 }
0x1057   :  { %8934 = vmatprep.subr.bf16.mxu1 %v12447_v28 }
0x1058   :  { %9115 = vmatpush1.bf16.msra.mxu0 %v12456_v46  ;;  %v9164_v46 = vld [vmem:[%s16202_s12] sm:$0xff] }
0x1059   :  { %9116 = vmatprep.subr.bf16.mxu0 %v12515_v3 }
0x105a   :  { %8935 = vmatpush1.bf16.msra.mxu1 %v12445_v43  ;;  %v9172_v43 = vld [vmem:[%s16202_s12 + $0x40] sm:$0xff] }
0x105b   :  { %8936 = vmatprep.subr.bf16.mxu1 %v12450_v39  ;;  %v9171_v39 = vld [vmem:[%s16202_s12 + $0x38] sm:$0xff] }
0x105c   :  { %9117 = vmatpush1.bf16.msra.mxu0 %v12457_v48 }
0x105d   :  { %9118 = vmatprep.subr.bf16.mxu0 %v12515_v3 }
0x105e   :  { %8937 = vmatpush1.bf16.msra.mxu1 %v12448_v26  ;;  %v9170_v26 = vld [vmem:[%s16202_s12 + $0x30] sm:$0xff] }
0x105f   :  { %11407 = vmatprep.subr.mxu1 %v9172_v43 }
0x1060   :  { %9119 = vmatpush1.bf16.msra.mxu0 %v12458_v18 }
0x1061   :  { %11075 = vmatmul.mubr.msk.bf16.vlgmr.msra.gmra.mxu1 %vm3849_vm8, %v8858_v9  ;;  %9132 = vmatprep.subr.bf16.mxu0 %v12515_v3  ;;  %v9169_v9 = vld [vmem:[%s16202_s12 + $0x28] sm:$0xff] }
0x1062   :  { %11408 = vmatpush3.msra.mxu1 %v9172_v43 }
0x1063   :  { %11409 = vmatprep.subr.mxu1 %v9171_v39 }
0x1064   :  { %9133 = vmatpush2.bf16.msra.mxu0 %v12459_v33  ;;  %11410 = vmatpush3.msra.mxu1 %v9171_v39 }
0x1065   :  { %9134 = vmatprep.subr.bf16.mxu0 %v12515_v3  ;;  %11411 = vmatprep.subr.mxu1 %v9170_v26 }
0x1066   :  { %11412 = vmatpush3.msra.mxu1 %v9170_v26 }
0x1067   :  { %11413 = vmatprep.subr.mxu1 %v9169_v9 }
0x1068   :  { %9135 = vmatpush2.bf16.msra.mxu0 %v12460_v50  ;;  %11414 = vmatpush3.msra.mxu1 %v9169_v9 }
0x1069   :  { %11415 = vmatprep.subr.mxu1 %v9168_v30 }
0x106a   :  { %11416 = vmatpush3.msra.mxu1 %v9168_v30 }
0x106b   :  { %11417 = vmatprep.subr.mxu1 %v9167_v16 }
0x106c   :  { %11418 = vmatpush3.msra.mxu1 %v9167_v16 }
0x106d   :  { %11419 = vmatprep.subr.mxu1 %v9166_v19 }
0x106e   :  { %11420 = vmatpush3.msra.mxu1 %v9166_v19 }
0x106f   :  { %11421 = vmatprep.subr.mxu1 %v9165_v53 }
0x1070   :  { %11422 = vmatpush3.msra.mxu1 %v9165_v53 }
0x1071   :  { %11423 = vmatprep.subr.mxu1 %v9164_v46 }
0x1072   :  { %11424 = vmatpush3.msra.mxu1 %v9164_v46 }
0x1073   :  { %11428 = vmatprep.subr.mxu1 %v12516_v55 }
0x1103   :  { %v8836_v51 = vpop.f32.mrf.mxu0 }
0x1105   :  { %v8838_v21 = vpop.f32.mrf.mxu0 }
0x1107   :  { %v8840_v63 = vpop.f32.mrf.mxu0 }
0x1109   :  { %v8731_v37 = vpop.f32.mrf.mxu1  ;;  %v8842_v54 = vpop.f32.mrf.mxu0 }
0x110a   :  { %v8837_v22 = vadd.f32 %v8836_v51, %v8731_v37 }
0x110b   :  { %v8733_v17 = vpop.f32.mrf.mxu1 }
0x110c   :  { %v8839_v45 = vadd.f32 %v8838_v21, %v8733_v17 }
0x110d   :  { %v8735_v49 = vpop.f32.mrf.mxu1 }
0x110e   :  { %v8841_v23 = vadd.f32 %v8840_v63, %v8735_v49  ;;  %v11116_v63 = vld [vmem:[%s16203_s13 + $0x70] sm:$0xff] }
0x110f   :  { %v8737_v59 = vpop.f32.mrf.mxu1 }
0x1110   :  { %v8843_v42 = vadd.f32 %v8842_v54, %v8737_v59 }
0x1121   :  { %v8956_v29 = vpop.f32.mrf.mxu1 }
0x1122   :  { %v8965_v32 = vadd.f32 %v8956_v29, %v8837_v22  ;;  %v11122_v29 = vcombine.high %v11116_v63, %v11116_v63 }
0x1123   :  { %v8958_v38 = vpop.f32.mrf.mxu1 }
0x1124   :  { %v8966_v24 = vadd.f32 %v8958_v38, %v8839_v45  ;;  %v8970_v56 = vmax.f32 %v8965_v32, 0.0  ;;  %v11121_v45 = vcombine.low %v11116_v63, %v11116_v63  ;;  %11123 = vmatprep.subr.msk.bf16.mxu0 %vm4539_vm11, %v11122_v29  ;;  %v11095_v32 = vld [vmem:[%s16203_s13 + $0x48] sm:$0xff] }
0x1125   :  { %v8960_v27 = vpop.f32.mrf.mxu1  ;;  %v11100_v25 = vcombine.low %v11095_v32, %v11095_v32 }
0x1126   :  { %v8971_v4 = vmax.f32 %v8966_v24, 0.0  ;;  %v8967_v36 = vadd.f32 %v8960_v27, %v8841_v23  ;;  %v8993_v57 = vmul.f32 %v8988_v1, %v8970_v56  ;;  %v9534_v61 = vsel %vm4539_vm11, %v11121_v45, 0  ;;  %v9254_v24 = vld [vmem:[%s16201_s11] sm:$0x1f]  ;;  %v12473_v56 = vld [vmem:[%s16203_s13 + $0x2c] ss:$8 sps:$4 sm:$0xff]  }
0x1127   :  { %v8962_v44 = vpop.f32.mrf.mxu1  ;;  %v11101_v23 = vcombine.high %v11095_v32, %v11095_v32  ;;  %v9378_v6 = vsel %vm4539_vm11, %v11100_v25, 0  ;;  %v12470_v27 = vld [vmem:[%s16203_s13 + $0x64] ss:$8 sps:$4 sm:$0xff]  }
0x1128   :  { %v8972_v7 = vmax.f32 %v8967_v36, 0.0  ;;  %v8968_v20 = vadd.f32 %v8962_v44, %v8843_v42  ;;  %v8994_v52 = vmul.f32 %v8992_v41, %v8971_v4  ;;  %v9015_v2 = vadd.f32 %v9010_v40, %v8993_v57  ;;  %v12468_v42 = vld [vmem:[%s16203_s13 + $0x60] ss:$8 sps:$4 sm:$0xff]   ;;  %v12467_v4 = vld [vmem:[%s16203_s13 + $0x3c] ss:$8 sps:$4 sm:$0xff]  }
0x1129   :  { %v12476_v36 = vld [vmem:[%s16203_s13 + $0x54] ss:$8 sps:$4 sm:$0xff]   ;;  %v9336_v44 = vld [vmem:[%s16203_s13 + $0x20] sm:$0xff] }
0x112a   :  { %v8995_v0 = vmul.f32 %v8988_v1, %v8972_v7  ;;  %v8973_v31 = vmax.f32 %v8968_v20, 0.0  ;;  %v9016_v58 = vadd.f32 %v9014_v47, %v8994_v52  ;;  %v12474_v1 = vld [vmem:[%s16203_s13 + $0x50] ss:$8 sps:$4 sm:$0xff]   ;;  %v11109_v7 = vcombine.high %v9336_v44, %v9336_v44 }
0x112b   :  { %v11108_v57 = vcombine.low %v9336_v44, %v9336_v44 }
0x112c   :  { %v8996_v10 = vmul.f32 %v8992_v41, %v8973_v31  ;;  %v9017_v62 = vadd.f32 %v9010_v40, %v8995_v0  ;;  %v12465_v41 = vld [vmem:[%s16203_s13 + $0x38] ss:$8 sps:$4 sm:$0xff]  }
0x112e   :  { %v9018_v15 = vadd.f32 %v9014_v47, %v8996_v10  ;;  %v9019_v28 = vpack.c.bf16 %v9017_v62, %v9015_v2  ;;  %v12479_v2 = vld [vmem:[%s16203_s13 + $0x10] ss:$8 sps:$4 sm:$0xff]  }
0x1130   :  { %v9020_v14 = vpack.c.bf16 %v9018_v15, %v9016_v58  ;;  %v9452_v58 = vsel %vm4539_vm11, %v11108_v57, 0  ;;  %v12481_v15 = vld [vmem:[%s16203_s13 + $0x14] ss:$8 sps:$4 sm:$0xff]  }
0x1132   :  { %11086 = vmatprep.mubr.msk.bf16.mxu0 %vm1430_vm4, %v9020_v14  ;;  %v12484_v14 = vld [vmem:[%s16203_s13 + $0x4] ss:$8 sps:$4 sm:$0xff]  }
0x1133   :  { %9137 = vmatmul.mubr.bf16.vlgmr.msra.gmra.mxu0 %v9019_v28  ;;  %v12482_v28 = vld [vmem:[%s16203_s13] ss:$8 sps:$4 sm:$0xff]  }
0x1134   :  { %9571 = vmatprep.mubr.bf16.mxu0 %v12515_v3  ;;  %9550 = vmatpush1.bf16.msra.mxu0 %v9534_v61 }
0x1135   :  { %9551 = vmatprep.subr.bf16.mxu0 %v12470_v27 }
0x1138   :  { %9552 = vmatpush1.bf16.msra.mxu0 %v12468_v42 }
0x1139   :  { %9553 = vmatprep.subr.bf16.mxu0 %v12476_v36 }
0x113c   :  { %9554 = vmatpush1.bf16.msra.mxu0 %v12474_v1 }
0x11f3   :  { %v9138_v60 = vpop.f32.mrf.mxu0 }
0x11f4   :  { %9147 = vrot.lane.b32.xlu1 %v9138_v60, %s12517_s27 }
0x11f5   :  { %v9140_v48 = vpop.f32.mrf.mxu0 }
0x11f7   :  { %v9141_v18 = vpop.f32.mrf.mxu0 }
0x11f8   :  { %9149 = vrot.lane.b32.xlu0 %v9141_v18, %s12517_s27 }
0x11f9   :  { %v9143_v33 = vpop.f32.mrf.mxu0 }
0x1266   :  { %v9148_v50 = vpop.permute.xlu1 %9147 }
0x1267   :  { %v9153_v37 = vmax.f32 %v9138_v60, %v9148_v50  ;;  %v9582_v60 = vld [vmem:[%s16204_s14] sm:$0xf] }
0x1268   :  { %v9589_v46 = vrot.slane %v9582_v60, %v12935_v5  ;;  %v9609_v33 = vrot.slane %v9582_v60, %v12948_v12  ;;  %v9593_v50 = vrot.slane %v9582_v60, %v12944_v8 }
0x1269   :  { %v9157_v49 = vrot.slane %v9153_v37, 1 }
0x126a   :  { %v9150_v17 = vpop.permute.xlu0 %9149  ;;  %v9619_v29 = vrot.slane %v9609_v33, %v12948_v12  ;;  %v9603_v45 = vrot.slane %v9593_v50, %v12935_v5 }
0x126b   :  { %v9154_v51 = vmax.f32 %v9141_v18, %v9150_v17 }
0x126d   :  { %v9158_v21 = vrot.slane %v9154_v51, 1 }
0x126f   :  { %v9159_v59 = vsel %vm425_vm3, %v9157_v49, %v9158_v21  ;;  %v9163_v22 = vmax.f32 %v9154_v51, %v9158_v21  ;;  %v9599_v51 = vrot.slane %v9589_v46, %v12935_v5  ;;  %v9613_v21 = vrot.slane %v9582_v60, %v12951_v13  ;;  %v9655_v5 = vld [vmem:[%s16205_s15 + $0x8] sm:$0xff] }
0x1270   :  { %v9162_v35 = vmax.f32 %v9153_v37, %v9159_v59 }
0x1271   :  { %v9623_v25 = vrot.slane %v9613_v21, %v12948_v12  ;;  %v9654_v12 = vld [vmem:[%s16205_s15] sm:$0xff] }
0x1272   :  { %11425 = vmatprep.mubr.msk.f32.mxu1 %vm4330_vm9, %v9162_v35  ;;  %v9658_v35 = vld [vmem:[%s16205_s15 + $0x20] sm:$0xff] }
0x1273   :  { %11426 = vmatmul.mubr.msk.f32.vlgmr.msra.gmra.mxu1 %vm4330_vm9, %v9163_v22  ;;  %v9657_v22 = vld [vmem:[%s16205_s15 + $0x18] sm:$0xff] }
0x1274   :  { %11432 = vmatprep.mubr.msk.f32.mxu1 %vm12518_vm10, %v12516_v55 }
0x1333   :  { %v11427_v38 = vpop.f32.mrf.mxu1 }
0x1334   :  { %11429 = vmatpush3.msk.msra.mxu1 %vm4417_vm12, %v11427_v38 }
0x1335   :  { %v9245_v54 = vpop.f32.mrf.mxu1  ;;  %11430 = vmatprep.subr.mxu1 %v12516_v55 }
0x1336   :  { %11431 = vmatpush3.msra.mxu1 %v9245_v54 }
0x1337   :  { %11433 = vmatmul.mubr.msk.f32.vlgmr.msra.gmra.mxu1 %vm4413_vm13, %v9254_v24  ;;  %11102 = vmatprep.subr.msk.bf16.mxu1 %vm4539_vm11, %v11101_v23 }
0x1338   :  { %9394 = vmatpush1.bf16.msra.mxu1 %v9378_v6  ;;  %9415 = vmatprep.mubr.bf16.mxu1 %v12515_v3  ;;  %v9656_v6 = vld [vmem:[%s16205_s15 + $0x10] sm:$0xff] }
0x1339   :  { %9395 = vmatprep.subr.bf16.mxu1 %v12467_v4 }
0x133c   :  { %9396 = vmatpush1.bf16.msra.mxu1 %v12465_v41 }
0x133d   :  { %9397 = vmatprep.subr.bf16.mxu1 %v12473_v56 }
0x1340   :  { %9398 = vmatpush1.bf16.msra.mxu1 %v12471_v34  ;;  %v4899_v34 = vsel %vm4898_vm0, %v14863_v11, -inf }
0x1341   :  { %11110 = vmatprep.subr.msk.bf16.mxu1 %vm4539_vm11, %v11109_v7 }
0x13f7   :  { %v9327_v20 = vpop.f32.mrf.mxu1 }
0x13f8   :  { %v9331_v52 = vpack.c.bf16 %v9327_v20, %v9327_v20 }
0x13f9   :  { %v11434_v47 = vpop.f32.mrf.mxu1 }
0x13fa   :  { %v9345_v0 = vshll.u32 %v9331_v52, 16  ;;  %v9504_v31 = vrot.slane %v9331_v52, 1  ;;  %v9343_v40 = vshrl.u32 %v9331_v52, 16 }
0x13fc   :  { %v9347_v10 = vrot.slane %v9345_v0, 1  ;;  %11124 = vmatmul.mubr.msk.bf16.vlgmr.msra.gmra.mxu0 %vm4535_vm14, %v9504_v31 }
0x13fe   :  { %v9348_v62 = vor.u32 %v9347_v10, %v9343_v40 }
0x1400   :  { %11103 = vmatmul.mubr.msk.bf16.vlgmr.msra.gmra.mxu1 %vm4535_vm14, %v9348_v62 }
0x1401   :  { %9468 = vmatpush1.bf16.msra.mxu1 %v9452_v58  ;;  %9489 = vmatprep.mubr.bf16.mxu1 %v12515_v3  ;;  %v9659_v3 = vld [vmem:[%s16205_s15 + $0x28] sm:$0xff]  ;;  %s12521_s15 = smov [#allocation2]  }
0x1402   :  { %9469 = vmatprep.subr.bf16.mxu1 %v12481_v15 }
0x1405   :  { %9470 = vmatpush1.bf16.msra.mxu1 %v12479_v2 }
0x1406   :  { %9471 = vmatprep.subr.bf16.mxu1 %v12484_v14 }
0x1409   :  { %9472 = vmatpush1.bf16.msra.mxu1 %v12482_v28 }
0x140a   :  { %11435 = vmatprep.subr.mxu1 %v12516_v55 }
0x140c   :  { %11111 = vmatmul.mubr.msk.bf16.vlgmr.msra.gmra.mxu1 %vm4535_vm14, %v9331_v52 }
0x140d   :  { %11447 = vmatprep.mubr.msk.f32.mxu1 %vm12518_vm10, %v12516_v55  ;;  %11436 = vmatpush3.msra.mxu1 %v9659_v3 }
0x140e   :  { %11437 = vmatprep.subr.mxu1 %v12516_v55 }
0x140f   :  { %11438 = vmatpush3.msra.mxu1 %v9658_v35 }
0x1410   :  { %11439 = vmatprep.subr.mxu1 %v12516_v55 }
0x1411   :  { %11440 = vmatpush3.msra.mxu1 %v9657_v22 }
0x1412   :  { %11441 = vmatprep.subr.mxu1 %v12516_v55 }
0x1413   :  { %11442 = vmatpush3.msra.mxu1 %v9656_v6 }
0x1414   :  { %11443 = vmatprep.subr.mxu1 %v12516_v55 }
0x1415   :  { %11444 = vmatpush3.msra.mxu1 %v9655_v5 }
0x1416   :  { %11445 = vmatprep.subr.mxu1 %v12516_v55 }
0x1417   :  { %11446 = vmatpush3.msra.mxu1 %v9654_v12 }
0x14bc   :  { %v9573_v43 = vpop.f32.mrf.mxu0 }
0x14be   :  { %v9575_v39 = vpop.f32.mrf.mxu0 }
0x14c0   :  { %v9417_v26 = vpop.f32.mrf.mxu1  ;;  %v9577_v9 = vpop.f32.mrf.mxu0 }
0x14c2   :  { %v9419_v30 = vpop.f32.mrf.mxu1  ;;  %v9578_v16 = vpop.f32.mrf.mxu0 }
0x14c4   :  { %v9421_v19 = vpop.f32.mrf.mxu1 }
0x14c6   :  { %v9422_v53 = vpop.f32.mrf.mxu1 }
0x14cc   :  { %v9491_v48 = vpop.f32.mrf.mxu1 }
0x14cd   :  { %v9492_v18 = vadd.f32 %v9491_v48, %v9417_v26 }
0x14ce   :  { %v9493_v37 = vpop.f32.mrf.mxu1 }
0x14cf   :  { %v9580_v17 = vadd.f32 %v9573_v43, %v9492_v18  ;;  %v9494_v49 = vadd.f32 %v9493_v37, %v9419_v30 }
0x14d0   :  { %v9495_v59 = vpop.f32.mrf.mxu1 }
0x14d1   :  { %v9583_v63 = vmax.f32 %v9580_v17, 0.0  ;;  %v9581_v8 = vadd.f32 %v9575_v39, %v9494_v49 }
0x14d2   :  { %v9496_v61 = vpop.f32.mrf.mxu1 }
0x14d3   :  { %v9604_v13 = vmul.f32 %v9599_v51, %v9583_v63  ;;  %v9584_v32 = vmax.f32 %v9581_v8, 0.0 }
0x14d5   :  { %v9624_v38 = vadd.f32 %v9619_v29, %v9604_v13  ;;  %v9605_v23 = vmul.f32 %v9603_v45, %v9584_v32 }
0x14d7   :  { %v9625_v24 = vadd.f32 %v9623_v25, %v9605_v23  ;;  %v9628_v54 = vrot.slane %v9624_v38, 1  ;;  %v9634_v42 = vrot.slane %v9624_v38, 2 }
0x14d9   :  { %v9632_v27 = vadd.f32 %v9628_v54, %v9624_v38  ;;  %v9629_v4 = vrot.slane %v9625_v24, 1  ;;  %v9635_v56 = vrot.slane %v9625_v24, 2 }
0x14db   :  { %v9638_v41 = vadd.f32 %v9634_v42, %v9632_v27  ;;  %v9633_v36 = vadd.f32 %v9629_v4, %v9625_v24 }
0x14dd   :  { %9646 = vrot.lane.b32.xlu0 %v9638_v41, %s12519_s17  ;;  %9641 = vrot.lane.b32.xlu1 %v9638_v41, %s12520_s18  ;;  %v9639_v1 = vadd.f32 %v9635_v56, %v9633_v36 }
0x14e1   :  { %9648 = vrot.lane.b32.xlu1 %v9639_v1, %s12519_s17  ;;  %s9753_s17 = sshll.u32 %s12521_s15, 4  ;;  %s9754_s17 = int_to_ptr.vmem [resolvable:$true] %s9753_s17 }
0x14e2   :  { %s12493_s18 = scalar_lea.vmem %s9754_s17, 32  ;;  %p12498_p1 = scmp.lt.s32.totalorder %s9754_s17, %s9754_s17 }
0x14e3   :  { %p12494_p0 = scmp.ne.s32.totalorder %s9754_s17, %s12493_s18  ;;  %p12499_p2 = scmp.lt.s32.totalorder %s12493_s18, %s12493_s18 }
0x14e5   :  { %p12500_p3 = por %p12499_p2, %p12498_p1 }
0x14e7   :  { %p12501_p4 = pnand %p12500_p3, %p12494_p0 }
0x14fc   :  { %4900 = vmax.xlane.f32.xlu0 %v4899_v34 }
0x154f   :  { %v9642_v44 = vpop.permute.xlu1 %9641  ;;  %v9647_v7 = vpop.permute.xlu0 %9646 }
0x1550   :  { %v9644_v20 = vadd.f32 %v9642_v44, %v9638_v41 }
0x1553   :  { %v9649_v52 = vpop.permute.xlu1 %9648 }
0x1554   :  { %v9650_v55 = vsel %vm1430_vm4, %v9647_v7, %v9649_v52 }
0x1555   :  { %v9652_v47 = vadd.f32 %v9650_v55, %v9644_v20 }
0x1557   :  { %v9653_v0 = vmul.f32 0.11111111, %v9652_v47 }
0x1559   :  { %11448 = vmatmul.mubr.msk.f32.vlgmr.msra.gmra.mxu1 %vm4824_vm15, %v9653_v0 }
0x1585   :  { %v4901_v31 = vpop.xlane.xlu0 %4900 }
0x1586   :  { %v4902_v57 = vsub.f32 %v14863_v11, %v4901_v31 }
0x1588   :  { %v4903_v40 = vmul.f32 1.442695, %v4902_v57 }
0x158a   :  { %12485 = vpow2.f32 %v4903_v40 }
0x1597   :  { %v12486_v10 = vpop.eup %12485 }
0x1598   :  { %v4905_v62 = vsel %vm4898_vm0, %v12486_v10, 0.0 }
0x1599   :  { %4906 = vadd.xlane.f32.xlu0 %v4905_v62 }
0x1619   :  { %v9729_v58 = vpop.f32.mrf.mxu1 }
0x161a   :  { %v9733_v15 = vsel %vm4898_vm0, %v9729_v58, -inf }
0x161b   :  { %9734 = vmax.xlane.f32.xlu1 %v9733_v15  ;;  %v11449_v2 = vpop.f32.mrf.mxu1 }
0x1622   :  { %v4907_v14 = vpop.xlane.xlu0 %4906 }
0x1623   :  { %12487 = vlog2.f32 %v4907_v14 }
0x1630   :  { %v12488_v28 = vpop.eup %12487 }
0x1631   :  { %v4909_v3 = vmul.f32 0.6931472, %v12488_v28 }
0x1633   :  { %v4910_v43 = vadd.f32 %v4909_v3, %v4901_v31 }
0x1635   :  { %v4911_v39 = vsub.f32 %v14863_v11, %v4910_v43 }
0x1637   :  { %4912 = vst.msk [vmem:[#allocation2] sm:$0x1] %vm4898_vm0, %v4911_v39 }
0x16a4   :  { %v9735_v26 = vpop.xlane.xlu1 %9734 }
0x16a5   :  { %v9736_v9 = vsub.f32 %v9729_v58, %v9735_v26 }
0x16a7   :  { %v9737_v30 = vmul.f32 1.442695, %v9736_v9 }
0x16a9   :  { %12489 = vpow2.f32 %v9737_v30 }
0x16b6   :  { %v12490_v16 = vpop.eup %12489 }
0x16b7   :  { %v9739_v19 = vsel %vm4898_vm0, %v12490_v16, 0.0 }
0x16b8   :  { %9740 = vadd.xlane.f32.xlu0 %v9739_v19 }
0x1741   :  { %v9741_v53 = vpop.xlane.xlu0 %9740 }
0x1742   :  { %12491 = vlog2.f32 %v9741_v53 }
0x174f   :  { %v12492_v60 = vpop.eup %12491 }
0x1750   :  { %v9743_v46 = vmul.f32 0.6931472, %v12492_v60 }
0x1752   :  { %v9744_v48 = vadd.f32 %v9743_v46, %v9735_v26 }
0x1754   :  { %v9745_v18 = vsub.f32 %v9729_v58, %v9744_v48 }
0x1756   :  { %9747 = vst.msk [vmem:[#allocation2 + $0x1] sm:$0x1] %vm4898_vm0, %v9745_v18 }
0x1757   :  { %12504 = shalt.err (!%p12501_p4)
}
0x1758   :  { %s12522_s30 = smov 16   ;;  %s12523_s24 = smov 1  }
0x1759   :  { %9759 = dma.vmem_to_hbm [thread:$0]  %s9754_s17, 32, %s16206_s16, [#allocation3], %s12522_s30, %s12522_s30, %s12523_s24  }
0x175a   :  { %12513 = dma.done.wait [#allocation3], 32  }
0x175b   :  { %12514 = vsyncadd [#allocation3], 4294967264 }
0x175c   :  { %9763 = vsyncpa [#allocation3], 1 }

</bundles_post_ra>
